<compile_context>
chip_gen: v7x
topology: tpu7x:2x2x1
jax: 0.10.0
libtpu: 0.0.40
codegen_flags: <defaults>
</compile_context>

<pallas_src>
import functools

import jax
import jax.numpy as jnp
from jax.experimental import pallas as pl
from jax.experimental.pallas import tpu as pltpu

LEAKY_SLOPE = 0.01  # nn.LeakyReLU() default
BN_EPS = 1e-5


# ----------------------------- Pallas kernel ---------------------------------
def _conv_taps_kernel(x_ref, w_ref, b_ref, out_ref, *, offsets, m, act, res_offset):
    """Stride-1 'valid' conv as accumulated per-tap matmuls on flattened rows.

    x_ref   : (R, Cin)        bf16  padded, row-flattened image (one batch elem)
    w_ref   : (T, Cin, Cout)  bf16  per-tap weight (BN scale pre-folded)
    b_ref   : (1, Cout)       f32   bias (BN folded)
    out_ref : (M, Cout)             M = H_out * W_padded (junk cols sliced later)
    """
    acc = None
    for t, off in enumerate(offsets):
        xs = x_ref[pl.ds(off, m), :]                         # (m, Cin) bf16
        part = jnp.dot(xs, w_ref[t], preferred_element_type=jnp.float32)
        acc = part if acc is None else acc + part
    y = acc + b_ref[...]                                     # f32 epilogue
    if act:
        y = jnp.where(y >= 0, y, LEAKY_SLOPE * y)
    if res_offset is not None:
        # ResBlock skip: the residual is exactly the conv input at the center
        # tap offset -- no extra operand needed.
        y = y + x_ref[pl.ds(res_offset, m), :].astype(jnp.float32)
    out_ref[...] = y.astype(out_ref.dtype)


def conv_stride1_valid(x_flat, w_taps, bias, *, wq, h_out, w_out, kh, kw,
                       act, res_offset, out_dtype):
    """x_flat: (B, R, Cin) bf16; w_taps: (T, Cin, Cout) bf16; bias: (Cout,) f32."""
    B, R, cin = x_flat.shape
    T, _, cout = w_taps.shape
    assert T == kh * kw
    if res_offset is not None:
        assert cin == cout
    m = h_out * wq
    offsets = tuple(dy * wq + dx for dy in range(kh) for dx in range(kw))
    assert offsets[-1] + m <= R  # static in-bounds guarantee for every tap slice
    b2 = bias.reshape(1, cout).astype(jnp.float32)

    out = pl.pallas_call(
        functools.partial(_conv_taps_kernel, offsets=offsets, m=m, act=act,
                          res_offset=res_offset),
        out_shape=jax.ShapeDtypeStruct((B, m, cout), out_dtype),
        grid=(B,),
        in_specs=[
            pl.BlockSpec((None, R, cin), lambda b: (b, 0, 0)),
            pl.BlockSpec((T, cin, cout), lambda b: (0, 0, 0)),
            pl.BlockSpec((1, cout), lambda b: (0, 0)),
        ],
        out_specs=pl.BlockSpec((None, m, cout), lambda b: (b, 0, 0)),
        compiler_params=pltpu.CompilerParams(dimension_semantics=("parallel",)),
    )(x_flat, w_taps, b2)
    # (B, m, cout) -> (B, h_out, w_out, cout); drop the junk columns [w_out:wq).
    return out.reshape(B, h_out, wq, cout)[:, :, :w_out, :]


# ----------------------- wrapper-side layout helpers --------------------------
def _pad_flatten_3x3(x):
    """(B,H,W,C) -> row-flattened padded image for a 3x3 'same' conv."""
    B, H, W, C = x.shape
    # pad 1 all around for the conv + 1 extra zero row at the bottom so every
    # tap-shifted slice stays statically in-bounds.
    xp = jnp.pad(x, ((0, 0), (1, 2), (1, 1), (0, 0)))
    wq = W + 2
    return xp.reshape(B, (H + 3) * wq, C), wq, H, W


def _pad_s2d_flatten(x):
    """(B,H,W,C) -> space-to-depth of the pad-1 image, row-flattened.

    Turns the 4x4 stride-2 pad-1 conv into a 2x2 stride-1 'valid' conv over
    (H/2+1, W/2+1, 4*C)."""
    B, H, W, C = x.shape
    xp = jnp.pad(x, ((0, 0), (1, 1), (1, 1), (0, 0)))            # (B, H+2, W+2, C)
    hs, ws = (H + 2) // 2, (W + 2) // 2
    xs = xp.reshape(B, hs, 2, ws, 2, C)
    xs = xs.transpose(0, 1, 3, 2, 4, 5).reshape(B, hs, ws, 4 * C)  # (py,px,c) order
    xs = jnp.pad(xs, ((0, 0), (0, 1), (0, 0), (0, 0)))           # slack row
    return xs.reshape(B, (hs + 1) * ws, 4 * C), ws, H // 2, W // 2


def _taps_3x3(w, scale):
    """w: (3,3,cin,cout) [,scale (cout,)] -> (9, cin, cout) bf16, scale folded."""
    if scale is not None:
        w = w * scale
    return w.reshape(9, w.shape[2], w.shape[3]).astype(jnp.bfloat16)


def _taps_4x4_s2(w, scale):
    """w: (4,4,cin,cout) -> (4, 4*cin, cout) bf16, reordered for space-to-depth."""
    w = w * scale
    _, _, cin, cout = w.shape
    w = w.reshape(2, 2, 2, 2, cin, cout)       # (oy, py, ox, px, cin, cout)
    w = w.transpose(0, 2, 1, 3, 4, 5)          # (oy, ox, py, px, cin, cout)
    return w.reshape(4, 4 * cin, cout).astype(jnp.bfloat16)


# ------------------------------- parameters ----------------------------------
def _init_bn(key, c):
    k1, k2, k3, k4 = jax.random.split(key, 4)
    gamma = 1.0 + 0.1 * jax.random.normal(k1, (c,), jnp.float32)
    beta = 0.1 * jax.random.normal(k2, (c,), jnp.float32)
    mean = 0.1 * jax.random.normal(k3, (c,), jnp.float32)
    var = 1.0 + 0.1 * jax.random.uniform(k4, (c,), jnp.float32)
    scale = gamma / jnp.sqrt(var + BN_EPS)
    bias = beta - mean * scale
    return scale, bias


def _init_conv(key, kh, kw, cin, cout):
    # weight stored as [kh, kw, cin, cout]
    return 0.1 * jax.random.normal(key, (kh, kw, cin, cout), jnp.float32)


def init_params(key, n_channels, n_filters, n_layers, n_channels_latent):
    keys = jax.random.split(key, 4 + 4 * n_layers)
    ki = iter(keys)
    params = {}
    params["proj_w"] = _init_conv(next(ki), 3, 3, n_channels, n_filters)
    params["proj_scale"], params["proj_bias"] = _init_bn(next(ki), n_filters)
    layers = []
    for i in range(n_layers):
        f_in = n_filters << i
        f_out = n_filters << (i + 1)
        lp = {}
        lp["res_w"] = _init_conv(next(ki), 3, 3, f_in, f_in)
        lp["res_scale"], lp["res_bias"] = _init_bn(next(ki), f_in)
        lp["red_w"] = _init_conv(next(ki), 4, 4, f_in, f_out)
        lp["red_scale"], lp["red_bias"] = _init_bn(next(ki), f_out)
        layers.append(lp)
    params["layers"] = layers
    params["lat_w"] = _init_conv(next(ki), 3, 3, n_filters << n_layers,
                                 2 * n_channels_latent)
    params["lat_b"] = 0.1 * jax.random.normal(next(ki), (2 * n_channels_latent,),
                                              jnp.float32)
    return params


# ------------------------------- forward pass --------------------------------
def vae_encoder_forward(x_nchw, params, n_layers, n_channels_latent):
    x = jnp.transpose(x_nchw, (0, 2, 3, 1)).astype(jnp.bfloat16)  # NCHW -> NHWC

    def conv3x3(x, w_taps, bias, *, act, residual, out_dtype=jnp.bfloat16):
        xf, wq, h, w = _pad_flatten_3x3(x)
        res_off = wq + 1 if residual else None   # center tap offset
        return conv_stride1_valid(xf, w_taps, bias, wq=wq, h_out=h, w_out=w,
                                  kh=3, kw=3, act=act, res_offset=res_off,
                                  out_dtype=out_dtype)

    def conv4x4s2(x, w_taps, bias):
        xf, ws, ho, wo = _pad_s2d_flatten(x)
        return conv_stride1_valid(xf, w_taps, bias, wq=ws, h_out=ho, w_out=wo,
                                  kh=2, kw=2, act=True, res_offset=None,
                                  out_dtype=jnp.bfloat16)

    # CNNEncoder.project_layer: 3x3 conv (same) + BN + LeakyReLU
    x = conv3x3(x, _taps_3x3(params["proj_w"], params["proj_scale"]),
                params["proj_bias"], act=True, residual=False)

    for i in range(n_layers):
        lp = params["layers"][i]
        # ResBlock: LeakyReLU(BN(conv3x3(x))) + x   (skip fused via center tap)
        x = conv3x3(x, _taps_3x3(lp["res_w"], lp["res_scale"]), lp["res_bias"],
                    act=True, residual=True)
        # ReduceBlock: 4x4 s2 p1 conv + BN + LeakyReLU  (as 2x2 s1 conv on s2d)
        x = conv4x4s2(x, _taps_4x4_s2(lp["red_w"], lp["red_scale"]),
                      lp["red_bias"])

    # project_latent: 3x3 conv (same) with bias, no BN, no activation
    y = conv3x3(x, _taps_3x3(params["lat_w"], None), params["lat_b"],
                act=False, residual=False, out_dtype=jnp.float32)

    B, H, W, _ = y.shape
    y = jnp.transpose(y, (0, 3, 1, 2))                  # back to NCHW
    return y.reshape(B, 2, n_channels_latent, H, W)     # 'b (d e) w h -> b d e w h'


# ---------------------------------- main --------------------------------------
if __name__ == "__main__":
    n_channels, n_filters, n_layers, n_channels_latent = 4, 8, 2, 4
    B, H, W = 2, 16, 16

    key = jax.random.PRNGKey(0)
    k_params, k_x = jax.random.split(key)
    params = init_params(k_params, n_channels, n_filters, n_layers,
                         n_channels_latent)
    x = jax.random.normal(k_x, (B, n_channels, H, W), jnp.float32)

    fwd = jax.jit(functools.partial(vae_encoder_forward,
                                    n_layers=n_layers,
                                    n_channels_latent=n_channels_latent))
    out = fwd(x, params)
    jax.block_until_ready(out)

    expected = (B, 2, n_channels_latent, H >> n_layers, W >> n_layers)
    assert out.shape == expected, (out.shape, expected)
    assert bool(jnp.all(jnp.isfinite(out)))
    print("KERNEL_OK")
</pallas_src>

<mosaic_0001>
module attributes {stable_mosaic.version = 11 : i64} {
  func.func @_conv_taps_kernel(%arg0: i32, %arg1: memref<1x342x4xbf16, #tpu.memory_space<vmem>>, %arg2: memref<9x4x8xbf16, #tpu.memory_space<vmem>>, %arg3: memref<1x8xf32, #tpu.memory_space<vmem>>, %arg4: memref<1x288x8xbf16, #tpu.memory_space<vmem>>) attributes {dimension_semantics = [#tpu.dimension_semantics<parallel>], iteration_bounds = array<i64: 2>, scalar_prefetch = 0 : i64, scratch_operands = 0 : i64, tpu.core_type = #tpu.core_type<tc>, window_params = [{transform_indices = @transform_0, window_bounds = array<i64: 1, 342, 4>}, {pipeline_mode = #tpu.pipeline_mode<synchronous>, transform_indices = @transform_1, window_bounds = array<i64: 9, 4, 8>}, {pipeline_mode = #tpu.pipeline_mode<synchronous>, transform_indices = @transform_2, window_bounds = array<i64: 1, 8>}, {transform_indices = @transform_3, window_bounds = array<i64: 1, 288, 8>}]} {
    %c0 = arith.constant 0 : index
    %c0_0 = arith.constant 0 : index
    %c0_1 = arith.constant 0 : index
    %0 = vector.load %arg1[%c0, %c0_0, %c0_1] : memref<1x342x4xbf16, #tpu.memory_space<vmem>>, vector<1x288x4xbf16>
    %1 = vector.shape_cast %0 : vector<1x288x4xbf16> to vector<288x4xbf16>
    %c0_2 = arith.constant 0 : index
    %c0_3 = arith.constant 0 : index
    %c0_4 = arith.constant 0 : index
    %2 = vector.load %arg2[%c0_2, %c0_3, %c0_4] : memref<9x4x8xbf16, #tpu.memory_space<vmem>>, vector<1x4x8xbf16>
    %3 = vector.shape_cast %2 : vector<1x4x8xbf16> to vector<4x8xbf16>
    %cst = arith.constant dense<0.000000e+00> : vector<288x8xf32>
    %4 = tpu.matmul %1, %3, %cst {dimension_numbers = #tpu.dot_dimension_numbers<[1], [0], [0], [1], [0, 0, 1, 1], [], []>} : vector<288x4xbf16>, vector<4x8xbf16>, vector<288x8xf32> -> vector<288x8xf32>
    %c0_5 = arith.constant 0 : index
    %c1 = arith.constant 1 : index
    %c0_6 = arith.constant 0 : index
    %5 = vector.load %arg1[%c0_5, %c1, %c0_6] : memref<1x342x4xbf16, #tpu.memory_space<vmem>>, vector<1x288x4xbf16>
    %6 = vector.shape_cast %5 : vector<1x288x4xbf16> to vector<288x4xbf16>
    %c1_7 = arith.constant 1 : index
    %c0_8 = arith.constant 0 : index
    %c0_9 = arith.constant 0 : index
    %7 = vector.load %arg2[%c1_7, %c0_8, %c0_9] : memref<9x4x8xbf16, #tpu.memory_space<vmem>>, vector<1x4x8xbf16>
    %8 = vector.shape_cast %7 : vector<1x4x8xbf16> to vector<4x8xbf16>
    %cst_10 = arith.constant dense<0.000000e+00> : vector<288x8xf32>
    %9 = tpu.matmul %6, %8, %cst_10 {dimension_numbers = #tpu.dot_dimension_numbers<[1], [0], [0], [1], [0, 0, 1, 1], [], []>} : vector<288x4xbf16>, vector<4x8xbf16>, vector<288x8xf32> -> vector<288x8xf32>
    %10 = arith.addf %4, %9 : vector<288x8xf32>
    %c0_11 = arith.constant 0 : index
    %c2 = arith.constant 2 : index
    %c0_12 = arith.constant 0 : index
    %11 = vector.load %arg1[%c0_11, %c2, %c0_12] : memref<1x342x4xbf16, #tpu.memory_space<vmem>>, vector<1x288x4xbf16>
    %12 = vector.shape_cast %11 : vector<1x288x4xbf16> to vector<288x4xbf16>
    %c2_13 = arith.constant 2 : index
    %c0_14 = arith.constant 0 : index
    %c0_15 = arith.constant 0 : index
    %13 = vector.load %arg2[%c2_13, %c0_14, %c0_15] : memref<9x4x8xbf16, #tpu.memory_space<vmem>>, vector<1x4x8xbf16>
    %14 = vector.shape_cast %13 : vector<1x4x8xbf16> to vector<4x8xbf16>
    %cst_16 = arith.constant dense<0.000000e+00> : vector<288x8xf32>
    %15 = tpu.matmul %12, %14, %cst_16 {dimension_numbers = #tpu.dot_dimension_numbers<[1], [0], [0], [1], [0, 0, 1, 1], [], []>} : vector<288x4xbf16>, vector<4x8xbf16>, vector<288x8xf32> -> vector<288x8xf32>
    %16 = arith.addf %10, %15 : vector<288x8xf32>
    %c0_17 = arith.constant 0 : index
    %c18 = arith.constant 18 : index
    %c0_18 = arith.constant 0 : index
    %17 = vector.load %arg1[%c0_17, %c18, %c0_18] : memref<1x342x4xbf16, #tpu.memory_space<vmem>>, vector<1x288x4xbf16>
    %18 = vector.shape_cast %17 : vector<1x288x4xbf16> to vector<288x4xbf16>
    %c3 = arith.constant 3 : index
    %c0_19 = arith.constant 0 : index
    %c0_20 = arith.constant 0 : index
    %19 = vector.load %arg2[%c3, %c0_19, %c0_20] : memref<9x4x8xbf16, #tpu.memory_space<vmem>>, vector<1x4x8xbf16>
    %20 = vector.shape_cast %19 : vector<1x4x8xbf16> to vector<4x8xbf16>
    %cst_21 = arith.constant dense<0.000000e+00> : vector<288x8xf32>
    %21 = tpu.matmul %18, %20, %cst_21 {dimension_numbers = #tpu.dot_dimension_numbers<[1], [0], [0], [1], [0, 0, 1, 1], [], []>} : vector<288x4xbf16>, vector<4x8xbf16>, vector<288x8xf32> -> vector<288x8xf32>
    %22 = arith.addf %16, %21 : vector<288x8xf32>
    %c0_22 = arith.constant 0 : index
    %c19 = arith.constant 19 : index
    %c0_23 = arith.constant 0 : index
    %23 = vector.load %arg1[%c0_22, %c19, %c0_23] : memref<1x342x4xbf16, #tpu.memory_space<vmem>>, vector<1x288x4xbf16>
    %24 = vector.shape_cast %23 : vector<1x288x4xbf16> to vector<288x4xbf16>
    %c4 = arith.constant 4 : index
    %c0_24 = arith.constant 0 : index
    %c0_25 = arith.constant 0 : index
    %25 = vector.load %arg2[%c4, %c0_24, %c0_25] : memref<9x4x8xbf16, #tpu.memory_space<vmem>>, vector<1x4x8xbf16>
    %26 = vector.shape_cast %25 : vector<1x4x8xbf16> to vector<4x8xbf16>
    %cst_26 = arith.constant dense<0.000000e+00> : vector<288x8xf32>
    %27 = tpu.matmul %24, %26, %cst_26 {dimension_numbers = #tpu.dot_dimension_numbers<[1], [0], [0], [1], [0, 0, 1, 1], [], []>} : vector<288x4xbf16>, vector<4x8xbf16>, vector<288x8xf32> -> vector<288x8xf32>
    %28 = arith.addf %22, %27 : vector<288x8xf32>
    %c0_27 = arith.constant 0 : index
    %c20 = arith.constant 20 : index
    %c0_28 = arith.constant 0 : index
    %29 = vector.load %arg1[%c0_27, %c20, %c0_28] : memref<1x342x4xbf16, #tpu.memory_space<vmem>>, vector<1x288x4xbf16>
    %30 = vector.shape_cast %29 : vector<1x288x4xbf16> to vector<288x4xbf16>
    %c5 = arith.constant 5 : index
    %c0_29 = arith.constant 0 : index
    %c0_30 = arith.constant 0 : index
    %31 = vector.load %arg2[%c5, %c0_29, %c0_30] : memref<9x4x8xbf16, #tpu.memory_space<vmem>>, vector<1x4x8xbf16>
    %32 = vector.shape_cast %31 : vector<1x4x8xbf16> to vector<4x8xbf16>
    %cst_31 = arith.constant dense<0.000000e+00> : vector<288x8xf32>
    %33 = tpu.matmul %30, %32, %cst_31 {dimension_numbers = #tpu.dot_dimension_numbers<[1], [0], [0], [1], [0, 0, 1, 1], [], []>} : vector<288x4xbf16>, vector<4x8xbf16>, vector<288x8xf32> -> vector<288x8xf32>
    %34 = arith.addf %28, %33 : vector<288x8xf32>
    %c0_32 = arith.constant 0 : index
    %c36 = arith.constant 36 : index
    %c0_33 = arith.constant 0 : index
    %35 = vector.load %arg1[%c0_32, %c36, %c0_33] : memref<1x342x4xbf16, #tpu.memory_space<vmem>>, vector<1x288x4xbf16>
    %36 = vector.shape_cast %35 : vector<1x288x4xbf16> to vector<288x4xbf16>
    %c6 = arith.constant 6 : index
    %c0_34 = arith.constant 0 : index
    %c0_35 = arith.constant 0 : index
    %37 = vector.load %arg2[%c6, %c0_34, %c0_35] : memref<9x4x8xbf16, #tpu.memory_space<vmem>>, vector<1x4x8xbf16>
    %38 = vector.shape_cast %37 : vector<1x4x8xbf16> to vector<4x8xbf16>
    %cst_36 = arith.constant dense<0.000000e+00> : vector<288x8xf32>
    %39 = tpu.matmul %36, %38, %cst_36 {dimension_numbers = #tpu.dot_dimension_numbers<[1], [0], [0], [1], [0, 0, 1, 1], [], []>} : vector<288x4xbf16>, vector<4x8xbf16>, vector<288x8xf32> -> vector<288x8xf32>
    %40 = arith.addf %34, %39 : vector<288x8xf32>
    %c0_37 = arith.constant 0 : index
    %c37 = arith.constant 37 : index
    %c0_38 = arith.constant 0 : index
    %41 = vector.load %arg1[%c0_37, %c37, %c0_38] : memref<1x342x4xbf16, #tpu.memory_space<vmem>>, vector<1x288x4xbf16>
    %42 = vector.shape_cast %41 : vector<1x288x4xbf16> to vector<288x4xbf16>
    %c7 = arith.constant 7 : index
    %c0_39 = arith.constant 0 : index
    %c0_40 = arith.constant 0 : index
    %43 = vector.load %arg2[%c7, %c0_39, %c0_40] : memref<9x4x8xbf16, #tpu.memory_space<vmem>>, vector<1x4x8xbf16>
    %44 = vector.shape_cast %43 : vector<1x4x8xbf16> to vector<4x8xbf16>
    %cst_41 = arith.constant dense<0.000000e+00> : vector<288x8xf32>
    %45 = tpu.matmul %42, %44, %cst_41 {dimension_numbers = #tpu.dot_dimension_numbers<[1], [0], [0], [1], [0, 0, 1, 1], [], []>} : vector<288x4xbf16>, vector<4x8xbf16>, vector<288x8xf32> -> vector<288x8xf32>
    %46 = arith.addf %40, %45 : vector<288x8xf32>
    %c0_42 = arith.constant 0 : index
    %c38 = arith.constant 38 : index
    %c0_43 = arith.constant 0 : index
    %47 = vector.load %arg1[%c0_42, %c38, %c0_43] : memref<1x342x4xbf16, #tpu.memory_space<vmem>>, vector<1x288x4xbf16>
    %48 = vector.shape_cast %47 : vector<1x288x4xbf16> to vector<288x4xbf16>
    %c8 = arith.constant 8 : index
    %c0_44 = arith.constant 0 : index
    %c0_45 = arith.constant 0 : index
    %49 = vector.load %arg2[%c8, %c0_44, %c0_45] : memref<9x4x8xbf16, #tpu.memory_space<vmem>>, vector<1x4x8xbf16>
    %50 = vector.shape_cast %49 : vector<1x4x8xbf16> to vector<4x8xbf16>
    %cst_46 = arith.constant dense<0.000000e+00> : vector<288x8xf32>
    %51 = tpu.matmul %48, %50, %cst_46 {dimension_numbers = #tpu.dot_dimension_numbers<[1], [0], [0], [1], [0, 0, 1, 1], [], []>} : vector<288x4xbf16>, vector<4x8xbf16>, vector<288x8xf32> -> vector<288x8xf32>
    %52 = arith.addf %46, %51 : vector<288x8xf32>
    %c0_47 = arith.constant 0 : index
    %c0_48 = arith.constant 0 : index
    %53 = vector.load %arg3[%c0_47, %c0_48] : memref<1x8xf32, #tpu.memory_space<vmem>>, vector<1x8xf32>
    %54 = vector.broadcast %53 : vector<1x8xf32> to vector<288x8xf32>
    %55 = arith.addf %52, %54 : vector<288x8xf32>
    %cst_49 = arith.constant 0.000000e+00 : f32
    %56 = vector.broadcast %cst_49 : f32 to vector<288x8xf32>
    %57 = arith.cmpf oge, %55, %56 : vector<288x8xf32>
    %cst_50 = arith.constant 0.00999999977 : f32
    %58 = vector.broadcast %cst_50 : f32 to vector<288x8xf32>
    %59 = arith.mulf %58, %55 : vector<288x8xf32>
    %60 = arith.select %57, %55, %59 : vector<288x8xi1>, vector<288x8xf32>
    %61 = arith.truncf %60 : vector<288x8xf32> to vector<288x8xbf16>
    %c0_51 = arith.constant 0 : index
    %c0_52 = arith.constant 0 : index
    %c0_53 = arith.constant 0 : index
    %62 = vector.load %arg4[%c0_51, %c0_52, %c0_53] : memref<1x288x8xbf16, #tpu.memory_space<vmem>>, vector<1x288x8xbf16>
    %63 = vector.shape_cast %62 : vector<1x288x8xbf16> to vector<288x8xbf16>
    %64 = vector.shape_cast %61 : vector<288x8xbf16> to vector<1x288x8xbf16>
    tpu.vector_store %arg4[%c0_51, %c0_52, %c0_53], %64 {strides = array<i32>} : memref<1x288x8xbf16, #tpu.memory_space<vmem>>, vector<1x288x8xbf16>,
    return
  }
  func.func @transform_0(%arg0: i32) -> (i32, i32, i32) {
    %c0_i32 = arith.constant 0 : i32
    %c0_i32_0 = arith.constant 0 : i32
    %c0_i32_1 = arith.constant 0 : i32
    return %arg0, %c0_i32, %c0_i32_0 : i32, i32, i32
  }
  func.func @transform_1(%arg0: i32) -> (i32, i32, i32) {
    %c0_i32 = arith.constant 0 : i32
    %c0_i32_0 = arith.constant 0 : i32
    %c0_i32_1 = arith.constant 0 : i32
    %c0_i32_2 = arith.constant 0 : i32
    return %c0_i32, %c0_i32_0, %c0_i32_1 : i32, i32, i32
  }
  func.func @transform_2(%arg0: i32) -> (i32, i32) {
    %c0_i32 = arith.constant 0 : i32
    %c0_i32_0 = arith.constant 0 : i32
    %c0_i32_1 = arith.constant 0 : i32
    return %c0_i32, %c0_i32_0 : i32, i32
  }
  func.func @transform_3(%arg0: i32) -> (i32, i32, i32) {
    %c0_i32 = arith.constant 0 : i32
    %c0_i32_0 = arith.constant 0 : i32
    %c0_i32_1 = arith.constant 0 : i32
    return %arg0, %c0_i32, %c0_i32_0 : i32, i32, i32
  }
}

module attributes {stable_mosaic.version = 11 : i64} {
  func.func @_conv_taps_kernel(%arg0: i32, %arg1: memref<1x342x8xbf16, #tpu.memory_space<vmem>>, %arg2: memref<9x8x8xbf16, #tpu.memory_space<vmem>>, %arg3: memref<1x8xf32, #tpu.memory_space<vmem>>, %arg4: memref<1x288x8xbf16, #tpu.memory_space<vmem>>) attributes {dimension_semantics = [#tpu.dimension_semantics<parallel>], iteration_bounds = array<i64: 2>, scalar_prefetch = 0 : i64, scratch_operands = 0 : i64, tpu.core_type = #tpu.core_type<tc>, window_params = [{transform_indices = @transform_0, window_bounds = array<i64: 1, 342, 8>}, {pipeline_mode = #tpu.pipeline_mode<synchronous>, transform_indices = @transform_1, window_bounds = array<i64: 9, 8, 8>}, {pipeline_mode = #tpu.pipeline_mode<synchronous>, transform_indices = @transform_2, window_bounds = array<i64: 1, 8>}, {transform_indices = @transform_3, window_bounds = array<i64: 1, 288, 8>}]} {
    %c0 = arith.constant 0 : index
    %c0_0 = arith.constant 0 : index
    %c0_1 = arith.constant 0 : index
    %0 = vector.load %arg1[%c0, %c0_0, %c0_1] : memref<1x342x8xbf16, #tpu.memory_space<vmem>>, vector<1x288x8xbf16>
    %1 = vector.shape_cast %0 : vector<1x288x8xbf16> to vector<288x8xbf16>
    %c0_2 = arith.constant 0 : index
    %c0_3 = arith.constant 0 : index
    %c0_4 = arith.constant 0 : index
    %2 = vector.load %arg2[%c0_2, %c0_3, %c0_4] : memref<9x8x8xbf16, #tpu.memory_space<vmem>>, vector<1x8x8xbf16>
    %3 = vector.shape_cast %2 : vector<1x8x8xbf16> to vector<8x8xbf16>
    %cst = arith.constant dense<0.000000e+00> : vector<288x8xf32>
    %4 = tpu.matmul %1, %3, %cst {dimension_numbers = #tpu.dot_dimension_numbers<[1], [0], [0], [1], [0, 0, 1, 1], [], []>} : vector<288x8xbf16>, vector<8x8xbf16>, vector<288x8xf32> -> vector<288x8xf32>
    %c0_5 = arith.constant 0 : index
    %c1 = arith.constant 1 : index
    %c0_6 = arith.constant 0 : index
    %5 = vector.load %arg1[%c0_5, %c1, %c0_6] : memref<1x342x8xbf16, #tpu.memory_space<vmem>>, vector<1x288x8xbf16>
    %6 = vector.shape_cast %5 : vector<1x288x8xbf16> to vector<288x8xbf16>
    %c1_7 = arith.constant 1 : index
    %c0_8 = arith.constant 0 : index
    %c0_9 = arith.constant 0 : index
    %7 = vector.load %arg2[%c1_7, %c0_8, %c0_9] : memref<9x8x8xbf16, #tpu.memory_space<vmem>>, vector<1x8x8xbf16>
    %8 = vector.shape_cast %7 : vector<1x8x8xbf16> to vector<8x8xbf16>
    %cst_10 = arith.constant dense<0.000000e+00> : vector<288x8xf32>
    %9 = tpu.matmul %6, %8, %cst_10 {dimension_numbers = #tpu.dot_dimension_numbers<[1], [0], [0], [1], [0, 0, 1, 1], [], []>} : vector<288x8xbf16>, vector<8x8xbf16>, vector<288x8xf32> -> vector<288x8xf32>
    %10 = arith.addf %4, %9 : vector<288x8xf32>
    %c0_11 = arith.constant 0 : index
    %c2 = arith.constant 2 : index
    %c0_12 = arith.constant 0 : index
    %11 = vector.load %arg1[%c0_11, %c2, %c0_12] : memref<1x342x8xbf16, #tpu.memory_space<vmem>>, vector<1x288x8xbf16>
    %12 = vector.shape_cast %11 : vector<1x288x8xbf16> to vector<288x8xbf16>
    %c2_13 = arith.constant 2 : index
    %c0_14 = arith.constant 0 : index
    %c0_15 = arith.constant 0 : index
    %13 = vector.load %arg2[%c2_13, %c0_14, %c0_15] : memref<9x8x8xbf16, #tpu.memory_space<vmem>>, vector<1x8x8xbf16>
    %14 = vector.shape_cast %13 : vector<1x8x8xbf16> to vector<8x8xbf16>
    %cst_16 = arith.constant dense<0.000000e+00> : vector<288x8xf32>
    %15 = tpu.matmul %12, %14, %cst_16 {dimension_numbers = #tpu.dot_dimension_numbers<[1], [0], [0], [1], [0, 0, 1, 1], [], []>} : vector<288x8xbf16>, vector<8x8xbf16>, vector<288x8xf32> -> vector<288x8xf32>
    %16 = arith.addf %10, %15 : vector<288x8xf32>
    %c0_17 = arith.constant 0 : index
    %c18 = arith.constant 18 : index
    %c0_18 = arith.constant 0 : index
    %17 = vector.load %arg1[%c0_17, %c18, %c0_18] : memref<1x342x8xbf16, #tpu.memory_space<vmem>>, vector<1x288x8xbf16>
    %18 = vector.shape_cast %17 : vector<1x288x8xbf16> to vector<288x8xbf16>
    %c3 = arith.constant 3 : index
    %c0_19 = arith.constant 0 : index
    %c0_20 = arith.constant 0 : index
    %19 = vector.load %arg2[%c3, %c0_19, %c0_20] : memref<9x8x8xbf16, #tpu.memory_space<vmem>>, vector<1x8x8xbf16>
    %20 = vector.shape_cast %19 : vector<1x8x8xbf16> to vector<8x8xbf16>
    %cst_21 = arith.constant dense<0.000000e+00> : vector<288x8xf32>
    %21 = tpu.matmul %18, %20, %cst_21 {dimension_numbers = #tpu.dot_dimension_numbers<[1], [0], [0], [1], [0, 0, 1, 1], [], []>} : vector<288x8xbf16>, vector<8x8xbf16>, vector<288x8xf32> -> vector<288x8xf32>
    %22 = arith.addf %16, %21 : vector<288x8xf32>
    %c0_22 = arith.constant 0 : index
    %c19 = arith.constant 19 : index
    %c0_23 = arith.constant 0 : index
    %23 = vector.load %arg1[%c0_22, %c19, %c0_23] : memref<1x342x8xbf16, #tpu.memory_space<vmem>>, vector<1x288x8xbf16>
    %24 = vector.shape_cast %23 : vector<1x288x8xbf16> to vector<288x8xbf16>
    %c4 = arith.constant 4 : index
    %c0_24 = arith.constant 0 : index
    %c0_25 = arith.constant 0 : index
    %25 = vector.load %arg2[%c4, %c0_24, %c0_25] : memref<9x8x8xbf16, #tpu.memory_space<vmem>>, vector<1x8x8xbf16>
    %26 = vector.shape_cast %25 : vector<1x8x8xbf16> to vector<8x8xbf16>
    %cst_26 = arith.constant dense<0.000000e+00> : vector<288x8xf32>
    %27 = tpu.matmul %24, %26, %cst_26 {dimension_numbers = #tpu.dot_dimension_numbers<[1], [0], [0], [1], [0, 0, 1, 1], [], []>} : vector<288x8xbf16>, vector<8x8xbf16>, vector<288x8xf32> -> vector<288x8xf32>
    %28 = arith.addf %22, %27 : vector<288x8xf32>
    %c0_27 = arith.constant 0 : index
    %c20 = arith.constant 20 : index
    %c0_28 = arith.constant 0 : index
    %29 = vector.load %arg1[%c0_27, %c20, %c0_28] : memref<1x342x8xbf16, #tpu.memory_space<vmem>>, vector<1x288x8xbf16>
    %30 = vector.shape_cast %29 : vector<1x288x8xbf16> to vector<288x8xbf16>
    %c5 = arith.constant 5 : index
    %c0_29 = arith.constant 0 : index
    %c0_30 = arith.constant 0 : index
    %31 = vector.load %arg2[%c5, %c0_29, %c0_30] : memref<9x8x8xbf16, #tpu.memory_space<vmem>>, vector<1x8x8xbf16>
    %32 = vector.shape_cast %31 : vector<1x8x8xbf16> to vector<8x8xbf16>
    %cst_31 = arith.constant dense<0.000000e+00> : vector<288x8xf32>
    %33 = tpu.matmul %30, %32, %cst_31 {dimension_numbers = #tpu.dot_dimension_numbers<[1], [0], [0], [1], [0, 0, 1, 1], [], []>} : vector<288x8xbf16>, vector<8x8xbf16>, vector<288x8xf32> -> vector<288x8xf32>
    %34 = arith.addf %28, %33 : vector<288x8xf32>
    %c0_32 = arith.constant 0 : index
    %c36 = arith.constant 36 : index
    %c0_33 = arith.constant 0 : index
    %35 = vector.load %arg1[%c0_32, %c36, %c0_33] : memref<1x342x8xbf16, #tpu.memory_space<vmem>>, vector<1x288x8xbf16>
    %36 = vector.shape_cast %35 : vector<1x288x8xbf16> to vector<288x8xbf16>
    %c6 = arith.constant 6 : index
    %c0_34 = arith.constant 0 : index
    %c0_35 = arith.constant 0 : index
    %37 = vector.load %arg2[%c6, %c0_34, %c0_35] : memref<9x8x8xbf16, #tpu.memory_space<vmem>>, vector<1x8x8xbf16>
    %38 = vector.shape_cast %37 : vector<1x8x8xbf16> to vector<8x8xbf16>
    %cst_36 = arith.constant dense<0.000000e+00> : vector<288x8xf32>
    %39 = tpu.matmul %36, %38, %cst_36 {dimension_numbers = #tpu.dot_dimension_numbers<[1], [0], [0], [1], [0, 0, 1, 1], [], []>} : vector<288x8xbf16>, vector<8x8xbf16>, vector<288x8xf32> -> vector<288x8xf32>
    %40 = arith.addf %34, %39 : vector<288x8xf32>
    %c0_37 = arith.constant 0 : index
    %c37 = arith.constant 37 : index
    %c0_38 = arith.constant 0 : index
    %41 = vector.load %arg1[%c0_37, %c37, %c0_38] : memref<1x342x8xbf16, #tpu.memory_space<vmem>>, vector<1x288x8xbf16>
    %42 = vector.shape_cast %41 : vector<1x288x8xbf16> to vector<288x8xbf16>
    %c7 = arith.constant 7 : index
    %c0_39 = arith.constant 0 : index
    %c0_40 = arith.constant 0 : index
    %43 = vector.load %arg2[%c7, %c0_39, %c0_40] : memref<9x8x8xbf16, #tpu.memory_space<vmem>>, vector<1x8x8xbf16>
    %44 = vector.shape_cast %43 : vector<1x8x8xbf16> to vector<8x8xbf16>
    %cst_41 = arith.constant dense<0.000000e+00> : vector<288x8xf32>
    %45 = tpu.matmul %42, %44, %cst_41 {dimension_numbers = #tpu.dot_dimension_numbers<[1], [0], [0], [1], [0, 0, 1, 1], [], []>} : vector<288x8xbf16>, vector<8x8xbf16>, vector<288x8xf32> -> vector<288x8xf32>
    %46 = arith.addf %40, %45 : vector<288x8xf32>
    %c0_42 = arith.constant 0 : index
    %c38 = arith.constant 38 : index
    %c0_43 = arith.constant 0 : index
    %47 = vector.load %arg1[%c0_42, %c38, %c0_43] : memref<1x342x8xbf16, #tpu.memory_space<vmem>>, vector<1x288x8xbf16>
    %48 = vector.shape_cast %47 : vector<1x288x8xbf16> to vector<288x8xbf16>
    %c8 = arith.constant 8 : index
    %c0_44 = arith.constant 0 : index
    %c0_45 = arith.constant 0 : index
    %49 = vector.load %arg2[%c8, %c0_44, %c0_45] : memref<9x8x8xbf16, #tpu.memory_space<vmem>>, vector<1x8x8xbf16>
    %50 = vector.shape_cast %49 : vector<1x8x8xbf16> to vector<8x8xbf16>
    %cst_46 = arith.constant dense<0.000000e+00> : vector<288x8xf32>
    %51 = tpu.matmul %48, %50, %cst_46 {dimension_numbers = #tpu.dot_dimension_numbers<[1], [0], [0], [1], [0, 0, 1, 1], [], []>} : vector<288x8xbf16>, vector<8x8xbf16>, vector<288x8xf32> -> vector<288x8xf32>
    %52 = arith.addf %46, %51 : vector<288x8xf32>
    %c0_47 = arith.constant 0 : index
    %c0_48 = arith.constant 0 : index
    %53 = vector.load %arg3[%c0_47, %c0_48] : memref<1x8xf32, #tpu.memory_space<vmem>>, vector<1x8xf32>
    %54 = vector.broadcast %53 : vector<1x8xf32> to vector<288x8xf32>
    %55 = arith.addf %52, %54 : vector<288x8xf32>
    %cst_49 = arith.constant 0.000000e+00 : f32
    %56 = vector.broadcast %cst_49 : f32 to vector<288x8xf32>
    %57 = arith.cmpf oge, %55, %56 : vector<288x8xf32>
    %cst_50 = arith.constant 0.00999999977 : f32
    %58 = vector.broadcast %cst_50 : f32 to vector<288x8xf32>
    %59 = arith.mulf %58, %55 : vector<288x8xf32>
    %60 = arith.select %57, %55, %59 : vector<288x8xi1>, vector<288x8xf32>
    %c0_51 = arith.constant 0 : index
    %c19_52 = arith.constant 19 : index
    %c0_53 = arith.constant 0 : index
    %61 = vector.load %arg1[%c0_51, %c19_52, %c0_53] : memref<1x342x8xbf16, #tpu.memory_space<vmem>>, vector<1x288x8xbf16>
    %62 = vector.shape_cast %61 : vector<1x288x8xbf16> to vector<288x8xbf16>
    %63 = arith.extf %62 : vector<288x8xbf16> to vector<288x8xf32>
    %64 = arith.addf %60, %63 : vector<288x8xf32>
    %65 = arith.truncf %64 : vector<288x8xf32> to vector<288x8xbf16>
    %c0_54 = arith.constant 0 : index
    %c0_55 = arith.constant 0 : index
    %c0_56 = arith.constant 0 : index
    %66 = vector.load %arg4[%c0_54, %c0_55, %c0_56] : memref<1x288x8xbf16, #tpu.memory_space<vmem>>, vector<1x288x8xbf16>
    %67 = vector.shape_cast %66 : vector<1x288x8xbf16> to vector<288x8xbf16>
    %68 = vector.shape_cast %65 : vector<288x8xbf16> to vector<1x288x8xbf16>
    tpu.vector_store %arg4[%c0_54, %c0_55, %c0_56], %68 {strides = array<i32>} : memref<1x288x8xbf16, #tpu.memory_space<vmem>>, vector<1x288x8xbf16>,
    return
  }
  func.func @transform_0(%arg0: i32) -> (i32, i32, i32) {
    %c0_i32 = arith.constant 0 : i32
    %c0_i32_0 = arith.constant 0 : i32
    %c0_i32_1 = arith.constant 0 : i32
    return %arg0, %c0_i32, %c0_i32_0 : i32, i32, i32
  }
  func.func @transform_1(%arg0: i32) -> (i32, i32, i32) {
    %c0_i32 = arith.constant 0 : i32
    %c0_i32_0 = arith.constant 0 : i32
    %c0_i32_1 = arith.constant 0 : i32
    %c0_i32_2 = arith.constant 0 : i32
    return %c0_i32, %c0_i32_0, %c0_i32_1 : i32, i32, i32
  }
  func.func @transform_2(%arg0: i32) -> (i32, i32) {
    %c0_i32 = arith.constant 0 : i32
    %c0_i32_0 = arith.constant 0 : i32
    %c0_i32_1 = arith.constant 0 : i32
    return %c0_i32, %c0_i32_0 : i32, i32
  }
  func.func @transform_3(%arg0: i32) -> (i32, i32, i32) {
    %c0_i32 = arith.constant 0 : i32
    %c0_i32_0 = arith.constant 0 : i32
    %c0_i32_1 = arith.constant 0 : i32
    return %arg0, %c0_i32, %c0_i32_0 : i32, i32, i32
  }
}

module attributes {stable_mosaic.version = 11 : i64} {
  func.func @_conv_taps_kernel(%arg0: i32, %arg1: memref<1x90x32xbf16, #tpu.memory_space<vmem>>, %arg2: memref<4x32x16xbf16, #tpu.memory_space<vmem>>, %arg3: memref<1x16xf32, #tpu.memory_space<vmem>>, %arg4: memref<1x72x16xbf16, #tpu.memory_space<vmem>>) attributes {dimension_semantics = [#tpu.dimension_semantics<parallel>], iteration_bounds = array<i64: 2>, scalar_prefetch = 0 : i64, scratch_operands = 0 : i64, tpu.core_type = #tpu.core_type<tc>, window_params = [{transform_indices = @transform_0, window_bounds = array<i64: 1, 90, 32>}, {pipeline_mode = #tpu.pipeline_mode<synchronous>, transform_indices = @transform_1, window_bounds = array<i64: 4, 32, 16>}, {pipeline_mode = #tpu.pipeline_mode<synchronous>, transform_indices = @transform_2, window_bounds = array<i64: 1, 16>}, {transform_indices = @transform_3, window_bounds = array<i64: 1, 72, 16>}]} {
    %c0 = arith.constant 0 : index
    %c0_0 = arith.constant 0 : index
    %c0_1 = arith.constant 0 : index
    %0 = vector.load %arg1[%c0, %c0_0, %c0_1] : memref<1x90x32xbf16, #tpu.memory_space<vmem>>, vector<1x72x32xbf16>
    %1 = vector.shape_cast %0 : vector<1x72x32xbf16> to vector<72x32xbf16>
    %c0_2 = arith.constant 0 : index
    %c0_3 = arith.constant 0 : index
    %c0_4 = arith.constant 0 : index
    %2 = vector.load %arg2[%c0_2, %c0_3, %c0_4] : memref<4x32x16xbf16, #tpu.memory_space<vmem>>, vector<1x32x16xbf16>
    %3 = vector.shape_cast %2 : vector<1x32x16xbf16> to vector<32x16xbf16>
    %cst = arith.constant dense<0.000000e+00> : vector<72x16xf32>
    %4 = tpu.matmul %1, %3, %cst {dimension_numbers = #tpu.dot_dimension_numbers<[1], [0], [0], [1], [0, 0, 1, 1], [], []>} : vector<72x32xbf16>, vector<32x16xbf16>, vector<72x16xf32> -> vector<72x16xf32>
    %c0_5 = arith.constant 0 : index
    %c1 = arith.constant 1 : index
    %c0_6 = arith.constant 0 : index
    %5 = vector.load %arg1[%c0_5, %c1, %c0_6] : memref<1x90x32xbf16, #tpu.memory_space<vmem>>, vector<1x72x32xbf16>
    %6 = vector.shape_cast %5 : vector<1x72x32xbf16> to vector<72x32xbf16>
    %c1_7 = arith.constant 1 : index
    %c0_8 = arith.constant 0 : index
    %c0_9 = arith.constant 0 : index
    %7 = vector.load %arg2[%c1_7, %c0_8, %c0_9] : memref<4x32x16xbf16, #tpu.memory_space<vmem>>, vector<1x32x16xbf16>
    %8 = vector.shape_cast %7 : vector<1x32x16xbf16> to vector<32x16xbf16>
    %cst_10 = arith.constant dense<0.000000e+00> : vector<72x16xf32>
    %9 = tpu.matmul %6, %8, %cst_10 {dimension_numbers = #tpu.dot_dimension_numbers<[1], [0], [0], [1], [0, 0, 1, 1], [], []>} : vector<72x32xbf16>, vector<32x16xbf16>, vector<72x16xf32> -> vector<72x16xf32>
    %10 = arith.addf %4, %9 : vector<72x16xf32>
    %c0_11 = arith.constant 0 : index
    %c9 = arith.constant 9 : index
    %c0_12 = arith.constant 0 : index
    %11 = vector.load %arg1[%c0_11, %c9, %c0_12] : memref<1x90x32xbf16, #tpu.memory_space<vmem>>, vector<1x72x32xbf16>
    %12 = vector.shape_cast %11 : vector<1x72x32xbf16> to vector<72x32xbf16>
    %c2 = arith.constant 2 : index
    %c0_13 = arith.constant 0 : index
    %c0_14 = arith.constant 0 : index
    %13 = vector.load %arg2[%c2, %c0_13, %c0_14] : memref<4x32x16xbf16, #tpu.memory_space<vmem>>, vector<1x32x16xbf16>
    %14 = vector.shape_cast %13 : vector<1x32x16xbf16> to vector<32x16xbf16>
    %cst_15 = arith.constant dense<0.000000e+00> : vector<72x16xf32>
    %15 = tpu.matmul %12, %14, %cst_15 {dimension_numbers = #tpu.dot_dimension_numbers<[1], [0], [0], [1], [0, 0, 1, 1], [], []>} : vector<72x32xbf16>, vector<32x16xbf16>, vector<72x16xf32> -> vector<72x16xf32>
    %16 = arith.addf %10, %15 : vector<72x16xf32>
    %c0_16 = arith.constant 0 : index
    %c10 = arith.constant 10 : index
    %c0_17 = arith.constant 0 : index
    %17 = vector.load %arg1[%c0_16, %c10, %c0_17] : memref<1x90x32xbf16, #tpu.memory_space<vmem>>, vector<1x72x32xbf16>
    %18 = vector.shape_cast %17 : vector<1x72x32xbf16> to vector<72x32xbf16>
    %c3 = arith.constant 3 : index
    %c0_18 = arith.constant 0 : index
    %c0_19 = arith.constant 0 : index
    %19 = vector.load %arg2[%c3, %c0_18, %c0_19] : memref<4x32x16xbf16, #tpu.memory_space<vmem>>, vector<1x32x16xbf16>
    %20 = vector.shape_cast %19 : vector<1x32x16xbf16> to vector<32x16xbf16>
    %cst_20 = arith.constant dense<0.000000e+00> : vector<72x16xf32>
    %21 = tpu.matmul %18, %20, %cst_20 {dimension_numbers = #tpu.dot_dimension_numbers<[1], [0], [0], [1], [0, 0, 1, 1], [], []>} : vector<72x32xbf16>, vector<32x16xbf16>, vector<72x16xf32> -> vector<72x16xf32>
    %22 = arith.addf %16, %21 : vector<72x16xf32>
    %c0_21 = arith.constant 0 : index
    %c0_22 = arith.constant 0 : index
    %23 = vector.load %arg3[%c0_21, %c0_22] : memref<1x16xf32, #tpu.memory_space<vmem>>, vector<1x16xf32>
    %24 = vector.broadcast %23 : vector<1x16xf32> to vector<72x16xf32>
    %25 = arith.addf %22, %24 : vector<72x16xf32>
    %cst_23 = arith.constant 0.000000e+00 : f32
    %26 = vector.broadcast %cst_23 : f32 to vector<72x16xf32>
    %27 = arith.cmpf oge, %25, %26 : vector<72x16xf32>
    %cst_24 = arith.constant 0.00999999977 : f32
    %28 = vector.broadcast %cst_24 : f32 to vector<72x16xf32>
    %29 = arith.mulf %28, %25 : vector<72x16xf32>
    %30 = arith.select %27, %25, %29 : vector<72x16xi1>, vector<72x16xf32>
    %31 = arith.truncf %30 : vector<72x16xf32> to vector<72x16xbf16>
    %c0_25 = arith.constant 0 : index
    %c0_26 = arith.constant 0 : index
    %c0_27 = arith.constant 0 : index
    %32 = vector.load %arg4[%c0_25, %c0_26, %c0_27] : memref<1x72x16xbf16, #tpu.memory_space<vmem>>, vector<1x72x16xbf16>
    %33 = vector.shape_cast %32 : vector<1x72x16xbf16> to vector<72x16xbf16>
    %34 = vector.shape_cast %31 : vector<72x16xbf16> to vector<1x72x16xbf16>
    tpu.vector_store %arg4[%c0_25, %c0_26, %c0_27], %34 {strides = array<i32>} : memref<1x72x16xbf16, #tpu.memory_space<vmem>>, vector<1x72x16xbf16>,
    return
  }
  func.func @transform_0(%arg0: i32) -> (i32, i32, i32) {
    %c0_i32 = arith.constant 0 : i32
    %c0_i32_0 = arith.constant 0 : i32
    %c0_i32_1 = arith.constant 0 : i32
    return %arg0, %c0_i32, %c0_i32_0 : i32, i32, i32
  }
  func.func @transform_1(%arg0: i32) -> (i32, i32, i32) {
    %c0_i32 = arith.constant 0 : i32
    %c0_i32_0 = arith.constant 0 : i32
    %c0_i32_1 = arith.constant 0 : i32
    %c0_i32_2 = arith.constant 0 : i32
    return %c0_i32, %c0_i32_0, %c0_i32_1 : i32, i32, i32
  }
  func.func @transform_2(%arg0: i32) -> (i32, i32) {
    %c0_i32 = arith.constant 0 : i32
    %c0_i32_0 = arith.constant 0 : i32
    %c0_i32_1 = arith.constant 0 : i32
    return %c0_i32, %c0_i32_0 : i32, i32
  }
  func.func @transform_3(%arg0: i32) -> (i32, i32, i32) {
    %c0_i32 = arith.constant 0 : i32
    %c0_i32_0 = arith.constant 0 : i32
    %c0_i32_1 = arith.constant 0 : i32
    return %arg0, %c0_i32, %c0_i32_0 : i32, i32, i32
  }
}

module attributes {stable_mosaic.version = 11 : i64} {
  func.func @_conv_taps_kernel(%arg0: i32, %arg1: memref<1x110x16xbf16, #tpu.memory_space<vmem>>, %arg2: memref<9x16x16xbf16, #tpu.memory_space<vmem>>, %arg3: memref<1x16xf32, #tpu.memory_space<vmem>>, %arg4: memref<1x80x16xbf16, #tpu.memory_space<vmem>>) attributes {dimension_semantics = [#tpu.dimension_semantics<parallel>], iteration_bounds = array<i64: 2>, scalar_prefetch = 0 : i64, scratch_operands = 0 : i64, tpu.core_type = #tpu.core_type<tc>, window_params = [{transform_indices = @transform_0, window_bounds = array<i64: 1, 110, 16>}, {pipeline_mode = #tpu.pipeline_mode<synchronous>, transform_indices = @transform_1, window_bounds = array<i64: 9, 16, 16>}, {pipeline_mode = #tpu.pipeline_mode<synchronous>, transform_indices = @transform_2, window_bounds = array<i64: 1, 16>}, {transform_indices = @transform_3, window_bounds = array<i64: 1, 80, 16>}]} {
    %c0 = arith.constant 0 : index
    %c0_0 = arith.constant 0 : index
    %c0_1 = arith.constant 0 : index
    %0 = vector.load %arg1[%c0, %c0_0, %c0_1] : memref<1x110x16xbf16, #tpu.memory_space<vmem>>, vector<1x80x16xbf16>
    %1 = vector.shape_cast %0 : vector<1x80x16xbf16> to vector<80x16xbf16>
    %c0_2 = arith.constant 0 : index
    %c0_3 = arith.constant 0 : index
    %c0_4 = arith.constant 0 : index
    %2 = vector.load %arg2[%c0_2, %c0_3, %c0_4] : memref<9x16x16xbf16, #tpu.memory_space<vmem>>, vector<1x16x16xbf16>
    %3 = vector.shape_cast %2 : vector<1x16x16xbf16> to vector<16x16xbf16>
    %cst = arith.constant dense<0.000000e+00> : vector<80x16xf32>
    %4 = tpu.matmul %1, %3, %cst {dimension_numbers = #tpu.dot_dimension_numbers<[1], [0], [0], [1], [0, 0, 1, 1], [], []>} : vector<80x16xbf16>, vector<16x16xbf16>, vector<80x16xf32> -> vector<80x16xf32>
    %c0_5 = arith.constant 0 : index
    %c1 = arith.constant 1 : index
    %c0_6 = arith.constant 0 : index
    %5 = vector.load %arg1[%c0_5, %c1, %c0_6] : memref<1x110x16xbf16, #tpu.memory_space<vmem>>, vector<1x80x16xbf16>
    %6 = vector.shape_cast %5 : vector<1x80x16xbf16> to vector<80x16xbf16>
    %c1_7 = arith.constant 1 : index
    %c0_8 = arith.constant 0 : index
    %c0_9 = arith.constant 0 : index
    %7 = vector.load %arg2[%c1_7, %c0_8, %c0_9] : memref<9x16x16xbf16, #tpu.memory_space<vmem>>, vector<1x16x16xbf16>
    %8 = vector.shape_cast %7 : vector<1x16x16xbf16> to vector<16x16xbf16>
    %cst_10 = arith.constant dense<0.000000e+00> : vector<80x16xf32>
    %9 = tpu.matmul %6, %8, %cst_10 {dimension_numbers = #tpu.dot_dimension_numbers<[1], [0], [0], [1], [0, 0, 1, 1], [], []>} : vector<80x16xbf16>, vector<16x16xbf16>, vector<80x16xf32> -> vector<80x16xf32>
    %10 = arith.addf %4, %9 : vector<80x16xf32>
    %c0_11 = arith.constant 0 : index
    %c2 = arith.constant 2 : index
    %c0_12 = arith.constant 0 : index
    %11 = vector.load %arg1[%c0_11, %c2, %c0_12] : memref<1x110x16xbf16, #tpu.memory_space<vmem>>, vector<1x80x16xbf16>
    %12 = vector.shape_cast %11 : vector<1x80x16xbf16> to vector<80x16xbf16>
    %c2_13 = arith.constant 2 : index
    %c0_14 = arith.constant 0 : index
    %c0_15 = arith.constant 0 : index
    %13 = vector.load %arg2[%c2_13, %c0_14, %c0_15] : memref<9x16x16xbf16, #tpu.memory_space<vmem>>, vector<1x16x16xbf16>
    %14 = vector.shape_cast %13 : vector<1x16x16xbf16> to vector<16x16xbf16>
    %cst_16 = arith.constant dense<0.000000e+00> : vector<80x16xf32>
    %15 = tpu.matmul %12, %14, %cst_16 {dimension_numbers = #tpu.dot_dimension_numbers<[1], [0], [0], [1], [0, 0, 1, 1], [], []>} : vector<80x16xbf16>, vector<16x16xbf16>, vector<80x16xf32> -> vector<80x16xf32>
    %16 = arith.addf %10, %15 : vector<80x16xf32>
    %c0_17 = arith.constant 0 : index
    %c10 = arith.constant 10 : index
    %c0_18 = arith.constant 0 : index
    %17 = vector.load %arg1[%c0_17, %c10, %c0_18] : memref<1x110x16xbf16, #tpu.memory_space<vmem>>, vector<1x80x16xbf16>
    %18 = vector.shape_cast %17 : vector<1x80x16xbf16> to vector<80x16xbf16>
    %c3 = arith.constant 3 : index
    %c0_19 = arith.constant 0 : index
    %c0_20 = arith.constant 0 : index
    %19 = vector.load %arg2[%c3, %c0_19, %c0_20] : memref<9x16x16xbf16, #tpu.memory_space<vmem>>, vector<1x16x16xbf16>
    %20 = vector.shape_cast %19 : vector<1x16x16xbf16> to vector<16x16xbf16>
    %cst_21 = arith.constant dense<0.000000e+00> : vector<80x16xf32>
    %21 = tpu.matmul %18, %20, %cst_21 {dimension_numbers = #tpu.dot_dimension_numbers<[1], [0], [0], [1], [0, 0, 1, 1], [], []>} : vector<80x16xbf16>, vector<16x16xbf16>, vector<80x16xf32> -> vector<80x16xf32>
    %22 = arith.addf %16, %21 : vector<80x16xf32>
    %c0_22 = arith.constant 0 : index
    %c11 = arith.constant 11 : index
    %c0_23 = arith.constant 0 : index
    %23 = vector.load %arg1[%c0_22, %c11, %c0_23] : memref<1x110x16xbf16, #tpu.memory_space<vmem>>, vector<1x80x16xbf16>
    %24 = vector.shape_cast %23 : vector<1x80x16xbf16> to vector<80x16xbf16>
    %c4 = arith.constant 4 : index
    %c0_24 = arith.constant 0 : index
    %c0_25 = arith.constant 0 : index
    %25 = vector.load %arg2[%c4, %c0_24, %c0_25] : memref<9x16x16xbf16, #tpu.memory_space<vmem>>, vector<1x16x16xbf16>
    %26 = vector.shape_cast %25 : vector<1x16x16xbf16> to vector<16x16xbf16>
    %cst_26 = arith.constant dense<0.000000e+00> : vector<80x16xf32>
    %27 = tpu.matmul %24, %26, %cst_26 {dimension_numbers = #tpu.dot_dimension_numbers<[1], [0], [0], [1], [0, 0, 1, 1], [], []>} : vector<80x16xbf16>, vector<16x16xbf16>, vector<80x16xf32> -> vector<80x16xf32>
    %28 = arith.addf %22, %27 : vector<80x16xf32>
    %c0_27 = arith.constant 0 : index
    %c12 = arith.constant 12 : index
    %c0_28 = arith.constant 0 : index
    %29 = vector.load %arg1[%c0_27, %c12, %c0_28] : memref<1x110x16xbf16, #tpu.memory_space<vmem>>, vector<1x80x16xbf16>
    %30 = vector.shape_cast %29 : vector<1x80x16xbf16> to vector<80x16xbf16>
    %c5 = arith.constant 5 : index
    %c0_29 = arith.constant 0 : index
    %c0_30 = arith.constant 0 : index
    %31 = vector.load %arg2[%c5, %c0_29, %c0_30] : memref<9x16x16xbf16, #tpu.memory_space<vmem>>, vector<1x16x16xbf16>
    %32 = vector.shape_cast %31 : vector<1x16x16xbf16> to vector<16x16xbf16>
    %cst_31 = arith.constant dense<0.000000e+00> : vector<80x16xf32>
    %33 = tpu.matmul %30, %32, %cst_31 {dimension_numbers = #tpu.dot_dimension_numbers<[1], [0], [0], [1], [0, 0, 1, 1], [], []>} : vector<80x16xbf16>, vector<16x16xbf16>, vector<80x16xf32> -> vector<80x16xf32>
    %34 = arith.addf %28, %33 : vector<80x16xf32>
    %c0_32 = arith.constant 0 : index
    %c20 = arith.constant 20 : index
    %c0_33 = arith.constant 0 : index
    %35 = vector.load %arg1[%c0_32, %c20, %c0_33] : memref<1x110x16xbf16, #tpu.memory_space<vmem>>, vector<1x80x16xbf16>
    %36 = vector.shape_cast %35 : vector<1x80x16xbf16> to vector<80x16xbf16>
    %c6 = arith.constant 6 : index
    %c0_34 = arith.constant 0 : index
    %c0_35 = arith.constant 0 : index
    %37 = vector.load %arg2[%c6, %c0_34, %c0_35] : memref<9x16x16xbf16, #tpu.memory_space<vmem>>, vector<1x16x16xbf16>
    %38 = vector.shape_cast %37 : vector<1x16x16xbf16> to vector<16x16xbf16>
    %cst_36 = arith.constant dense<0.000000e+00> : vector<80x16xf32>
    %39 = tpu.matmul %36, %38, %cst_36 {dimension_numbers = #tpu.dot_dimension_numbers<[1], [0], [0], [1], [0, 0, 1, 1], [], []>} : vector<80x16xbf16>, vector<16x16xbf16>, vector<80x16xf32> -> vector<80x16xf32>
    %40 = arith.addf %34, %39 : vector<80x16xf32>
    %c0_37 = arith.constant 0 : index
    %c21 = arith.constant 21 : index
    %c0_38 = arith.constant 0 : index
    %41 = vector.load %arg1[%c0_37, %c21, %c0_38] : memref<1x110x16xbf16, #tpu.memory_space<vmem>>, vector<1x80x16xbf16>
    %42 = vector.shape_cast %41 : vector<1x80x16xbf16> to vector<80x16xbf16>
    %c7 = arith.constant 7 : index
    %c0_39 = arith.constant 0 : index
    %c0_40 = arith.constant 0 : index
    %43 = vector.load %arg2[%c7, %c0_39, %c0_40] : memref<9x16x16xbf16, #tpu.memory_space<vmem>>, vector<1x16x16xbf16>
    %44 = vector.shape_cast %43 : vector<1x16x16xbf16> to vector<16x16xbf16>
    %cst_41 = arith.constant dense<0.000000e+00> : vector<80x16xf32>
    %45 = tpu.matmul %42, %44, %cst_41 {dimension_numbers = #tpu.dot_dimension_numbers<[1], [0], [0], [1], [0, 0, 1, 1], [], []>} : vector<80x16xbf16>, vector<16x16xbf16>, vector<80x16xf32> -> vector<80x16xf32>
    %46 = arith.addf %40, %45 : vector<80x16xf32>
    %c0_42 = arith.constant 0 : index
    %c22 = arith.constant 22 : index
    %c0_43 = arith.constant 0 : index
    %47 = vector.load %arg1[%c0_42, %c22, %c0_43] : memref<1x110x16xbf16, #tpu.memory_space<vmem>>, vector<1x80x16xbf16>
    %48 = vector.shape_cast %47 : vector<1x80x16xbf16> to vector<80x16xbf16>
    %c8 = arith.constant 8 : index
    %c0_44 = arith.constant 0 : index
    %c0_45 = arith.constant 0 : index
    %49 = vector.load %arg2[%c8, %c0_44, %c0_45] : memref<9x16x16xbf16, #tpu.memory_space<vmem>>, vector<1x16x16xbf16>
    %50 = vector.shape_cast %49 : vector<1x16x16xbf16> to vector<16x16xbf16>
    %cst_46 = arith.constant dense<0.000000e+00> : vector<80x16xf32>
    %51 = tpu.matmul %48, %50, %cst_46 {dimension_numbers = #tpu.dot_dimension_numbers<[1], [0], [0], [1], [0, 0, 1, 1], [], []>} : vector<80x16xbf16>, vector<16x16xbf16>, vector<80x16xf32> -> vector<80x16xf32>
    %52 = arith.addf %46, %51 : vector<80x16xf32>
    %c0_47 = arith.constant 0 : index
    %c0_48 = arith.constant 0 : index
    %53 = vector.load %arg3[%c0_47, %c0_48] : memref<1x16xf32, #tpu.memory_space<vmem>>, vector<1x16xf32>
    %54 = vector.broadcast %53 : vector<1x16xf32> to vector<80x16xf32>
    %55 = arith.addf %52, %54 : vector<80x16xf32>
    %cst_49 = arith.constant 0.000000e+00 : f32
    %56 = vector.broadcast %cst_49 : f32 to vector<80x16xf32>
    %57 = arith.cmpf oge, %55, %56 : vector<80x16xf32>
    %cst_50 = arith.constant 0.00999999977 : f32
    %58 = vector.broadcast %cst_50 : f32 to vector<80x16xf32>
    %59 = arith.mulf %58, %55 : vector<80x16xf32>
    %60 = arith.select %57, %55, %59 : vector<80x16xi1>, vector<80x16xf32>
    %c0_51 = arith.constant 0 : index
    %c11_52 = arith.constant 11 : index
    %c0_53 = arith.constant 0 : index
    %61 = vector.load %arg1[%c0_51, %c11_52, %c0_53] : memref<1x110x16xbf16, #tpu.memory_space<vmem>>, vector<1x80x16xbf16>
    %62 = vector.shape_cast %61 : vector<1x80x16xbf16> to vector<80x16xbf16>
    %63 = arith.extf %62 : vector<80x16xbf16> to vector<80x16xf32>
    %64 = arith.addf %60, %63 : vector<80x16xf32>
    %65 = arith.truncf %64 : vector<80x16xf32> to vector<80x16xbf16>
    %c0_54 = arith.constant 0 : index
    %c0_55 = arith.constant 0 : index
    %c0_56 = arith.constant 0 : index
    %66 = vector.load %arg4[%c0_54, %c0_55, %c0_56] : memref<1x80x16xbf16, #tpu.memory_space<vmem>>, vector<1x80x16xbf16>
    %67 = vector.shape_cast %66 : vector<1x80x16xbf16> to vector<80x16xbf16>
    %68 = vector.shape_cast %65 : vector<80x16xbf16> to vector<1x80x16xbf16>
    tpu.vector_store %arg4[%c0_54, %c0_55, %c0_56], %68 {strides = array<i32>} : memref<1x80x16xbf16, #tpu.memory_space<vmem>>, vector<1x80x16xbf16>,
    return
  }
  func.func @transform_0(%arg0: i32) -> (i32, i32, i32) {
    %c0_i32 = arith.constant 0 : i32
    %c0_i32_0 = arith.constant 0 : i32
    %c0_i32_1 = arith.constant 0 : i32
    return %arg0, %c0_i32, %c0_i32_0 : i32, i32, i32
  }
  func.func @transform_1(%arg0: i32) -> (i32, i32, i32) {
    %c0_i32 = arith.constant 0 : i32
    %c0_i32_0 = arith.constant 0 : i32
    %c0_i32_1 = arith.constant 0 : i32
    %c0_i32_2 = arith.constant 0 : i32
    return %c0_i32, %c0_i32_0, %c0_i32_1 : i32, i32, i32
  }
  func.func @transform_2(%arg0: i32) -> (i32, i32) {
    %c0_i32 = arith.constant 0 : i32
    %c0_i32_0 = arith.constant 0 : i32
    %c0_i32_1 = arith.constant 0 : i32
    return %c0_i32, %c0_i32_0 : i32, i32
  }
  func.func @transform_3(%arg0: i32) -> (i32, i32, i32) {
    %c0_i32 = arith.constant 0 : i32
    %c0_i32_0 = arith.constant 0 : i32
    %c0_i32_1 = arith.constant 0 : i32
    return %arg0, %c0_i32, %c0_i32_0 : i32, i32, i32
  }
}

module attributes {stable_mosaic.version = 11 : i64} {
  func.func @_conv_taps_kernel(%arg0: i32, %arg1: memref<1x42x32xbf16, #tpu.memory_space<vmem>>, %arg2: memref<9x32x8xbf16, #tpu.memory_space<vmem>>, %arg3: memref<1x8xf32, #tpu.memory_space<vmem>>, %arg4: memref<1x24x8xf32, #tpu.memory_space<vmem>>) attributes {dimension_semantics = [#tpu.dimension_semantics<parallel>], iteration_bounds = array<i64: 2>, scalar_prefetch = 0 : i64, scratch_operands = 0 : i64, tpu.core_type = #tpu.core_type<tc>, window_params = [{transform_indices = @transform_0, window_bounds = array<i64: 1, 42, 32>}, {pipeline_mode = #tpu.pipeline_mode<synchronous>, transform_indices = @transform_1, window_bounds = array<i64: 9, 32, 8>}, {pipeline_mode = #tpu.pipeline_mode<synchronous>, transform_indices = @transform_2, window_bounds = array<i64: 1, 8>}, {transform_indices = @transform_3, window_bounds = array<i64: 1, 24, 8>}]} {
    %c0 = arith.constant 0 : index
    %c0_0 = arith.constant 0 : index
    %c0_1 = arith.constant 0 : index
    %0 = vector.load %arg1[%c0, %c0_0, %c0_1] : memref<1x42x32xbf16, #tpu.memory_space<vmem>>, vector<1x24x32xbf16>
    %1 = vector.shape_cast %0 : vector<1x24x32xbf16> to vector<24x32xbf16>
    %c0_2 = arith.constant 0 : index
    %c0_3 = arith.constant 0 : index
    %c0_4 = arith.constant 0 : index
    %2 = vector.load %arg2[%c0_2, %c0_3, %c0_4] : memref<9x32x8xbf16, #tpu.memory_space<vmem>>, vector<1x32x8xbf16>
    %3 = vector.shape_cast %2 : vector<1x32x8xbf16> to vector<32x8xbf16>
    %cst = arith.constant dense<0.000000e+00> : vector<24x8xf32>
    %4 = tpu.matmul %1, %3, %cst {dimension_numbers = #tpu.dot_dimension_numbers<[1], [0], [0], [1], [0, 0, 1, 1], [], []>} : vector<24x32xbf16>, vector<32x8xbf16>, vector<24x8xf32> -> vector<24x8xf32>
    %c0_5 = arith.constant 0 : index
    %c1 = arith.constant 1 : index
    %c0_6 = arith.constant 0 : index
    %5 = vector.load %arg1[%c0_5, %c1, %c0_6] : memref<1x42x32xbf16, #tpu.memory_space<vmem>>, vector<1x24x32xbf16>
    %6 = vector.shape_cast %5 : vector<1x24x32xbf16> to vector<24x32xbf16>
    %c1_7 = arith.constant 1 : index
    %c0_8 = arith.constant 0 : index
    %c0_9 = arith.constant 0 : index
    %7 = vector.load %arg2[%c1_7, %c0_8, %c0_9] : memref<9x32x8xbf16, #tpu.memory_space<vmem>>, vector<1x32x8xbf16>
    %8 = vector.shape_cast %7 : vector<1x32x8xbf16> to vector<32x8xbf16>
    %cst_10 = arith.constant dense<0.000000e+00> : vector<24x8xf32>
    %9 = tpu.matmul %6, %8, %cst_10 {dimension_numbers = #tpu.dot_dimension_numbers<[1], [0], [0], [1], [0, 0, 1, 1], [], []>} : vector<24x32xbf16>, vector<32x8xbf16>, vector<24x8xf32> -> vector<24x8xf32>
    %10 = arith.addf %4, %9 : vector<24x8xf32>
    %c0_11 = arith.constant 0 : index
    %c2 = arith.constant 2 : index
    %c0_12 = arith.constant 0 : index
    %11 = vector.load %arg1[%c0_11, %c2, %c0_12] : memref<1x42x32xbf16, #tpu.memory_space<vmem>>, vector<1x24x32xbf16>
    %12 = vector.shape_cast %11 : vector<1x24x32xbf16> to vector<24x32xbf16>
    %c2_13 = arith.constant 2 : index
    %c0_14 = arith.constant 0 : index
    %c0_15 = arith.constant 0 : index
    %13 = vector.load %arg2[%c2_13, %c0_14, %c0_15] : memref<9x32x8xbf16, #tpu.memory_space<vmem>>, vector<1x32x8xbf16>
    %14 = vector.shape_cast %13 : vector<1x32x8xbf16> to vector<32x8xbf16>
    %cst_16 = arith.constant dense<0.000000e+00> : vector<24x8xf32>
    %15 = tpu.matmul %12, %14, %cst_16 {dimension_numbers = #tpu.dot_dimension_numbers<[1], [0], [0], [1], [0, 0, 1, 1], [], []>} : vector<24x32xbf16>, vector<32x8xbf16>, vector<24x8xf32> -> vector<24x8xf32>
    %16 = arith.addf %10, %15 : vector<24x8xf32>
    %c0_17 = arith.constant 0 : index
    %c6 = arith.constant 6 : index
    %c0_18 = arith.constant 0 : index
    %17 = vector.load %arg1[%c0_17, %c6, %c0_18] : memref<1x42x32xbf16, #tpu.memory_space<vmem>>, vector<1x24x32xbf16>
    %18 = vector.shape_cast %17 : vector<1x24x32xbf16> to vector<24x32xbf16>
    %c3 = arith.constant 3 : index
    %c0_19 = arith.constant 0 : index
    %c0_20 = arith.constant 0 : index
    %19 = vector.load %arg2[%c3, %c0_19, %c0_20] : memref<9x32x8xbf16, #tpu.memory_space<vmem>>, vector<1x32x8xbf16>
    %20 = vector.shape_cast %19 : vector<1x32x8xbf16> to vector<32x8xbf16>
    %cst_21 = arith.constant dense<0.000000e+00> : vector<24x8xf32>
    %21 = tpu.matmul %18, %20, %cst_21 {dimension_numbers = #tpu.dot_dimension_numbers<[1], [0], [0], [1], [0, 0, 1, 1], [], []>} : vector<24x32xbf16>, vector<32x8xbf16>, vector<24x8xf32> -> vector<24x8xf32>
    %22 = arith.addf %16, %21 : vector<24x8xf32>
    %c0_22 = arith.constant 0 : index
    %c7 = arith.constant 7 : index
    %c0_23 = arith.constant 0 : index
    %23 = vector.load %arg1[%c0_22, %c7, %c0_23] : memref<1x42x32xbf16, #tpu.memory_space<vmem>>, vector<1x24x32xbf16>
    %24 = vector.shape_cast %23 : vector<1x24x32xbf16> to vector<24x32xbf16>
    %c4 = arith.constant 4 : index
    %c0_24 = arith.constant 0 : index
    %c0_25 = arith.constant 0 : index
    %25 = vector.load %arg2[%c4, %c0_24, %c0_25] : memref<9x32x8xbf16, #tpu.memory_space<vmem>>, vector<1x32x8xbf16>
    %26 = vector.shape_cast %25 : vector<1x32x8xbf16> to vector<32x8xbf16>
    %cst_26 = arith.constant dense<0.000000e+00> : vector<24x8xf32>
    %27 = tpu.matmul %24, %26, %cst_26 {dimension_numbers = #tpu.dot_dimension_numbers<[1], [0], [0], [1], [0, 0, 1, 1], [], []>} : vector<24x32xbf16>, vector<32x8xbf16>, vector<24x8xf32> -> vector<24x8xf32>
    %28 = arith.addf %22, %27 : vector<24x8xf32>
    %c0_27 = arith.constant 0 : index
    %c8 = arith.constant 8 : index
    %c0_28 = arith.constant 0 : index
    %29 = vector.load %arg1[%c0_27, %c8, %c0_28] : memref<1x42x32xbf16, #tpu.memory_space<vmem>>, vector<1x24x32xbf16>
    %30 = vector.shape_cast %29 : vector<1x24x32xbf16> to vector<24x32xbf16>
    %c5 = arith.constant 5 : index
    %c0_29 = arith.constant 0 : index
    %c0_30 = arith.constant 0 : index
    %31 = vector.load %arg2[%c5, %c0_29, %c0_30] : memref<9x32x8xbf16, #tpu.memory_space<vmem>>, vector<1x32x8xbf16>
    %32 = vector.shape_cast %31 : vector<1x32x8xbf16> to vector<32x8xbf16>
    %cst_31 = arith.constant dense<0.000000e+00> : vector<24x8xf32>
    %33 = tpu.matmul %30, %32, %cst_31 {dimension_numbers = #tpu.dot_dimension_numbers<[1], [0], [0], [1], [0, 0, 1, 1], [], []>} : vector<24x32xbf16>, vector<32x8xbf16>, vector<24x8xf32> -> vector<24x8xf32>
    %34 = arith.addf %28, %33 : vector<24x8xf32>
    %c0_32 = arith.constant 0 : index
    %c12 = arith.constant 12 : index
    %c0_33 = arith.constant 0 : index
    %35 = vector.load %arg1[%c0_32, %c12, %c0_33] : memref<1x42x32xbf16, #tpu.memory_space<vmem>>, vector<1x24x32xbf16>
    %36 = vector.shape_cast %35 : vector<1x24x32xbf16> to vector<24x32xbf16>
    %c6_34 = arith.constant 6 : index
    %c0_35 = arith.constant 0 : index
    %c0_36 = arith.constant 0 : index
    %37 = vector.load %arg2[%c6_34, %c0_35, %c0_36] : memref<9x32x8xbf16, #tpu.memory_space<vmem>>, vector<1x32x8xbf16>
    %38 = vector.shape_cast %37 : vector<1x32x8xbf16> to vector<32x8xbf16>
    %cst_37 = arith.constant dense<0.000000e+00> : vector<24x8xf32>
    %39 = tpu.matmul %36, %38, %cst_37 {dimension_numbers = #tpu.dot_dimension_numbers<[1], [0], [0], [1], [0, 0, 1, 1], [], []>} : vector<24x32xbf16>, vector<32x8xbf16>, vector<24x8xf32> -> vector<24x8xf32>
    %40 = arith.addf %34, %39 : vector<24x8xf32>
    %c0_38 = arith.constant 0 : index
    %c13 = arith.constant 13 : index
    %c0_39 = arith.constant 0 : index
    %41 = vector.load %arg1[%c0_38, %c13, %c0_39] : memref<1x42x32xbf16, #tpu.memory_space<vmem>>, vector<1x24x32xbf16>
    %42 = vector.shape_cast %41 : vector<1x24x32xbf16> to vector<24x32xbf16>
    %c7_40 = arith.constant 7 : index
    %c0_41 = arith.constant 0 : index
    %c0_42 = arith.constant 0 : index
    %43 = vector.load %arg2[%c7_40, %c0_41, %c0_42] : memref<9x32x8xbf16, #tpu.memory_space<vmem>>, vector<1x32x8xbf16>
    %44 = vector.shape_cast %43 : vector<1x32x8xbf16> to vector<32x8xbf16>
    %cst_43 = arith.constant dense<0.000000e+00> : vector<24x8xf32>
    %45 = tpu.matmul %42, %44, %cst_43 {dimension_numbers = #tpu.dot_dimension_numbers<[1], [0], [0], [1], [0, 0, 1, 1], [], []>} : vector<24x32xbf16>, vector<32x8xbf16>, vector<24x8xf32> -> vector<24x8xf32>
    %46 = arith.addf %40, %45 : vector<24x8xf32>
    %c0_44 = arith.constant 0 : index
    %c14 = arith.constant 14 : index
    %c0_45 = arith.constant 0 : index
    %47 = vector.load %arg1[%c0_44, %c14, %c0_45] : memref<1x42x32xbf16, #tpu.memory_space<vmem>>, vector<1x24x32xbf16>
    %48 = vector.shape_cast %47 : vector<1x24x32xbf16> to vector<24x32xbf16>
    %c8_46 = arith.constant 8 : index
    %c0_47 = arith.constant 0 : index
    %c0_48 = arith.constant 0 : index
    %49 = vector.load %arg2[%c8_46, %c0_47, %c0_48] : memref<9x32x8xbf16, #tpu.memory_space<vmem>>, vector<1x32x8xbf16>
    %50 = vector.shape_cast %49 : vector<1x32x8xbf16> to vector<32x8xbf16>
    %cst_49 = arith.constant dense<0.000000e+00> : vector<24x8xf32>
    %51 = tpu.matmul %48, %50, %cst_49 {dimension_numbers = #tpu.dot_dimension_numbers<[1], [0], [0], [1], [0, 0, 1, 1], [], []>} : vector<24x32xbf16>, vector<32x8xbf16>, vector<24x8xf32> -> vector<24x8xf32>
    %52 = arith.addf %46, %51 : vector<24x8xf32>
    %c0_50 = arith.constant 0 : index
    %c0_51 = arith.constant 0 : index
    %53 = vector.load %arg3[%c0_50, %c0_51] : memref<1x8xf32, #tpu.memory_space<vmem>>, vector<1x8xf32>
    %54 = vector.broadcast %53 : vector<1x8xf32> to vector<24x8xf32>
    %55 = arith.addf %52, %54 : vector<24x8xf32>
    %c0_52 = arith.constant 0 : index
    %c0_53 = arith.constant 0 : index
    %c0_54 = arith.constant 0 : index
    %56 = vector.load %arg4[%c0_52, %c0_53, %c0_54] : memref<1x24x8xf32, #tpu.memory_space<vmem>>, vector<1x24x8xf32>
    %57 = vector.shape_cast %56 : vector<1x24x8xf32> to vector<24x8xf32>
    %58 = vector.shape_cast %55 : vector<24x8xf32> to vector<1x24x8xf32>
    tpu.vector_store %arg4[%c0_52, %c0_53, %c0_54], %58 {strides = array<i32>} : memref<1x24x8xf32, #tpu.memory_space<vmem>>, vector<1x24x8xf32>,
    return
  }
  func.func @transform_0(%arg0: i32) -> (i32, i32, i32) {
    %c0_i32 = arith.constant 0 : i32
    %c0_i32_0 = arith.constant 0 : i32
    %c0_i32_1 = arith.constant 0 : i32
    return %arg0, %c0_i32, %c0_i32_0 : i32, i32, i32
  }
  func.func @transform_1(%arg0: i32) -> (i32, i32, i32) {
    %c0_i32 = arith.constant 0 : i32
    %c0_i32_0 = arith.constant 0 : i32
    %c0_i32_1 = arith.constant 0 : i32
    %c0_i32_2 = arith.constant 0 : i32
    return %c0_i32, %c0_i32_0, %c0_i32_1 : i32, i32, i32
  }
  func.func @transform_2(%arg0: i32) -> (i32, i32) {
    %c0_i32 = arith.constant 0 : i32
    %c0_i32_0 = arith.constant 0 : i32
    %c0_i32_1 = arith.constant 0 : i32
    return %c0_i32, %c0_i32_0 : i32, i32
  }
  func.func @transform_3(%arg0: i32) -> (i32, i32, i32) {
    %c0_i32 = arith.constant 0 : i32
    %c0_i32_0 = arith.constant 0 : i32
    %c0_i32_1 = arith.constant 0 : i32
    return %arg0, %c0_i32, %c0_i32_0 : i32, i32, i32
  }
}

module attributes {stable_mosaic.version = 11 : i64} {
  func.func @_conv_taps_kernel(%arg0: i32, %arg1: memref<1x30x64xbf16, #tpu.memory_space<vmem>>, %arg2: memref<4x64x32xbf16, #tpu.memory_space<vmem>>, %arg3: memref<1x32xf32, #tpu.memory_space<vmem>>, %arg4: memref<1x20x32xbf16, #tpu.memory_space<vmem>>) attributes {dimension_semantics = [#tpu.dimension_semantics<parallel>], iteration_bounds = array<i64: 2>, scalar_prefetch = 0 : i64, scratch_operands = 0 : i64, tpu.core_type = #tpu.core_type<tc>, window_params = [{transform_indices = @transform_0, window_bounds = array<i64: 1, 30, 64>}, {pipeline_mode = #tpu.pipeline_mode<synchronous>, transform_indices = @transform_1, window_bounds = array<i64: 4, 64, 32>}, {pipeline_mode = #tpu.pipeline_mode<synchronous>, transform_indices = @transform_2, window_bounds = array<i64: 1, 32>}, {transform_indices = @transform_3, window_bounds = array<i64: 1, 20, 32>}]} {
    %c0 = arith.constant 0 : index
    %c0_0 = arith.constant 0 : index
    %c0_1 = arith.constant 0 : index
    %0 = vector.load %arg1[%c0, %c0_0, %c0_1] : memref<1x30x64xbf16, #tpu.memory_space<vmem>>, vector<1x20x64xbf16>
    %1 = vector.shape_cast %0 : vector<1x20x64xbf16> to vector<20x64xbf16>
    %c0_2 = arith.constant 0 : index
    %c0_3 = arith.constant 0 : index
    %c0_4 = arith.constant 0 : index
    %2 = vector.load %arg2[%c0_2, %c0_3, %c0_4] : memref<4x64x32xbf16, #tpu.memory_space<vmem>>, vector<1x64x32xbf16>
    %3 = vector.shape_cast %2 : vector<1x64x32xbf16> to vector<64x32xbf16>
    %cst = arith.constant dense<0.000000e+00> : vector<20x32xf32>
    %4 = tpu.matmul %1, %3, %cst {dimension_numbers = #tpu.dot_dimension_numbers<[1], [0], [0], [1], [0, 0, 1, 1], [], []>} : vector<20x64xbf16>, vector<64x32xbf16>, vector<20x32xf32> -> vector<20x32xf32>
    %c0_5 = arith.constant 0 : index
    %c1 = arith.constant 1 : index
    %c0_6 = arith.constant 0 : index
    %5 = vector.load %arg1[%c0_5, %c1, %c0_6] : memref<1x30x64xbf16, #tpu.memory_space<vmem>>, vector<1x20x64xbf16>
    %6 = vector.shape_cast %5 : vector<1x20x64xbf16> to vector<20x64xbf16>
    %c1_7 = arith.constant 1 : index
    %c0_8 = arith.constant 0 : index
    %c0_9 = arith.constant 0 : index
    %7 = vector.load %arg2[%c1_7, %c0_8, %c0_9] : memref<4x64x32xbf16, #tpu.memory_space<vmem>>, vector<1x64x32xbf16>
    %8 = vector.shape_cast %7 : vector<1x64x32xbf16> to vector<64x32xbf16>
    %cst_10 = arith.constant dense<0.000000e+00> : vector<20x32xf32>
    %9 = tpu.matmul %6, %8, %cst_10 {dimension_numbers = #tpu.dot_dimension_numbers<[1], [0], [0], [1], [0, 0, 1, 1], [], []>} : vector<20x64xbf16>, vector<64x32xbf16>, vector<20x32xf32> -> vector<20x32xf32>
    %10 = arith.addf %4, %9 : vector<20x32xf32>
    %c0_11 = arith.constant 0 : index
    %c5 = arith.constant 5 : index
    %c0_12 = arith.constant 0 : index
    %11 = vector.load %arg1[%c0_11, %c5, %c0_12] : memref<1x30x64xbf16, #tpu.memory_space<vmem>>, vector<1x20x64xbf16>
    %12 = vector.shape_cast %11 : vector<1x20x64xbf16> to vector<20x64xbf16>
    %c2 = arith.constant 2 : index
    %c0_13 = arith.constant 0 : index
    %c0_14 = arith.constant 0 : index
    %13 = vector.load %arg2[%c2, %c0_13, %c0_14] : memref<4x64x32xbf16, #tpu.memory_space<vmem>>, vector<1x64x32xbf16>
    %14 = vector.shape_cast %13 : vector<1x64x32xbf16> to vector<64x32xbf16>
    %cst_15 = arith.constant dense<0.000000e+00> : vector<20x32xf32>
    %15 = tpu.matmul %12, %14, %cst_15 {dimension_numbers = #tpu.dot_dimension_numbers<[1], [0], [0], [1], [0, 0, 1, 1], [], []>} : vector<20x64xbf16>, vector<64x32xbf16>, vector<20x32xf32> -> vector<20x32xf32>
    %16 = arith.addf %10, %15 : vector<20x32xf32>
    %c0_16 = arith.constant 0 : index
    %c6 = arith.constant 6 : index
    %c0_17 = arith.constant 0 : index
    %17 = vector.load %arg1[%c0_16, %c6, %c0_17] : memref<1x30x64xbf16, #tpu.memory_space<vmem>>, vector<1x20x64xbf16>
    %18 = vector.shape_cast %17 : vector<1x20x64xbf16> to vector<20x64xbf16>
    %c3 = arith.constant 3 : index
    %c0_18 = arith.constant 0 : index
    %c0_19 = arith.constant 0 : index
    %19 = vector.load %arg2[%c3, %c0_18, %c0_19] : memref<4x64x32xbf16, #tpu.memory_space<vmem>>, vector<1x64x32xbf16>
    %20 = vector.shape_cast %19 : vector<1x64x32xbf16> to vector<64x32xbf16>
    %cst_20 = arith.constant dense<0.000000e+00> : vector<20x32xf32>
    %21 = tpu.matmul %18, %20, %cst_20 {dimension_numbers = #tpu.dot_dimension_numbers<[1], [0], [0], [1], [0, 0, 1, 1], [], []>} : vector<20x64xbf16>, vector<64x32xbf16>, vector<20x32xf32> -> vector<20x32xf32>
    %22 = arith.addf %16, %21 : vector<20x32xf32>
    %c0_21 = arith.constant 0 : index
    %c0_22 = arith.constant 0 : index
    %23 = vector.load %arg3[%c0_21, %c0_22] : memref<1x32xf32, #tpu.memory_space<vmem>>, vector<1x32xf32>
    %24 = vector.broadcast %23 : vector<1x32xf32> to vector<20x32xf32>
    %25 = arith.addf %22, %24 : vector<20x32xf32>
    %cst_23 = arith.constant 0.000000e+00 : f32
    %26 = vector.broadcast %cst_23 : f32 to vector<20x32xf32>
    %27 = arith.cmpf oge, %25, %26 : vector<20x32xf32>
    %cst_24 = arith.constant 0.00999999977 : f32
    %28 = vector.broadcast %cst_24 : f32 to vector<20x32xf32>
    %29 = arith.mulf %28, %25 : vector<20x32xf32>
    %30 = arith.select %27, %25, %29 : vector<20x32xi1>, vector<20x32xf32>
    %31 = arith.truncf %30 : vector<20x32xf32> to vector<20x32xbf16>
    %c0_25 = arith.constant 0 : index
    %c0_26 = arith.constant 0 : index
    %c0_27 = arith.constant 0 : index
    %32 = vector.load %arg4[%c0_25, %c0_26, %c0_27] : memref<1x20x32xbf16, #tpu.memory_space<vmem>>, vector<1x20x32xbf16>
    %33 = vector.shape_cast %32 : vector<1x20x32xbf16> to vector<20x32xbf16>
    %34 = vector.shape_cast %31 : vector<20x32xbf16> to vector<1x20x32xbf16>
    tpu.vector_store %arg4[%c0_25, %c0_26, %c0_27], %34 {strides = array<i32>} : memref<1x20x32xbf16, #tpu.memory_space<vmem>>, vector<1x20x32xbf16>,
    return
  }
  func.func @transform_0(%arg0: i32) -> (i32, i32, i32) {
    %c0_i32 = arith.constant 0 : i32
    %c0_i32_0 = arith.constant 0 : i32
    %c0_i32_1 = arith.constant 0 : i32
    return %arg0, %c0_i32, %c0_i32_0 : i32, i32, i32
  }
  func.func @transform_1(%arg0: i32) -> (i32, i32, i32) {
    %c0_i32 = arith.constant 0 : i32
    %c0_i32_0 = arith.constant 0 : i32
    %c0_i32_1 = arith.constant 0 : i32
    %c0_i32_2 = arith.constant 0 : i32
    return %c0_i32, %c0_i32_0, %c0_i32_1 : i32, i32, i32
  }
  func.func @transform_2(%arg0: i32) -> (i32, i32) {
    %c0_i32 = arith.constant 0 : i32
    %c0_i32_0 = arith.constant 0 : i32
    %c0_i32_1 = arith.constant 0 : i32
    return %c0_i32, %c0_i32_0 : i32, i32
  }
  func.func @transform_3(%arg0: i32) -> (i32, i32, i32) {
    %c0_i32 = arith.constant 0 : i32
    %c0_i32_0 = arith.constant 0 : i32
    %c0_i32_1 = arith.constant 0 : i32
    return %arg0, %c0_i32, %c0_i32_0 : i32, i32, i32
  }
}

</mosaic_0001>

<bundles_post_ra>
// kernel: vae_encoder_forward.6
= control target key start
LH: loop header
LB: loop body
LE: loop exit
PB: predicated region body
PF: predicated region fallthrough
CT: control target
= control target key end

     0   :  { %s5245_s12 = smov 0   ;;  %s6217_s0 = inlined_call_operand.vmem [shape: bf16[2,342,4], index: 0, kind: input, shape index: {}]   ;;  %s6218_s1 = inlined_call_operand.vmem [shape: bf16[9,4,8], index: 1, kind: input, shape index: {}]   ;;  %s6219_s2 = inlined_call_operand.vmem [shape: f32[1,8], index: 2, kind: input, shape index: {}]   ;;  %s6220_s3 = inlined_call_operand.vmem [shape: bf16[2,288,8], index: 3, kind: output, shape index: {}]  }
   0x1 LB: > { %s4007_s13 = sadd.s32 4294967295, %s5223_s12   ;;  %p4011_p0 = scmp.ge.s32.totalorder %s5223_s12, 1  ;;  %s5223_s12 = sphi %s5245_s12, %s13_s12  }
   0x2   : > { %p137_p1 = scmp.lt.s32.totalorder %s5223_s12, 3 }
   0x4   : > { %p138_p2 = pnand %p4011_p0, %p137_p1 }
   0x5   : > { %vm509_vm0 = vcmask (!%p138_p2), 1041408   ;;  %v4128_v0 = vld [vmem:[%s6218_s1 + $0x8] sm:$0x3] (!%p138_p2)  ;;  %v4014_v1 = vld [vmem:[%s6218_s1 + $0x2] sm:$0x3] (!%p138_p2)  ;;  %p161_p3 = scmp.lt.s32.totalorder (!%p138_p2), %s4007_s13, 1 }
   0x6   : > { %141 = sbr.rel (%p138_p2) target bundleno = 576 (0x240), region = 32  ;;  %5128 = vmatprep.subr.msk.bf16.mxu0 (!%p138_p2), %vm509_vm0, %v4128_v0  ;;  %5124 = vmatprep.subr.msk.bf16.mxu1 (!%p138_p2), %vm509_vm0, %v4014_v1  ;;  %v5262_v2 = vsel (!%p138_p2), %vm509_vm0, %v4128_v0, 0  ;;  %v511_v3 = vsel (!%p138_p2), %vm509_vm0, %v4014_v1, 0  ;;  %v4148_v4 = vld [vmem:[%s6218_s1 + $0xa] sm:$0x3] (!%p138_p2)  ;;  %vm454_vm2 = vcmask (!%p138_p2), 31744  }
   0x7   : > { %4645 = vmatpush3.bf16.msra.mxu0 (!%p138_p2), %v5262_v2  ;;  %4493 = vmatpush3.bf16.msra.mxu1 (!%p138_p2), %v511_v3  ;;  %v208_v5 = vld [vmem:[%s6218_s1] sm:$0x3] (!%p138_p2)  ;;  %vm305_vm1 = vsmask.f32 (!%p138_p2), 7424  ;;  %v5283_v6 = vsel (!%p138_p2), %vm509_vm0, %v4148_v4, 0  ;;  %vm2112_vm4 = vcmask (!%p138_p2), 1045504  }
   0x8   : > { %5130 = vmatprep.subr.msk.bf16.mxu0 (!%p138_p2), %vm509_vm0, %v4148_v4  ;;  %5125 = vmatprep.subr.msk.bf16.mxu1 (!%p138_p2), %vm509_vm0, %v208_v5  ;;  %vm1665_vm3 = vsmask.f32 (!%p138_p2), 6400  ;;  %v727_v12 = vsel (!%p138_p2), %vm509_vm0, %v208_v5, 0  ;;  %v5331_v39 = vld [vmem:[%s6218_s1 + $0x4] sm:$0x3] (!%p138_p2)  ;;  %vm912_vm5 = vcmask (!%p138_p2), 1046528  }
   0x9   : > { %v5365_v1 = vld [vmem:[%s6218_s1 + $0xc] sm:$0x3] (!%p138_p2)  ;;  %vm2865_vm6 = vsmask.f32 (!%p138_p2), 5376  ;;  %vm3312_vm7 = vcmask (!%p138_p2), 1044480   ;;  %vm3915_vm10 = vcmask (!%p138_p2), 60416  }
   0xd   : > { %s6222_s13 = smov (!%p161_p3, %s4007_s13), 1 }
   0xe   : > { %s5134_s22 = smul.u32 172, %s6222_s13 }
   0xf   : > { %s5135_s15 = smul.u32 144, %s6222_s13 }
  0x10   : > { %s5280_s25 = scalar_lea.vmem %s6217_s0, %s5134_s22 }
  0x11   : > { %v172_v7 = vld [vmem:[%s5280_s25] sm:$0xf]  ;;  %v5287_v8 = vld [vmem:[%s5280_s25 + $0x4] sm:$0xf]  ;;  %v5293_v10 = vld [vmem:[%s5280_s25 + $0x8] sm:$0xff]   ;;  %s6096_s18 = scalar_lea.vmem %s6220_s3, %s5135_s15 }
  0x12   : > { %v5290_v9 = vcombine.low %v172_v7, %v5287_v8  ;;  %v1220_v11 = vld [vmem:[%s5280_s25 + $0x8] sm:$0xe]  ;;  %v5298_v13 = vld [vmem:[%s5280_s25 + $0xc] sm:$0xf]  ;;  %v314_v16 = vshll.u32 %v5293_v10, 16  ;;  %v318_v17 = vshrl.u32 %v5293_v10, 16 }
  0x13   : > { %v5305_v18 = vld [vmem:[%s5280_s25 + $0x10] sm:$0xff]   ;;  %v5311_v20 = vcombine.low %v1220_v11, %v5298_v13  ;;  %v5319_v28 = vld [vmem:[%s5280_s25 + $0x18] sm:$0xff]   ;;  %v5325_v34 = vld [vmem:[%s5280_s25 + $0x20] sm:$0xff]  }
  0x14   : > { %v307_v14 = vshrl.u32 %v5290_v9, 16  ;;  %v309_v15 = vshll.u32 %v5290_v9, 16  ;;  %v5308_v19 = vld [vmem:[%s5280_s25 + $0x10] sm:$0xff]   ;;  %v316_v22 = vrot.slane %v314_v16, 1  ;;  %v1675_v23 = vshrl.u32 %v5305_v18, 16  ;;  %v5322_v33 = vld [vmem:[%s5280_s25 + $0x18] sm:$0xff]  }
  0x15   : > { %v1678_v24 = vshll.u32 %v5305_v18, 16  ;;  %v1667_v25 = vshrl.u32 %v5311_v20, 16  ;;  %v1670_v26 = vshll.u32 %v5311_v20, 16  ;;  %v322_v27 = vshll.u32 %v5308_v19, 16  ;;  %v5340_v48 = vld [vmem:[%s5280_s25 + $0x20] sm:$0xff]   ;;  %v5343_v49 = vld [vmem:[%s5280_s25 + $0x28] sm:$0xff]  }
  0x16   : > { %v311_v21 = vrot.slane %v309_v15, 1  ;;  %v320_v30 = vor.u32 %v318_v17, %v316_v22  ;;  %v1677_v31 = vrot.slane %v1675_v23, 1  ;;  %v1684_v38 = vshrl.u32 %v5319_v28, 16  ;;  %v5349_v54 = vld [vmem:[%s5280_s25 + $0x28] sm:$0xff]   ;;  %v5355_v59 = vld [vmem:[%s5280_s25 + $0x30] sm:$0xff]   ;;  %v5379_v23 = vld [vmem:[%s5280_s25 + $0x38] sm:$0xff]  }
  0x17   : > { %v1680_v32 = vrot.slane %v1678_v24, 2  ;;  %v1669_v35 = vrot.slane %v1667_v25, 1  ;;  %v1672_v36 = vrot.slane %v1670_v26, 2  ;;  %v324_v37 = vrot.slane %v322_v27, 1  ;;  %v5360_v0 = vld [vmem:[%s5280_s25 + $0x30] sm:$0xff]  }
  0x18   : > { %v312_v29 = vor.u32 %v311_v21, %v307_v14  ;;  %v1687_v42 = vshll.u32 %v5319_v28, 16  ;;  %v326_v43 = vshrl.u32 %v5308_v19, 16  ;;  %v1686_v46 = vrot.slane %v1684_v38, 1 }
  0x19   : > { %v1681_v41 = vor.u32 %v1680_v32, %v1677_v31  ;;  %v1673_v44 = vor.u32 %v1672_v36, %v1669_v35  ;;  %v325_v45 = vsel %vm305_vm1, %v320_v30, %v324_v37  ;;  %v330_v47 = vshll.u32 %v5322_v33, 16  ;;  %v5388_v35 = vld [vmem:[%s5280_s25 + $0x38] sm:$0xff]  }
  0x1a   : > { %v317_v40 = vsel %vm305_vm1, %v312_v29, %v316_v22  ;;  %v1689_v50 = vrot.slane %v1687_v42, 2  ;;  %v328_v51 = vor.u32 %v326_v43, %v324_v37  ;;  %v1693_v52 = vshrl.u32 %v5325_v34, 16 }
  0x1b   : > { %4494 = vmatprep.mubr.msk.bf16.mxu1 %vm454_vm2, %v317_v40  ;;  %v1696_v53 = vshll.u32 %v5325_v34, 16  ;;  %v1682_v55 = vsel %vm1665_vm3, %v1673_v44, %v1681_v41  ;;  %v332_v56 = vrot.slane %v330_v47, 1  ;;  %v334_v57 = vshrl.u32 %v5322_v33, 16  ;;  %v5399_v44 = vld [vmem:[%s5280_s25 + $0x40] sm:$0xff]  }
  0x1c   : > { %4495 = vmatmul.mubr.msk.bf16.vlgmr.msra.gmra.mrb[0].mxu1 %vm454_vm2, %v325_v45  ;;  %v338_v58 = vshll.u32 %v5340_v48, 16  ;;  %4646 = vmatprep.mubr.msk.bf16.mxu0 %vm454_vm2, %v1682_v55  ;;  %v1690_v60 = vor.u32 %v1689_v50, %v1686_v46  ;;  %v1695_v61 = vrot.slane %v1693_v52, 1  ;;  %v1702_v63 = vshrl.u32 %v5343_v49, 16 }
  0x1d   : > { %4531 = vmatpush3.bf16.msra.mxu1 %v727_v12  ;;  %v1698_v62 = vrot.slane %v1696_v53, 2  ;;  %v333_v3 = vsel %vm305_vm1, %v328_v51, %v332_v56  ;;  %v336_v4 = vor.u32 %v334_v57, %v332_v56  ;;  %v1705_v7 = vshll.u32 %v5343_v49, 16  ;;  %v5404_v51 = vld [vmem:[%s5280_s25 + $0x40] sm:$0xff]  }
  0x1e   : > { %5126 = vmatprep.subr.msk.bf16.mxu1 %vm509_vm0, %v5331_v39  ;;  %v340_v5 = vrot.slane %v338_v58, 1  ;;  %v1691_v11 = vsel %vm1665_vm3, %v1681_v41, %v1690_v60  ;;  %4498 = vmatprep.mubr.msk.bf16.mxu1 %vm454_vm2, %v333_v3  ;;  %v1704_v14 = vrot.slane %v1702_v63, 1  ;;  %v342_v15 = vshrl.u32 %v5340_v48, 16  ;;  %v5415_v63 = vld [vmem:[%s5280_s25 + $0x48] sm:$0xff]  }
  0x1f   : > { %v1699_v12 = vor.u32 %v1698_v62, %v1695_v61  ;;  %4647 = vmatmul.mubr.msk.bf16.vlgmr.msra.gmra.mrb[0].mxu0 %vm454_vm2, %v1691_v11  ;;  %v1707_v17 = vrot.slane %v1705_v7, 2  ;;  %v346_v21 = vshll.u32 %v5349_v54, 16  ;;  %v1711_v22 = vshrl.u32 %v5355_v59, 16  ;;  %v5412_v62 = vld [vmem:[%s5280_s25 + $0x48] sm:$0xff]  }
  0x20   : > { %v341_v16 = vsel %vm305_vm1, %v336_v4, %v340_v5  ;;  %4683 = vmatpush3.bf16.msra.mxu0 %v5283_v6  ;;  %v344_v25 = vor.u32 %v342_v15, %v340_v5  ;;  %v1714_v26 = vshll.u32 %v5355_v59, 16  ;;  %v350_v27 = vshrl.u32 %v5349_v54, 16 }
  0x21   : > { %v1700_v24 = vsel %vm1665_vm3, %v1690_v60, %v1699_v12  ;;  %v1708_v29 = vor.u32 %v1707_v17, %v1704_v14  ;;  %v348_v30 = vrot.slane %v346_v21, 1  ;;  %v1713_v31 = vrot.slane %v1711_v22, 1  ;;  %5131 = vmatprep.subr.msk.bf16.mxu0 %vm509_vm0, %v5365_v1  ;;  %v5424_v14 = vld [vmem:[%s5280_s25 + $0x50] sm:$0xff]  }
  0x22   : > { %4650 = vmatprep.mubr.msk.bf16.mxu0 %vm454_vm2, %v1700_v24  ;;  %v354_v32 = vshll.u32 %v5360_v0, 16  ;;  %v1716_v6 = vrot.slane %v1714_v26, 2  ;;  %v1720_v36 = vshrl.u32 %v5379_v23, 16  ;;  %v1723_v37 = vshll.u32 %v5379_v23, 16 }
  0x23   : > { %v358_v38 = vshrl.u32 %v5360_v0, 16  ;;  %v1709_v40 = vsel %vm1665_vm3, %v1699_v12, %v1708_v29  ;;  %v349_v41 = vsel %vm305_vm1, %v344_v25, %v348_v30  ;;  %v352_v42 = vor.u32 %v350_v27, %v348_v30  ;;  %v5432_v25 = vld [vmem:[%s5280_s25 + $0x50] sm:$0xff]  }
  0x24   : > { %4499 = vmatmul.mubr.msk.bf16.gmra.mrb[4].mxu1 %vm454_vm2, %v341_v16  ;;  %v356_v43 = vrot.slane %v354_v32, 1  ;;  %v1717_v45 = vor.u32 %v1716_v6, %v1713_v31  ;;  %v1722_v46 = vrot.slane %v1720_v36, 1  ;;  %v1725_v47 = vrot.slane %v1723_v37, 2 }
  0x25   : > { %4502 = vmatprep.mubr.msk.bf16.mxu1 %vm454_vm2, %v349_v41  ;;  %v362_v50 = vshll.u32 %v5388_v35, 16  ;;  %v1729_v55 = vshrl.u32 %v5399_v44, 16  ;;  %v1732_v56 = vshll.u32 %v5399_v44, 16  ;;  %v366_v61 = vshrl.u32 %v5388_v35, 16  ;;  %v5442_v41 = vld [vmem:[%s5280_s25 + $0x58] sm:$0xff]  }
  0x26   : > { %v357_v52 = vsel %vm305_vm1, %v352_v42, %v356_v43  ;;  %v360_v53 = vor.u32 %v358_v38, %v356_v43  ;;  %v1718_v57 = vsel %vm1665_vm3, %v1708_v29, %v1717_v45  ;;  %v1726_v58 = vor.u32 %v1725_v47, %v1722_v46  ;;  %v5437_v29 = vld [vmem:[%s5280_s25 + $0x58] sm:$0xff]  }
  0x27   : > { %v364_v60 = vrot.slane %v362_v50, 1  ;;  %4651 = vmatmul.mubr.msk.bf16.gmra.mrb[4].mxu0 %vm454_vm2, %v1709_v40  ;;  %v1731_v3 = vrot.slane %v1729_v55, 1  ;;  %v1734_v4 = vrot.slane %v1732_v56, 2  ;;  %v370_v5 = vshll.u32 %v5404_v51, 16 }
  0x28   : > { %v374_v7 = vshrl.u32 %v5404_v51, 16  ;;  %4654 = vmatprep.mubr.msk.bf16.mxu0 %vm454_vm2, %v1718_v57  ;;  %v1738_v12 = vshrl.u32 %v5412_v62, 16  ;;  %v1741_v16 = vshll.u32 %v5412_v62, 16  ;;  %v378_v17 = vshll.u32 %v5415_v63, 16  ;;  %v2106_v57 = vld [vmem:[%s5280_s25 + $0x8] sm:$0xc] }
  0x29   : > { %v365_v11 = vsel %vm305_vm1, %v360_v53, %v364_v60  ;;  %v1735_v15 = vor.u32 %v1734_v4, %v1731_v3  ;;  %v372_v21 = vrot.slane %v370_v5, 1  ;;  %v1747_v22 = vshrl.u32 %v5424_v14, 16 }
  0x2a   : > { %v1750_v24 = vshll.u32 %v5424_v14, 16  ;;  %v1727_v26 = vsel %vm1665_vm3, %v1717_v45, %v1726_v58  ;;  %v368_v27 = vor.u32 %v366_v61, %v364_v60  ;;  %v1740_v30 = vrot.slane %v1738_v12, 1 }
  0x2b   : > { %v1743_v31 = vrot.slane %v1741_v16, 2  ;;  %v376_v32 = vor.u32 %v374_v7, %v372_v21  ;;  %v380_v6 = vrot.slane %v378_v17, 1  ;;  %v1736_v36 = vsel %vm1665_vm3, %v1726_v58, %v1735_v15  ;;  %v5456_v58 = vld [vmem:[%s5280_s25 + $0x60] sm:$0xff]  }
  0x2c   : > { %4503 = vmatmul.mubr.msk.bf16.gmra.mrb[8].mxu1 %vm454_vm2, %v357_v52  ;;  %v1749_v37 = vrot.slane %v1747_v22, 1  ;;  %v1752_v38 = vrot.slane %v1750_v24, 2  ;;  %v386_v40 = vshll.u32 %v5432_v25, 16  ;;  %v373_v42 = vsel %vm305_vm1, %v368_v27, %v372_v21 }
  0x2d   : > { %4506 = vmatprep.mubr.msk.bf16.mxu1 %vm454_vm2, %v365_v11  ;;  %v382_v43 = vshrl.u32 %v5415_v63, 16  ;;  %v1756_v45 = vshrl.u32 %v5437_v29, 16  ;;  %v1759_v46 = vshll.u32 %v5437_v29, 16  ;;  %v1744_v47 = vor.u32 %v1743_v31, %v1740_v30  ;;  %v5461_v11 = vld [vmem:[%s5280_s25 + $0x68] sm:$0xff]  }
  0x2e   : > { %v381_v50 = vsel %vm305_vm1, %v376_v32, %v380_v6  ;;  %v390_v52 = vshrl.u32 %v5432_v25, 16  ;;  %v394_v53 = vshll.u32 %v5442_v41, 16  ;;  %v1753_v55 = vor.u32 %v1752_v38, %v1749_v37  ;;  %v5478_v32 = vld [vmem:[%s5280_s25 + $0x70] sm:$0xff]  }
  0x2f   : > { %4655 = vmatmul.mubr.msk.bf16.gmra.mrb[8].mxu0 %vm454_vm2, %v1727_v26  ;;  %v388_v56 = vrot.slane %v386_v40, 1  ;;  %v384_v60 = vor.u32 %v382_v43, %v380_v6  ;;  %v1758_v61 = vrot.slane %v1756_v45, 1  ;;  %v1761_v3 = vrot.slane %v1759_v46, 2  ;;  %v5484_v40 = vld [vmem:[%s5280_s25 + $0x78] sm:$0xff]  }
  0x30   : > { %4658 = vmatprep.mubr.msk.bf16.mxu0 %vm454_vm2, %v1736_v36  ;;  %v1745_v4 = vsel %vm1665_vm3, %v1735_v15, %v1744_v47  ;;  %v396_v7 = vrot.slane %v394_v53, 1  ;;  %v1754_v12 = vsel %vm1665_vm3, %v1744_v47, %v1753_v55  ;;  %v4149_v16 = vcombine.low %v2106_v57, %v5298_v13 }
  0x31   : > { %v392_v5 = vor.u32 %v390_v52, %v388_v56  ;;  %v402_v17 = vshll.u32 %v5456_v58, 16  ;;  %v389_v21 = vsel %vm305_vm1, %v384_v60, %v388_v56  ;;  %v398_v22 = vshrl.u32 %v5442_v41, 16  ;;  %v5499_v56 = vld [vmem:[%s5280_s25 + $0x80] sm:$0xff]  }
  0x32   : > { %v5470_v15 = vor.u32 %v1761_v3, %v1758_v61  ;;  %v406_v26 = vshrl.u32 %v5456_v58, 16  ;;  %v410_v27 = vshll.u32 %v5461_v11, 16  ;;  %v2113_v13 = vrot.slane %v4149_v16, 2 }
  0x33   : > { %v397_v24 = vsel %vm305_vm1, %v392_v5, %v396_v7  ;;  %v2114_v30 = vrot.slane %v5305_v18, 2  ;;  %v404_v31 = vrot.slane %v402_v17, 1  ;;  %v400_v6 = vor.u32 %v398_v22, %v396_v7 }
  0x34   : > { %4507 = vmatmul.mubr.msk.bf16.gmra.mrb[12].mxu1 %vm454_vm2, %v373_v42  ;;  %v1763_v36 = vsel %vm1665_vm3, %v1753_v55, %v5470_v15  ;;  %v412_v38 = vrot.slane %v410_v27, 1  ;;  %v418_v18 = vshll.u32 %v5478_v32, 16  ;;  %v2116_v45 = vrot.slane %v5319_v28, 2  ;;  %v5529_v27 = vld [vmem:[%s5280_s25 + $0x90] ss:$0 sps:$4 sm:$0x11]  }
  0x35   : > { %4510 = vmatprep.mubr.msk.bf16.mxu1 %vm454_vm2, %v381_v50  ;;  %v408_v37 = vor.u32 %v406_v26, %v404_v31  ;;  %v2115_v42 = vsel %vm2112_vm4, %v2113_v13, %v2114_v30  ;;  %v405_v43 = vsel %vm305_vm1, %v400_v6, %v404_v31  ;;  %v414_v46 = vshrl.u32 %v5461_v11, 16 }
  0x36   : > { %v422_v50 = vshrl.u32 %v5478_v32, 16  ;;  %v426_v52 = vshll.u32 %v5484_v40, 16  ;;  %v2118_v53 = vrot.slane %v5325_v34, 2  ;;  %v420_v55 = vrot.slane %v418_v18, 1  ;;  %v5512_v34 = vld [vmem:[%s6218_s1 + $0xe] sm:$0x3] }
  0x37   : > { %4659 = vmatmul.mubr.msk.bf16.gmra.mrb[12].mxu0 %vm454_vm2, %v1745_v4  ;;  %v413_v47 = vsel %vm305_vm1, %v408_v37, %v412_v38  ;;  %v2644_v28 = vsel %vm509_vm0, %v5365_v1, 0  ;;  %v416_v57 = vor.u32 %v414_v46, %v412_v38  ;;  %v2117_v60 = vsel %vm2112_vm4, %v2114_v30, %v2116_v45  ;;  %v5506_v4 = vld [vmem:[%s5280_s25 + $0x88] sm:$0xff]  }
  0x38   : > { %4662 = vmatprep.mubr.msk.bf16.mxu0 %vm454_vm2, %v1754_v12  ;;  %v424_v61 = vor.u32 %v422_v50, %v420_v55  ;;  %v428_v3 = vrot.slane %v426_v52, 1  ;;  %v2119_v5 = vsel %vm2112_vm4, %v2116_v45, %v2118_v53  ;;  %v434_v7 = vshll.u32 %v5499_v56, 16 }
  0x39   : > { %v421_v1 = vsel %vm305_vm1, %v416_v57, %v420_v55  ;;  %v2120_v12 = vrot.slane %v5343_v49, 2  ;;  %v430_v16 = vshrl.u32 %v5484_v40, 16  ;;  %v442_v22 = vshll.u32 %v5506_v4, 16  ;;  %v5556_v55 = vld [vmem:[%s5280_s25 + $0x60] sm:$0xff]   ;;  %v5575_v57 = vld [vmem:[%s5280_s25 + $0x68] sm:$0xff]  }
  0x3a   : > { %v429_v17 = vsel %vm305_vm1, %v424_v61, %v428_v3  ;;  %v436_v26 = vrot.slane %v434_v7, 1  ;;  %v450_v37 = vshll.u32 %v5529_v27, 16  ;;  %v2124_v38 = vrot.slane %v5379_v23, 2  ;;  %v5593_v7 = vld [vmem:[%s5280_s25 + $0x78] sm:$0xff]  }
  0x3b   : > { %v432_v49 = vor.u32 %v430_v16, %v428_v3  ;;  %v2121_v13 = vsel %vm2112_vm4, %v2118_v53, %v2120_v12  ;;  %v444_v31 = vrot.slane %v442_v22, 1  ;;  %v2126_v18 = vrot.slane %v5399_v44, 2  ;;  %v5609_v22 = vld [vmem:[%s5280_s25 + $0x88] sm:$0xff]  }
  0x3c   : > { %4511 = vmatmul.mubr.msk.bf16.gmra.mrb[16].mxu1 %vm454_vm2, %v389_v21  ;;  %v438_v21 = vshrl.u32 %v5499_v56, 16  ;;  %v452_v45 = vrot.slane %v450_v37, 1  ;;  %v2128_v23 = vrot.slane %v5412_v62, 2  ;;  %v2130_v44 = vrot.slane %v5424_v14, 2 }
  0x3d   : > { %4514 = vmatprep.mubr.msk.bf16.mxu1 %vm454_vm2, %v397_v24  ;;  %v2122_v24 = vrot.slane %v5355_v59, 2  ;;  %v437_v59 = vsel %vm305_vm1, %v432_v49, %v436_v26  ;;  %v2132_v62 = vrot.slane %v5437_v29, 2  ;;  %v1005_v14 = vsel %vm509_vm0, %v5331_v39, 0 }
  0x3e   : > { %v440_v30 = vor.u32 %v438_v21, %v436_v26  ;;  %v2129_v52 = vsel %vm2112_vm4, %v2126_v18, %v2128_v23  ;;  %v2131_v53 = vsel %vm2112_vm4, %v2128_v23, %v2130_v44  ;;  %v2136_v61 = vrot.slane %v5575_v57, 2  ;;  %v5613_v26 = vld [vmem:[%s5280_s25 + $0x90] sm:$0xff]  }
  0x3f   : > { %4663 = vmatmul.mubr.msk.bf16.gmra.mrb[16].mxu0 %vm454_vm2, %v1763_v36  ;;  %v2123_v6 = vsel %vm2112_vm4, %v2120_v12, %v2122_v24  ;;  %v446_v36 = vshrl.u32 %v5506_v4, 16  ;;  %v2125_v46 = vsel %vm2112_vm4, %v2122_v24, %v2124_v38  ;;  %v2133_v29 = vsel %vm2112_vm4, %v2130_v44, %v2132_v62  ;;  %v5597_v12 = vld [vmem:[%s5280_s25 + $0x80] sm:$0xff]  }
  0x40   : > { %4684 = vmatprep.mubr.msk.bf16.mxu0 %vm454_vm2, %v2115_v42  ;;  %v445_v42 = vsel %vm305_vm1, %v440_v30, %v444_v31  ;;  %v2140_v16 = vrot.slane %v5593_v7, 2  ;;  %v2144_v49 = vrot.slane %v5609_v22, 2  ;;  %v2420_v30 = vld [vmem:[%s5280_s25 + $0x10] sm:$0xc] }
  0x44   : > { %4515 = vmatmul.mubr.msk.bf16.gmra.mrb[20].mxu1 %vm454_vm2, %v405_v43  ;;  %v448_v43 = vor.u32 %v446_v36, %v444_v31  ;;  %v5623_v31 = vld [vmem:[%s5280_s25 + $0x14] sm:$0xf] }
  0x45   : > { %4518 = vmatprep.mubr.msk.bf16.mxu1 %vm454_vm2, %v413_v47  ;;  %v2127_v47 = vsel %vm2112_vm4, %v2124_v38, %v2126_v18  ;;  %v5633_v37 = vcombine.low %v2420_v30, %v5623_v31  ;;  %v5636_v38 = vld [vmem:[%s5280_s25 + $0x18] sm:$0xff]  }
  0x46   : > { %v453_v50 = vsel %vm305_vm1, %v448_v43, %v452_v45  ;;  %v2553_v43 = vrot.slane %v5636_v38, 2 }
  0x47   : > { %4685 = vmatmul.mubr.msk.bf16.vlgmr.msra.gmra.mrb[0].mxu0 %vm454_vm2, %v2117_v60  ;;  %v5581_v60 = vld [vmem:[%s5280_s25 + $0x70] sm:$0xff]   ;;  %v2552_v18 = vrot.slane %v5633_v37, 2 }
  0x48   : > { %4721 = vmatpush3.bf16.msra.mxu0 %v2644_v28  ;;  %4688 = vmatprep.mubr.msk.bf16.mxu0 %vm454_vm2, %v2119_v5  ;;  %v2134_v28 = vrot.slane %v5556_v55, 2  ;;  %v2138_v3 = vrot.slane %v5581_v60, 2 }
  0x49   : > { %5132 = vmatprep.subr.msk.bf16.mxu0 %vm509_vm0, %v5512_v34 }
  0x4a   : > { %v2135_v39 = vsel %vm2112_vm4, %v2132_v62, %v2134_v28  ;;  %v2137_v5 = vsel %vm2112_vm4, %v2134_v28, %v2136_v61  ;;  %v2141_v21 = vsel %vm2112_vm4, %v2138_v3, %v2140_v16  ;;  %v3091_v62 = vsel %vm509_vm0, %v5512_v34, 0  ;;  %v5671_v28 = vld [vmem:[%s5280_s25 + $0x38] sm:$0xff]  }
  0x4c   : > { %4519 = vmatmul.mubr.msk.bf16.gmra.mrb[24].mxu1 %vm454_vm2, %v421_v1  ;;  %v2139_v1 = vsel %vm2112_vm4, %v2136_v61, %v2138_v3  ;;  %v2561_v61 = vrot.slane %v5671_v28, 2  ;;  %v5690_v3 = vld [vmem:[%s5280_s25 + $0x40] sm:$0xff]  }
  0x4d   : > { %4522 = vmatprep.mubr.msk.bf16.mxu1 %vm454_vm2, %v429_v17  ;;  %v2142_v17 = vrot.slane %v5597_v12, 2 }
  0x4f   : > { %4689 = vmatmul.mubr.msk.bf16.gmra.mrb[4].mxu0 %vm454_vm2, %v2121_v13  ;;  %v2143_v24 = vsel %vm2112_vm4, %v2140_v16, %v2142_v17  ;;  %v2146_v13 = vrot.slane %v5613_v26, 2  ;;  %v906_v16 = vld [vmem:[%s5280_s25] sm:$0xe] }
  0x50   : > { %4692 = vmatprep.mubr.msk.bf16.mxu0 %vm454_vm2, %v2123_v6  ;;  %v2145_v6 = vsel %vm2112_vm4, %v2142_v17, %v2144_v49  ;;  %v2563_v17 = vrot.slane %v5690_v3, 2 }
  0x51   : > { %v2147_v36 = vsel %vm2112_vm4, %v2144_v49, %v2146_v13 }
  0x52   : > { %v2564_v49 = vsel %vm2112_vm4, %v2561_v61, %v2563_v17 }
  0x54   : > { %4523 = vmatmul.mubr.msk.bf16.gmra.mrb[28].mxu1 %vm454_vm2, %v437_v59  ;;  %v5629_v59 = vld [vmem:[%s5280_s25 + $0x98] ss:$0 sps:$4 sm:$0x33]  }
  0x55   : > { %4526 = vmatprep.mubr.msk.bf16.mxu1 %vm454_vm2, %v445_v42  ;;  %v2148_v42 = vrot.slane %v5629_v59, 2 }
  0x57   : > { %4693 = vmatmul.mubr.msk.bf16.gmra.mrb[8].mxu0 %vm454_vm2, %v2125_v46  ;;  %v2149_v45 = vsel %vm2112_vm4, %v2146_v13, %v2148_v42  ;;  %v5649_v46 = vld [vmem:[%s5280_s25 + $0x20] sm:$0xff]   ;;  %v5708_v13 = vld [vmem:[%s5280_s25 + $0x50] sm:$0xff]  }
  0x58   : > { %4696 = vmatprep.mubr.msk.bf16.mxu0 %vm454_vm2, %v2127_v47  ;;  %v2554_v47 = vsel %vm2112_vm4, %v2552_v18, %v2553_v43  ;;  %v2555_v23 = vrot.slane %v5649_v46, 2  ;;  %v2567_v42 = vrot.slane %v5708_v13, 2 }
  0x5c   : > { %4527 = vmatmul.mubr.msk.bf16.gmra.mrb[32].mxu1 %vm454_vm2, %v453_v50  ;;  %v5653_v50 = vld [vmem:[%s5280_s25 + $0x28] sm:$0xff]  }
  0x5d   : > { %4532 = vmatprep.mubr.msk.bf16.mxu1 %vm454_vm2, %v5290_v9  ;;  %v5567_v9 = vld [vmem:[%s6218_s1 + $0x6] sm:$0x3]  ;;  %v2557_v44 = vrot.slane %v5653_v50, 2 }
  0x5f   : > { %4697 = vmatmul.mubr.msk.bf16.gmra.mrb[12].mxu0 %vm454_vm2, %v2129_v52  ;;  %v2556_v52 = vsel %vm2112_vm4, %v2553_v43, %v2555_v23 }
  0x60   : > { %4700 = vmatprep.mubr.msk.bf16.mxu0 %vm454_vm2, %v2131_v53  ;;  %v5665_v53 = vld [vmem:[%s5280_s25 + $0x30] sm:$0xff]  }
  0x64   : > { %4533 = vmatmul.mubr.msk.bf16.vlgmr.msra.gmra.mrb[0].mxu1 %vm454_vm2, %v5293_v10 }
  0x65   : > { %4536 = vmatprep.mubr.msk.bf16.mxu1 %vm454_vm2, %v5308_v19  ;;  %4569 = vmatpush3.bf16.msra.mxu1 %v1005_v14  ;;  %v2558_v14 = vsel %vm2112_vm4, %v2555_v23, %v2557_v44  ;;  %v918_v23 = vrot.slane %v5322_v33, 1 }
  0x66   : > { %5127 = vmatprep.subr.msk.bf16.mxu1 %vm509_vm0, %v5567_v9 }
  0x67   : > { %4701 = vmatmul.mubr.msk.bf16.gmra.mrb[16].mxu0 %vm454_vm2, %v2133_v29  ;;  %v5676_v29 = vld [vmem:[%s6218_s1 + $0x10] sm:$0x3] }
  0x68   : > { %4704 = vmatprep.mubr.msk.bf16.mxu0 %vm454_vm2, %v2135_v39  ;;  %v2559_v39 = vrot.slane %v5665_v53, 2 }
  0x6a   : > { %v2560_v34 = vsel %vm2112_vm4, %v2557_v44, %v2559_v39 }
  0x6c   : > { %4537 = vmatmul.mubr.msk.bf16.gmra.mrb[4].mxu1 %vm454_vm2, %v5322_v33 }
  0x6d   : > { %4540 = vmatprep.mubr.msk.bf16.mxu1 %vm454_vm2, %v5340_v48 }
  0x6f   : > { %4705 = vmatmul.mubr.msk.bf16.gmra.mrb[20].mxu0 %vm454_vm2, %v2137_v5  ;;  %v2562_v5 = vsel %vm2112_vm4, %v2559_v39, %v2561_v61  ;;  %v1444_v39 = vsel %vm509_vm0, %v5567_v9, 0  ;;  %v920_v61 = vrot.slane %v5340_v48, 1  ;;  %v5206_v9 = vld [vmem:[%s6218_s1 + $0x8] sm:$0x3] }
  0x70   : > { %4708 = vmatprep.mubr.msk.bf16.mxu0 %vm454_vm2, %v2139_v1  ;;  %v5694_v1 = vld [vmem:[%s5280_s25 + $0x48] sm:$0xff]  }
  0x71   : > { %v921_v48 = vsel %vm912_vm5, %v918_v23, %v920_v61 }
  0x74   : > { %4541 = vmatmul.mubr.msk.bf16.gmra.mrb[8].mxu1 %vm454_vm2, %v5349_v54 }
  0x75   : > { %4544 = vmatprep.mubr.msk.bf16.mxu1 %vm454_vm2, %v5360_v0 }
  0x77   : > { %4709 = vmatmul.mubr.msk.bf16.gmra.mrb[24].mxu0 %vm454_vm2, %v2141_v21  ;;  %v4071_v21 = vcombine.low %v906_v16, %v5287_v8  ;;  %v5713_v8 = vld [vmem:[%s5280_s25 + $0x58] sm:$0xff]   ;;  %v922_v16 = vrot.slane %v5349_v54, 1 }
  0x78   : > { %4712 = vmatprep.mubr.msk.bf16.mxu0 %vm454_vm2, %v2143_v24  ;;  %v2565_v24 = vrot.slane %v5694_v1, 2  ;;  %v2569_v43 = vrot.slane %v5713_v8, 2 }
  0x79   : > { %v913_v30 = vrot.slane %v4071_v21, 1  ;;  %v5755_v21 = vld [vmem:[%s5280_s25 + $0x78] sm:$0xff]   ;;  %v923_v54 = vsel %vm912_vm5, %v920_v61, %v922_v16 }
  0x7a   : > { %v2570_v44 = vsel %vm2112_vm4, %v2567_v42, %v2569_v43 }
  0x7c   : > { %4545 = vmatmul.mubr.msk.bf16.gmra.mrb[12].mxu1 %vm454_vm2, %v5388_v35 }
  0x7d   : > { %4548 = vmatprep.mubr.msk.bf16.mxu1 %vm454_vm2, %v5404_v51 }
  0x7f   : > { %4713 = vmatmul.mubr.msk.bf16.gmra.mrb[28].mxu0 %vm454_vm2, %v2145_v6  ;;  %v914_v6 = vrot.slane %v5293_v10, 1  ;;  %v916_v10 = vrot.slane %v5308_v19, 1 }
  0x80   : > { %4716 = vmatprep.mubr.msk.bf16.mxu0 %vm454_vm2, %v2147_v36  ;;  %v2566_v36 = vsel %vm2112_vm4, %v2563_v17, %v2565_v24 }
  0x81   : > { %v915_v18 = vsel %vm912_vm5, %v913_v30, %v914_v6  ;;  %v924_v30 = vrot.slane %v5360_v0, 1 }
  0x84   : > { %4549 = vmatmul.mubr.msk.bf16.gmra.mrb[16].mxu1 %vm454_vm2, %v5415_v63 }
  0x85   : > { %4552 = vmatprep.mubr.msk.bf16.mxu1 %vm454_vm2, %v5432_v25 }
  0x87   : > { %4717 = vmatmul.mubr.msk.bf16.gmra.mrb[32].mxu0 %vm454_vm2, %v2149_v45  ;;  %v2568_v45 = vsel %vm2112_vm4, %v2565_v24, %v2567_v42  ;;  %v926_v42 = vrot.slane %v5388_v35, 1  ;;  %v928_v35 = vrot.slane %v5404_v51, 1 }
  0x88   : > { %4722 = vmatprep.mubr.msk.bf16.mxu0 %vm454_vm2, %v2554_v47  ;;  %v5726_v47 = vld [vmem:[%s5280_s25 + $0x60] sm:$0xff]  }
  0x89   : > { %v2571_v19 = vrot.slane %v5726_v47, 2 }
  0x8c   : > { %4553 = vmatmul.mubr.msk.bf16.gmra.mrb[20].mxu1 %vm454_vm2, %v5442_v41 }
  0x8d   : > { %4556 = vmatprep.mubr.msk.bf16.mxu1 %vm454_vm2, %v5456_v58 }
  0x8f   : > { %4723 = vmatmul.mubr.msk.bf16.vlgmr.msra.gmra.mrb[0].mxu0 %vm454_vm2, %v2556_v52  ;;  %v5731_v52 = vld [vmem:[%s5280_s25 + $0x68] sm:$0xff]  }
  0x90   : > { %4759 = vmatpush3.bf16.msra.mxu0 %v3091_v62  ;;  %4726 = vmatprep.mubr.msk.bf16.mxu0 %vm454_vm2, %v2558_v14  ;;  %v917_v62 = vsel %vm912_vm5, %v914_v6, %v916_v10  ;;  %v919_v14 = vsel %vm912_vm5, %v916_v10, %v918_v23  ;;  %v2573_v33 = vrot.slane %v5731_v52, 2  ;;  %v925_v10 = vsel %vm912_vm5, %v922_v16, %v924_v30 }
  0x91   : > { %5133 = vmatprep.subr.msk.bf16.mxu0 %vm509_vm0, %v5676_v29  ;;  %v2867_v16 = vshrl.u32 %v5633_v37, 16 }
  0x92   : > { %v2574_v17 = vsel %vm2112_vm4, %v2571_v19, %v2573_v33 }
  0x94   : > { %4557 = vmatmul.mubr.msk.bf16.gmra.mrb[24].mxu1 %vm454_vm2, %v5461_v11 }
  0x95   : > { %4560 = vmatprep.mubr.msk.bf16.mxu1 %vm454_vm2, %v5478_v32 }
  0x97   : > { %4727 = vmatmul.mubr.msk.bf16.gmra.mrb[4].mxu0 %vm454_vm2, %v2560_v34  ;;  %v2572_v34 = vsel %vm2112_vm4, %v2569_v43, %v2571_v19  ;;  %v5773_v43 = vld [vmem:[%s5280_s25 + $0x88] sm:$0xff]   ;;  %v930_v19 = vrot.slane %v5415_v63, 1  ;;  %v2870_v63 = vshll.u32 %v5633_v37, 16 }
  0x98   : > { %4730 = vmatprep.mubr.msk.bf16.mxu0 %vm454_vm2, %v2562_v5  ;;  %v5746_v5 = vld [vmem:[%s5280_s25 + $0x70] sm:$0xff]   ;;  %v2581_v23 = vrot.slane %v5773_v43, 2 }
  0x99   : > { %v2575_v24 = vrot.slane %v5746_v5, 2  ;;  %v931_v51 = vsel %vm912_vm5, %v928_v35, %v930_v19 }
  0x9b   : > { %v2576_v6 = vsel %vm2112_vm4, %v2573_v33, %v2575_v24  ;;  %v929_v33 = vsel %vm912_vm5, %v926_v42, %v928_v35 }
  0x9c   : > { %4561 = vmatmul.mubr.msk.bf16.gmra.mrb[28].mxu1 %vm454_vm2, %v5484_v40 }
  0x9d   : > { %4564 = vmatprep.mubr.msk.bf16.mxu1 %vm454_vm2, %v5499_v56 }
  0x9f   : > { %4731 = vmatmul.mubr.msk.bf16.gmra.mrb[8].mxu0 %vm454_vm2, %v2564_v49  ;;  %v2577_v49 = vrot.slane %v5755_v21, 2 }
  0xa0   : > { %4734 = vmatprep.mubr.msk.bf16.mxu0 %vm454_vm2, %v2566_v36  ;;  %v5768_v36 = vld [vmem:[%s5280_s25 + $0x80] sm:$0xff]  }
  0xa1   : > { %v2579_v0 = vrot.slane %v5768_v36, 2 }
  0xa4   : > { %4565 = vmatmul.mubr.msk.bf16.gmra.mrb[32].mxu1 %vm454_vm2, %v5506_v4 }
  0xa5   : > { %4570 = vmatprep.mubr.msk.bf16.mxu1 %vm454_vm2, %v915_v18  ;;  %v2578_v18 = vsel %vm2112_vm4, %v2575_v24, %v2577_v49 }
  0xa7   : > { %4735 = vmatmul.mubr.msk.bf16.gmra.mrb[12].mxu0 %vm454_vm2, %v2568_v45  ;;  %v927_v45 = vsel %vm912_vm5, %v924_v30, %v926_v42  ;;  %v934_v30 = vrot.slane %v5442_v41, 1  ;;  %v2872_v42 = vrot.slane %v2870_v63, 3  ;;  %v2893_v41 = vshrl.u32 %v5653_v50, 16 }
  0xa8   : > { %4738 = vmatprep.mubr.msk.bf16.mxu0 %vm454_vm2, %v2570_v44  ;;  %v2580_v44 = vsel %vm2112_vm4, %v2577_v49, %v2579_v0  ;;  %v5202_v49 = vld [vmem:[%s5280_s25 + $0xa0] ss:$0 sps:$4 sm:$0x33]  }
  0xac   : > { %4571 = vmatmul.mubr.msk.bf16.vlgmr.msra.gmra.mrb[0].mxu1 %vm454_vm2, %v917_v62  ;;  %v5786_v62 = vld [vmem:[%s5280_s25 + $0x90] sm:$0xff]  }
  0xad   : > { %4574 = vmatprep.mubr.msk.bf16.mxu1 %vm454_vm2, %v919_v14  ;;  %4607 = vmatpush3.bf16.msra.mxu1 %v1444_v39  ;;  %v5790_v14 = vld [vmem:[%s5280_s25 + $0x98] sm:$0xff]   ;;  %v2582_v39 = vsel %vm2112_vm4, %v2579_v0, %v2581_v23  ;;  %v2583_v61 = vrot.slane %v5786_v62, 2  ;;  %v2587_v0 = vrot.slane %v5202_v49, 2 }
  0xae   : > { %5129 = vmatprep.subr.msk.bf16.mxu1 %vm509_vm0, %v5206_v9  ;;  %v2875_v9 = vshrl.u32 %v5636_v38, 16 }
  0xaf   : > { %4739 = vmatmul.mubr.msk.bf16.gmra.mrb[16].mxu0 %vm454_vm2, %v2572_v34  ;;  %v2585_v34 = vrot.slane %v5790_v14, 2  ;;  %v2584_v24 = vsel %vm2112_vm4, %v2581_v23, %v2583_v61  ;;  %v2887_v23 = vshll.u32 %v5649_v46, 16 }
  0xb0   : > { %4742 = vmatprep.mubr.msk.bf16.mxu0 %vm454_vm2, %v2574_v17  ;;  %v2878_v17 = vshll.u32 %v5636_v38, 16  ;;  %v2877_v37 = vrot.slane %v2875_v9, 2  ;;  %v2895_v9 = vrot.slane %v2893_v41, 2  ;;  %v2920_v41 = vshrl.u32 %v5690_v3, 16 }
  0xb4   : > { %4575 = vmatmul.mubr.msk.bf16.gmra.mrb[4].mxu1 %vm454_vm2, %v921_v48  ;;  %v932_v48 = vrot.slane %v5432_v25, 1 }
  0xb5   : > { %4578 = vmatprep.mubr.msk.bf16.mxu1 %vm454_vm2, %v923_v54  ;;  %v2586_v54 = vsel %vm2112_vm4, %v2583_v61, %v2585_v34 }
  0xb6   : > { %v935_v25 = vsel %vm912_vm5, %v932_v48, %v934_v30 }
  0xb7   : > { %4743 = vmatmul.mubr.msk.bf16.gmra.mrb[20].mxu0 %vm454_vm2, %v2576_v6  ;;  %v2869_v6 = vrot.slane %v2867_v16, 2  ;;  %v938_v16 = vrot.slane %v5461_v11, 1  ;;  %v2911_v11 = vshrl.u32 %v5671_v28, 16 }
  0xb8   : > { %4746 = vmatprep.mubr.msk.bf16.mxu0 %vm454_vm2, %v2578_v18  ;;  %v2880_v18 = vrot.slane %v2878_v17, 3 }
  0xb9   : > { %v2873_v35 = vor.u32 %v2872_v42, %v2869_v6  ;;  %v2914_v6 = vshll.u32 %v5671_v28, 16 }
  0xbc   : > { %4579 = vmatmul.mubr.msk.bf16.gmra.mrb[8].mxu1 %vm454_vm2, %v925_v10  ;;  %v933_v10 = vsel %vm912_vm5, %v930_v19, %v932_v48  ;;  %v936_v19 = vrot.slane %v5456_v58, 1  ;;  %v2902_v58 = vshrl.u32 %v5665_v53, 16 }
  0xbd   : > { %4582 = vmatprep.mubr.msk.bf16.mxu1 %vm454_vm2, %v927_v45  ;;  %v2884_v45 = vshrl.u32 %v5649_v46, 16 }
  0xbe   : > { %v937_v48 = vsel %vm912_vm5, %v934_v30, %v936_v19  ;;  %v940_v30 = vrot.slane %v5478_v32, 1  ;;  %v2923_v32 = vshll.u32 %v5690_v3, 16 }
  0xbf   : > { %4747 = vmatmul.mubr.msk.bf16.gmra.mrb[24].mxu0 %vm454_vm2, %v2580_v44  ;;  %v2881_v44 = vor.u32 %v2880_v18, %v2877_v37  ;;  %v2886_v61 = vrot.slane %v2884_v45, 2  ;;  %v2904_v37 = vrot.slane %v2902_v58, 2  ;;  %v2913_v45 = vrot.slane %v2911_v11, 2 }
  0xc0   : > { %4750 = vmatprep.mubr.msk.bf16.mxu0 %vm454_vm2, %v2582_v39  ;;  %v2896_v39 = vshll.u32 %v5653_v50, 16  ;;  %v2938_v58 = vshrl.u32 %v5708_v13, 16  ;;  %v2950_v11 = vshll.u32 %v5713_v8, 16 }
  0xc1   : > { %v2882_v63 = vsel %vm2865_vm6, %v2873_v35, %v2881_v44  ;;  %v941_v35 = vsel %vm912_vm5, %v938_v16, %v940_v30 }
  0xc2   : > { %v2898_v17 = vrot.slane %v2896_v39, 3 }
  0xc4   : > { %4583 = vmatmul.mubr.msk.bf16.gmra.mrb[12].mxu1 %vm454_vm2, %v929_v33  ;;  %v2588_v33 = vsel %vm2112_vm4, %v2585_v34, %v2587_v0  ;;  %v2905_v34 = vshll.u32 %v5665_v53, 16  ;;  %v2899_v49 = vor.u32 %v2898_v17, %v2895_v9  ;;  %v3405_v0 = vsel %vm509_vm0, %v5676_v29, 0 }
  0xc5   : > { %4586 = vmatprep.mubr.msk.bf16.mxu1 %vm454_vm2, %v931_v51  ;;  %v2889_v51 = vrot.slane %v2887_v23, 3  ;;  %v2916_v23 = vrot.slane %v2914_v6, 3  ;;  %v2929_v29 = vshrl.u32 %v5694_v1, 16 }
  0xc6   : > { %v2907_v18 = vrot.slane %v2905_v34, 3  ;;  %v2941_v34 = vshll.u32 %v5708_v13, 16 }
  0xc7   : > { %4751 = vmatmul.mubr.msk.bf16.gmra.mrb[28].mxu0 %vm454_vm2, %v2584_v24  ;;  %v2890_v24 = vor.u32 %v2889_v51, %v2886_v61  ;;  %v2917_v39 = vor.u32 %v2916_v23, %v2913_v45  ;;  %v2922_v61 = vrot.slane %v2920_v41, 2  ;;  %v2925_v51 = vrot.slane %v2923_v32, 3 }
  0xc8   : > { %4754 = vmatprep.mubr.msk.bf16.mxu0 %vm454_vm2, %v2586_v54  ;;  %v939_v54 = vsel %vm912_vm5, %v936_v19, %v938_v16  ;;  %v2932_v19 = vshll.u32 %v5694_v1, 16  ;;  %v2931_v17 = vrot.slane %v2929_v29, 2  ;;  %v2952_v23 = vrot.slane %v2950_v11, 3  ;;  %v5208_v29 = vld [vmem:[%s5280_s25 + $0x18] sm:$0xff]  }
  0xc9   : > { %v2891_v42 = vsel %vm2865_vm6, %v2881_v44, %v2890_v24  ;;  %v2908_v44 = vor.u32 %v2907_v18, %v2904_v37  ;;  %v2943_v37 = vrot.slane %v2941_v34, 3  ;;  %v1352_v18 = vrot.slane %v5311_v20, 1 }
  0xca   : > { %v2956_v32 = vshrl.u32 %v5726_v47, 16  ;;  %v2959_v20 = vshll.u32 %v5726_v47, 16  ;;  %v2977_v34 = vshll.u32 %v5746_v5, 16  ;;  %v2986_v11 = vshll.u32 %v5755_v21, 16 }
  0xcb   : > { %v2909_v16 = vsel %vm2865_vm6, %v2899_v49, %v2908_v44  ;;  %v2918_v9 = vsel %vm2865_vm6, %v2908_v44, %v2917_v39 }
  0xcc   : > { %4587 = vmatmul.mubr.msk.bf16.gmra.mrb[16].mxu1 %vm454_vm2, %v933_v10  ;;  %v942_v10 = vrot.slane %v5484_v40, 1 }
  0xcd   : > { %4590 = vmatprep.mubr.msk.bf16.mxu1 %vm454_vm2, %v935_v25  ;;  %v2900_v25 = vsel %vm2865_vm6, %v2890_v24, %v2899_v49 }
  0xce   : > { %v943_v40 = vsel %vm912_vm5, %v940_v30, %v942_v10  ;;  %v948_v30 = vrot.slane %v5529_v27, 1 }
  0xcf   : > { %4755 = vmatmul.mubr.msk.bf16.gmra.mrb[32].mxu0 %vm454_vm2, %v2588_v33  ;;  %v944_v33 = vrot.slane %v5499_v56, 1 }
  0xd0   : > { %4760 = vmatprep.mubr.msk.bf16.mxu0 %vm454_vm2, %v2882_v63  ;;  %v946_v63 = vrot.slane %v5506_v4, 1  ;;  %v2947_v4 = vshrl.u32 %v5713_v8, 16 }
  0xd1   : > { %v945_v24 = vsel %vm912_vm5, %v942_v10, %v944_v33  ;;  %v5207_v10 = vld [vmem:[%s5280_s25 + $0x10] sm:$0xff]  }
  0xd2   : > { %v947_v56 = vsel %vm912_vm5, %v944_v33, %v946_v63  ;;  %v2949_v45 = vrot.slane %v2947_v4, 2  ;;  %v2983_v4 = vshrl.u32 %v5755_v21, 16 }
  0xd4   : > { %4591 = vmatmul.mubr.msk.bf16.gmra.mrb[20].mxu1 %vm454_vm2, %v937_v48  ;;  %v2934_v48 = vrot.slane %v2932_v19, 3  ;;  %v2953_v44 = vor.u32 %v2952_v23, %v2949_v45  ;;  %v1355_v19 = vrot.slane %v5208_v29, 1  ;;  %v2985_v45 = vrot.slane %v2983_v4, 2 }
  0xd5   : > { %4594 = vmatprep.mubr.msk.bf16.mxu1 %vm454_vm2, %v939_v54  ;;  %v2926_v54 = vor.u32 %v2925_v51, %v2922_v61  ;;  %v2958_v61 = vrot.slane %v2956_v32, 2  ;;  %v2961_v51 = vrot.slane %v2959_v20, 3  ;;  %v2988_v23 = vrot.slane %v2986_v11, 3  ;;  %v5214_v11 = vld [vmem:[%s5280_s25 + $0x48] sm:$0xff]  }
  0xd6   : > { %v2935_v49 = vor.u32 %v2934_v48, %v2931_v17  ;;  %v2995_v32 = vshll.u32 %v5768_v36, 16  ;;  %v3022_v4 = vshll.u32 %v5790_v14, 16 }
  0xd7   : > { %4761 = vmatmul.mubr.msk.bf16.vlgmr.msra.gmra.mrb[0].mxu0 %vm454_vm2, %v2891_v42  ;;  %v2927_v6 = vsel %vm2865_vm6, %v2917_v39, %v2926_v54  ;;  %v2940_v42 = vrot.slane %v2938_v58, 2  ;;  %v2968_v39 = vshll.u32 %v5731_v52, 16  ;;  %v2974_v58 = vshrl.u32 %v5746_v5, 16 }
  0xd8   : > { %4797 = vmatpush3.bf16.msra.mxu0 %v3405_v0  ;;  %4764 = vmatprep.mubr.msk.bf16.mxu0 %vm454_vm2, %v2900_v25  ;;  %v1353_v0 = vrot.slane %v5207_v10, 1  ;;  %v2936_v25 = vsel %vm2865_vm6, %v2926_v54, %v2935_v49  ;;  %v2962_v54 = vor.u32 %v2961_v51, %v2958_v61  ;;  %v5211_v10 = vld [vmem:[%s5280_s25 + $0x30] sm:$0xff]   ;;  %v2989_v20 = vor.u32 %v2988_v23, %v2985_v45  ;;  %v5213_v51 = vld [vmem:[%s5280_s25 + $0x40] sm:$0xff]  }
  0xd9   : > { %v2944_v41 = vor.u32 %v2943_v37, %v2940_v42  ;;  %v2970_v48 = vrot.slane %v2968_v39, 3  ;;  %v2976_v37 = vrot.slane %v2974_v58, 2  ;;  %v5212_v39 = vld [vmem:[%s5280_s25 + $0x38] sm:$0xff]   ;;  %v2997_v61 = vrot.slane %v2995_v32, 3 }
  0xda   : > { %v1354_v27 = vsel %vm912_vm5, %v1352_v18, %v1353_v0  ;;  %v2963_v42 = vsel %vm2865_vm6, %v2953_v44, %v2962_v54  ;;  %v2979_v18 = vrot.slane %v2977_v34, 3  ;;  %v1363_v29 = vrot.slane %v5212_v39, 1 }
  0xdb   : > { %v2945_v33 = vsel %vm2865_vm6, %v2935_v49, %v2944_v41  ;;  %v3013_v58 = vshll.u32 %v5786_v62, 16  ;;  %v3024_v23 = vrot.slane %v3022_v4, 3  ;;  %v3318_v4 = vrot.slane %v5653_v50, 3 }
  0xdc   : > { %4595 = vmatmul.mubr.msk.bf16.gmra.mrb[24].mxu1 %vm454_vm2, %v941_v35  ;;  %v949_v35 = vsel %vm912_vm5, %v946_v63, %v948_v30  ;;  %v3320_v50 = vrot.slane %v5665_v53, 3 }
  0xdd   : > { %4598 = vmatprep.mubr.msk.bf16.mxu1 %vm454_vm2, %v943_v40  ;;  %v2965_v40 = vshrl.u32 %v5731_v52, 16 }
  0xdf   : > { %4765 = vmatmul.mubr.msk.bf16.gmra.mrb[4].mxu0 %vm454_vm2, %v2909_v16  ;;  %v5209_v16 = vld [vmem:[%s5280_s25 + $0x20] sm:$0xff]   ;;  %v2967_v17 = vrot.slane %v2965_v40, 2  ;;  %v3004_v40 = vshll.u32 %v5773_v43, 16 }
  0xe0   : > { %4768 = vmatprep.mubr.msk.bf16.mxu0 %vm454_vm2, %v2918_v9  ;;  %v1357_v63 = vrot.slane %v5209_v16, 1  ;;  %v2954_v9 = vsel %vm2865_vm6, %v2944_v41, %v2953_v44  ;;  %v2980_v41 = vor.u32 %v2979_v18, %v2976_v37  ;;  %v3001_v44 = vshrl.u32 %v5773_v43, 16  ;;  %v5215_v18 = vld [vmem:[%s5280_s25 + $0x50] sm:$0xff]  }
  0xe1   : > { %v2971_v49 = vor.u32 %v2970_v48, %v2967_v17  ;;  %v1365_v16 = vrot.slane %v5213_v51, 1  ;;  %v3006_v17 = vrot.slane %v3004_v40, 3  ;;  %v3015_v37 = vrot.slane %v3013_v58, 3  ;;  %v5216_v40 = vld [vmem:[%s5280_s25 + $0x58] sm:$0xff]  }
  0xe2   : > { %v1371_v39 = vrot.slane %v5216_v40, 1  ;;  %v1774_v40 = vshrl.u32 %v5575_v57, 16 }
  0xe4   : > { %4599 = vmatmul.mubr.msk.bf16.gmra.mrb[28].mxu1 %vm454_vm2, %v945_v24  ;;  %v1356_v24 = vsel %vm912_vm5, %v1353_v0, %v1355_v19  ;;  %v1361_v0 = vrot.slane %v5211_v10, 1  ;;  %v1369_v10 = vrot.slane %v5215_v18, 1  ;;  %v3322_v18 = vrot.slane %v5671_v28, 3 }
  0xe5   : > { %4602 = vmatprep.mubr.msk.bf16.mxu1 %vm454_vm2, %v947_v56  ;;  %v1358_v56 = vsel %vm912_vm5, %v1355_v19, %v1357_v63  ;;  %v2981_v19 = vsel %vm2865_vm6, %v2971_v49, %v2980_v41 }
  0xe6   : > { %v1364_v48 = vsel %vm912_vm5, %v1361_v0, %v1363_v29  ;;  %v3323_v53 = vsel %vm3312_vm7, %v3320_v50, %v3322_v18 }
  0xe7   : > { %4769 = vmatmul.mubr.msk.bf16.gmra.mrb[8].mxu0 %vm454_vm2, %v2927_v6  ;;  %v5210_v6 = vld [vmem:[%s5280_s25 + $0x28] sm:$0xff]  }
  0xe8   : > { %4772 = vmatprep.mubr.msk.bf16.mxu0 %vm454_vm2, %v2936_v25  ;;  %v1359_v30 = vrot.slane %v5210_v6, 1  ;;  %v2972_v25 = vsel %vm2865_vm6, %v2962_v54, %v2971_v49  ;;  %v1366_v54 = vsel %vm912_vm5, %v1363_v29, %v1365_v16  ;;  %v3019_v49 = vshrl.u32 %v5790_v14, 16 }
  0xe9   : > { %v1367_v6 = vrot.slane %v5214_v11, 1  ;;  %v1379_v11 = vrot.slane %v5593_v7, 1 }
  0xea   : > { %v3021_v45 = vrot.slane %v3019_v49, 2 }
  0xec   : > { %4603 = vmatmul.mubr.msk.bf16.gmra.mrb[32].mxu1 %vm454_vm2, %v949_v35  ;;  %v1360_v35 = vsel %vm912_vm5, %v1357_v63, %v1359_v30  ;;  %v2990_v63 = vsel %vm2865_vm6, %v2980_v41, %v2989_v20 }
  0xed   : > { %4608 = vmatprep.mubr.msk.bf16.mxu1 %vm454_vm2, %v1354_v27  ;;  %v2992_v27 = vshrl.u32 %v5768_v36, 16 }
  0xef   : > { %4773 = vmatmul.mubr.msk.bf16.gmra.mrb[12].mxu0 %vm454_vm2, %v2945_v33  ;;  %v2994_v33 = vrot.slane %v2992_v27, 2 }
  0xf0   : > { %4776 = vmatprep.mubr.msk.bf16.mxu0 %vm454_vm2, %v2954_v9  ;;  %v3003_v9 = vrot.slane %v3001_v44, 2  ;;  %v3306_v44 = vld [vmem:[%s5280_s25 + $0x10] sm:$0x8] }
  0xf2   : > { %v3007_v34 = vor.u32 %v3006_v17, %v3003_v9 }
  0xf4   : > { %4609 = vmatmul.mubr.msk.bf16.vlgmr.msra.gmra.mrb[0].mxu1 %vm454_vm2, %v1356_v24  ;;  %v2998_v24 = vor.u32 %v2997_v61, %v2994_v33  ;;  %v1373_v61 = vrot.slane %v5556_v55, 1 }
  0xf5   : > { %4612 = vmatprep.mubr.msk.bf16.mxu1 %vm454_vm2, %v1358_v56  ;;  %4835 = vmatpush3.bf16.msra.mxu1 %v5262_v2  ;;  %v1362_v2 = vsel %vm912_vm5, %v1359_v30, %v1361_v0  ;;  %v3010_v56 = vshrl.u32 %v5786_v62, 16  ;;  %v5926_v0 = vld [vmem:[%s5280_s25 + $0xa0] ss:$0 sps:$4 sm:$0x77]  }
  0xf6   : > { %v2999_v30 = vsel %vm2865_vm6, %v2989_v20, %v2998_v24  ;;  %v3028_v27 = vshrl.u32 %v5926_v0, 16  ;;  %v3031_v32 = vshll.u32 %v5926_v0, 16  ;;  %v3025_v20 = vor.u32 %v3024_v23, %v3021_v45 }
  0xf7   : > { %4777 = vmatmul.mubr.msk.bf16.gmra.mrb[16].mxu0 %vm454_vm2, %v2963_v42  ;;  %v3012_v42 = vrot.slane %v3010_v56, 2  ;;  %v1374_v17 = vsel %vm912_vm5, %v1371_v39, %v1373_v61  ;;  %v1377_v56 = vrot.slane %v5581_v60, 1  ;;  %v1385_v45 = vrot.slane %v5613_v26, 1 }
  0xf8   : > { %4780 = vmatprep.mubr.msk.bf16.mxu0 %vm454_vm2, %v2972_v25  ;;  %v3008_v25 = vsel %vm2865_vm6, %v2998_v24, %v3007_v34  ;;  %v3033_v33 = vrot.slane %v3031_v32, 3  ;;  %v3314_v24 = vrot.slane %v5636_v38, 3  ;;  %v3316_v38 = vrot.slane %v5649_v46, 3 }
  0xf9   : > { %v3016_v41 = vor.u32 %v3015_v37, %v3012_v42  ;;  %v1380_v46 = vsel %vm912_vm5, %v1377_v56, %v1379_v11  ;;  %v1765_v23 = vshrl.u32 %v5556_v55, 16 }
  0xfa   : > { %v3319_v42 = vsel %vm3312_vm7, %v3316_v38, %v3318_v4 }
  0xfb   : > { %v3017_v29 = vsel %vm2865_vm6, %v3007_v34, %v3016_v41  ;;  %v3026_v51 = vsel %vm2865_vm6, %v3016_v41, %v3025_v20  ;;  %v5205_v41 = vld [vmem:[%s5280_s25 + $0x98] ss:$0 sps:$4 sm:$0x11]   ;;  %v1767_v32 = vrot.slane %v1765_v23, 1 }
  0xfc   : > { %4613 = vmatmul.mubr.msk.bf16.gmra.mrb[4].mxu1 %vm454_vm2, %v1360_v35  ;;  %v1368_v35 = vsel %vm912_vm5, %v1365_v16, %v1367_v6  ;;  %v4227_v16 = vcombine.low %v3306_v44, %v5623_v31  ;;  %v3326_v44 = vrot.slane %v5694_v1, 3 }
  0xfd   : > { %4616 = vmatprep.mubr.msk.bf16.mxu1 %vm454_vm2, %v1362_v2  ;;  %v1370_v2 = vsel %vm912_vm5, %v1367_v6, %v1369_v10  ;;  %v3317_v6 = vsel %vm3312_vm7, %v3314_v24, %v3316_v38 }
  0xff   : > { %4781 = vmatmul.mubr.msk.bf16.gmra.mrb[20].mxu0 %vm454_vm2, %v2981_v19  ;;  %v3030_v19 = vrot.slane %v3028_v27, 2 }
 0x100   : > { %4784 = vmatprep.mubr.msk.bf16.mxu0 %vm454_vm2, %v2990_v63  ;;  %v1372_v63 = vsel %vm912_vm5, %v1369_v10, %v1371_v39  ;;  %v1383_v10 = vrot.slane %v5609_v22, 1  ;;  %v1777_v39 = vshll.u32 %v5575_v57, 16 }
 0x101   : > { %v3034_v9 = vor.u32 %v3033_v33, %v3030_v19  ;;  %v1786_v33 = vshll.u32 %v5581_v60, 16 }
 0x102   : > { %v1386_v27 = vsel %vm912_vm5, %v1383_v10, %v1385_v45 }
 0x103   : > { %v3035_v31 = vsel %vm2865_vm6, %v3025_v20, %v3034_v9 }
 0x104   : > { %4617 = vmatmul.mubr.msk.bf16.gmra.mrb[8].mxu1 %vm454_vm2, %v1364_v48  ;;  %v3313_v48 = vrot.slane %v4227_v16, 3  ;;  %v1779_v16 = vrot.slane %v1777_v39, 2 }
 0x105   : > { %4620 = vmatprep.mubr.msk.bf16.mxu1 %vm454_vm2, %v1366_v54  ;;  %v1375_v54 = vrot.slane %v5575_v57, 1 }
 0x106   : > { %v3315_v58 = vsel %vm3312_vm7, %v3313_v48, %v3314_v24  ;;  %v3330_v48 = vrot.slane %v5713_v8, 3  ;;  %v1792_v24 = vshrl.u32 %v5593_v7, 16 }
 0x107   : > { %4785 = vmatmul.mubr.msk.bf16.gmra.mrb[24].mxu0 %vm454_vm2, %v2999_v30  ;;  %v1376_v34 = vsel %vm912_vm5, %v1373_v61, %v1375_v54  ;;  %v1378_v49 = vsel %vm912_vm5, %v1375_v54, %v1377_v56  ;;  %v1381_v30 = vrot.slane %v5597_v12, 1  ;;  %v1795_v54 = vshll.u32 %v5593_v7, 16 }
 0x108   : > { %4788 = vmatprep.mubr.msk.bf16.mxu0 %vm454_vm2, %v3008_v25  ;;  %v3321_v25 = vsel %vm3312_vm7, %v3318_v4, %v3320_v50 }
 0x109   : > { %v1382_v37 = vsel %vm912_vm5, %v1379_v11, %v1381_v30  ;;  %v1384_v28 = vsel %vm912_vm5, %v1381_v30, %v1383_v10  ;;  %v1797_v38 = vrot.slane %v1795_v54, 2  ;;  %v1810_v30 = vshrl.u32 %v5609_v22, 16 }
 0x10b   : > { %v1812_v10 = vrot.slane %v1810_v30, 1 }
 0x10c   : > { %4621 = vmatmul.mubr.msk.bf16.gmra.mrb[12].mxu1 %vm454_vm2, %v1368_v35  ;;  %v1768_v35 = vshll.u32 %v5556_v55, 16  ;;  %v1387_v55 = vrot.slane %v5205_v41, 1  ;;  %v1831_v41 = vshll.u32 %v5629_v59, 16 }
 0x10d   : > { %4624 = vmatprep.mubr.msk.bf16.mxu1 %vm454_vm2, %v1370_v2  ;;  %v3324_v2 = vrot.slane %v5690_v3, 3  ;;  %v1783_v3 = vshrl.u32 %v5581_v60, 16 }
 0x10e   : > { %v1770_v20 = vrot.slane %v1768_v35, 2  ;;  %v1388_v1 = vsel %vm912_vm5, %v1385_v45, %v1387_v55  ;;  %v3336_v45 = vrot.slane %v5746_v5, 3 }
 0x10f   : > { %4789 = vmatmul.mubr.msk.bf16.gmra.mrb[28].mxu0 %vm454_vm2, %v3017_v29  ;;  %v3325_v29 = vsel %vm3312_vm7, %v3322_v18, %v3324_v2  ;;  %v3327_v61 = vsel %vm3312_vm7, %v3324_v2, %v3326_v44  ;;  %v1785_v9 = vrot.slane %v1783_v3, 1  ;;  %v3346_v3 = vrot.slane %v5790_v14, 3 }
 0x110   : > { %4792 = vmatprep.mubr.msk.bf16.mxu0 %vm454_vm2, %v3026_v51  ;;  %v1771_v19 = vor.u32 %v1770_v20, %v1767_v32  ;;  %v1776_v51 = vrot.slane %v1774_v40, 1  ;;  %v3342_v40 = vrot.slane %v5773_v43, 3 }
 0x112   : > { %v1772_v57 = vsel %vm1665_vm3, %v5470_v15, %v1771_v19  ;;  %v1780_v60 = vor.u32 %v1779_v16, %v1776_v51  ;;  %v1804_v15 = vshll.u32 %v5597_v12, 16 }
 0x114   : > { %4625 = vmatmul.mubr.msk.bf16.gmra.mrb[16].mxu1 %vm454_vm2, %v1372_v63  ;;  %v3328_v63 = vrot.slane %v5708_v13, 3  ;;  %v1801_v13 = vshrl.u32 %v5597_v12, 16  ;;  %v1781_v8 = vsel %vm1665_vm3, %v1771_v19, %v1780_v60  ;;  %v1806_v11 = vrot.slane %v1804_v15, 2 }
 0x115   : > { %4628 = vmatprep.mubr.msk.bf16.mxu1 %vm454_vm2, %v1374_v17  ;;  %v1788_v17 = vrot.slane %v1786_v33, 2 }
 0x116   : > { %v1803_v4 = vrot.slane %v1801_v13, 1 }
 0x117   : > { %4793 = vmatmul.mubr.msk.bf16.gmra.mrb[32].mxu0 %vm454_vm2, %v3035_v31  ;;  %v3329_v31 = vsel %vm3312_vm7, %v3326_v44, %v3328_v63  ;;  %v1789_v56 = vor.u32 %v1788_v17, %v1785_v9  ;;  %v3340_v44 = vrot.slane %v5768_v36, 3  ;;  %v3344_v36 = vrot.slane %v5786_v62, 3 }
 0x118   : > { %4798 = vmatprep.mubr.msk.bf16.mxu0 %vm454_vm2, %v3315_v58  ;;  %v3331_v58 = vsel %vm3312_vm7, %v3328_v63, %v3330_v48  ;;  %v1807_v50 = vor.u32 %v1806_v11, %v1803_v4 }
 0x119   : > { %v1790_v7 = vsel %vm1665_vm3, %v1780_v60, %v1789_v56  ;;  %v3345_v43 = vsel %vm3312_vm7, %v3342_v40, %v3344_v36  ;;  %v3347_v33 = vsel %vm3312_vm7, %v3344_v36, %v3346_v3 }
 0x11c   : > { %4629 = vmatmul.mubr.msk.bf16.gmra.mrb[20].mxu1 %vm454_vm2, %v1376_v34  ;;  %v1794_v34 = vrot.slane %v1792_v24, 1 }
 0x11d   : > { %4632 = vmatprep.mubr.msk.bf16.mxu1 %vm454_vm2, %v1378_v49  ;;  %v3332_v49 = vrot.slane %v5726_v47, 3  ;;  %v1819_v47 = vshrl.u32 %v5613_v26, 16 }
 0x11e   : > { %v1798_v12 = vor.u32 %v1797_v38, %v1794_v34 }
 0x11f   : > { %4799 = vmatmul.mubr.msk.bf16.vlgmr.msra.gmra.mrb[0].mxu0 %vm454_vm2, %v3317_v6  ;;  %v3334_v6 = vrot.slane %v5731_v52, 3  ;;  %v1821_v23 = vrot.slane %v1819_v47, 1 }
 0x120   : > { %4802 = vmatprep.mubr.msk.bf16.mxu0 %vm454_vm2, %v3319_v42  ;;  %v1813_v42 = vshll.u32 %v5609_v22, 16  ;;  %v1799_v52 = vsel %vm1665_vm3, %v1789_v56, %v1798_v12  ;;  %v1808_v22 = vsel %vm1665_vm3, %v1798_v12, %v1807_v50 }
 0x121   : > { %v3335_v18 = vsel %vm3312_vm7, %v3332_v49, %v3334_v6  ;;  %v3337_v2 = vsel %vm3312_vm7, %v3334_v6, %v3336_v45 }
 0x124   : > { %4633 = vmatmul.mubr.msk.bf16.gmra.mrb[24].mxu1 %vm454_vm2, %v1380_v46  ;;  %v3333_v46 = vsel %vm3312_vm7, %v3330_v48, %v3332_v49  ;;  %v6086_v49 = vld [vmem:[%s6219_s2] ss:$0 sm:$0xff] }
 0x125   : > { %4636 = vmatprep.mubr.msk.bf16.mxu1 %vm454_vm2, %v1382_v37  ;;  %v1822_v37 = vshll.u32 %v5613_v26, 16 }
 0x127   : > { %4803 = vmatmul.mubr.msk.bf16.gmra.mrb[4].mxu0 %vm454_vm2, %v3321_v25  ;;  %v1815_v25 = vrot.slane %v1813_v42, 2  ;;  %v1824_v35 = vrot.slane %v1822_v37, 2 }
 0x128   : > { %4806 = vmatprep.mubr.msk.bf16.mxu0 %vm454_vm2, %v3323_v53  ;;  %v3338_v53 = vrot.slane %v5755_v21, 3  ;;  %v1833_v21 = vrot.slane %v1831_v41, 2 }
 0x129   : > { %v1816_v26 = vor.u32 %v1815_v25, %v1812_v10 }
 0x12a   : > { %v3339_v5 = vsel %vm3312_vm7, %v3336_v45, %v3338_v53  ;;  %v3341_v39 = vsel %vm3312_vm7, %v3338_v53, %v3340_v44 }
 0x12b   : > { %v1817_v32 = vsel %vm1665_vm3, %v1807_v50, %v1816_v26 }
 0x12c   : > { %4637 = vmatmul.mubr.msk.bf16.gmra.mrb[28].mxu1 %vm454_vm2, %v1384_v28  ;;  %v1828_v28 = vshrl.u32 %v5629_v59, 16 }
 0x12d   : > { %4640 = vmatprep.mubr.msk.bf16.mxu1 %vm454_vm2, %v1386_v27  ;;  %v1825_v27 = vor.u32 %v1824_v35, %v1821_v23 }
 0x12e   : > { %v1830_v20 = vrot.slane %v1828_v28, 1 }
 0x12f   : > { %4807 = vmatmul.mubr.msk.bf16.gmra.mrb[8].mxu0 %vm454_vm2, %v3325_v29  ;;  %v1826_v55 = vsel %vm1665_vm3, %v1816_v26, %v1825_v27  ;;  %v3343_v29 = vsel %vm3312_vm7, %v3340_v44, %v3342_v40 }
 0x130   : > { %4810 = vmatprep.mubr.msk.bf16.mxu0 %vm454_vm2, %v3327_v61  ;;  %v1834_v59 = vor.u32 %v1833_v21, %v1830_v20  ;;  %v3348_v61 = vrot.slane %v5926_v0, 3 }
 0x132   : > { %v1835_v19 = vsel %vm1665_vm3, %v1825_v27, %v1834_v59 }
 0x134   : > { %4641 = vmatmul.mubr.msk.bf16.gmra.mrb[32].mxu1 %vm454_vm2, %v1388_v1  ;;  %v3349_v1 = vsel %vm3312_vm7, %v3346_v3, %v3348_v61 }
 0x135   : > { %4666 = vmatprep.mubr.msk.bf16.mxu1 %vm454_vm2, %v1772_v57 }
 0x137   : > { %4811 = vmatmul.mubr.msk.bf16.gmra.mrb[12].mxu0 %vm454_vm2, %v3329_v31 }
 0x138   : > { %4814 = vmatprep.mubr.msk.bf16.mxu0 %vm454_vm2, %v3331_v58 }
 0x13c   : > { %4667 = vmatmul.mubr.msk.bf16.vlgmr.msra.gmra.mrb[20].mxu1 %vm454_vm2, %v1781_v8 }
 0x13d   : > { %4670 = vmatprep.mubr.msk.bf16.mxu1 %vm454_vm2, %v1790_v7 }
 0x13f   : > { %4815 = vmatmul.mubr.msk.bf16.gmra.mrb[16].mxu0 %vm454_vm2, %v3333_v46 }
 0x140   : > { %4818 = vmatprep.mubr.msk.bf16.mxu0 %vm454_vm2, %v3335_v18 }
 0x144   : > { %4671 = vmatmul.mubr.msk.bf16.gmra.mrb[24].mxu1 %vm454_vm2, %v1799_v52 }
 0x145   : > { %4674 = vmatprep.mubr.msk.bf16.mxu1 %vm454_vm2, %v1808_v22 }
 0x147   : > { %4819 = vmatmul.mubr.msk.bf16.gmra.mrb[20].mxu0 %vm454_vm2, %v3337_v2 }
 0x148   : > { %4822 = vmatprep.mubr.msk.bf16.mxu0 %vm454_vm2, %v3339_v5 }
 0x14c   : > { %4675 = vmatmul.mubr.msk.bf16.gmra.mrb[28].mxu1 %vm454_vm2, %v1817_v32 }
 0x14d   : > { %4678 = vmatprep.mubr.msk.bf16.mxu1 %vm454_vm2, %v1826_v55 }
 0x14f   : > { %4823 = vmatmul.mubr.msk.bf16.gmra.mrb[24].mxu0 %vm454_vm2, %v3341_v39 }
 0x150   : > { %4826 = vmatprep.mubr.msk.bf16.mxu0 %vm454_vm2, %v3343_v29 }
 0x154   : > { %4679 = vmatmul.mubr.msk.bf16.gmra.mrb[32].mxu1 %vm454_vm2, %v1835_v19 }
 0x157   : > { %4827 = vmatmul.mubr.msk.bf16.gmra.mrb[28].mxu0 %vm454_vm2, %v3345_v43 }
 0x158   : > { %4830 = vmatprep.mubr.msk.bf16.mxu0 %vm454_vm2, %v3347_v33 }
 0x15f   : > { %4831 = vmatmul.mubr.msk.bf16.gmra.mrb[32].mxu0 %vm454_vm2, %v3349_v1 }
 0x1c7   : > { %v4610_v51 = vpop.f32.mrb[0].mxu1 }
 0x1c8   : > { %v1480_v62 = vpop.f32.mrb[1].mxu1 }
 0x1c9   : > { %v4611_v16 = vpop.f32.mrb[2].mxu1 }
 0x1ca   : > { %v1483_v14 = vpop.f32.mrb[3].mxu1 }
 0x1cf   : > { %v4614_v63 = vpop.f32.mrb[4].mxu1 }
 0x1d0   : > { %v1496_v57 = vpop.f32.mrb[5].mxu1 }
 0x1d1   : > { %v4615_v9 = vpop.f32.mrb[6].mxu1 }
 0x1d2   : > { %v1499_v17 = vpop.f32.mrb[7].mxu1 }
 0x1d7   : > { %v6059_v48 = vpop.f32.mrb[8].mxu1 }
 0x1d8   : > { %v6061_v60 = vpop.f32.mrb[9].mxu1 }
 0x1d9   : > { %v6063_v24 = vpop.f32.mrb[10].mxu1 }
 0x1da   : > { %v6065_v0 = vpop.f32.mrb[11].mxu1 }
 0x1df   : > { %v6067_v54 = vpop.f32.mrb[12].mxu1 }
 0x1e0   : > { %v6069_v31 = vpop.f32.mrb[13].mxu1 }
 0x1e1   : > { %v6071_v56 = vpop.f32.mrb[14].mxu1 }
 0x1e2   : > { %v6073_v13 = vpop.f32.mrb[15].mxu1 }
 0x1e7   : > { %v6075_v15 = vpop.f32.mrb[16].mxu1 }
 0x1e8   : > { %v6077_v58 = vpop.f32.mrb[17].mxu1 }
 0x1e9   : > { %v6079_v8 = vpop.f32.mrb[18].mxu1 }
 0x1ea   : > { %v6081_v34 = vpop.f32.mrb[19].mxu1 }
 0x1f2   : > { %v4800_v38 = vpop.f32.mrb[0].mxu0 }
 0x1f3   : > { %v4836_v7 = vadd.f32 %v4800_v38, %v4610_v51  ;;  %v3441_v4 = vpop.f32.mrb[1].mxu0 }
 0x1f4   : > { %v4837_v11 = vadd.f32 %v3441_v4, %v1480_v62  ;;  %v4801_v6 = vpop.f32.mrb[2].mxu0 }
 0x1f5   : > { %v3629_v12 = vadd.f32 %v4836_v7, %v6086_v49  ;;  %v4838_v30 = vadd.f32 %v4801_v6, %v4611_v16  ;;  %v3444_v42 = vpop.f32.mrb[3].mxu0 }
 0x1f6   : > { %v3627_v46 = vadd.f32 %v4837_v11, %v6086_v49  ;;  %v4839_v50 = vadd.f32 %v3444_v42, %v1483_v14 }
 0x1f7   : > { %vm3665_vm8 = vcmp.ge.f32.partialorder %v3629_v12, 0.0  ;;  %v3701_v47 = vmul.f32 0.01, %v3629_v12  ;;  %v3630_v37 = vadd.f32 %v4838_v30, %v6086_v49 }
 0x1f8   : > { %vm3663_vm9 = vcmp.ge.f32.partialorder %v3627_v46, 0.0  ;;  %v3699_v18 = vmul.f32 0.01, %v3627_v46  ;;  %v3628_v52 = vadd.f32 %v4839_v50, %v6086_v49 }
 0x1f9   : > { %v3737_v10 = vsel %vm3665_vm8, %v3629_v12, %v3701_v47  ;;  %vm3666_vm11 = vcmp.ge.f32.partialorder %v3630_v37, 0.0  ;;  %v3702_v25 = vmul.f32 0.01, %v3630_v37 }
 0x1fa   : > { %v4287_v45 = vpack.c.bf16 %v3737_v10, %v3737_v10  ;;  %v3735_v22 = vsel %vm3663_vm9, %v3627_v46, %v3699_v18  ;;  %vm3664_vm12 = vcmp.ge.f32.partialorder %v3628_v52, 0.0  ;;  %v3700_v23 = vmul.f32 0.01, %v3628_v52  ;;  %v4804_v35 = vpop.f32.mrb[4].mxu0 }
 0x1fb   : > { %v4285_v53 = vpack.c.bf16 %v3735_v22, %v3735_v22  ;;  %v3738_v26 = vsel %vm3666_vm11, %v3630_v37, %v3702_v25  ;;  %v4840_v28 = vadd.f32 %v4804_v35, %v4614_v63  ;;  %v3457_v41 = vpop.f32.mrb[5].mxu0 }
 0x1fc   : > { %3918 = vst.msk [vmem:[%s6096_s18 + $0x8] sm:$0xf] %vm3915_vm10, %v4287_v45  ;;  %v4288_v2 = vpack.c.bf16 %v3738_v26, %v3738_v26  ;;  %v3736_v27 = vsel %vm3664_vm12, %v3628_v52, %v3700_v23  ;;  %v4841_v5 = vadd.f32 %v3457_v41, %v1496_v57  ;;  %v4805_v32 = vpop.f32.mrb[6].mxu0 }
 0x1fd   : > { %3916 = vst.msk [vmem:[%s6096_s18] sm:$0xf] %vm3915_vm10, %v4285_v53  ;;  %v4286_v20 = vpack.c.bf16 %v3736_v27, %v3736_v27  ;;  %v3633_v21 = vadd.f32 %v4840_v28, %v6086_v49  ;;  %v4842_v44 = vadd.f32 %v4805_v32, %v4615_v9  ;;  %v3460_v55 = vpop.f32.mrb[7].mxu0 }
 0x1fe   : > { %3919 = vst.msk [vmem:[%s6096_s18 + $0xc] sm:$0xf] %vm3915_vm10, %v4288_v2  ;;  %v3631_v40 = vadd.f32 %v4841_v5, %v6086_v49  ;;  %v4843_v59 = vadd.f32 %v3460_v55, %v1499_v17 }
 0x1ff   : > { %3917 = vst.msk [vmem:[%s6096_s18 + $0x4] sm:$0xf] %vm3915_vm10, %v4286_v20  ;;  %vm3669_vm13 = vcmp.ge.f32.partialorder %v3633_v21, 0.0  ;;  %v3705_v39 = vmul.f32 0.01, %v3633_v21  ;;  %v3634_v29 = vadd.f32 %v4842_v44, %v6086_v49 }
 0x200   : > { %vm3667_vm14 = vcmp.ge.f32.partialorder %v3631_v40, 0.0  ;;  %v3703_v19 = vmul.f32 0.01, %v3631_v40  ;;  %v3632_v36 = vadd.f32 %v4843_v59, %v6086_v49 }
 0x201   : > { %v3741_v3 = vsel %vm3669_vm13, %v3633_v21, %v3705_v39  ;;  %vm3670_vm15 = vcmp.ge.f32.partialorder %v3634_v29, 0.0  ;;  %v3706_v43 = vmul.f32 0.01, %v3634_v29 }
 0x202   : > { %v4291_v33 = vpack.c.bf16 %v3741_v3, %v3741_v3  ;;  %v3739_v61 = vsel %vm3667_vm14, %v3631_v40, %v3703_v19  ;;  %vm3668_vm0 = vcmp.ge.f32.partialorder %v3632_v36, 0.0  ;;  %v3704_v1 = vmul.f32 0.01, %v3632_v36  ;;  %v4808_v51 = vpop.f32.mrb[8].mxu0 }
 0x203   : > { %v4289_v62 = vpack.c.bf16 %v3739_v61, %v3739_v61  ;;  %v3742_v16 = vsel %vm3670_vm15, %v3634_v29, %v3706_v43  ;;  %v4844_v14 = vadd.f32 %v4808_v51, %v6059_v48  ;;  %v3473_v63 = vpop.f32.mrb[9].mxu0 }
 0x204   : > { %3922 = vst.msk [vmem:[%s6096_s18 + $0x18] sm:$0xf] %vm3915_vm10, %v4291_v33  ;;  %v4292_v57 = vpack.c.bf16 %v3742_v16, %v3742_v16  ;;  %v3740_v9 = vsel %vm3668_vm0, %v3632_v36, %v3704_v1  ;;  %v4845_v17 = vadd.f32 %v3473_v63, %v6061_v60  ;;  %v4809_v38 = vpop.f32.mrb[10].mxu0 }
 0x205   : > { %3920 = vst.msk [vmem:[%s6096_s18 + $0x10] sm:$0xf] %vm3915_vm10, %v4289_v62  ;;  %v4290_v7 = vpack.c.bf16 %v3740_v9, %v3740_v9  ;;  %v3637_v4 = vadd.f32 %v4844_v14, %v6086_v49  ;;  %v4846_v11 = vadd.f32 %v4809_v38, %v6063_v24  ;;  %v3476_v6 = vpop.f32.mrb[11].mxu0 }
 0x206   : > { %3923 = vst.msk [vmem:[%s6096_s18 + $0x1c] sm:$0xf] %vm3915_vm10, %v4292_v57  ;;  %v3635_v48 = vadd.f32 %v4845_v17, %v6086_v49  ;;  %v4847_v12 = vadd.f32 %v3476_v6, %v6065_v0 }
 0x207   : > { %3921 = vst.msk [vmem:[%s6096_s18 + $0x14] sm:$0xf] %vm3915_vm10, %v4290_v7  ;;  %vm3673_vm1 = vcmp.ge.f32.partialorder %v3637_v4, 0.0  ;;  %v3709_v30 = vmul.f32 0.01, %v3637_v4  ;;  %v3638_v60 = vadd.f32 %v4846_v11, %v6086_v49 }
 0x208   : > { %vm3671_vm2 = vcmp.ge.f32.partialorder %v3635_v48, 0.0  ;;  %v3707_v42 = vmul.f32 0.01, %v3635_v48  ;;  %v3636_v46 = vadd.f32 %v4847_v12, %v6086_v49 }
 0x209   : > { %v3745_v50 = vsel %vm3673_vm1, %v3637_v4, %v3709_v30  ;;  %vm3674_vm3 = vcmp.ge.f32.partialorder %v3638_v60, 0.0  ;;  %v3710_v24 = vmul.f32 0.01, %v3638_v60 }
 0x20a   : > { %v4295_v47 = vpack.c.bf16 %v3745_v50, %v3745_v50  ;;  %v3743_v37 = vsel %vm3671_vm2, %v3635_v48, %v3707_v42  ;;  %vm3672_vm4 = vcmp.ge.f32.partialorder %v3636_v46, 0.0  ;;  %v3708_v18 = vmul.f32 0.01, %v3636_v46  ;;  %v4812_v0 = vpop.f32.mrb[12].mxu0 }
 0x20b   : > { %v4293_v52 = vpack.c.bf16 %v3743_v37, %v3743_v37  ;;  %v3746_v10 = vsel %vm3674_vm3, %v3638_v60, %v3710_v24  ;;  %v4848_v25 = vadd.f32 %v4812_v0, %v6067_v54  ;;  %v3489_v45 = vpop.f32.mrb[13].mxu0 }
 0x20c   : > { %3926 = vst.msk [vmem:[%s6096_s18 + $0x28] sm:$0xf] %vm3915_vm10, %v4295_v47  ;;  %v4296_v22 = vpack.c.bf16 %v3746_v10, %v3746_v10  ;;  %v3744_v23 = vsel %vm3672_vm4, %v3636_v46, %v3708_v18  ;;  %v4849_v35 = vadd.f32 %v3489_v45, %v6069_v31  ;;  %v4813_v53 = vpop.f32.mrb[14].mxu0 }
 0x20d   : > { %3924 = vst.msk [vmem:[%s6096_s18 + $0x20] sm:$0xf] %vm3915_vm10, %v4293_v52  ;;  %v4294_v26 = vpack.c.bf16 %v3744_v23, %v3744_v23  ;;  %v3641_v28 = vadd.f32 %v4848_v25, %v6086_v49  ;;  %v4850_v41 = vadd.f32 %v4813_v53, %v6071_v56  ;;  %v3492_v2 = vpop.f32.mrb[15].mxu0 }
 0x20e   : > { %3927 = vst.msk [vmem:[%s6096_s18 + $0x2c] sm:$0xf] %vm3915_vm10, %v4296_v22  ;;  %v3639_v54 = vadd.f32 %v4849_v35, %v6086_v49  ;;  %v4851_v5 = vadd.f32 %v3492_v2, %v6073_v13 }
 0x20f   : > { %v4668_v27 = vpop.f32.mrb[20].mxu1  ;;  %3925 = vst.msk [vmem:[%s6096_s18 + $0x24] sm:$0xf] %vm3915_vm10, %v4294_v26  ;;  %vm3677_vm5 = vcmp.ge.f32.partialorder %v3641_v28, 0.0  ;;  %v3713_v31 = vmul.f32 0.01, %v3641_v28  ;;  %v3642_v20 = vadd.f32 %v4850_v41, %v6086_v49 }
 0x210   : > { %v2007_v32 = vpop.f32.mrb[21].mxu1  ;;  %vm3675_vm6 = vcmp.ge.f32.partialorder %v3639_v54, 0.0  ;;  %v3711_v44 = vmul.f32 0.01, %v3639_v54  ;;  %v3640_v56 = vadd.f32 %v4851_v5, %v6086_v49 }
 0x211   : > { %v4669_v21 = vpop.f32.mrb[22].mxu1  ;;  %v3749_v40 = vsel %vm3677_vm5, %v3641_v28, %v3713_v31  ;;  %vm3678_vm7 = vcmp.ge.f32.partialorder %v3642_v20, 0.0  ;;  %v3714_v59 = vmul.f32 0.01, %v3642_v20 }
 0x212   : > { %v2010_v55 = vpop.f32.mrb[23].mxu1  ;;  %v4299_v39 = vpack.c.bf16 %v3749_v40, %v3749_v40  ;;  %v3747_v13 = vsel %vm3675_vm6, %v3639_v54, %v3711_v44  ;;  %vm3676_vm8 = vcmp.ge.f32.partialorder %v3640_v56, 0.0  ;;  %v3712_v29 = vmul.f32 0.01, %v3640_v56  ;;  %v4816_v19 = vpop.f32.mrb[16].mxu0 }
 0x213   : > { %v4297_v36 = vpack.c.bf16 %v3747_v13, %v3747_v13  ;;  %v3750_v3 = vsel %vm3678_vm7, %v3642_v20, %v3714_v59  ;;  %v4852_v43 = vadd.f32 %v4816_v19, %v6075_v15  ;;  %v3505_v33 = vpop.f32.mrb[17].mxu0 }
 0x214   : > { %3930 = vst.msk [vmem:[%s6096_s18 + $0x38] sm:$0xf] %vm3915_vm10, %v4299_v39  ;;  %v4300_v61 = vpack.c.bf16 %v3750_v3, %v3750_v3  ;;  %v3748_v1 = vsel %vm3676_vm8, %v3640_v56, %v3712_v29  ;;  %v4853_v51 = vadd.f32 %v3505_v33, %v6077_v58  ;;  %v4817_v62 = vpop.f32.mrb[18].mxu0 }
 0x215   : > { %3928 = vst.msk [vmem:[%s6096_s18 + $0x30] sm:$0xf] %vm3915_vm10, %v4297_v36  ;;  %v4298_v16 = vpack.c.bf16 %v3748_v1, %v3748_v1  ;;  %v3645_v14 = vadd.f32 %v4852_v43, %v6086_v49  ;;  %v4854_v63 = vadd.f32 %v4817_v62, %v6079_v8  ;;  %v3508_v57 = vpop.f32.mrb[19].mxu0 }
 0x216   : > { %3931 = vst.msk [vmem:[%s6096_s18 + $0x3c] sm:$0xf] %vm3915_vm10, %v4300_v61  ;;  %v3643_v15 = vadd.f32 %v4853_v51, %v6086_v49  ;;  %v4855_v17 = vadd.f32 %v3508_v57, %v6081_v34 }
 0x217   : > { %v4672_v9 = vpop.f32.mrb[24].mxu1  ;;  %3929 = vst.msk [vmem:[%s6096_s18 + $0x34] sm:$0xf] %vm3915_vm10, %v4298_v16  ;;  %vm3681_vm9 = vcmp.ge.f32.partialorder %v3645_v14, 0.0  ;;  %v3717_v58 = vmul.f32 0.01, %v3645_v14  ;;  %v3646_v7 = vadd.f32 %v4854_v63, %v6086_v49 }
 0x218   : > { %v2023_v38 = vpop.f32.mrb[25].mxu1  ;;  %vm3679_vm11 = vcmp.ge.f32.partialorder %v3643_v15, 0.0  ;;  %v3715_v11 = vmul.f32 0.01, %v3643_v15  ;;  %v3644_v8 = vadd.f32 %v4855_v17, %v6086_v49 }
 0x219   : > { %v4673_v4 = vpop.f32.mrb[26].mxu1  ;;  %v3753_v48 = vsel %vm3681_vm9, %v3645_v14, %v3717_v58  ;;  %vm3682_vm12 = vcmp.ge.f32.partialorder %v3646_v7, 0.0  ;;  %v3718_v12 = vmul.f32 0.01, %v3646_v7 }
 0x21a   : > { %v2026_v6 = vpop.f32.mrb[27].mxu1  ;;  %v4303_v30 = vpack.c.bf16 %v3753_v48, %v3753_v48  ;;  %v3751_v34 = vsel %vm3679_vm11, %v3643_v15, %v3715_v11  ;;  %vm3680_vm13 = vcmp.ge.f32.partialorder %v3644_v8, 0.0  ;;  %v3716_v60 = vmul.f32 0.01, %v3644_v8  ;;  %v4820_v42 = vpop.f32.mrb[20].mxu0 }
 0x21b   : > { %v4301_v46 = vpack.c.bf16 %v3751_v34, %v3751_v34  ;;  %v3754_v50 = vsel %vm3682_vm12, %v3646_v7, %v3718_v12  ;;  %v4856_v24 = vadd.f32 %v4820_v42, %v4668_v27  ;;  %v3521_v47 = vpop.f32.mrb[21].mxu0 }
 0x21c   : > { %3934 = vst.msk [vmem:[%s6096_s18 + $0x48] sm:$0xf] %vm3915_vm10, %v4303_v30  ;;  %v4304_v37 = vpack.c.bf16 %v3754_v50, %v3754_v50  ;;  %v3752_v18 = vsel %vm3680_vm13, %v3644_v8, %v3716_v60  ;;  %v4857_v0 = vadd.f32 %v3521_v47, %v2007_v32  ;;  %v4821_v52 = vpop.f32.mrb[22].mxu0 }
 0x21d   : > { %3932 = vst.msk [vmem:[%s6096_s18 + $0x40] sm:$0xf] %vm3915_vm10, %v4301_v46  ;;  %v4302_v10 = vpack.c.bf16 %v3752_v18, %v3752_v18  ;;  %v3649_v25 = vadd.f32 %v4856_v24, %v6086_v49  ;;  %v4858_v45 = vadd.f32 %v4821_v52, %v4669_v21  ;;  %v3524_v22 = vpop.f32.mrb[23].mxu0 }
 0x21e   : > { %3935 = vst.msk [vmem:[%s6096_s18 + $0x4c] sm:$0xf] %vm3915_vm10, %v4304_v37  ;;  %v3647_v35 = vadd.f32 %v4857_v0, %v6086_v49  ;;  %v4859_v53 = vadd.f32 %v3524_v22, %v2010_v55 }
 0x21f   : > { %v4676_v23 = vpop.f32.mrb[28].mxu1  ;;  %3933 = vst.msk [vmem:[%s6096_s18 + $0x44] sm:$0xf] %vm3915_vm10, %v4302_v10  ;;  %vm3685_vm14 = vcmp.ge.f32.partialorder %v3649_v25, 0.0  ;;  %v3721_v28 = vmul.f32 0.01, %v3649_v25  ;;  %v3650_v41 = vadd.f32 %v4858_v45, %v6086_v49 }
 0x220   : > { %v2039_v26 = vpop.f32.mrb[29].mxu1  ;;  %vm3683_vm15 = vcmp.ge.f32.partialorder %v3647_v35, 0.0  ;;  %v3719_v27 = vmul.f32 0.01, %v3647_v35  ;;  %v3648_v54 = vadd.f32 %v4859_v53, %v6086_v49 }
 0x221   : > { %v4677_v2 = vpop.f32.mrb[30].mxu1  ;;  %v3757_v32 = vsel %vm3685_vm14, %v3649_v25, %v3721_v28  ;;  %vm3686_vm0 = vcmp.ge.f32.partialorder %v3650_v41, 0.0  ;;  %v3722_v31 = vmul.f32 0.01, %v3650_v41 }
 0x222   : > { %v2042_v5 = vpop.f32.mrb[31].mxu1  ;;  %v4307_v20 = vpack.c.bf16 %v3757_v32, %v3757_v32  ;;  %v3755_v21 = vsel %vm3683_vm15, %v3647_v35, %v3719_v27  ;;  %vm3684_vm1 = vcmp.ge.f32.partialorder %v3648_v54, 0.0  ;;  %v3720_v44 = vmul.f32 0.01, %v3648_v54  ;;  %v4824_v56 = vpop.f32.mrb[24].mxu0 }
 0x223   : > { %v4305_v55 = vpack.c.bf16 %v3755_v21, %v3755_v21  ;;  %v3758_v40 = vsel %vm3686_vm0, %v3650_v41, %v3722_v31  ;;  %v4860_v59 = vadd.f32 %v4824_v56, %v4672_v9  ;;  %v3537_v39 = vpop.f32.mrb[25].mxu0 }
 0x224   : > { %3938 = vst.msk [vmem:[%s6096_s18 + $0x58] sm:$0xf] %vm3915_vm10, %v4307_v20  ;;  %v4308_v13 = vpack.c.bf16 %v3758_v40, %v3758_v40  ;;  %v3756_v29 = vsel %vm3684_vm1, %v3648_v54, %v3720_v44  ;;  %v4861_v19 = vadd.f32 %v3537_v39, %v2023_v38  ;;  %v4825_v36 = vpop.f32.mrb[26].mxu0 }
 0x225   : > { %3936 = vst.msk [vmem:[%s6096_s18 + $0x50] sm:$0xf] %vm3915_vm10, %v4305_v55  ;;  %v4306_v3 = vpack.c.bf16 %v3756_v29, %v3756_v29  ;;  %v3653_v43 = vadd.f32 %v4860_v59, %v6086_v49  ;;  %v4862_v33 = vadd.f32 %v4825_v36, %v4673_v4  ;;  %v3540_v61 = vpop.f32.mrb[27].mxu0 }
 0x226   : > { %3939 = vst.msk [vmem:[%s6096_s18 + $0x5c] sm:$0xf] %vm3915_vm10, %v4308_v13  ;;  %v3651_v51 = vadd.f32 %v4861_v19, %v6086_v49  ;;  %v4863_v62 = vadd.f32 %v3540_v61, %v2026_v6 }
 0x227   : > { %v4680_v1 = vpop.f32.mrb[32].mxu1  ;;  %3937 = vst.msk [vmem:[%s6096_s18 + $0x54] sm:$0xf] %vm3915_vm10, %v4306_v3  ;;  %vm3689_vm2 = vcmp.ge.f32.partialorder %v3653_v43, 0.0  ;;  %v3725_v14 = vmul.f32 0.01, %v3653_v43  ;;  %v3654_v63 = vadd.f32 %v4862_v33, %v6086_v49 }
 0x228   : > { %v2055_v16 = vpop.f32.mrb[33].mxu1  ;;  %vm3687_vm3 = vcmp.ge.f32.partialorder %v3651_v51, 0.0  ;;  %v3723_v9 = vmul.f32 0.01, %v3651_v51  ;;  %v3652_v15 = vadd.f32 %v4863_v62, %v6086_v49 }
 0x229   : > { %v4681_v57 = vpop.f32.mrb[34].mxu1  ;;  %v3761_v38 = vsel %vm3689_vm2, %v3653_v43, %v3725_v14  ;;  %vm3690_vm4 = vcmp.ge.f32.partialorder %v3654_v63, 0.0  ;;  %v3726_v58 = vmul.f32 0.01, %v3654_v63 }
 0x22a   : > { %v2058_v17 = vpop.f32.mrb[35].mxu1  ;;  %v4311_v7 = vpack.c.bf16 %v3761_v38, %v3761_v38  ;;  %v3759_v4 = vsel %vm3687_vm3, %v3651_v51, %v3723_v9  ;;  %vm3688_vm5 = vcmp.ge.f32.partialorder %v3652_v15, 0.0  ;;  %v3724_v11 = vmul.f32 0.01, %v3652_v15  ;;  %v4828_v8 = vpop.f32.mrb[28].mxu0 }
 0x22b   : > { %v4309_v6 = vpack.c.bf16 %v3759_v4, %v3759_v4  ;;  %v3762_v48 = vsel %vm3690_vm4, %v3654_v63, %v3726_v58  ;;  %v4864_v12 = vadd.f32 %v4828_v8, %v4676_v23  ;;  %v3553_v30 = vpop.f32.mrb[29].mxu0 }
 0x22c   : > { %3942 = vst.msk [vmem:[%s6096_s18 + $0x68] sm:$0xf] %vm3915_vm10, %v4311_v7  ;;  %v4312_v34 = vpack.c.bf16 %v3762_v48, %v3762_v48  ;;  %v3760_v60 = vsel %vm3688_vm5, %v3652_v15, %v3724_v11  ;;  %v4865_v42 = vadd.f32 %v3553_v30, %v2039_v26  ;;  %v4829_v46 = vpop.f32.mrb[30].mxu0 }
 0x22d   : > { %3940 = vst.msk [vmem:[%s6096_s18 + $0x60] sm:$0xf] %vm3915_vm10, %v4309_v6  ;;  %v4310_v50 = vpack.c.bf16 %v3760_v60, %v3760_v60  ;;  %v3657_v24 = vadd.f32 %v4864_v12, %v6086_v49  ;;  %v4866_v47 = vadd.f32 %v4829_v46, %v4677_v2  ;;  %v3556_v37 = vpop.f32.mrb[31].mxu0 }
 0x22e   : > { %3943 = vst.msk [vmem:[%s6096_s18 + $0x6c] sm:$0xf] %vm3915_vm10, %v4312_v34  ;;  %v3655_v18 = vadd.f32 %v4865_v42, %v6086_v49  ;;  %v4867_v0 = vadd.f32 %v3556_v37, %v2042_v5 }
 0x22f   : > { %3941 = vst.msk [vmem:[%s6096_s18 + $0x64] sm:$0xf] %vm3915_vm10, %v4310_v50  ;;  %vm3693_vm6 = vcmp.ge.f32.partialorder %v3657_v24, 0.0  ;;  %v3729_v52 = vmul.f32 0.01, %v3657_v24  ;;  %v3658_v10 = vadd.f32 %v4866_v47, %v6086_v49 }
 0x230   : > { %vm3691_vm7 = vcmp.ge.f32.partialorder %v3655_v18, 0.0  ;;  %v3727_v25 = vmul.f32 0.01, %v3655_v18  ;;  %v3656_v45 = vadd.f32 %v4867_v0, %v6086_v49 }
 0x231   : > { %v3765_v22 = vsel %vm3693_vm6, %v3657_v24, %v3729_v52  ;;  %vm3694_vm8 = vcmp.ge.f32.partialorder %v3658_v10, 0.0  ;;  %v3730_v23 = vmul.f32 0.01, %v3658_v10 }
 0x232   : > { %v4315_v35 = vpack.c.bf16 %v3765_v22, %v3765_v22  ;;  %v3763_v53 = vsel %vm3691_vm7, %v3655_v18, %v3727_v25  ;;  %vm3692_vm9 = vcmp.ge.f32.partialorder %v3656_v45, 0.0  ;;  %v3728_v26 = vmul.f32 0.01, %v3656_v45  ;;  %v4832_v28 = vpop.f32.mrb[32].mxu0 }
 0x233   : > { %v4313_v41 = vpack.c.bf16 %v3763_v53, %v3763_v53  ;;  %v3766_v2 = vsel %vm3694_vm8, %v3658_v10, %v3730_v23  ;;  %v4868_v27 = vadd.f32 %v4832_v28, %v4680_v1  ;;  %v3569_v54 = vpop.f32.mrb[33].mxu0 }
 0x234   : > { %3946 = vst.msk [vmem:[%s6096_s18 + $0x78] sm:$0xf] %vm3915_vm10, %v4315_v35  ;;  %v4316_v5 = vpack.c.bf16 %v3766_v2, %v3766_v2  ;;  %v3764_v32 = vsel %vm3692_vm9, %v3656_v45, %v3728_v26  ;;  %v4869_v31 = vadd.f32 %v3569_v54, %v2055_v16  ;;  %v4833_v20 = vpop.f32.mrb[34].mxu0 }
 0x235   : > { %3944 = vst.msk [vmem:[%s6096_s18 + $0x70] sm:$0xf] %vm3915_vm10, %v4313_v41  ;;  %v4314_v21 = vpack.c.bf16 %v3764_v32, %v3764_v32  ;;  %v3661_v44 = vadd.f32 %v4868_v27, %v6086_v49  ;;  %v4870_v56 = vadd.f32 %v4833_v20, %v4681_v57  ;;  %v3572_v55 = vpop.f32.mrb[35].mxu0 }
 0x236   : > { %3947 = vst.msk [vmem:[%s6096_s18 + $0x7c] sm:$0xf] %vm3915_vm10, %v4316_v5  ;;  %v3659_v40 = vadd.f32 %v4869_v31, %v6086_v49  ;;  %v4871_v59 = vadd.f32 %v3572_v55, %v2058_v17 }
 0x237   : > { %3945 = vst.msk [vmem:[%s6096_s18 + $0x74] sm:$0xf] %vm3915_vm10, %v4314_v21  ;;  %vm3697_vm11 = vcmp.ge.f32.partialorder %v3661_v44, 0.0  ;;  %v3733_v39 = vmul.f32 0.01, %v3661_v44  ;;  %v3662_v13 = vadd.f32 %v4870_v56, %v6086_v49 }
 0x238   : > { %vm3695_vm12 = vcmp.ge.f32.partialorder %v3659_v40, 0.0  ;;  %v3731_v29 = vmul.f32 0.01, %v3659_v40  ;;  %v3660_v19 = vadd.f32 %v4871_v59, %v6086_v49 }
 0x239   : > { %v3769_v36 = vsel %vm3697_vm11, %v3661_v44, %v3733_v39  ;;  %vm3698_vm13 = vcmp.ge.f32.partialorder %v3662_v13, 0.0  ;;  %v3734_v3 = vmul.f32 0.01, %v3662_v13 }
 0x23a   : > { %v4319_v43 = vpack.c.bf16 %v3769_v36, %v3769_v36  ;;  %v3767_v33 = vsel %vm3695_vm12, %v3659_v40, %v3731_v29  ;;  %vm3696_vm14 = vcmp.ge.f32.partialorder %v3660_v19, 0.0  ;;  %v3732_v61 = vmul.f32 0.01, %v3660_v19 }
 0x23b   : > { %v4317_v1 = vpack.c.bf16 %v3767_v33, %v3767_v33  ;;  %v3770_v51 = vsel %vm3698_vm13, %v3662_v13, %v3734_v3 }
 0x23c   : > { %3950 = vst.msk [vmem:[%s6096_s18 + $0x88] sm:$0xf] %vm3915_vm10, %v4319_v43  ;;  %v4320_v62 = vpack.c.bf16 %v3770_v51, %v3770_v51  ;;  %v3768_v16 = vsel %vm3696_vm14, %v3660_v19, %v3732_v61 }
 0x23d   : > { %3948 = vst.msk [vmem:[%s6096_s18 + $0x80] sm:$0xf] %vm3915_vm10, %v4317_v1  ;;  %v4318_v14 = vpack.c.bf16 %v3768_v16, %v3768_v16 }
 0x23e   : > { %3951 = vst.msk [vmem:[%s6096_s18 + $0x8c] sm:$0xf] %vm3915_vm10, %v4320_v62 }
 0x23f   : > { %3949 = vst.msk [vmem:[%s6096_s18 + $0x84] sm:$0xf] %vm3915_vm10, %v4318_v14 }
 0x240 PF: > { %s13_s12 = sadd.s32 1, %s5223_s12  }
 0x241   : > { %p10_p4 = scmp.ge.s32.totalorder %s13_s12, 4  }
 0x243   :  { %12 = sbr.rel (!%p10_p4) target bundleno = 1 (0x1), region = 70 }

// kernel: vae_encoder_forward.7
= control target key start
LH: loop header
LB: loop body
LE: loop exit
PB: predicated region body
PF: predicated region fallthrough
CT: control target
= control target key end

     0   :  { %s5491_s12 = smov 0   ;;  %s6734_s0 = inlined_call_operand.vmem [shape: bf16[2,342,8], index: 0, kind: input, shape index: {}]   ;;  %s6735_s1 = inlined_call_operand.vmem [shape: bf16[9,8,8], index: 1, kind: input, shape index: {}]   ;;  %s6736_s2 = inlined_call_operand.vmem [shape: f32[1,8], index: 2, kind: input, shape index: {}]   ;;  %s6737_s3 = inlined_call_operand.vmem [shape: bf16[2,288,8], index: 3, kind: output, shape index: {}]  }
   0x1 LB: > { %s4227_s13 = sadd.s32 4294967295, %s5469_s12   ;;  %p4231_p0 = scmp.ge.s32.totalorder %s5469_s12, 1  ;;  %s5469_s12 = sphi %s5491_s12, %s13_s12  }
   0x2   : > { %p137_p1 = scmp.lt.s32.totalorder %s5469_s12, 3 }
   0x4   : > { %p138_p2 = pnand %p4231_p0, %p137_p1 }
   0x6   : > { %141 = sbr.rel (%p138_p2) target bundleno = 580 (0x244), region = 32 }
   0xd   : > { %vm509_vm0 = vcmask 1043456   ;;  %v5502_v0 = vld [vmem:[%s6735_s1 + $0x10] sm:$0xf]  ;;  %v4234_v1 = vld [vmem:[%s6735_s1 + $0x4] sm:$0xf]  ;;  %p161_p3 = scmp.lt.s32.totalorder %s4227_s13, 1 }
   0xe   : > { %5348 = vmatprep.subr.msk.bf16.mxu0 %vm509_vm0, %v5502_v0  ;;  %5344 = vmatprep.subr.msk.bf16.mxu1 %vm509_vm0, %v4234_v1  ;;  %v5512_v2 = vsel %vm509_vm0, %v5502_v0, 0  ;;  %v511_v3 = vsel %vm509_vm0, %v4234_v1, 0  ;;  %v4368_v4 = vld [vmem:[%s6735_s1 + $0x14] sm:$0xf]  ;;  %v208_v5 = vld [vmem:[%s6735_s1] sm:$0xf] }
   0xf   : > { %4865 = vmatpush3.bf16.msra.mxu0 %v5512_v2  ;;  %4713 = vmatpush3.bf16.msra.mxu1 %v511_v3  ;;  %s6762_s13 = smov (!%p161_p3, %s4227_s13), 1  ;;  %vm305_vm1 = vsmask.f32 7424  ;;  %vm1665_vm2 = vsmask.f32 6400  ;;  %vm454_vm3 = vcmask 64512  }
  0x10   : > { %5350 = vmatprep.subr.msk.bf16.mxu0 %vm509_vm0, %v4368_v4  ;;  %s5354_s22 = smul.u32 172, %s6762_s13  ;;  %5345 = vmatprep.subr.msk.bf16.mxu1 %vm509_vm0, %v208_v5  ;;  %v2205_v20 = vsel %vm509_vm0, %v4368_v4, 0  ;;  %v727_v24 = vsel %vm509_vm0, %v208_v5, 0  ;;  %v5584_v43 = vld [vmem:[%s6735_s1 + $0x8] sm:$0xf]  ;;  %vm2112_vm4 = vcmask 1045504  }
  0x11   : > { %v5606_v60 = vld [vmem:[%s6735_s1 + $0x18] sm:$0xf]  ;;  %vm912_vm5 = vcmask 1046528   ;;  %vm2865_vm6 = vsmask.f32 5376  ;;  %vm3312_vm7 = vcmask 1044480  }
  0x12   : > { %s5530_s25 = scalar_lea.vmem %s6734_s0, %s5354_s22  ;;  %vm4135_vm8 = vcmask 60416   ;;  %s5355_s11 = smul.u32 144, %s6762_s13 }
  0x13   : > { %v172_v6 = vld [vmem:[%s5530_s25] sm:$0xf]  ;;  %v5534_v7 = vld [vmem:[%s5530_s25 + $0x4] sm:$0xf]  ;;  %v5540_v9 = vld [vmem:[%s5530_s25 + $0x8] sm:$0xff]  }
  0x14   : > { %v5537_v8 = vcombine.low %v172_v6, %v5534_v7  ;;  %v1220_v10 = vld [vmem:[%s5530_s25 + $0x8] sm:$0xe]  ;;  %v5544_v11 = vld [vmem:[%s5530_s25 + $0xc] sm:$0xf]  ;;  %v5547_v12 = vld [vmem:[%s5530_s25 + $0x10] sm:$0xff]   ;;  %v314_v15 = vshll.u32 %v5540_v9, 16  ;;  %s6458_s15 = scalar_lea.vmem %s6737_s3, %s5355_s11 }
  0x15   : > { %v318_v16 = vshrl.u32 %v5540_v9, 16  ;;  %v5554_v17 = vcombine.low %v1220_v10, %v5544_v11  ;;  %v5557_v18 = vld [vmem:[%s5530_s25 + $0x10] sm:$0xff]   ;;  %v5560_v19 = vld [vmem:[%s5530_s25 + $0x18] sm:$0xff]   ;;  %v1675_v27 = vshrl.u32 %v5547_v12, 16  ;;  %v1678_v28 = vshll.u32 %v5547_v12, 16  ;;  %v5574_v33 = vld [vmem:[%s5530_s25 + $0x20] sm:$0xff]  }
  0x16   : > { %v307_v13 = vshrl.u32 %v5537_v8, 16  ;;  %v309_v14 = vshll.u32 %v5537_v8, 16  ;;  %v316_v22 = vrot.slane %v314_v15, 1  ;;  %v5564_v23 = vld [vmem:[%s5530_s25 + $0x18] sm:$0xff]   ;;  %v322_v31 = vshll.u32 %v5557_v18, 16  ;;  %v5577_v34 = vld [vmem:[%s5530_s25 + $0x20] sm:$0xff]  }
  0x17   : > { %v1667_v25 = vshrl.u32 %v5554_v17, 16  ;;  %v1670_v26 = vshll.u32 %v5554_v17, 16  ;;  %v1684_v32 = vshrl.u32 %v5560_v19, 16  ;;  %v1677_v37 = vrot.slane %v1675_v27, 1  ;;  %v5590_v48 = vld [vmem:[%s5530_s25 + $0x28] sm:$0xff]   ;;  %v5611_v3 = vld [vmem:[%s5530_s25 + $0x30] sm:$0xff]  }
  0x18   : > { %v311_v21 = vrot.slane %v309_v14, 1  ;;  %v320_v30 = vor.u32 %v318_v16, %v316_v22  ;;  %v1680_v38 = vrot.slane %v1678_v28, 2  ;;  %v324_v40 = vrot.slane %v322_v31, 1  ;;  %v5595_v52 = vld [vmem:[%s5530_s25 + $0x28] sm:$0xff]   ;;  %v5614_v4 = vld [vmem:[%s5530_s25 + $0x30] sm:$0xff]   ;;  %v5622_v14 = vld [vmem:[%s5530_s25 + $0x38] sm:$0xff]  }
  0x19   : > { %v1669_v35 = vrot.slane %v1667_v25, 1  ;;  %v1672_v36 = vrot.slane %v1670_v26, 2  ;;  %v1686_v41 = vrot.slane %v1684_v32, 1  ;;  %v1687_v42 = vshll.u32 %v5560_v19, 16 }
  0x1a   : > { %v312_v29 = vor.u32 %v311_v21, %v307_v13  ;;  %v1681_v45 = vor.u32 %v1680_v38, %v1677_v37  ;;  %v326_v46 = vshrl.u32 %v5557_v18, 16  ;;  %v330_v47 = vshll.u32 %v5564_v23, 16 }
  0x1b   : > { %v1673_v44 = vor.u32 %v1672_v36, %v1669_v35  ;;  %v325_v49 = vsel %vm305_vm1, %v320_v30, %v324_v40  ;;  %v1689_v50 = vrot.slane %v1687_v42, 2  ;;  %v334_v51 = vshrl.u32 %v5564_v23, 16  ;;  %v5631_v30 = vld [vmem:[%s5530_s25 + $0x38] sm:$0xff]   ;;  %v5640_v36 = vld [vmem:[%s5530_s25 + $0x40] sm:$0xff]   ;;  %v5649_v42 = vld [vmem:[%s5530_s25 + $0x48] sm:$0xff]  }
  0x1c   : > { %v317_v39 = vsel %vm305_vm1, %v312_v29, %v316_v22  ;;  %v328_v54 = vor.u32 %v326_v46, %v324_v40  ;;  %v332_v55 = vrot.slane %v330_v47, 1  ;;  %v338_v56 = vshll.u32 %v5577_v34, 16 }
  0x1d   : > { %4714 = vmatprep.mubr.msk.bf16.mxu1 %vm454_vm3, %v317_v39  ;;  %v1682_v53 = vsel %vm1665_vm2, %v1673_v44, %v1681_v45  ;;  %v1690_v57 = vor.u32 %v1689_v50, %v1686_v41  ;;  %v1693_v58 = vshrl.u32 %v5574_v33, 16  ;;  %v1696_v59 = vshll.u32 %v5574_v33, 16  ;;  %v5646_v41 = vld [vmem:[%s5530_s25 + $0x40] sm:$0xff]  }
  0x1e   : > { %4715 = vmatmul.mubr.msk.bf16.vlgmr.msra.gmra.mrb[0].mxu1 %vm454_vm3, %v325_v49  ;;  %4866 = vmatprep.mubr.msk.bf16.mxu0 %vm454_vm3, %v1682_v53  ;;  %v333_v61 = vsel %vm305_vm1, %v328_v54, %v332_v55  ;;  %v336_v62 = vor.u32 %v334_v51, %v332_v55  ;;  %v340_v63 = vrot.slane %v338_v56, 1  ;;  %v342_v1 = vshrl.u32 %v5577_v34, 16 }
  0x1f   : > { %4751 = vmatpush3.bf16.msra.mxu1 %v727_v24  ;;  %v1691_v5 = vsel %vm1665_vm2, %v1681_v45, %v1690_v57  ;;  %4718 = vmatprep.mubr.msk.bf16.mxu1 %vm454_vm3, %v333_v61  ;;  %v1695_v6 = vrot.slane %v1693_v58, 1  ;;  %v1698_v10 = vrot.slane %v1696_v59, 2  ;;  %v1702_v13 = vshrl.u32 %v5590_v48, 16  ;;  %v5661_v61 = vld [vmem:[%s5530_s25 + $0x48] sm:$0xff]  }
  0x20   : > { %5346 = vmatprep.subr.msk.bf16.mxu1 %vm509_vm0, %v5584_v43  ;;  %4867 = vmatmul.mubr.msk.bf16.vlgmr.msra.gmra.mrb[0].mxu0 %vm454_vm3, %v1691_v5  ;;  %v341_v15 = vsel %vm305_vm1, %v336_v62, %v340_v63  ;;  %v1705_v16 = vshll.u32 %v5590_v48, 16  ;;  %v344_v21 = vor.u32 %v342_v1, %v340_v63  ;;  %v346_v22 = vshll.u32 %v5595_v52, 16 }
  0x21   : > { %4903 = vmatpush3.bf16.msra.mxu0 %v2205_v20  ;;  %v1699_v24 = vor.u32 %v1698_v10, %v1695_v6  ;;  %v1704_v25 = vrot.slane %v1702_v13, 1  ;;  %v350_v26 = vshrl.u32 %v5595_v52, 16  ;;  %v354_v29 = vshll.u32 %v5614_v4, 16  ;;  %v5670_v13 = vld [vmem:[%s5530_s25 + $0x50] sm:$0xff]  }
  0x22   : > { %v1707_v27 = vrot.slane %v1705_v16, 2  ;;  %v348_v28 = vrot.slane %v346_v22, 1  ;;  %5351 = vmatprep.subr.msk.bf16.mxu0 %vm509_vm0, %v5606_v60  ;;  %v1711_v32 = vshrl.u32 %v5611_v3, 16  ;;  %v1714_v20 = vshll.u32 %v5611_v3, 16 }
  0x23   : > { %v1700_v31 = vsel %vm1665_vm2, %v1690_v57, %v1699_v24  ;;  %v358_v35 = vshrl.u32 %v5614_v4, 16  ;;  %v356_v40 = vrot.slane %v354_v29, 1  ;;  %v1720_v46 = vshrl.u32 %v5622_v14, 16 }
  0x24   : > { %4870 = vmatprep.mubr.msk.bf16.mxu0 %vm454_vm3, %v1700_v31  ;;  %v1708_v37 = vor.u32 %v1707_v27, %v1704_v25  ;;  %v349_v38 = vsel %vm305_vm1, %v344_v21, %v348_v28  ;;  %v352_v39 = vor.u32 %v350_v26, %v348_v28  ;;  %v1713_v44 = vrot.slane %v1711_v32, 1  ;;  %v5677_v25 = vld [vmem:[%s5530_s25 + $0x58] sm:$0xff]  }
  0x25   : > { %v1716_v45 = vrot.slane %v1714_v20, 2  ;;  %v1723_v47 = vshll.u32 %v5622_v14, 16  ;;  %v360_v51 = vor.u32 %v358_v35, %v356_v40  ;;  %v362_v53 = vshll.u32 %v5631_v30, 16 }
  0x26   : > { %4719 = vmatmul.mubr.msk.bf16.gmra.mrb[4].mxu1 %vm454_vm3, %v341_v15  ;;  %v1709_v49 = vsel %vm1665_vm2, %v1699_v24, %v1708_v37  ;;  %v357_v50 = vsel %vm305_vm1, %v352_v39, %v356_v40  ;;  %v1722_v55 = vrot.slane %v1720_v46, 1  ;;  %v366_v58 = vshrl.u32 %v5631_v30, 16  ;;  %v5673_v15 = vld [vmem:[%s5530_s25 + $0x50] sm:$0xff]  }
  0x27   : > { %4722 = vmatprep.mubr.msk.bf16.mxu1 %vm454_vm3, %v349_v38  ;;  %v1717_v54 = vor.u32 %v1716_v45, %v1713_v44  ;;  %v1725_v56 = vrot.slane %v1723_v47, 2  ;;  %v364_v57 = vrot.slane %v362_v53, 1  ;;  %v370_v59 = vshll.u32 %v5646_v41, 16  ;;  %v5685_v38 = vld [vmem:[%s5530_s25 + $0x58] sm:$0xff]  }
  0x28   : > { %4871 = vmatmul.mubr.msk.bf16.gmra.mrb[4].mxu0 %vm454_vm3, %v1709_v49  ;;  %v1729_v1 = vshrl.u32 %v5640_v36, 16  ;;  %v1732_v5 = vshll.u32 %v5640_v36, 16  ;;  %v1738_v10 = vshrl.u32 %v5649_v42, 16  ;;  %v1741_v24 = vshll.u32 %v5649_v42, 16 }
  0x29   : > { %v1718_v62 = vsel %vm1665_vm2, %v1708_v37, %v1717_v54  ;;  %v1726_v63 = vor.u32 %v1725_v56, %v1722_v55  ;;  %v365_v6 = vsel %vm305_vm1, %v360_v51, %v364_v57  ;;  %v368_v22 = vor.u32 %v366_v58, %v364_v57 }
  0x2a   : > { %4874 = vmatprep.mubr.msk.bf16.mxu0 %vm454_vm3, %v1718_v62  ;;  %v1731_v16 = vrot.slane %v1729_v1, 1  ;;  %v1734_v21 = vrot.slane %v1732_v5, 2  ;;  %v372_v26 = vrot.slane %v370_v59, 1  ;;  %v1740_v27 = vrot.slane %v1738_v10, 1  ;;  %v2106_v59 = vld [vmem:[%s5530_s25 + $0x8] sm:$0xc] }
  0x2b   : > { %v374_v28 = vshrl.u32 %v5646_v41, 16  ;;  %v378_v29 = vshll.u32 %v5661_v61, 16  ;;  %v1727_v31 = vsel %vm1665_vm2, %v1717_v54, %v1726_v63  ;;  %v1743_v20 = vrot.slane %v1741_v24, 2 }
  0x2c   : > { %v1735_v32 = vor.u32 %v1734_v21, %v1731_v16  ;;  %v1747_v40 = vshrl.u32 %v5670_v13, 16  ;;  %v1750_v44 = vshll.u32 %v5670_v13, 16  ;;  %v373_v45 = vsel %vm305_vm1, %v368_v22, %v372_v26 }
  0x2d   : > { %v376_v35 = vor.u32 %v374_v28, %v372_v26  ;;  %v380_v37 = vrot.slane %v378_v29, 1  ;;  %v1744_v46 = vor.u32 %v1743_v20, %v1740_v27  ;;  %v382_v47 = vshrl.u32 %v5661_v61, 16  ;;  %v5710_v26 = vld [vmem:[%s5530_s25 + $0x68] sm:$0xff]  }
  0x2e   : > { %4723 = vmatmul.mubr.msk.bf16.gmra.mrb[8].mxu1 %vm454_vm3, %v357_v50  ;;  %v1736_v39 = vsel %vm1665_vm2, %v1726_v63, %v1735_v32  ;;  %v386_v49 = vshll.u32 %v5673_v15, 16  ;;  %v1749_v50 = vrot.slane %v1747_v40, 1  ;;  %v1752_v51 = vrot.slane %v1750_v44, 2  ;;  %v5703_v63 = vld [vmem:[%s5530_s25 + $0x60] sm:$0xff]   ;;  %v5725_v44 = vld [vmem:[%s5530_s25 + $0x70] sm:$0xff]  }
  0x2f   : > { %4726 = vmatprep.mubr.msk.bf16.mxu1 %vm454_vm3, %v365_v6  ;;  %v1756_v53 = vshrl.u32 %v5677_v25, 16  ;;  %v1759_v54 = vshll.u32 %v5677_v25, 16  ;;  %v381_v55 = vsel %vm305_vm1, %v376_v35, %v380_v37  ;;  %v390_v56 = vshrl.u32 %v5673_v15, 16 }
  0x30   : > { %4875 = vmatmul.mubr.msk.bf16.gmra.mrb[8].mxu0 %vm454_vm3, %v1727_v31  ;;  %v394_v57 = vshll.u32 %v5685_v38, 16  ;;  %v1753_v58 = vor.u32 %v1752_v51, %v1749_v50  ;;  %v388_v62 = vrot.slane %v386_v49, 1  ;;  %v1745_v1 = vsel %vm1665_vm2, %v1735_v32, %v1744_v46 }
  0x31   : > { %4878 = vmatprep.mubr.msk.bf16.mxu0 %vm454_vm3, %v1736_v39  ;;  %v384_v5 = vor.u32 %v382_v47, %v380_v37  ;;  %v1758_v6 = vrot.slane %v1756_v53, 1  ;;  %v1761_v10 = vrot.slane %v1759_v54, 2  ;;  %v4369_v24 = vcombine.low %v2106_v59, %v5544_v11 }
  0x32   : > { %v1754_v16 = vsel %vm1665_vm2, %v1744_v46, %v1753_v58  ;;  %v392_v21 = vor.u32 %v390_v56, %v388_v62  ;;  %v396_v22 = vrot.slane %v394_v57, 1  ;;  %v398_v27 = vshrl.u32 %v5685_v38, 16  ;;  %v5731_v46 = vld [vmem:[%s5530_s25 + $0x78] sm:$0xff]  }
  0x33   : > { %v402_v28 = vshll.u32 %v5703_v63, 16  ;;  %v389_v29 = vsel %vm305_vm1, %v384_v5, %v388_v62  ;;  %v5717_v31 = vor.u32 %v1761_v10, %v1758_v6  ;;  %v2114_v32 = vrot.slane %v5547_v12, 2 }
  0x34   : > { %v397_v11 = vsel %vm305_vm1, %v392_v21, %v396_v22  ;;  %v2113_v20 = vrot.slane %v4369_v24, 2  ;;  %v406_v35 = vshrl.u32 %v5703_v63, 16  ;;  %v410_v37 = vshll.u32 %v5710_v26, 16  ;;  %v5754_v24 = vld [vmem:[%s5530_s25 + $0x88] sm:$0xff]  }
  0x35   : > { %6749 = vst [vmem:[#allocation2_spill] sm:$0xff] %v5717_v31  ;;  %v400_v39 = vor.u32 %v398_v27, %v396_v22  ;;  %v404_v40 = vrot.slane %v402_v28, 1  ;;  %v2116_v53 = vrot.slane %v5560_v19, 2  ;;  %v418_v54 = vshll.u32 %v5725_v44, 16  ;;  %v5759_v27 = vld [vmem:[%s6735_s1 + $0x1c] sm:$0xf] }
  0x36   : > { %4727 = vmatmul.mubr.msk.bf16.gmra.mrb[12].mxu1 %vm454_vm3, %v373_v45  ;;  %v1763_v45 = vsel %vm1665_vm2, %v1753_v58, %v5717_v31  ;;  %v2115_v47 = vsel %vm2112_vm4, %v2113_v20, %v2114_v32  ;;  %v412_v50 = vrot.slane %v410_v37, 1  ;;  %v414_v56 = vshrl.u32 %v5710_v26, 16 }
  0x37   : > { %4730 = vmatprep.mubr.msk.bf16.mxu1 %vm454_vm3, %v381_v55  ;;  %v408_v49 = vor.u32 %v406_v35, %v404_v40  ;;  %v405_v51 = vsel %vm305_vm1, %v400_v39, %v404_v40  ;;  %v2118_v55 = vrot.slane %v5574_v33, 2  ;;  %v422_v57 = vshrl.u32 %v5725_v44, 16 }
  0x38   : > { %4879 = vmatmul.mubr.msk.bf16.gmra.mrb[12].mxu0 %vm454_vm3, %v1745_v1  ;;  %v426_v58 = vshll.u32 %v5731_v46, 16  ;;  %v420_v62 = vrot.slane %v418_v54, 1  ;;  %v5746_v1 = vld [vmem:[%s5530_s25 + $0x80] sm:$0xff]   ;;  %v2117_v5 = vsel %vm2112_vm4, %v2114_v32, %v2116_v53  ;;  %v2644_v6 = vsel %vm509_vm0, %v5606_v60, 0 }
  0x39   : > { %4882 = vmatprep.mubr.msk.bf16.mxu0 %vm454_vm3, %v1754_v16  ;;  %v413_v59 = vsel %vm305_vm1, %v408_v49, %v412_v50  ;;  %v416_v10 = vor.u32 %v414_v56, %v412_v50  ;;  %v2119_v16 = vsel %vm2112_vm4, %v2116_v53, %v2118_v55  ;;  %v434_v28 = vshll.u32 %v5746_v1, 16 }
  0x3a   : > { %v424_v21 = vor.u32 %v422_v57, %v420_v62  ;;  %v428_v22 = vrot.slane %v426_v58, 1  ;;  %v430_v32 = vshrl.u32 %v5731_v46, 16  ;;  %v2122_v20 = vrot.slane %v5611_v3, 2 }
  0x3b   : > { %v421_v60 = vsel %vm305_vm1, %v416_v10, %v420_v62  ;;  %v438_v35 = vshrl.u32 %v5746_v1, 16  ;;  %v442_v37 = vshll.u32 %v5754_v24, 16  ;;  %v436_v39 = vrot.slane %v434_v28, 1 }
  0x3c   : > { %v2124_v54 = vrot.slane %v5622_v14, 2  ;;  %v2126_v58 = vrot.slane %v5640_v36, 2 }
  0x3d   : > { %v440_v50 = vor.u32 %v438_v35, %v436_v39  ;;  %v5815_v35 = vld [vmem:[%s5530_s25 + $0x70] sm:$0xff]  }
  0x3e   : > { %4731 = vmatmul.mubr.msk.bf16.gmra.mrb[16].mxu1 %vm454_vm3, %v389_v29  ;;  %v2120_v29 = vrot.slane %v5590_v48, 2 }
  0x3f   : > { %4734 = vmatprep.mubr.msk.bf16.mxu1 %vm454_vm3, %v397_v11  ;;  %v429_v11 = vsel %vm305_vm1, %v424_v21, %v428_v22  ;;  %v2130_v21 = vrot.slane %v5670_v13, 2 }
  0x40   : > { %4883 = vmatmul.mubr.msk.bf16.gmra.mrb[16].mxu0 %vm454_vm3, %v1763_v45  ;;  %v2121_v40 = vsel %vm2112_vm4, %v2118_v55, %v2120_v29  ;;  %v432_v45 = vor.u32 %v430_v32, %v428_v22  ;;  %v2123_v49 = vsel %vm2112_vm4, %v2120_v29, %v2122_v20  ;;  %v446_v55 = vshrl.u32 %v5754_v24, 16  ;;  %v5798_v22 = vld [vmem:[%s5530_s25 + $0x60] sm:$0xff]  }
  0x41   : > { %4904 = vmatprep.mubr.msk.bf16.mxu0 %vm454_vm3, %v2115_v47  ;;  %v5777_v47 = vld [vmem:[%s5530_s25 + $0x90] ss:$0 sps:$4 sm:$0x11]   ;;  %v2132_v29 = vrot.slane %v5677_v25, 2  ;;  %v2134_v32 = vrot.slane %v5798_v22, 2 }
  0x42   : > { %v437_v53 = vsel %vm305_vm1, %v432_v45, %v436_v39  ;;  %v450_v56 = vshll.u32 %v5777_v47, 16  ;;  %v5835_v45 = vld [vmem:[%s5530_s25 + $0x78] sm:$0xff]  }
  0x43   : > { %6750 = vst [vmem:[#allocation3_spill] sm:$0xff] %v5835_v45 }
  0x46   : > { %4735 = vmatmul.mubr.msk.bf16.gmra.mrb[20].mxu1 %vm454_vm3, %v405_v51  ;;  %v444_v51 = vrot.slane %v442_v37, 1  ;;  %v2133_v37 = vsel %vm2112_vm4, %v2130_v21, %v2132_v29 }
  0x47   : > { %4738 = vmatprep.mubr.msk.bf16.mxu1 %vm454_vm3, %v413_v59  ;;  %v2125_v59 = vsel %vm2112_vm4, %v2122_v20, %v2124_v54  ;;  %v5812_v20 = vld [vmem:[%s5530_s25 + $0x68] sm:$0xff]  }
  0x48   : > { %4905 = vmatmul.mubr.msk.bf16.vlgmr.msra.gmra.mrb[0].mxu0 %vm454_vm3, %v2117_v5  ;;  %v445_v57 = vsel %vm305_vm1, %v440_v50, %v444_v51  ;;  %v448_v62 = vor.u32 %v446_v55, %v444_v51  ;;  %v452_v5 = vrot.slane %v450_v56, 1  ;;  %v2136_v39 = vrot.slane %v5812_v20, 2  ;;  %v5851_v55 = vld [vmem:[%s5530_s25 + $0x88] sm:$0xff]   ;;  %v5854_v56 = vld [vmem:[%s5530_s25 + $0x90] sm:$0xff]  }
  0x49   : > { %4941 = vmatpush3.bf16.msra.mxu0 %v2644_v6  ;;  %4908 = vmatprep.mubr.msk.bf16.mxu0 %vm454_vm3, %v2119_v16  ;;  %v2127_v6 = vsel %vm2112_vm4, %v2124_v54, %v2126_v58  ;;  %v2128_v16 = vrot.slane %v5649_v42, 2  ;;  %6752 = vst [vmem:[#allocation5_spill] sm:$0xff] %v5851_v55  ;;  %6753 = vst [vmem:[#allocation6_spill] sm:$0xff] %v5854_v56 }
  0x4a   : > { %5352 = vmatprep.subr.msk.bf16.mxu0 %vm509_vm0, %v5759_v27  ;;  %v453_v10 = vsel %vm305_vm1, %v448_v62, %v452_v5  ;;  %v2137_v50 = vsel %vm2112_vm4, %v2134_v32, %v2136_v39  ;;  %v2146_v62 = vrot.slane %v5854_v56, 2  ;;  %v1659_v5 = vld [vmem:[%s5530_s25 + $0x98] sm:$0x3] }
  0x4b   : > { %v2129_v28 = vsel %vm2112_vm4, %v2126_v58, %v2128_v16 }
  0x4e   : > { %4739 = vmatmul.mubr.msk.bf16.gmra.mrb[24].mxu1 %vm454_vm3, %v421_v60  ;;  %v2131_v60 = vsel %vm2112_vm4, %v2128_v16, %v2130_v21  ;;  %v5876_v21 = vcombine.low %v1659_v5, %v1659_v5  ;;  %v5923_v5 = vld [vmem:[%s6735_s1 + $0x20] sm:$0xf] }
  0x4f   : > { %4742 = vmatprep.mubr.msk.bf16.mxu1 %vm454_vm3, %v429_v11  ;;  %v1005_v11 = vsel %vm509_vm0, %v5584_v43, 0  ;;  %v2135_v43 = vsel %vm2112_vm4, %v2132_v29, %v2134_v32  ;;  %v5883_v29 = vld [vmem:[%s5530_s25 + $0x18] sm:$0xff]  }
  0x50   : > { %4909 = vmatmul.mubr.msk.bf16.gmra.mrb[4].mxu0 %vm454_vm3, %v2121_v40  ;;  %v2138_v40 = vrot.slane %v5815_v35, 2  ;;  %6754 = vst [vmem:[#allocation7_spill] sm:$0xff] %v5876_v21  ;;  %v2148_v32 = vrot.slane %v5876_v21, 2  ;;  %v5998_v21 = vld [vmem:[%s5530_s25 + $0x78] sm:$0xff]  }
  0x51   : > { %4912 = vmatprep.mubr.msk.bf16.mxu0 %vm454_vm3, %v2123_v49  ;;  %v5838_v49 = vld [vmem:[%s5530_s25 + $0x80] sm:$0xff]  }
  0x52   : > { %6751 = vst [vmem:[#allocation4_spill] sm:$0xff] %v5838_v49  ;;  %v2139_v51 = vsel %vm2112_vm4, %v2136_v39, %v2138_v40  ;;  %v2142_v54 = vrot.slane %v5838_v49, 2  ;;  %v5896_v39 = vld [vmem:[%s5530_s25 + $0x20] sm:$0xff]  }
  0x56   : > { %4743 = vmatmul.mubr.msk.bf16.gmra.mrb[28].mxu1 %vm454_vm3, %v437_v53  ;;  %v2140_v53 = vrot.slane %v5835_v45, 2 }
  0x57   : > { %4746 = vmatprep.mubr.msk.bf16.mxu1 %vm454_vm3, %v445_v57 }
  0x58   : > { %4913 = vmatmul.mubr.msk.bf16.gmra.mrb[8].mxu0 %vm454_vm3, %v2125_v59  ;;  %v2141_v57 = vsel %vm2112_vm4, %v2138_v40, %v2140_v53  ;;  %v2143_v58 = vsel %vm2112_vm4, %v2140_v53, %v2142_v54  ;;  %v2144_v59 = vrot.slane %v5851_v55, 2 }
  0x59   : > { %4916 = vmatprep.mubr.msk.bf16.mxu0 %vm454_vm3, %v2127_v6  ;;  %v2420_v6 = vld [vmem:[%s5530_s25 + $0x10] sm:$0xc] }
  0x5a   : > { %v2145_v16 = vsel %vm2112_vm4, %v2142_v54, %v2144_v59 }
  0x5e   : > { %4747 = vmatmul.mubr.msk.bf16.gmra.mrb[32].mxu1 %vm454_vm3, %v453_v10  ;;  %v5869_v10 = vld [vmem:[%s5530_s25 + $0x14] sm:$0xf] }
  0x5f   : > { %4752 = vmatprep.mubr.msk.bf16.mxu1 %vm454_vm3, %v5537_v8  ;;  %v5820_v8 = vld [vmem:[%s6735_s1 + $0xc] sm:$0xf] }
  0x60   : > { %4917 = vmatmul.mubr.msk.bf16.gmra.mrb[12].mxu0 %vm454_vm3, %v2129_v28  ;;  %v2147_v28 = vsel %vm2112_vm4, %v2144_v59, %v2146_v62 }
  0x61   : > { %4920 = vmatprep.mubr.msk.bf16.mxu0 %vm454_vm3, %v2131_v60  ;;  %v5880_v60 = vcombine.low %v2420_v6, %v5869_v10 }
  0x66   : > { %4753 = vmatmul.mubr.msk.bf16.vlgmr.msra.gmra.mrb[0].mxu1 %vm454_vm3, %v5540_v9 }
  0x67   : > { %4756 = vmatprep.mubr.msk.bf16.mxu1 %vm454_vm3, %v5557_v18  ;;  %4789 = vmatpush3.bf16.msra.mxu1 %v1005_v11  ;;  %v2552_v11 = vrot.slane %v5880_v60, 2 }
  0x68   : > { %5347 = vmatprep.subr.msk.bf16.mxu1 %vm509_vm0, %v5820_v8  ;;  %4921 = vmatmul.mubr.msk.bf16.gmra.mrb[16].mxu0 %vm454_vm3, %v2133_v37  ;;  %v2553_v37 = vrot.slane %v5883_v29, 2 }
  0x69   : > { %4924 = vmatprep.mubr.msk.bf16.mxu0 %vm454_vm3, %v2135_v43  ;;  %v2149_v43 = vsel %vm2112_vm4, %v2146_v62, %v2148_v32  ;;  %v5918_v62 = vld [vmem:[%s5530_s25 + $0x38] sm:$0xff]  }
  0x6a   : > { %v2554_v40 = vsel %vm2112_vm4, %v2552_v11, %v2553_v37  ;;  %v5941_v11 = vld [vmem:[%s5530_s25 + $0x48] sm:$0xff]  }
  0x6e   : > { %4757 = vmatmul.mubr.msk.bf16.gmra.mrb[4].mxu1 %vm454_vm3, %v5564_v23 }
  0x6f   : > { %4760 = vmatprep.mubr.msk.bf16.mxu1 %vm454_vm3, %v5577_v34 }
  0x70   : > { %4925 = vmatmul.mubr.msk.bf16.gmra.mrb[20].mxu0 %vm454_vm3, %v2137_v50  ;;  %v5900_v50 = vld [vmem:[%s5530_s25 + $0x28] sm:$0xff]  }
  0x71   : > { %4928 = vmatprep.mubr.msk.bf16.mxu0 %vm454_vm3, %v2139_v51  ;;  %v2555_v51 = vrot.slane %v5896_v39, 2  ;;  %v2557_v53 = vrot.slane %v5900_v50, 2 }
  0x73   : > { %v2556_v54 = vsel %vm2112_vm4, %v2553_v37, %v2555_v51  ;;  %v2558_v59 = vsel %vm2112_vm4, %v2555_v51, %v2557_v53  ;;  %v906_v37 = vld [vmem:[%s5530_s25] sm:$0xe] }
  0x74   : > { %v4291_v51 = vcombine.low %v906_v37, %v5534_v7 }
  0x76   : > { %4761 = vmatmul.mubr.msk.bf16.gmra.mrb[8].mxu1 %vm454_vm3, %v5595_v52 }
  0x77   : > { %4764 = vmatprep.mubr.msk.bf16.mxu1 %vm454_vm3, %v5614_v4 }
  0x78   : > { %4929 = vmatmul.mubr.msk.bf16.gmra.mrb[24].mxu0 %vm454_vm3, %v2141_v57  ;;  %v5912_v57 = vld [vmem:[%s5530_s25 + $0x30] sm:$0xff]  }
  0x79   : > { %4932 = vmatprep.mubr.msk.bf16.mxu0 %vm454_vm3, %v2143_v58  ;;  %v3091_v58 = vsel %vm509_vm0, %v5759_v27, 0  ;;  %v2559_v6 = vrot.slane %v5912_v57, 2 }
  0x7b   : > { %v2560_v27 = vsel %vm2112_vm4, %v2557_v53, %v2559_v6 }
  0x7e   : > { %4765 = vmatmul.mubr.msk.bf16.gmra.mrb[12].mxu1 %vm454_vm3, %v5631_v30 }
  0x7f   : > { %4768 = vmatprep.mubr.msk.bf16.mxu1 %vm454_vm3, %v5646_v41 }
  0x80   : > { %4933 = vmatmul.mubr.msk.bf16.gmra.mrb[28].mxu0 %vm454_vm3, %v2145_v16  ;;  %v2561_v16 = vrot.slane %v5918_v62, 2 }
  0x81   : > { %4936 = vmatprep.mubr.msk.bf16.mxu0 %vm454_vm3, %v2147_v28  ;;  %v5937_v28 = vld [vmem:[%s5530_s25 + $0x40] sm:$0xff]  }
  0x82   : > { %v2562_v32 = vsel %vm2112_vm4, %v2559_v6, %v2561_v16  ;;  %v914_v6 = vrot.slane %v5540_v9, 1  ;;  %v916_v9 = vrot.slane %v5557_v18, 1 }
  0x86   : > { %4769 = vmatmul.mubr.msk.bf16.gmra.mrb[16].mxu1 %vm454_vm3, %v5661_v61 }
  0x87   : > { %4772 = vmatprep.mubr.msk.bf16.mxu1 %vm454_vm3, %v5673_v15 }
  0x88   : > { %4937 = vmatmul.mubr.msk.bf16.gmra.mrb[32].mxu0 %vm454_vm3, %v2149_v43  ;;  %v2563_v43 = vrot.slane %v5937_v28, 2 }
  0x89   : > { %4942 = vmatprep.mubr.msk.bf16.mxu0 %vm454_vm3, %v2554_v40  ;;  %v2565_v40 = vrot.slane %v5941_v11, 2 }
  0x8a   : > { %v2564_v53 = vsel %vm2112_vm4, %v2561_v16, %v2563_v43 }
  0x8e   : > { %4773 = vmatmul.mubr.msk.bf16.gmra.mrb[20].mxu1 %vm454_vm3, %v5685_v38 }
  0x8f   : > { %4776 = vmatprep.mubr.msk.bf16.mxu1 %vm454_vm3, %v5703_v63 }
  0x90   : > { %4943 = vmatmul.mubr.msk.bf16.vlgmr.msra.gmra.mrb[0].mxu0 %vm454_vm3, %v2556_v54  ;;  %v5955_v54 = vld [vmem:[%s5530_s25 + $0x50] sm:$0xff]  }
  0x91   : > { %4979 = vmatpush3.bf16.msra.mxu0 %v3091_v58  ;;  %4946 = vmatprep.mubr.msk.bf16.mxu0 %vm454_vm3, %v2558_v59  ;;  %v2566_v58 = vsel %vm2112_vm4, %v2563_v43, %v2565_v40  ;;  %v913_v59 = vrot.slane %v4291_v51, 1  ;;  %v2567_v7 = vrot.slane %v5955_v54, 2  ;;  %v5973_v43 = vld [vmem:[%s5530_s25 + $0x60] sm:$0xff]  }
  0x92   : > { %5353 = vmatprep.subr.msk.bf16.mxu0 %vm509_vm0, %v5923_v5 }
  0x93   : > { %v915_v16 = vsel %vm912_vm5, %v913_v59, %v914_v6  ;;  %v2568_v37 = vsel %vm2112_vm4, %v2565_v40, %v2567_v7  ;;  %v917_v40 = vsel %vm912_vm5, %v914_v6, %v916_v9  ;;  %v2571_v59 = vrot.slane %v5973_v43, 2  ;;  %v5993_v6 = vld [vmem:[%s5530_s25 + $0x70] sm:$0xff]  }
  0x96   : > { %4777 = vmatmul.mubr.msk.bf16.gmra.mrb[24].mxu1 %vm454_vm3, %v5710_v26 }
  0x97   : > { %4780 = vmatprep.mubr.msk.bf16.mxu1 %vm454_vm3, %v5725_v44 }
  0x98   : > { %4947 = vmatmul.mubr.msk.bf16.gmra.mrb[4].mxu0 %vm454_vm3, %v2560_v27  ;;  %v5960_v27 = vld [vmem:[%s5530_s25 + $0x58] sm:$0xff]  }
  0x99   : > { %4950 = vmatprep.mubr.msk.bf16.mxu0 %vm454_vm3, %v2562_v32  ;;  %v2569_v32 = vrot.slane %v5960_v27, 2 }
  0x9b   : > { %v2570_v51 = vsel %vm2112_vm4, %v2567_v7, %v2569_v32  ;;  %v1444_v7 = vsel %vm509_vm0, %v5820_v8, 0  ;;  %v2575_v8 = vrot.slane %v5993_v6, 2 }
  0x9e   : > { %4781 = vmatmul.mubr.msk.bf16.gmra.mrb[28].mxu1 %vm454_vm3, %v5731_v46 }
  0x9f   : > { %4784 = vmatprep.mubr.msk.bf16.mxu1 %vm454_vm3, %v5746_v1 }
  0xa0   : > { %4951 = vmatmul.mubr.msk.bf16.gmra.mrb[8].mxu0 %vm454_vm3, %v2564_v53  ;;  %v918_v53 = vrot.slane %v5564_v23, 1  ;;  %v2572_v23 = vsel %vm2112_vm4, %v2569_v32, %v2571_v59 }
  0xa1   : > { %4954 = vmatprep.mubr.msk.bf16.mxu0 %vm454_vm3, %v2566_v58  ;;  %v5978_v58 = vld [vmem:[%s5530_s25 + $0x68] sm:$0xff]  }
  0xa2   : > { %v919_v18 = vsel %vm912_vm5, %v916_v9, %v918_v53  ;;  %v922_v9 = vrot.slane %v5595_v52, 1 }
  0xa6   : > { %4785 = vmatmul.mubr.msk.bf16.gmra.mrb[32].mxu1 %vm454_vm3, %v5754_v24 }
  0xa7   : > { %4790 = vmatprep.mubr.msk.bf16.mxu1 %vm454_vm3, %v915_v16  ;;  %v2573_v16 = vrot.slane %v5978_v58, 2 }
  0xa8   : > { %4955 = vmatmul.mubr.msk.bf16.gmra.mrb[12].mxu0 %vm454_vm3, %v2568_v37  ;;  %v920_v37 = vrot.slane %v5577_v34, 1 }
  0xa9   : > { %4958 = vmatprep.mubr.msk.bf16.mxu0 %vm454_vm3, %v2570_v51  ;;  %v2574_v51 = vsel %vm2112_vm4, %v2571_v59, %v2573_v16  ;;  %v2576_v52 = vsel %vm2112_vm4, %v2573_v16, %v2575_v8  ;;  %v6013_v59 = vld [vmem:[%s5530_s25 + $0x80] sm:$0xff]  }
  0xaa   : > { %v921_v34 = vsel %vm912_vm5, %v918_v53, %v920_v37  ;;  %v923_v32 = vsel %vm912_vm5, %v920_v37, %v922_v9 }
  0xae   : > { %4791 = vmatmul.mubr.msk.bf16.vlgmr.msra.gmra.mrb[0].mxu1 %vm454_vm3, %v917_v40  ;;  %v2577_v40 = vrot.slane %v5998_v21, 2 }
  0xaf   : > { %4794 = vmatprep.mubr.msk.bf16.mxu1 %vm454_vm3, %v919_v18  ;;  %4827 = vmatpush3.bf16.msra.mxu1 %v1444_v7  ;;  %v926_v18 = vrot.slane %v5631_v30, 1  ;;  %v6018_v7 = vld [vmem:[%s5530_s25 + $0x88] sm:$0xff]   ;;  %v928_v30 = vrot.slane %v5646_v41, 1 }
  0xb0   : > { %5349 = vmatprep.subr.msk.bf16.mxu1 %vm509_vm0, %v5502_v0  ;;  %4959 = vmatmul.mubr.msk.bf16.gmra.mrb[16].mxu0 %vm454_vm3, %v2572_v23  ;;  %v924_v0 = vrot.slane %v5614_v4, 1  ;;  %v2578_v53 = vsel %vm2112_vm4, %v2575_v8, %v2577_v40  ;;  %v2579_v23 = vrot.slane %v6013_v59, 2  ;;  %v2581_v4 = vrot.slane %v6018_v7, 2 }
  0xb1   : > { %4962 = vmatprep.mubr.msk.bf16.mxu0 %vm454_vm3, %v2574_v51  ;;  %v930_v8 = vrot.slane %v5661_v61, 1  ;;  %v2870_v61 = vshll.u32 %v5880_v60, 16 }
  0xb2   : > { %v925_v16 = vsel %vm912_vm5, %v922_v9, %v924_v0  ;;  %v927_v37 = vsel %vm912_vm5, %v924_v0, %v926_v18  ;;  %v2580_v51 = vsel %vm2112_vm4, %v2577_v40, %v2579_v23  ;;  %v6035_v9 = vld [vmem:[%s5530_s25 + $0x98] sm:$0xff]  }
  0xb3   : > { %v931_v0 = vsel %vm912_vm5, %v928_v30, %v930_v8  ;;  %v2585_v41 = vrot.slane %v6035_v9, 2  ;;  %v2872_v56 = vrot.slane %v2870_v61, 3 }
  0xb6   : > { %4795 = vmatmul.mubr.msk.bf16.gmra.mrb[4].mxu1 %vm454_vm3, %v921_v34  ;;  %v6031_v34 = vld [vmem:[%s5530_s25 + $0x90] sm:$0xff]  }
  0xb7   : > { %4798 = vmatprep.mubr.msk.bf16.mxu1 %vm454_vm3, %v923_v32  ;;  %v2582_v32 = vsel %vm2112_vm4, %v2579_v23, %v2581_v4  ;;  %v2583_v40 = vrot.slane %v6031_v34, 2  ;;  %v2878_v23 = vshll.u32 %v5883_v29, 16 }
  0xb8   : > { %4963 = vmatmul.mubr.msk.bf16.gmra.mrb[20].mxu0 %vm454_vm3, %v2576_v52  ;;  %v929_v52 = vsel %vm912_vm5, %v926_v18, %v928_v30  ;;  %v932_v30 = vrot.slane %v5673_v15, 1 }
  0xb9   : > { %4966 = vmatprep.mubr.msk.bf16.mxu0 %vm454_vm3, %v2578_v53  ;;  %v2867_v53 = vshrl.u32 %v5880_v60, 16  ;;  %v2586_v18 = vsel %vm2112_vm4, %v2583_v40, %v2585_v41  ;;  %v2880_v55 = vrot.slane %v2878_v23, 3 }
  0xbb   : > { %v2869_v31 = vrot.slane %v2867_v53, 2  ;;  %v2896_v53 = vshll.u32 %v5900_v50, 16 }
  0xbd   : > { %v2873_v15 = vor.u32 %v2872_v56, %v2869_v31  ;;  %v938_v31 = vrot.slane %v5710_v26, 1  ;;  %v2898_v56 = vrot.slane %v2896_v53, 3  ;;  %v2914_v26 = vshll.u32 %v5918_v62, 16 }
  0xbe   : > { %4799 = vmatmul.mubr.msk.bf16.gmra.mrb[8].mxu1 %vm454_vm3, %v925_v16  ;;  %v2875_v16 = vshrl.u32 %v5883_v29, 16 }
  0xbf   : > { %4802 = vmatprep.mubr.msk.bf16.mxu1 %vm454_vm3, %v927_v37  ;;  %v5422_v37 = vld [vmem:[%s5530_s25 + $0xa0] ss:$0 sps:$4 sm:$0x33]  }
  0xc0   : > { %4967 = vmatmul.mubr.msk.bf16.gmra.mrb[24].mxu0 %vm454_vm3, %v2580_v51  ;;  %v2584_v51 = vsel %vm2112_vm4, %v2581_v4, %v2583_v40  ;;  %v2877_v60 = vrot.slane %v2875_v16, 2  ;;  %v2587_v49 = vrot.slane %v5422_v37, 2  ;;  %v2887_v40 = vshll.u32 %v5896_v39, 16 }
  0xc1   : > { %4970 = vmatprep.mubr.msk.bf16.mxu0 %vm454_vm3, %v2582_v32  ;;  %v934_v32 = vrot.slane %v5685_v38, 1  ;;  %v2893_v38 = vshrl.u32 %v5900_v50, 16 }
  0xc2   : > { %v2881_v45 = vor.u32 %v2880_v55, %v2877_v60  ;;  %v2588_v61 = vsel %vm2112_vm4, %v2585_v41, %v2587_v49  ;;  %v2889_v23 = vrot.slane %v2887_v40, 3  ;;  %v2902_v49 = vshrl.u32 %v5912_v57, 16 }
  0xc3   : > { %v935_v4 = vsel %vm912_vm5, %v932_v30, %v934_v32  ;;  %v2895_v55 = vrot.slane %v2893_v38, 2  ;;  %v2905_v41 = vshll.u32 %v5912_v57, 16  ;;  %v2911_v60 = vshrl.u32 %v5918_v62, 16 }
  0xc4   : > { %v2882_v37 = vsel %vm2865_vm6, %v2873_v15, %v2881_v45  ;;  %v942_v38 = vrot.slane %v5731_v46, 1 }
  0xc5   : > { %v2907_v40 = vrot.slane %v2905_v41, 3  ;;  %v2913_v53 = vrot.slane %v2911_v60, 2 }
  0xc6   : > { %4803 = vmatmul.mubr.msk.bf16.gmra.mrb[12].mxu1 %vm454_vm3, %v929_v52  ;;  %v933_v52 = vsel %vm912_vm5, %v930_v8, %v932_v30  ;;  %v936_v8 = vrot.slane %v5703_v63, 1  ;;  %v2899_v30 = vor.u32 %v2898_v56, %v2895_v55 }
  0xc7   : > { %4806 = vmatprep.mubr.msk.bf16.mxu1 %vm454_vm3, %v931_v0  ;;  %v2884_v0 = vshrl.u32 %v5896_v39, 16 }
  0xc8   : > { %4971 = vmatmul.mubr.msk.bf16.gmra.mrb[28].mxu0 %vm454_vm3, %v2584_v51  ;;  %v937_v51 = vsel %vm912_vm5, %v934_v32, %v936_v8  ;;  %v939_v63 = vsel %vm912_vm5, %v936_v8, %v938_v31  ;;  %v940_v32 = vrot.slane %v5725_v44, 1  ;;  %v2920_v8 = vshrl.u32 %v5937_v28, 16 }
  0xc9   : > { %4974 = vmatprep.mubr.msk.bf16.mxu0 %vm454_vm3, %v2586_v18  ;;  %v2886_v16 = vrot.slane %v2884_v0, 2  ;;  %v2904_v0 = vrot.slane %v2902_v49, 2 }
  0xca   : > { %v943_v46 = vsel %vm912_vm5, %v940_v32, %v942_v38  ;;  %v2922_v55 = vrot.slane %v2920_v8, 2  ;;  %v1353_v8 = vrot.slane %v5547_v12, 1  ;;  %v2968_v12 = vshll.u32 %v5978_v58, 16 }
  0xcb   : > { %v2890_v18 = vor.u32 %v2889_v23, %v2886_v16  ;;  %v2908_v44 = vor.u32 %v2907_v40, %v2904_v0  ;;  %v2929_v16 = vshrl.u32 %v5941_v11, 16  ;;  %v2932_v23 = vshll.u32 %v5941_v11, 16 }
  0xcc   : > { %v2950_v0 = vshll.u32 %v5960_v27, 16 }
  0xcd   : > { %v2900_v15 = vsel %vm2865_vm6, %v2890_v18, %v2899_v30  ;;  %v2931_v49 = vrot.slane %v2929_v16, 2 }
  0xce   : > { %4807 = vmatmul.mubr.msk.bf16.gmra.mrb[16].mxu1 %vm454_vm3, %v933_v52  ;;  %v3405_v52 = vsel %vm509_vm0, %v5923_v5, 0  ;;  %v2923_v5 = vshll.u32 %v5937_v28, 16 }
  0xcf   : > { %4810 = vmatprep.mubr.msk.bf16.mxu1 %vm454_vm3, %v935_v4  ;;  %v2891_v4 = vsel %vm2865_vm6, %v2881_v45, %v2890_v18  ;;  %v941_v45 = vsel %vm912_vm5, %v938_v31, %v940_v32  ;;  %v944_v18 = vrot.slane %v5746_v1, 1  ;;  %v2934_v31 = vrot.slane %v2932_v23, 3 }
  0xd0   : > { %4975 = vmatmul.mubr.msk.bf16.gmra.mrb[32].mxu0 %vm454_vm3, %v2588_v61  ;;  %v2916_v61 = vrot.slane %v2914_v26, 3  ;;  %v2925_v56 = vrot.slane %v2923_v5, 3  ;;  %v2947_v32 = vshrl.u32 %v5960_v27, 16  ;;  %v2956_v23 = vshrl.u32 %v5973_v43, 16 }
  0xd1   : > { %4980 = vmatprep.mubr.msk.bf16.mxu0 %vm454_vm3, %v2882_v37  ;;  %v945_v26 = vsel %vm912_vm5, %v942_v38, %v944_v18 }
  0xd2   : > { %v2917_v37 = vor.u32 %v2916_v61, %v2913_v53  ;;  %v2926_v60 = vor.u32 %v2925_v56, %v2922_v55  ;;  %v1352_v61 = vrot.slane %v5554_v17, 1  ;;  %v2949_v5 = vrot.slane %v2947_v32, 2 }
  0xd3   : > { %v2965_v17 = vshrl.u32 %v5978_v58, 16  ;;  %v1355_v56 = vrot.slane %v5560_v19, 1 }
  0xd4   : > { %v2918_v41 = vsel %vm2865_vm6, %v2908_v44, %v2917_v37 }
  0xd6   : > { %4811 = vmatmul.mubr.msk.bf16.gmra.mrb[20].mxu1 %vm454_vm3, %v937_v51  ;;  %v2909_v51 = vsel %vm2865_vm6, %v2899_v30, %v2908_v44  ;;  %v2938_v30 = vshrl.u32 %v5955_v54, 16 }
  0xd7   : > { %4814 = vmatprep.mubr.msk.bf16.mxu1 %vm454_vm3, %v939_v63  ;;  %v946_v63 = vrot.slane %v5754_v24, 1  ;;  %v2927_v24 = vsel %vm2865_vm6, %v2917_v37, %v2926_v60 }
  0xd8   : > { %4981 = vmatmul.mubr.msk.bf16.vlgmr.msra.gmra.mrb[0].mxu0 %vm454_vm3, %v2891_v4  ;;  %v2941_v4 = vshll.u32 %v5955_v54, 16  ;;  %v2940_v38 = vrot.slane %v2938_v30, 2  ;;  %v2977_v30 = vshll.u32 %v5993_v6, 16 }
  0xd9   : > { %5017 = vmatpush3.bf16.msra.mxu0 %v3405_v52  ;;  %4984 = vmatprep.mubr.msk.bf16.mxu0 %vm454_vm3, %v2900_v15  ;;  %v2935_v52 = vor.u32 %v2934_v31, %v2931_v49  ;;  %v947_v1 = vsel %vm912_vm5, %v944_v18, %v946_v63  ;;  %v948_v15 = vrot.slane %v5777_v47, 1  ;;  %v1354_v47 = vsel %vm912_vm5, %v1352_v61, %v1353_v8 }
  0xda   : > { %v2943_v53 = vrot.slane %v2941_v4, 3  ;;  %v1357_v31 = vrot.slane %v5574_v33, 1  ;;  %v2986_v33 = vshll.u32 %v5998_v21, 16 }
  0xdb   : > { %v2936_v40 = vsel %vm2865_vm6, %v2926_v60, %v2935_v52  ;;  %v949_v44 = vsel %vm912_vm5, %v946_v63, %v948_v15  ;;  %v2970_v63 = vrot.slane %v2968_v12, 3  ;;  %v1356_v60 = vsel %vm912_vm5, %v1353_v8, %v1355_v56 }
  0xdc   : > { %v2944_v16 = vor.u32 %v2943_v53, %v2940_v38  ;;  %v1358_v19 = vsel %vm912_vm5, %v1355_v56, %v1357_v31  ;;  %v1361_v38 = vrot.slane %v5611_v3, 1  ;;  %v2988_v61 = vrot.slane %v2986_v33, 3 }
  0xdd   : > { %v3004_v3 = vshll.u32 %v6018_v7, 16  ;;  %v1365_v12 = vrot.slane %v5640_v36, 1  ;;  %v3022_v36 = vshll.u32 %v6035_v9, 16 }
  0xde   : > { %4815 = vmatmul.mubr.msk.bf16.gmra.mrb[24].mxu1 %vm454_vm3, %v941_v45  ;;  %v2952_v45 = vrot.slane %v2950_v0, 3  ;;  %v2945_v55 = vsel %vm2865_vm6, %v2935_v52, %v2944_v16  ;;  %v2974_v52 = vshrl.u32 %v5993_v6, 16  ;;  %v1359_v0 = vrot.slane %v5590_v48, 1 }
  0xdf   : > { %4818 = vmatprep.mubr.msk.bf16.mxu1 %vm454_vm3, %v943_v46  ;;  %v2959_v46 = vshll.u32 %v5973_v43, 16  ;;  %v2995_v48 = vshll.u32 %v6013_v59, 16  ;;  %v3006_v56 = vrot.slane %v3004_v3, 3 }
  0xe0   : > { %4985 = vmatmul.mubr.msk.bf16.gmra.mrb[4].mxu0 %vm454_vm3, %v2909_v51  ;;  %v2953_v37 = vor.u32 %v2952_v45, %v2949_v5  ;;  %v2958_v51 = vrot.slane %v2956_v23, 2  ;;  %v1360_v8 = vsel %vm912_vm5, %v1357_v31, %v1359_v0  ;;  %v2992_v45 = vshrl.u32 %v6013_v59, 16 }
  0xe1   : > { %4988 = vmatprep.mubr.msk.bf16.mxu0 %vm454_vm3, %v2918_v41  ;;  %v2961_v18 = vrot.slane %v2959_v46, 3  ;;  %v2967_v41 = vrot.slane %v2965_v17, 2  ;;  %v1363_v46 = vrot.slane %v5622_v14, 1  ;;  %v3013_v14 = vshll.u32 %v6031_v34, 16 }
  0xe2   : > { %v2954_v49 = vsel %vm2865_vm6, %v2944_v16, %v2953_v37  ;;  %v3001_v16 = vshrl.u32 %v6018_v7, 16 }
  0xe3   : > { %v2971_v4 = vor.u32 %v2970_v63, %v2967_v41  ;;  %v1366_v31 = vsel %vm912_vm5, %v1363_v46, %v1365_v12  ;;  %v3019_v63 = vshrl.u32 %v6035_v9, 16 }
  0xe5   : > { %v3021_v33 = vrot.slane %v3019_v63, 2  ;;  %v3322_v63 = vrot.slane %v5918_v62, 3 }
  0xe6   : > { %4819 = vmatmul.mubr.msk.bf16.gmra.mrb[28].mxu1 %vm454_vm3, %v945_v26  ;;  %v2962_v26 = vor.u32 %v2961_v18, %v2958_v51  ;;  %v1364_v51 = vsel %vm912_vm5, %v1361_v38, %v1363_v46 }
  0xe7   : > { %4822 = vmatprep.mubr.msk.bf16.mxu1 %vm454_vm3, %v947_v1  ;;  %v2983_v1 = vshrl.u32 %v5998_v21, 16 }
  0xe8   : > { %4989 = vmatmul.mubr.msk.bf16.gmra.mrb[8].mxu0 %vm454_vm3, %v2927_v24  ;;  %v2963_v32 = vsel %vm2865_vm6, %v2953_v37, %v2962_v26  ;;  %v2976_v24 = vrot.slane %v2974_v52, 2  ;;  %v2972_v15 = vsel %vm2865_vm6, %v2962_v26, %v2971_v4  ;;  %v2997_v37 = vrot.slane %v2995_v48, 3 }
  0xe9   : > { %4992 = vmatprep.mubr.msk.bf16.mxu0 %vm454_vm3, %v2936_v40  ;;  %v2979_v40 = vrot.slane %v2977_v30, 3  ;;  %v2985_v53 = vrot.slane %v2983_v1, 2  ;;  %v1367_v26 = vrot.slane %v5649_v42, 1  ;;  %v3015_v30 = vrot.slane %v3013_v14, 3  ;;  %v6756_v14 = vld [vmem:[#allocation4_spill] sm:$0xff] }
  0xea   : > { %v1369_v1 = vrot.slane %v5670_v13, 1  ;;  %v1373_v48 = vrot.slane %v5798_v22, 1 }
  0xeb   : > { %v2980_v5 = vor.u32 %v2979_v40, %v2976_v24 }
  0xed   : > { %v2981_v23 = vsel %vm2865_vm6, %v2971_v4, %v2980_v5 }
  0xee   : > { %4823 = vmatmul.mubr.msk.bf16.gmra.mrb[32].mxu1 %vm454_vm3, %v949_v44  ;;  %v2989_v44 = vor.u32 %v2988_v61, %v2985_v53  ;;  %v3306_v53 = vld [vmem:[%s5530_s25 + $0x10] sm:$0x8]  ;;  %v1371_v61 = vrot.slane %v5677_v25, 1  ;;  %v3314_v25 = vrot.slane %v5883_v29, 3  ;;  %v3316_v29 = vrot.slane %v5896_v39, 3 }
  0xef   : > { %4828 = vmatprep.mubr.msk.bf16.mxu1 %vm454_vm3, %v1354_v47  ;;  %v2994_v47 = vrot.slane %v2992_v45, 2 }
  0xf0   : > { %4993 = vmatmul.mubr.msk.bf16.gmra.mrb[12].mxu0 %vm454_vm3, %v2945_v55  ;;  %v2990_v17 = vsel %vm2865_vm6, %v2980_v5, %v2989_v44  ;;  %v3003_v55 = vrot.slane %v3001_v16, 2  ;;  %v1374_v3 = vsel %vm912_vm5, %v1371_v61, %v1373_v48 }
  0xf1   : > { %4996 = vmatprep.mubr.msk.bf16.mxu0 %vm454_vm3, %v2954_v49  ;;  %v2998_v18 = vor.u32 %v2997_v37, %v2994_v47  ;;  %v3010_v49 = vshrl.u32 %v6031_v34, 16  ;;  %v1377_v37 = vrot.slane %v5815_v35, 1 }
  0xf2   : > { %v3007_v41 = vor.u32 %v3006_v56, %v3003_v55  ;;  %v3318_v55 = vrot.slane %v5900_v50, 3  ;;  %v3317_v56 = vsel %vm3312_vm7, %v3314_v25, %v3316_v29  ;;  %v3320_v50 = vrot.slane %v5912_v57, 3 }
  0xf3   : > { %v3012_v52 = vrot.slane %v3010_v49, 2  ;;  %v1768_v57 = vshll.u32 %v5798_v22, 16 }
  0xf4   : > { %v3008_v4 = vsel %vm2865_vm6, %v2998_v18, %v3007_v41  ;;  %v3319_v49 = vsel %vm3312_vm7, %v3316_v29, %v3318_v55 }
  0xf5   : > { %v3016_v24 = vor.u32 %v3015_v30, %v3012_v52  ;;  %v3323_v52 = vsel %vm3312_vm7, %v3320_v50, %v3322_v63  ;;  %v6758_v30 = vld [vmem:[#allocation6_spill] sm:$0xff] }
  0xf6   : > { %4829 = vmatmul.mubr.msk.bf16.vlgmr.msra.gmra.mrb[0].mxu1 %vm454_vm3, %v1356_v60  ;;  %v2999_v60 = vsel %vm2865_vm6, %v2989_v44, %v2998_v18  ;;  %v1372_v44 = vsel %vm912_vm5, %v1369_v1, %v1371_v61  ;;  %v1783_v61 = vshrl.u32 %v5815_v35, 16 }
  0xf7   : > { %4832 = vmatprep.mubr.msk.bf16.mxu1 %vm454_vm3, %v1358_v19  ;;  %5055 = vmatpush3.bf16.msra.mxu1 %v5512_v2  ;;  %v1362_v2 = vsel %vm912_vm5, %v1359_v0, %v1361_v38  ;;  %v6170_v19 = vld [vmem:[%s5530_s25 + $0xa0] ss:$0 sps:$4 sm:$0x77]   ;;  %v1368_v0 = vsel %vm912_vm5, %v1365_v12, %v1367_v26  ;;  %v3017_v13 = vsel %vm2865_vm6, %v3007_v41, %v3016_v24 }
  0xf8   : > { %4997 = vmatmul.mubr.msk.bf16.gmra.mrb[16].mxu0 %vm454_vm3, %v2963_v32  ;;  %v3024_v32 = vrot.slane %v3022_v36, 3  ;;  %v3028_v42 = vshrl.u32 %v6170_v19, 16  ;;  %v3031_v40 = vshll.u32 %v6170_v19, 16  ;;  %v3321_v36 = vsel %vm3312_vm7, %v3318_v55, %v3320_v50 }
  0xf9   : > { %5000 = vmatprep.mubr.msk.bf16.mxu0 %vm454_vm3, %v2972_v15  ;;  %v1370_v15 = vsel %vm912_vm5, %v1367_v26, %v1369_v1  ;;  %v1765_v1 = vshrl.u32 %v5798_v22, 16 }
  0xfa   : > { %v3025_v38 = vor.u32 %v3024_v32, %v3021_v33  ;;  %v3033_v5 = vrot.slane %v3031_v40, 3  ;;  %v3324_v33 = vrot.slane %v5937_v28, 3  ;;  %v5425_v32 = vld [vmem:[%s5530_s25 + $0x98] ss:$0 sps:$4 sm:$0x11]   ;;  %v1770_v40 = vrot.slane %v1768_v57, 2 }
  0xfb   : > { %v1387_v22 = vrot.slane %v5425_v32, 1 }
  0xfc   : > { %v3026_v45 = vsel %vm2865_vm6, %v3016_v24, %v3025_v38  ;;  %v3326_v24 = vrot.slane %v5941_v11, 3  ;;  %v1786_v11 = vshll.u32 %v5815_v35, 16 }
  0xfe   : > { %4833 = vmatmul.mubr.msk.bf16.gmra.mrb[4].mxu1 %vm454_vm3, %v1360_v8  ;;  %v3030_v8 = vrot.slane %v3028_v42, 2  ;;  %v1767_v42 = vrot.slane %v1765_v1, 1  ;;  %v3327_v28 = vsel %vm3312_vm7, %v3324_v33, %v3326_v24 }
  0xff   : > { %4836 = vmatprep.mubr.msk.bf16.mxu1 %vm454_vm3, %v1362_v2  ;;  %v4447_v2 = vcombine.low %v3306_v53, %v5869_v10  ;;  %v1375_v10 = vrot.slane %v5812_v20, 1  ;;  %v1777_v53 = vshll.u32 %v5812_v20, 16 }
 0x100   : > { %5001 = vmatmul.mubr.msk.bf16.gmra.mrb[20].mxu0 %vm454_vm3, %v2981_v23  ;;  %v3034_v16 = vor.u32 %v3033_v5, %v3030_v8  ;;  %v3328_v5 = vrot.slane %v5955_v54, 3 }
 0x101   : > { %5004 = vmatprep.mubr.msk.bf16.mxu0 %vm454_vm3, %v2990_v17  ;;  %v3313_v23 = vrot.slane %v4447_v2, 3  ;;  %v1376_v17 = vsel %vm912_vm5, %v1373_v48, %v1375_v10  ;;  %v1378_v12 = vsel %vm912_vm5, %v1375_v10, %v1377_v37  ;;  %v1779_v48 = vrot.slane %v1777_v53, 2  ;;  %v6759_v2 = vld [vmem:[#allocation2_spill] sm:$0xff] }
 0x102   : > { %v3035_v46 = vsel %vm2865_vm6, %v3025_v38, %v3034_v16  ;;  %v1774_v38 = vshrl.u32 %v5812_v20, 16  ;;  %v1785_v16 = vrot.slane %v1783_v61, 1  ;;  %v3329_v35 = vsel %vm3312_vm7, %v3326_v24, %v3328_v5 }
 0x103   : > { %v3315_v47 = vsel %vm3312_vm7, %v3313_v23, %v3314_v25  ;;  %v3344_v61 = vrot.slane %v6031_v34, 3 }
 0x106   : > { %4837 = vmatmul.mubr.msk.bf16.gmra.mrb[8].mxu1 %vm454_vm3, %v1364_v51  ;;  %v6755_v51 = vld [vmem:[#allocation3_spill] sm:$0xff] }
 0x107   : > { %4840 = vmatprep.mubr.msk.bf16.mxu1 %vm454_vm3, %v1366_v31  ;;  %v1379_v18 = vrot.slane %v6755_v51, 1  ;;  %v1381_v31 = vrot.slane %v6756_v14, 1  ;;  %v1792_v25 = vshrl.u32 %v6755_v51, 16  ;;  %v1795_v54 = vshll.u32 %v6755_v51, 16 }
 0x108   : > { %5005 = vmatmul.mubr.msk.bf16.gmra.mrb[24].mxu0 %vm454_vm3, %v2999_v60  ;;  %v6757_v60 = vld [vmem:[#allocation5_spill] sm:$0xff] }
 0x109   : > { %5008 = vmatprep.mubr.msk.bf16.mxu0 %vm454_vm3, %v3008_v4  ;;  %v1380_v39 = vsel %vm912_vm5, %v1377_v37, %v1379_v18  ;;  %v1382_v41 = vsel %vm912_vm5, %v1379_v18, %v1381_v31  ;;  %v1383_v26 = vrot.slane %v6757_v60, 1  ;;  %v1385_v4 = vrot.slane %v6758_v30, 1 }
 0x10a   : > { %v1794_v29 = vrot.slane %v1792_v25, 1 }
 0x10b   : > { %v1384_v62 = vsel %vm912_vm5, %v1381_v31, %v1383_v26  ;;  %v1388_v8 = vsel %vm912_vm5, %v1385_v4, %v1387_v22  ;;  %v1810_v31 = vshrl.u32 %v6757_v60, 16 }
 0x10e   : > { %4841 = vmatmul.mubr.msk.bf16.gmra.mrb[12].mxu1 %vm454_vm3, %v1368_v0  ;;  %v1386_v0 = vsel %vm912_vm5, %v1383_v26, %v1385_v4  ;;  %v1812_v26 = vrot.slane %v1810_v31, 1 }
 0x10f   : > { %4844 = vmatprep.mubr.msk.bf16.mxu1 %vm454_vm3, %v1370_v15  ;;  %v3325_v15 = vsel %vm3312_vm7, %v3322_v63, %v3324_v33  ;;  %v6760_v33 = vld [vmem:[#allocation7_spill] sm:$0xff] }
 0x110   : > { %5009 = vmatmul.mubr.msk.bf16.gmra.mrb[28].mxu0 %vm454_vm3, %v3017_v13  ;;  %v1771_v13 = vor.u32 %v1770_v40, %v1767_v42  ;;  %v1828_v32 = vshrl.u32 %v6760_v33, 16  ;;  %v3340_v42 = vrot.slane %v6013_v59, 3 }
 0x111   : > { %5012 = vmatprep.mubr.msk.bf16.mxu0 %vm454_vm3, %v3026_v45  ;;  %v1776_v45 = vrot.slane %v1774_v38, 1  ;;  %v3342_v38 = vrot.slane %v6018_v7, 3 }
 0x112   : > { %v1772_v20 = vsel %vm1665_vm2, %v6759_v2, %v1771_v13  ;;  %v1830_v40 = vrot.slane %v1828_v32, 1  ;;  %v5449_v32 = vld [vmem:[%s5530_s25 + $0x30] sm:$0xff]  }
 0x113   : > { %v1780_v23 = vor.u32 %v1779_v48, %v1776_v45  ;;  %v3345_v7 = vsel %vm3312_vm7, %v3342_v38, %v3344_v61 }
 0x115   : > { %v1781_v37 = vsel %vm1665_vm2, %v1771_v13, %v1780_v23  ;;  %v3343_v13 = vsel %vm3312_vm7, %v3340_v42, %v3342_v38 }
 0x116   : > { %4845 = vmatmul.mubr.msk.bf16.gmra.mrb[16].mxu1 %vm454_vm3, %v1372_v44  ;;  %v3330_v44 = vrot.slane %v5960_v27, 3  ;;  %v1804_v27 = vshll.u32 %v6756_v14, 16 }
 0x117   : > { %4848 = vmatprep.mubr.msk.bf16.mxu1 %vm454_vm3, %v1374_v3  ;;  %v1788_v3 = vrot.slane %v1786_v11, 2  ;;  %v3346_v11 = vrot.slane %v6035_v9, 3 }
 0x118   : > { %5013 = vmatmul.mubr.msk.bf16.gmra.mrb[32].mxu0 %vm454_vm3, %v3035_v46  ;;  %v3331_v46 = vsel %vm3312_vm7, %v3328_v5, %v3330_v44  ;;  %v1806_v18 = vrot.slane %v1804_v27, 2  ;;  %v3348_v5 = vrot.slane %v6170_v19, 3 }
 0x119   : > { %5018 = vmatprep.mubr.msk.bf16.mxu0 %vm454_vm3, %v3315_v47  ;;  %v1789_v10 = vor.u32 %v1788_v3, %v1785_v16  ;;  %v1801_v47 = vshrl.u32 %v6756_v14, 16 }
 0x11a   : > { %v3349_v45 = vsel %vm3312_vm7, %v3346_v11, %v3348_v5 }
 0x11b   : > { %v1790_v55 = vsel %vm1665_vm2, %v1780_v23, %v1789_v10  ;;  %v1803_v51 = vrot.slane %v1801_v47, 1 }
 0x11d   : > { %v1807_v50 = vor.u32 %v1806_v18, %v1803_v51  ;;  %v5447_v18 = vld [vmem:[%s5530_s25 + $0x20] sm:$0xff]  }
 0x11e   : > { %4849 = vmatmul.mubr.msk.bf16.gmra.mrb[20].mxu1 %vm454_vm3, %v1376_v17  ;;  %v3332_v17 = vrot.slane %v5973_v43, 3 }
 0x11f   : > { %4852 = vmatprep.mubr.msk.bf16.mxu1 %vm454_vm3, %v1378_v12  ;;  %v1797_v12 = vrot.slane %v1795_v54, 2 }
 0x120   : > { %5019 = vmatmul.mubr.msk.bf16.vlgmr.msra.gmra.mrb[0].mxu0 %vm454_vm3, %v3317_v56  ;;  %v3334_v56 = vrot.slane %v5978_v58, 3  ;;  %v1822_v58 = vshll.u32 %v6758_v30, 16 }
 0x121   : > { %5022 = vmatprep.mubr.msk.bf16.mxu0 %vm454_vm3, %v3319_v49  ;;  %v3333_v49 = vsel %vm3312_vm7, %v3330_v44, %v3332_v17  ;;  %v1798_v14 = vor.u32 %v1797_v12, %v1794_v29  ;;  %v5445_v29 = vld [vmem:[%s5530_s25 + $0xc] sm:$0xf] }
 0x122   : > { %v3335_v43 = vsel %vm3312_vm7, %v3332_v17, %v3334_v56  ;;  %v1824_v57 = vrot.slane %v1822_v58, 2  ;;  %v3772_v12 = vunpack.c.l.bf16 %v5445_v29  ;;  %v5454_v29 = vld [vmem:[%s5530_s25 + $0x58] sm:$0xff]  }
 0x123   : > { %v1799_v63 = vsel %vm1665_vm2, %v1789_v10, %v1798_v14  ;;  %v1808_v4 = vsel %vm1665_vm2, %v1798_v14, %v1807_v50  ;;  %v5443_v10 = vld [vmem:[%s5530_s25 + $0x10] sm:$0xff]   ;;  %v3778_v14 = vunpack.c.h.bf16 %v5447_v18 }
 0x124   : > { %v3773_v47 = vunpack.c.l.bf16 %v5443_v10  ;;  %v3774_v27 = vunpack.c.h.bf16 %v5443_v10  ;;  %v5453_v10 = vld [vmem:[%s5530_s25 + $0x50] sm:$0xff]  }
 0x126   : > { %4853 = vmatmul.mubr.msk.bf16.gmra.mrb[24].mxu1 %vm454_vm3, %v1380_v39  ;;  %v1813_v39 = vshll.u32 %v6757_v60, 16  ;;  %v3338_v60 = vrot.slane %v5998_v21, 3  ;;  %v3851_v58 = vrot.slane %v3774_v27, 3  ;;  %v3790_v27 = vunpack.c.h.bf16 %v5453_v10 }
 0x127   : > { %4856 = vmatprep.mubr.msk.bf16.mxu1 %vm454_vm3, %v1382_v41  ;;  %v1819_v41 = vshrl.u32 %v6758_v30, 16 }
 0x128   : > { %5023 = vmatmul.mubr.msk.bf16.gmra.mrb[4].mxu0 %vm454_vm3, %v3321_v36  ;;  %v3336_v36 = vrot.slane %v5993_v6, 3  ;;  %v3341_v53 = vsel %vm3312_vm7, %v3338_v60, %v3340_v42 }
 0x129   : > { %5026 = vmatprep.mubr.msk.bf16.mxu0 %vm454_vm3, %v3323_v52  ;;  %v1815_v52 = vrot.slane %v1813_v39, 2  ;;  %v1821_v1 = vrot.slane %v1819_v41, 1  ;;  %v3849_v41 = vrot.slane %v3773_v47, 3  ;;  %v3789_v47 = vunpack.c.l.bf16 %v5453_v10 }
 0x12a   : > { %v3337_v30 = vsel %vm3312_vm7, %v3334_v56, %v3336_v36  ;;  %v3339_v6 = vsel %vm3312_vm7, %v3336_v36, %v3338_v60  ;;  %v5446_v56 = vld [vmem:[%s5530_s25 + $0x18] sm:$0xff]   ;;  %v3847_v36 = vrot.slane %v3772_v12, 3  ;;  %v3791_v12 = vunpack.c.l.bf16 %v5454_v29 }
 0x12b   : > { %v1825_v24 = vor.u32 %v1824_v57, %v1821_v1  ;;  %v3775_v51 = vunpack.c.l.bf16 %v5446_v56  ;;  %v3776_v39 = vunpack.c.h.bf16 %v5446_v56  ;;  %v5455_v56 = vld [vmem:[%s5530_s25 + $0x60] sm:$0xff]  }
 0x12d   : > { %v3855_v60 = vrot.slane %v3776_v39, 3 }
 0x12e   : > { %4857 = vmatmul.mubr.msk.bf16.gmra.mrb[28].mxu1 %vm454_vm3, %v1384_v62  ;;  %v1816_v62 = vor.u32 %v1815_v52, %v1812_v26  ;;  %v3853_v26 = vrot.slane %v3775_v51, 3  ;;  %v3793_v51 = vunpack.c.l.bf16 %v5455_v56 }
 0x12f   : > { %4860 = vmatprep.mubr.msk.bf16.mxu1 %vm454_vm3, %v1386_v0  ;;  %v1831_v0 = vshll.u32 %v6760_v33, 16 }
 0x130   : > { %5027 = vmatmul.mubr.msk.bf16.gmra.mrb[8].mxu0 %vm454_vm3, %v3325_v15  ;;  %v1817_v21 = vsel %vm1665_vm2, %v1807_v50, %v1816_v62  ;;  %v1826_v22 = vsel %vm1665_vm2, %v1816_v62, %v1825_v24  ;;  %v6347_v62 = vsel %vm3312_vm7, %v3849_v41, %v3851_v58 }
 0x131   : > { %5030 = vmatprep.mubr.msk.bf16.mxu0 %vm454_vm3, %v3327_v28  ;;  %v1833_v15 = vrot.slane %v1831_v0, 2  ;;  %v3781_v0 = vunpack.c.l.bf16 %v5449_v32 }
 0x133   : > { %v1834_v28 = vor.u32 %v1833_v15, %v1830_v40  ;;  %v3782_v40 = vunpack.c.h.bf16 %v5449_v32  ;;  %v3883_v32 = vrot.slane %v3790_v27, 3 }
 0x135   : > { %v1835_v59 = vsel %vm1665_vm2, %v1825_v24, %v1834_v28  ;;  %v6356_v24 = vsel %vm3312_vm7, %v3851_v58, %v3853_v26 }
 0x136   : > { %4861 = vmatmul.mubr.msk.bf16.gmra.mrb[32].mxu1 %vm454_vm3, %v1388_v8  ;;  %v3347_v8 = vsel %vm3312_vm7, %v3344_v61, %v3346_v11 }
 0x137   : > { %4886 = vmatprep.mubr.msk.bf16.mxu1 %vm454_vm3, %v1772_v20 }
 0x138   : > { %5031 = vmatmul.mubr.msk.bf16.gmra.mrb[12].mxu0 %vm454_vm3, %v3329_v35 }
 0x139   : > { %5034 = vmatprep.mubr.msk.bf16.mxu0 %vm454_vm3, %v3331_v46 }
 0x13e   : > { %4887 = vmatmul.mubr.msk.bf16.vlgmr.msra.gmra.mrb[20].mxu1 %vm454_vm3, %v1781_v37  ;;  %v5444_v37 = vld [vmem:[%s5530_s25 + $0x8] sm:$0xe] }
 0x13f   : > { %4890 = vmatprep.mubr.msk.bf16.mxu1 %vm454_vm3, %v1790_v55  ;;  %v3771_v17 = vunpack.c.l.bf16 %v5444_v37 }
 0x140   : > { %5035 = vmatmul.mubr.msk.bf16.gmra.mrb[16].mxu0 %vm454_vm3, %v3333_v49  ;;  %v3777_v49 = vunpack.c.l.bf16 %v5447_v18  ;;  %v3794_v18 = vunpack.c.h.bf16 %v5455_v56 }
 0x141   : > { %5038 = vmatprep.mubr.msk.bf16.mxu0 %vm454_vm3, %v3335_v43  ;;  %v5448_v43 = vld [vmem:[%s5530_s25 + $0x28] sm:$0xff]  }
 0x142   : > { %v3779_v50 = vunpack.c.l.bf16 %v5448_v43  ;;  %v3857_v52 = vrot.slane %v3777_v49, 3  ;;  %v3780_v38 = vunpack.c.h.bf16 %v5448_v43  ;;  %v3792_v43 = vunpack.c.h.bf16 %v5454_v29 }
 0x144   : > { %v3861_v57 = vrot.slane %v3779_v50, 3  ;;  %v3863_v49 = vrot.slane %v3780_v38, 3  ;;  %v3885_v38 = vrot.slane %v3791_v12, 3 }
 0x146   : > { %4891 = vmatmul.mubr.msk.bf16.gmra.mrb[24].mxu1 %vm454_vm3, %v1799_v63  ;;  %v3846_v63 = vrot.slane %v3771_v17, 3  ;;  %v3867_v17 = vrot.slane %v3782_v40, 3  ;;  %v6425_v56 = vsel %vm3312_vm7, %v3883_v32, %v3885_v38 }
 0x147   : > { %4894 = vmatprep.mubr.msk.bf16.mxu1 %vm454_vm3, %v1808_v4  ;;  %v3859_v4 = vrot.slane %v3778_v14, 3 }
 0x148   : > { %5039 = vmatmul.mubr.msk.bf16.gmra.mrb[20].mxu0 %vm454_vm3, %v3337_v30  ;;  %v6350_v33 = vsel %vm3312_vm7, %v3846_v63, %v3847_v36  ;;  %v6379_v63 = vld [vmem:[%s5530_s25 + $0x68] sm:$0xff]  }
 0x149   : > { %5042 = vmatprep.mubr.msk.bf16.mxu0 %vm454_vm3, %v3339_v6  ;;  %v6362_v42 = vsel %vm3312_vm7, %v3857_v52, %v3859_v4  ;;  %v6372_v61 = vsel %vm3312_vm7, %v3859_v4, %v3861_v57  ;;  %v3881_v4 = vrot.slane %v3789_v47, 3 }
 0x14e   : > { %4895 = vmatmul.mubr.msk.bf16.gmra.mrb[28].mxu1 %vm454_vm3, %v1817_v21  ;;  %v6359_v21 = vsel %vm3312_vm7, %v3847_v36, %v3849_v41  ;;  %v3795_v36 = vunpack.c.l.bf16 %v6379_v63 }
 0x14f   : > { %4898 = vmatprep.mubr.msk.bf16.mxu1 %vm454_vm3, %v1826_v22  ;;  %v6367_v22 = vsel %vm3312_vm7, %v3853_v26, %v3855_v60  ;;  %v6383_v26 = vsel %vm3312_vm7, %v3855_v60, %v3857_v52  ;;  %v3887_v52 = vrot.slane %v3792_v43, 3  ;;  %v5457_v43 = vld [vmem:[%s5530_s25 + $0x70] sm:$0xff]  }
 0x150   : > { %5043 = vmatmul.mubr.msk.bf16.gmra.mrb[24].mxu0 %vm454_vm3, %v3341_v53  ;;  %v5450_v53 = vld [vmem:[%s5530_s25 + $0x38] sm:$0xff]   ;;  %v6411_v10 = vrot.slane %v3795_v36, 3 }
 0x151   : > { %5046 = vmatprep.mubr.msk.bf16.mxu0 %vm454_vm3, %v3343_v13  ;;  %v3783_v28 = vunpack.c.l.bf16 %v5450_v53  ;;  %v5451_v13 = vld [vmem:[%s5530_s25 + $0x40] sm:$0xff]  }
 0x152   : > { %v3786_v11 = vunpack.c.h.bf16 %v5451_v13 }
 0x153   : > { %v3869_v14 = vrot.slane %v3783_v28, 3  ;;  %v3891_v28 = vrot.slane %v3794_v18, 3 }
 0x154   : > { %v3875_v50 = vrot.slane %v3786_v11, 3 }
 0x156   : > { %4899 = vmatmul.mubr.msk.bf16.gmra.mrb[32].mxu1 %vm454_vm3, %v1835_v59  ;;  %v3785_v59 = vunpack.c.l.bf16 %v5451_v13  ;;  %v6389_v13 = vsel %vm3312_vm7, %v3861_v57, %v3863_v49 }
 0x158   : > { %5047 = vmatmul.mubr.msk.bf16.gmra.mrb[28].mxu0 %vm454_vm3, %v3345_v7  ;;  %v3784_v7 = vunpack.c.h.bf16 %v5450_v53  ;;  %v3873_v39 = vrot.slane %v3785_v59, 3  ;;  %v3889_v53 = vrot.slane %v3793_v51, 3  ;;  %v6392_v59 = vsel %vm3312_vm7, %v3867_v17, %v3869_v14 }
 0x159   : > { %5050 = vmatprep.mubr.msk.bf16.mxu0 %vm454_vm3, %v3347_v8  ;;  %v5452_v8 = vld [vmem:[%s5530_s25 + $0x48] sm:$0xff]  }
 0x15a   : > { %v3787_v5 = vunpack.c.l.bf16 %v5452_v8  ;;  %v3788_v37 = vunpack.c.h.bf16 %v5452_v8  ;;  %v3871_v41 = vrot.slane %v3784_v7, 3  ;;  %v6400_v7 = vld [vmem:[%s6736_s2] ss:$0 sm:$0xff]  ;;  %v6403_v8 = vsel %vm3312_vm7, %v3873_v39, %v3875_v50 }
 0x15b   : > { %v6431_v51 = vsel %vm3312_vm7, %v3889_v53, %v3891_v28  ;;  %v6446_v36 = vsel %vm3312_vm7, %v3887_v52, %v3889_v53 }
 0x15c   : > { %v3877_v58 = vrot.slane %v3787_v5, 3  ;;  %v6406_v5 = vsel %vm3312_vm7, %v3869_v14, %v3871_v41  ;;  %v6415_v27 = vsel %vm3312_vm7, %v3871_v41, %v3873_v39  ;;  %v6436_v39 = vsel %vm3312_vm7, %v3885_v38, %v3887_v52 }
 0x15e   : > { %v6409_v57 = vsel %vm3312_vm7, %v3875_v50, %v3877_v58 }
 0x160   : > { %5051 = vmatmul.mubr.msk.bf16.gmra.mrb[32].mxu0 %vm454_vm3, %v3349_v45  ;;  %v3865_v45 = vrot.slane %v3781_v0, 3  ;;  %v3879_v0 = vrot.slane %v3788_v37, 3  ;;  %v6418_v37 = vsel %vm3312_vm7, %v3881_v4, %v3883_v32  ;;  %v3798_v32 = vunpack.c.h.bf16 %v5457_v43 }
 0x162   : > { %v6386_v40 = vsel %vm3312_vm7, %v3865_v45, %v3867_v17  ;;  %v6395_v11 = vsel %vm3312_vm7, %v3863_v49, %v3865_v45  ;;  %v6421_v17 = vsel %vm3312_vm7, %v3877_v58, %v3879_v0  ;;  %v6443_v58 = vsel %vm3312_vm7, %v3891_v28, %v6411_v10 }
 0x1c9   : > { %v6304_v34 = vpop.f32.mrb[0].mxu1 }
 0x1ca   : > { %v6306_v9 = vpop.f32.mrb[1].mxu1 }
 0x1cb   : > { %v6308_v48 = vpop.f32.mrb[2].mxu1 }
 0x1cc   : > { %v6310_v2 = vpop.f32.mrb[3].mxu1 }
 0x1d1   : > { %v6312_v20 = vpop.f32.mrb[4].mxu1 }
 0x1d2   : > { %v6314_v44 = vpop.f32.mrb[5].mxu1 }
 0x1d3   : > { %v6316_v19 = vpop.f32.mrb[6].mxu1 }
 0x1d4   : > { %v6318_v16 = vpop.f32.mrb[7].mxu1 }
 0x1d9   : > { %v6320_v3 = vpop.f32.mrb[8].mxu1 }
 0x1da   : > { %v6322_v35 = vpop.f32.mrb[9].mxu1 }
 0x1db   : > { %v6324_v23 = vpop.f32.mrb[10].mxu1 }
 0x1dc   : > { %v6326_v25 = vpop.f32.mrb[11].mxu1 }
 0x1e1   : > { %v6328_v54 = vpop.f32.mrb[12].mxu1 }
 0x1e2   : > { %v6330_v46 = vpop.f32.mrb[13].mxu1 }
 0x1e3   : > { %v6335_v55 = vpop.f32.mrb[14].mxu1 }
 0x1e4   : > { %v6339_v31 = vpop.f32.mrb[15].mxu1 }
 0x1e9   : > { %v6342_v1 = vpop.f32.mrb[16].mxu1 }
 0x1ea   : > { %v6344_v30 = vpop.f32.mrb[17].mxu1 }
 0x1eb   : > { %v6353_v6 = vpop.f32.mrb[18].mxu1 }
 0x1ec   : > { %v6364_v15 = vpop.f32.mrb[19].mxu1 }
 0x1f3   : > { %v5020_v60 = vpop.f32.mrb[0].mxu0 }
 0x1f4   : > { %v5056_v45 = vadd.f32 %v5020_v60, %v6304_v34  ;;  %v3441_v47 = vpop.f32.mrb[1].mxu0  ;;  %v6428_v34 = vsel %vm3312_vm7, %v3879_v0, %v3881_v4  ;;  %v3796_v60 = vunpack.c.h.bf16 %v6379_v63 }
 0x1f5   : > { %v5057_v29 = vadd.f32 %v3441_v47, %v6306_v9  ;;  %v5021_v12 = vpop.f32.mrb[2].mxu0  ;;  %v3797_v9 = vunpack.c.l.bf16 %v5457_v43 }
 0x1f6   : > { %v3629_v18 = vadd.f32 %v5056_v45, %v6400_v7  ;;  %v5058_v49 = vadd.f32 %v5021_v12, %v6308_v48  ;;  %v3444_v14 = vpop.f32.mrb[3].mxu0 }
 0x1f7   : > { %v3627_v50 = vadd.f32 %v5057_v29, %v6400_v7  ;;  %v5059_v41 = vadd.f32 %v3444_v14, %v6310_v2  ;;  %v6452_v28 = vrot.slane %v3797_v9, 3  ;;  %v6462_v14 = vrot.slane %v3798_v32, 3 }
 0x1f8   : > { %vm3665_vm9 = vcmp.ge.f32.partialorder %v3629_v18, 0.0  ;;  %v3701_v48 = vmul.f32 0.01, %v3629_v18  ;;  %v3630_v4 = vadd.f32 %v5058_v49, %v6400_v7 }
 0x1f9   : > { %vm3663_vm10 = vcmp.ge.f32.partialorder %v3627_v50, 0.0  ;;  %v3699_v0 = vmul.f32 0.01, %v3627_v50  ;;  %v3628_v38 = vadd.f32 %v5059_v41, %v6400_v7 }
 0x1fa   : > { %v3737_v2 = vsel %vm3665_vm9, %v3629_v18, %v3701_v48  ;;  %vm3666_vm11 = vcmp.ge.f32.partialorder %v3630_v4, 0.0  ;;  %v3702_v45 = vmul.f32 0.01, %v3630_v4 }
 0x1fb   : > { %v3957_v53 = vadd.f32 %v6347_v62, %v3737_v2  ;;  %v3735_v52 = vsel %vm3663_vm10, %v3627_v50, %v3699_v0  ;;  %vm3664_vm12 = vcmp.ge.f32.partialorder %v3628_v38, 0.0  ;;  %v3700_v47 = vmul.f32 0.01, %v3628_v38  ;;  %v5024_v29 = vpop.f32.mrb[4].mxu0 }
 0x1fc   : > { %v3955_v12 = vadd.f32 %v6350_v33, %v3735_v52  ;;  %v3738_v63 = vsel %vm3666_vm11, %v3630_v4, %v3702_v45  ;;  %v5060_v18 = vadd.f32 %v5024_v29, %v6312_v20  ;;  %v3457_v49 = vpop.f32.mrb[5].mxu0 }
 0x1fd   : > { %v4507_v62 = vpack.c.bf16 %v3957_v53, %v3957_v53  ;;  %v3958_v43 = vadd.f32 %v6356_v24, %v3738_v63  ;;  %v3736_v9 = vsel %vm3664_vm12, %v3628_v38, %v3700_v47  ;;  %v5061_v50 = vadd.f32 %v3457_v49, %v6314_v44  ;;  %v5025_v41 = vpop.f32.mrb[6].mxu0  ;;  %v6474_v38 = vld [vmem:[%s5530_s25 + $0x78] sm:$0xff]  }
 0x1fe   : > { %v4505_v48 = vpack.c.bf16 %v3955_v12, %v3955_v12  ;;  %v3956_v0 = vadd.f32 %v6359_v21, %v3736_v9  ;;  %v3633_v33 = vadd.f32 %v5060_v18, %v6400_v7  ;;  %v5062_v20 = vadd.f32 %v5025_v41, %v6316_v19  ;;  %v3460_v4 = vpop.f32.mrb[7].mxu0 }
 0x1ff   : > { %4138 = vst.msk [vmem:[%s6458_s15 + $0x8] sm:$0xf] %vm4135_vm8, %v4507_v62  ;;  %v4508_v32 = vpack.c.bf16 %v3958_v43, %v3958_v43  ;;  %v3631_v2 = vadd.f32 %v5061_v50, %v6400_v7  ;;  %v5063_v24 = vadd.f32 %v3460_v4, %v6318_v16  ;;  %v3799_v44 = vunpack.c.l.bf16 %v6474_v38 }
 0x200   : > { %4136 = vst.msk [vmem:[%s6458_s15] sm:$0xf] %vm4135_vm8, %v4505_v48  ;;  %v4506_v21 = vpack.c.bf16 %v3956_v0, %v3956_v0  ;;  %vm3669_vm13 = vcmp.ge.f32.partialorder %v3633_v33, 0.0  ;;  %v3705_v45 = vmul.f32 0.01, %v3633_v33  ;;  %v3634_v19 = vadd.f32 %v5062_v20, %v6400_v7 }
 0x201   : > { %4139 = vst.msk [vmem:[%s6458_s15 + $0xc] sm:$0xf] %vm4135_vm8, %v4508_v32  ;;  %vm3667_vm14 = vcmp.ge.f32.partialorder %v3631_v2, 0.0  ;;  %v3703_v53 = vmul.f32 0.01, %v3631_v2  ;;  %v3632_v52 = vadd.f32 %v5063_v24, %v6400_v7  ;;  %v3895_v47 = vrot.slane %v3796_v60, 3 }
 0x202   : > { %4137 = vst.msk [vmem:[%s6458_s15 + $0x4] sm:$0xf] %vm4135_vm8, %v4506_v21  ;;  %v3741_v16 = vsel %vm3669_vm13, %v3633_v33, %v3705_v45  ;;  %vm3670_vm15 = vcmp.ge.f32.partialorder %v3634_v19, 0.0  ;;  %v3706_v29 = vmul.f32 0.01, %v3634_v19  ;;  %v6488_v12 = vsel %vm3312_vm7, %v6452_v28, %v6462_v14 }
 0x203   : > { %v3961_v63 = vadd.f32 %v6362_v42, %v3741_v16  ;;  %v3739_v18 = vsel %vm3667_vm14, %v3631_v2, %v3703_v53  ;;  %vm3668_vm0 = vcmp.ge.f32.partialorder %v3632_v52, 0.0  ;;  %v3704_v49 = vmul.f32 0.01, %v3632_v52  ;;  %v5028_v62 = vpop.f32.mrb[8].mxu0 }
 0x204   : > { %v3959_v43 = vadd.f32 %v6367_v22, %v3739_v18  ;;  %v3742_v60 = vsel %vm3670_vm15, %v3634_v19, %v3706_v29  ;;  %v5064_v9 = vadd.f32 %v5028_v62, %v6320_v3  ;;  %v3473_v50 = vpop.f32.mrb[9].mxu0  ;;  %v6493_v41 = vrot.slane %v3799_v44, 3 }
 0x205   : > { %v4511_v48 = vpack.c.bf16 %v3961_v63, %v3961_v63  ;;  %v3962_v0 = vadd.f32 %v6372_v61, %v3742_v60  ;;  %v3740_v33 = vsel %vm3668_vm0, %v3632_v52, %v3704_v49  ;;  %v5065_v42 = vadd.f32 %v3473_v50, %v6322_v35  ;;  %v5029_v20 = vpop.f32.mrb[10].mxu0  ;;  %v5459_v60 = vld [vmem:[%s5530_s25 + $0x80] sm:$0xff]  }
 0x206   : > { %v4509_v4 = vpack.c.bf16 %v3959_v43, %v3959_v43  ;;  %v3960_v32 = vadd.f32 %v6383_v26, %v3740_v33  ;;  %v3637_v22 = vadd.f32 %v5064_v9, %v6400_v7  ;;  %v5066_v2 = vadd.f32 %v5029_v20, %v6324_v23  ;;  %v3476_v3 = vpop.f32.mrb[11].mxu0 }
 0x207   : > { %4142 = vst.msk [vmem:[%s6458_s15 + $0x18] sm:$0xf] %vm4135_vm8, %v4511_v48  ;;  %v4512_v24 = vpack.c.bf16 %v3962_v0, %v3962_v0  ;;  %v3635_v44 = vadd.f32 %v5065_v42, %v6400_v7  ;;  %v5067_v61 = vadd.f32 %v3476_v3, %v6326_v25  ;;  %v6506_v35 = vsel %vm3312_vm7, %v6411_v10, %v3895_v47 }
 0x208   : > { %4140 = vst.msk [vmem:[%s6458_s15 + $0x10] sm:$0xf] %vm4135_vm8, %v4509_v4  ;;  %v4510_v26 = vpack.c.bf16 %v3960_v32, %v3960_v32  ;;  %vm3673_vm1 = vcmp.ge.f32.partialorder %v3637_v22, 0.0  ;;  %v3709_v21 = vmul.f32 0.01, %v3637_v22  ;;  %v3638_v23 = vadd.f32 %v5066_v2, %v6400_v7 }
 0x209   : > { %4143 = vst.msk [vmem:[%s6458_s15 + $0x1c] sm:$0xf] %vm4135_vm8, %v4512_v24  ;;  %vm3671_vm2 = vcmp.ge.f32.partialorder %v3635_v44, 0.0  ;;  %v3707_v45 = vmul.f32 0.01, %v3635_v44  ;;  %v3636_v19 = vadd.f32 %v5067_v61, %v6400_v7  ;;  %v6517_v25 = vsel %vm3312_vm7, %v6462_v14, %v6493_v41 }
 0x20a   : > { %4141 = vst.msk [vmem:[%s6458_s15 + $0x14] sm:$0xf] %vm4135_vm8, %v4510_v26  ;;  %v3745_v10 = vsel %vm3673_vm1, %v3637_v22, %v3709_v21  ;;  %vm3674_vm3 = vcmp.ge.f32.partialorder %v3638_v23, 0.0  ;;  %v3710_v53 = vmul.f32 0.01, %v3638_v23  ;;  %v6523_v52 = vsel %vm3312_vm7, %v3895_v47, %v6452_v28 }
 0x20b   : > { %v3965_v16 = vadd.f32 %v6386_v40, %v3745_v10  ;;  %v3743_v29 = vsel %vm3671_vm2, %v3635_v44, %v3707_v45  ;;  %vm3672_vm4 = vcmp.ge.f32.partialorder %v3636_v19, 0.0  ;;  %v3708_v63 = vmul.f32 0.01, %v3636_v19  ;;  %v5032_v18 = vpop.f32.mrb[12].mxu0 }
 0x20c   : > { %v3963_v49 = vadd.f32 %v6389_v13, %v3743_v29  ;;  %v3746_v14 = vsel %vm3674_vm3, %v3638_v23, %v3710_v53  ;;  %v5068_v62 = vadd.f32 %v5032_v18, %v6328_v54  ;;  %v3489_v43 = vpop.f32.mrb[13].mxu0  ;;  %v3801_v9 = vunpack.c.l.bf16 %v5459_v60 }
 0x20d   : > { %v4515_v50 = vpack.c.bf16 %v3965_v16, %v3965_v16  ;;  %v3966_v28 = vadd.f32 %v6392_v59, %v3746_v14  ;;  %v3744_v47 = vsel %vm3672_vm4, %v3636_v19, %v3708_v63  ;;  %v5069_v40 = vadd.f32 %v3489_v43, %v6330_v46  ;;  %v5033_v48 = vpop.f32.mrb[14].mxu0 }
 0x20e   : > { %v4513_v0 = vpack.c.bf16 %v3963_v49, %v3963_v49  ;;  %v3964_v33 = vadd.f32 %v6395_v11, %v3744_v47  ;;  %v3641_v13 = vadd.f32 %v5068_v62, %v6400_v7  ;;  %v5070_v42 = vadd.f32 %v5033_v48, %v6335_v55  ;;  %v3492_v54 = vpop.f32.mrb[15].mxu0 }
 0x20f   : > { %4146 = vst.msk [vmem:[%s6458_s15 + $0x28] sm:$0xf] %vm4135_vm8, %v4515_v50  ;;  %v4516_v20 = vpack.c.bf16 %v3966_v28, %v3966_v28  ;;  %v3639_v4 = vadd.f32 %v5069_v40, %v6400_v7  ;;  %v5071_v59 = vadd.f32 %v3492_v54, %v6339_v31  ;;  %v3802_v46 = vunpack.c.h.bf16 %v5459_v60 }
 0x210   : > { %4144 = vst.msk [vmem:[%s6458_s15 + $0x20] sm:$0xf] %vm4135_vm8, %v4513_v0  ;;  %v4514_v11 = vpack.c.bf16 %v3964_v33, %v3964_v33  ;;  %vm3677_vm5 = vcmp.ge.f32.partialorder %v3641_v13, 0.0  ;;  %v3713_v22 = vmul.f32 0.01, %v3641_v13  ;;  %v3642_v2 = vadd.f32 %v5070_v42, %v6400_v7 }
 0x211   : > { %v6538_v32 = vpop.f32.mrb[20].mxu1  ;;  %4147 = vst.msk [vmem:[%s6458_s15 + $0x2c] sm:$0xf] %vm4135_vm8, %v4516_v20  ;;  %vm3675_vm6 = vcmp.ge.f32.partialorder %v3639_v4, 0.0  ;;  %v3711_v3 = vmul.f32 0.01, %v3639_v4  ;;  %v3640_v24 = vadd.f32 %v5071_v59, %v6400_v7  ;;  %v3800_v31 = vunpack.c.h.bf16 %v6474_v38 }
 0x212   : > { %v6543_v55 = vpop.f32.mrb[21].mxu1  ;;  %4145 = vst.msk [vmem:[%s6458_s15 + $0x24] sm:$0xf] %vm4135_vm8, %v4514_v11  ;;  %v3749_v61 = vsel %vm3677_vm5, %v3641_v13, %v3713_v22  ;;  %vm3678_vm9 = vcmp.ge.f32.partialorder %v3642_v2, 0.0  ;;  %v3714_v26 = vmul.f32 0.01, %v3642_v2 }
 0x213   : > { %v6548_v44 = vpop.f32.mrb[22].mxu1  ;;  %v6555_v23 = vrot.slane %v3801_v9, 3  ;;  %v3969_v45 = vadd.f32 %v6403_v8, %v3749_v61  ;;  %v3747_v19 = vsel %vm3675_vm6, %v3639_v4, %v3711_v3  ;;  %vm3676_vm10 = vcmp.ge.f32.partialorder %v3640_v24, 0.0  ;;  %v5036_v53 = vpop.f32.mrb[16].mxu0 }
 0x214   : > { %v6553_v21 = vpop.f32.mrb[23].mxu1  ;;  %v3712_v10 = vmul.f32 0.01, %v3640_v24  ;;  %v3967_v16 = vadd.f32 %v6406_v5, %v3747_v19  ;;  %v3750_v29 = vsel %vm3678_vm9, %v3642_v2, %v3714_v26  ;;  %v5072_v38 = vadd.f32 %v5036_v53, %v6342_v1  ;;  %v3505_v63 = vpop.f32.mrb[17].mxu0 }
 0x215   : > { %v6560_v18 = vrot.slane %v3802_v46, 3  ;;  %v4519_v49 = vpack.c.bf16 %v3969_v45, %v3969_v45  ;;  %v3970_v14 = vadd.f32 %v6409_v57, %v3750_v29  ;;  %v5073_v8 = vadd.f32 %v3505_v63, %v6344_v30  ;;  %v5037_v43 = vpop.f32.mrb[18].mxu0  ;;  %v6574_v30 = vld [vmem:[%s5530_s25 + $0x88] sm:$0xff]  }
 0x216   : > { %v3748_v62 = vsel %vm3676_vm10, %v3640_v24, %v3712_v10  ;;  %v4517_v60 = vpack.c.bf16 %v3967_v16, %v3967_v16  ;;  %v3645_v5 = vadd.f32 %v5072_v38, %v6400_v7  ;;  %v5074_v1 = vadd.f32 %v5037_v43, %v6353_v6  ;;  %v3508_v50 = vpop.f32.mrb[19].mxu0 }
 0x217   : > { %v3968_v9 = vadd.f32 %v6415_v27, %v3748_v62  ;;  %4150 = vst.msk [vmem:[%s6458_s15 + $0x38] sm:$0xf] %vm4135_vm8, %v4519_v49  ;;  %v4520_v28 = vpack.c.bf16 %v3970_v14, %v3970_v14  ;;  %v3643_v47 = vadd.f32 %v5073_v8, %v6400_v7  ;;  %v5075_v57 = vadd.f32 %v3508_v50, %v6364_v15 }
 0x218   : > { %v3803_v27 = vunpack.c.l.bf16 %v6574_v30  ;;  %4148 = vst.msk [vmem:[%s6458_s15 + $0x30] sm:$0xf] %vm4135_vm8, %v4517_v60  ;;  %vm3681_vm11 = vcmp.ge.f32.partialorder %v3645_v5, 0.0  ;;  %v3717_v6 = vmul.f32 0.01, %v3645_v5  ;;  %v3646_v0 = vadd.f32 %v5074_v1, %v6400_v7 }
 0x219   : > { %v6571_v40 = vpop.f32.mrb[24].mxu1  ;;  %v4518_v48 = vpack.c.bf16 %v3968_v9, %v3968_v9  ;;  %4151 = vst.msk [vmem:[%s6458_s15 + $0x3c] sm:$0xf] %vm4135_vm8, %v4520_v28  ;;  %vm3679_vm12 = vcmp.ge.f32.partialorder %v3643_v47, 0.0  ;;  %v3715_v15 = vmul.f32 0.01, %v3643_v47  ;;  %v3644_v13 = vadd.f32 %v5075_v57, %v6400_v7 }
 0x21a   : > { %v6580_v33 = vpop.f32.mrb[25].mxu1  ;;  %v3903_v54 = vrot.slane %v3800_v31, 3  ;;  %v3753_v20 = vsel %vm3681_vm11, %v3645_v5, %v3717_v6  ;;  %vm3682_vm13 = vcmp.ge.f32.partialorder %v3646_v0, 0.0  ;;  %v3718_v4 = vmul.f32 0.01, %v3646_v0 }
 0x21b   : > { %v6585_v42 = vpop.f32.mrb[26].mxu1  ;;  %4149 = vst.msk [vmem:[%s6458_s15 + $0x34] sm:$0xf] %vm4135_vm8, %v4518_v48  ;;  %v6594_v46 = vsel %vm3312_vm7, %v6555_v23, %v6560_v18  ;;  %v3973_v11 = vadd.f32 %v6418_v37, %v3753_v20  ;;  %v3751_v22 = vsel %vm3679_vm12, %v3643_v47, %v3715_v15  ;;  %vm3680_vm14 = vcmp.ge.f32.partialorder %v3644_v13, 0.0  ;;  %v5040_v3 = vpop.f32.mrb[20].mxu0 }
 0x21c   : > { %v6589_v59 = vpop.f32.mrb[27].mxu1  ;;  %v3716_v2 = vmul.f32 0.01, %v3644_v13  ;;  %v3971_v24 = vadd.f32 %v6421_v17, %v3751_v22  ;;  %v3754_v31 = vsel %vm3682_vm13, %v3646_v0, %v3718_v4  ;;  %v5076_v61 = vadd.f32 %v5040_v3, %v6538_v32  ;;  %v3521_v26 = vpop.f32.mrb[21].mxu0 }
 0x21d   : > { %v6599_v45 = vrot.slane %v3803_v27, 3  ;;  %v4523_v19 = vpack.c.bf16 %v3973_v11, %v3973_v11  ;;  %v3974_v10 = vadd.f32 %v6425_v56, %v3754_v31  ;;  %v5077_v37 = vadd.f32 %v3521_v26, %v6543_v55  ;;  %v5041_v16 = vpop.f32.mrb[22].mxu0 }
 0x21e   : > { %v3752_v53 = vsel %vm3680_vm14, %v3644_v13, %v3716_v2  ;;  %v4521_v29 = vpack.c.bf16 %v3971_v24, %v3971_v24  ;;  %v3649_v17 = vadd.f32 %v5076_v61, %v6400_v7  ;;  %v5078_v63 = vadd.f32 %v5041_v16, %v6548_v44  ;;  %v3524_v32 = vpop.f32.mrb[23].mxu0  ;;  %v5461_v13 = vld [vmem:[%s5530_s25 + $0x90] sm:$0xff]  }
 0x21f   : > { %v3972_v38 = vadd.f32 %v6428_v34, %v3752_v53  ;;  %4154 = vst.msk [vmem:[%s6458_s15 + $0x48] sm:$0xf] %vm4135_vm8, %v4523_v19  ;;  %v4524_v49 = vpack.c.bf16 %v3974_v10, %v3974_v10  ;;  %v3647_v14 = vadd.f32 %v5077_v37, %v6400_v7  ;;  %v5079_v56 = vadd.f32 %v3524_v32, %v6553_v21 }
 0x220   : > { %v6614_v55 = vsel %vm3312_vm7, %v6493_v41, %v3903_v54  ;;  %4152 = vst.msk [vmem:[%s6458_s15 + $0x40] sm:$0xf] %vm4135_vm8, %v4521_v29  ;;  %vm3685_vm15 = vcmp.ge.f32.partialorder %v3649_v17, 0.0  ;;  %v3721_v44 = vmul.f32 0.01, %v3649_v17  ;;  %v3650_v8 = vadd.f32 %v5078_v63, %v6400_v7 }
 0x221   : > { %v6610_v62 = vpop.f32.mrb[28].mxu1  ;;  %v4522_v34 = vpack.c.bf16 %v3972_v38, %v3972_v38  ;;  %4155 = vst.msk [vmem:[%s6458_s15 + $0x4c] sm:$0xf] %vm4135_vm8, %v4524_v49  ;;  %vm3683_vm0 = vcmp.ge.f32.partialorder %v3647_v14, 0.0  ;;  %v3719_v60 = vmul.f32 0.01, %v3647_v14  ;;  %v3648_v21 = vadd.f32 %v5079_v56, %v6400_v7 }
 0x222   : > { %v6619_v43 = vpop.f32.mrb[29].mxu1  ;;  %v6629_v41 = vsel %vm3312_vm7, %v6560_v18, %v6599_v45  ;;  %v3757_v5 = vsel %vm3685_vm15, %v3649_v17, %v3721_v44  ;;  %vm3686_vm1 = vcmp.ge.f32.partialorder %v3650_v8, 0.0  ;;  %v3722_v1 = vmul.f32 0.01, %v3650_v8 }
 0x223   : > { %v6624_v9 = vpop.f32.mrb[30].mxu1  ;;  %4153 = vst.msk [vmem:[%s6458_s15 + $0x44] sm:$0xf] %vm4135_vm8, %v4522_v34  ;;  %v6637_v28 = vsel %vm3312_vm7, %v3903_v54, %v6555_v23  ;;  %v3977_v47 = vadd.f32 %v6431_v51, %v3757_v5  ;;  %v3755_v57 = vsel %vm3683_vm0, %v3647_v14, %v3719_v60  ;;  %vm3684_vm2 = vcmp.ge.f32.partialorder %v3648_v21, 0.0  ;;  %v5044_v48 = vpop.f32.mrb[24].mxu0 }
 0x224   : > { %v6633_v50 = vpop.f32.mrb[31].mxu1  ;;  %v3720_v27 = vmul.f32 0.01, %v3648_v21  ;;  %v3975_v18 = vadd.f32 %v6436_v39, %v3755_v57  ;;  %v3758_v6 = vsel %vm3686_vm1, %v3650_v8, %v3722_v1  ;;  %v5080_v0 = vadd.f32 %v5044_v48, %v6571_v40  ;;  %v3537_v15 = vpop.f32.mrb[25].mxu0 }
 0x225   : > { %v3805_v20 = vunpack.c.l.bf16 %v5461_v13  ;;  %v4527_v4 = vpack.c.bf16 %v3977_v47, %v3977_v47  ;;  %v3978_v23 = vadd.f32 %v6443_v58, %v3758_v6  ;;  %v5081_v51 = vadd.f32 %v3537_v15, %v6580_v33  ;;  %v5045_v11 = vpop.f32.mrb[26].mxu0  ;;  %v5462_v6 = vld [vmem:[%s5530_s25 + $0x98] sm:$0x3] }
 0x226   : > { %v3756_v54 = vsel %vm3684_vm2, %v3648_v21, %v3720_v27  ;;  %v4525_v22 = vpack.c.bf16 %v3975_v18, %v3975_v18  ;;  %v3653_v39 = vadd.f32 %v5080_v0, %v6400_v7  ;;  %v5082_v3 = vadd.f32 %v5045_v11, %v6585_v42  ;;  %v3540_v40 = vpop.f32.mrb[27].mxu0 }
 0x227   : > { %v3976_v2 = vadd.f32 %v6446_v36, %v3756_v54  ;;  %4158 = vst.msk [vmem:[%s6458_s15 + $0x58] sm:$0xf] %vm4135_vm8, %v4527_v4  ;;  %v4528_v24 = vpack.c.bf16 %v3978_v23, %v3978_v23  ;;  %v3651_v31 = vadd.f32 %v5081_v51, %v6400_v7  ;;  %v5083_v58 = vadd.f32 %v3540_v40, %v6589_v59 }
 0x228   : > { %v3806_v33 = vunpack.c.h.bf16 %v5461_v13  ;;  %4156 = vst.msk [vmem:[%s6458_s15 + $0x50] sm:$0xf] %vm4135_vm8, %v4525_v22  ;;  %vm3689_vm3 = vcmp.ge.f32.partialorder %v3653_v39, 0.0  ;;  %v3725_v26 = vmul.f32 0.01, %v3653_v39  ;;  %v3654_v19 = vadd.f32 %v5082_v3, %v6400_v7 }
 0x229   : > { %v6652_v61 = vpop.f32.mrb[32].mxu1  ;;  %v4526_v36 = vpack.c.bf16 %v3976_v2, %v3976_v2  ;;  %4159 = vst.msk [vmem:[%s6458_s15 + $0x5c] sm:$0xf] %vm4135_vm8, %v4528_v24  ;;  %vm3687_vm4 = vcmp.ge.f32.partialorder %v3651_v31, 0.0  ;;  %v3723_v10 = vmul.f32 0.01, %v3651_v31  ;;  %v3652_v53 = vadd.f32 %v5083_v58, %v6400_v7 }
 0x22a   : > { %v6657_v42 = vpop.f32.mrb[33].mxu1  ;;  %v3804_v59 = vunpack.c.h.bf16 %v6574_v30  ;;  %v3761_v16 = vsel %vm3689_vm3, %v3653_v39, %v3725_v26  ;;  %vm3690_vm5 = vcmp.ge.f32.partialorder %v3654_v19, 0.0  ;;  %v3726_v29 = vmul.f32 0.01, %v3654_v19 }
 0x22b   : > { %v6662_v37 = vpop.f32.mrb[34].mxu1  ;;  %4157 = vst.msk [vmem:[%s6458_s15 + $0x54] sm:$0xf] %vm4135_vm8, %v4526_v36  ;;  %v6669_v17 = vrot.slane %v3805_v20, 3  ;;  %v3981_v63 = vadd.f32 %v6488_v12, %v3761_v16  ;;  %v3759_v32 = vsel %vm3687_vm4, %v3651_v31, %v3723_v10  ;;  %vm3688_vm6 = vcmp.ge.f32.partialorder %v3652_v53, 0.0  ;;  %v5048_v14 = vpop.f32.mrb[28].mxu0 }
 0x22c   : > { %v6667_v38 = vpop.f32.mrb[35].mxu1  ;;  %v3724_v49 = vmul.f32 0.01, %v3652_v53  ;;  %v3979_v56 = vadd.f32 %v6506_v35, %v3759_v32  ;;  %v3762_v34 = vsel %vm3690_vm5, %v3654_v19, %v3726_v29  ;;  %v5084_v30 = vadd.f32 %v5048_v14, %v6610_v62  ;;  %v3553_v44 = vpop.f32.mrb[29].mxu0 }
 0x22d   : > { %v6674_v8 = vrot.slane %v3806_v33, 3  ;;  %v4531_v60 = vpack.c.bf16 %v3981_v63, %v3981_v63  ;;  %v3982_v21 = vadd.f32 %v6517_v25, %v3762_v34  ;;  %v5085_v12 = vadd.f32 %v3553_v44, %v6619_v43  ;;  %v5049_v1 = vpop.f32.mrb[30].mxu0 }
 0x22e   : > { %v3760_v5 = vsel %vm3688_vm6, %v3652_v53, %v3724_v49  ;;  %v4529_v47 = vpack.c.bf16 %v3979_v56, %v3979_v56  ;;  %v3657_v35 = vadd.f32 %v5084_v30, %v6400_v7  ;;  %v5086_v62 = vadd.f32 %v5049_v1, %v6624_v9  ;;  %v3556_v27 = vpop.f32.mrb[31].mxu0 }
 0x22f   : > { %v3980_v57 = vadd.f32 %v6523_v52, %v3760_v5  ;;  %4162 = vst.msk [vmem:[%s6458_s15 + $0x68] sm:$0xf] %vm4135_vm8, %v4531_v60  ;;  %v4532_v48 = vpack.c.bf16 %v3982_v21, %v3982_v21  ;;  %v3655_v18 = vadd.f32 %v5085_v12, %v6400_v7  ;;  %v5087_v25 = vadd.f32 %v3556_v27, %v6633_v50 }
 0x230   : > { %v3807_v43 = vunpack.c.l.bf16 %v5462_v6  ;;  %4160 = vst.msk [vmem:[%s6458_s15 + $0x60] sm:$0xf] %vm4135_vm8, %v4529_v47  ;;  %vm3693_vm9 = vcmp.ge.f32.partialorder %v3657_v35, 0.0  ;;  %v3729_v52 = vmul.f32 0.01, %v3657_v35  ;;  %v3658_v15 = vadd.f32 %v5086_v62, %v6400_v7 }
 0x231   : > { %v4530_v0 = vpack.c.bf16 %v3980_v57, %v3980_v57  ;;  %4163 = vst.msk [vmem:[%s6458_s15 + $0x6c] sm:$0xf] %vm4135_vm8, %v4532_v48  ;;  %vm3691_vm10 = vcmp.ge.f32.partialorder %v3655_v18, 0.0  ;;  %v3727_v9 = vmul.f32 0.01, %v3655_v18  ;;  %v3656_v13 = vadd.f32 %v5087_v25, %v6400_v7 }
 0x232   : > { %v3911_v20 = vrot.slane %v3804_v59, 3  ;;  %v3765_v4 = vsel %vm3693_vm9, %v3657_v35, %v3729_v52  ;;  %vm3694_vm11 = vcmp.ge.f32.partialorder %v3658_v15, 0.0  ;;  %v3730_v50 = vmul.f32 0.01, %v3658_v15 }
 0x233   : > { %4161 = vst.msk [vmem:[%s6458_s15 + $0x64] sm:$0xf] %vm4135_vm8, %v4530_v0  ;;  %v3916_v23 = vsel %vm3312_vm7, %v6669_v17, %v6674_v8  ;;  %v3985_v54 = vadd.f32 %v6594_v46, %v3765_v4  ;;  %v3763_v51 = vsel %vm3691_vm10, %v3655_v18, %v3727_v9  ;;  %vm3692_vm12 = vcmp.ge.f32.partialorder %v3656_v13, 0.0  ;;  %v5052_v22 = vpop.f32.mrb[32].mxu0 }
 0x234   : > { %v3728_v11 = vmul.f32 0.01, %v3656_v13  ;;  %v3983_v2 = vadd.f32 %v6614_v55, %v3763_v51  ;;  %v3766_v39 = vsel %vm3694_vm11, %v3658_v15, %v3730_v50  ;;  %v5088_v3 = vadd.f32 %v5052_v22, %v6652_v61  ;;  %v3569_v40 = vpop.f32.mrb[33].mxu0 }
 0x235   : > { %v3917_v24 = vrot.slane %v3807_v43, 3  ;;  %v4535_v31 = vpack.c.bf16 %v3985_v54, %v3985_v54  ;;  %v3986_v58 = vadd.f32 %v6629_v41, %v3766_v39  ;;  %v5089_v36 = vadd.f32 %v3569_v40, %v6657_v42  ;;  %v5053_v46 = vpop.f32.mrb[34].mxu0 }
 0x236   : > { %v3764_v33 = vsel %vm3692_vm12, %v3656_v13, %v3728_v11  ;;  %v4533_v26 = vpack.c.bf16 %v3983_v2, %v3983_v2  ;;  %v3661_v10 = vadd.f32 %v5088_v3, %v6400_v7  ;;  %v5090_v55 = vadd.f32 %v5053_v46, %v6662_v37  ;;  %v3572_v53 = vpop.f32.mrb[35].mxu0 }
 0x237   : > { %v3984_v19 = vadd.f32 %v6637_v28, %v3764_v33  ;;  %4166 = vst.msk [vmem:[%s6458_s15 + $0x78] sm:$0xf] %vm4135_vm8, %v4535_v31  ;;  %v4536_v61 = vpack.c.bf16 %v3986_v58, %v3986_v58  ;;  %v3659_v59 = vadd.f32 %v5089_v36, %v6400_v7  ;;  %v3912_v41 = vsel %vm3312_vm7, %v6599_v45, %v3911_v20 }
 0x238   : > { %v5091_v42 = vadd.f32 %v3572_v53, %v6667_v38  ;;  %4164 = vst.msk [vmem:[%s6458_s15 + $0x70] sm:$0xf] %vm4135_vm8, %v4533_v26  ;;  %vm3697_vm13 = vcmp.ge.f32.partialorder %v3661_v10, 0.0  ;;  %v3733_v28 = vmul.f32 0.01, %v3661_v10  ;;  %v3662_v29 = vadd.f32 %v5090_v55, %v6400_v7 }
 0x239   : > { %v4534_v16 = vpack.c.bf16 %v3984_v19, %v3984_v19  ;;  %4167 = vst.msk [vmem:[%s6458_s15 + $0x7c] sm:$0xf] %vm4135_vm8, %v4536_v61  ;;  %vm3695_vm14 = vcmp.ge.f32.partialorder %v3659_v59, 0.0  ;;  %v3731_v37 = vmul.f32 0.01, %v3659_v59  ;;  %v3918_v63 = vsel %vm3312_vm7, %v6674_v8, %v3917_v24 }
 0x23a   : > { %v3660_v32 = vadd.f32 %v5091_v42, %v6400_v7  ;;  %v3769_v45 = vsel %vm3697_vm13, %v3661_v10, %v3733_v28  ;;  %vm3698_vm15 = vcmp.ge.f32.partialorder %v3662_v29, 0.0  ;;  %v3734_v38 = vmul.f32 0.01, %v3662_v29 }
 0x23b   : > { %4165 = vst.msk [vmem:[%s6458_s15 + $0x74] sm:$0xf] %vm4135_vm8, %v4534_v16  ;;  %v3914_v49 = vsel %vm3312_vm7, %v3911_v20, %v6669_v17  ;;  %v3989_v14 = vadd.f32 %v3916_v23, %v3769_v45  ;;  %v3767_v56 = vsel %vm3695_vm14, %v3659_v59, %v3731_v37 }
 0x23c   : > { %vm3696_vm0 = vcmp.ge.f32.partialorder %v3660_v32, 0.0  ;;  %v3732_v34 = vmul.f32 0.01, %v3660_v32  ;;  %v3987_v30 = vadd.f32 %v3912_v41, %v3767_v56  ;;  %v3770_v44 = vsel %vm3698_vm15, %v3662_v29, %v3734_v38 }
 0x23d   : > { %v4539_v8 = vpack.c.bf16 %v3989_v14, %v3989_v14  ;;  %v3990_v7 = vadd.f32 %v3918_v63, %v3770_v44 }
 0x23e   : > { %v3768_v60 = vsel %vm3696_vm0, %v3660_v32, %v3732_v34  ;;  %v4537_v21 = vpack.c.bf16 %v3987_v30, %v3987_v30 }
 0x23f   : > { %v3988_v5 = vadd.f32 %v3914_v49, %v3768_v60  ;;  %4170 = vst.msk [vmem:[%s6458_s15 + $0x88] sm:$0xf] %vm4135_vm8, %v4539_v8  ;;  %v4540_v12 = vpack.c.bf16 %v3990_v7, %v3990_v7 }
 0x240   : > { %4168 = vst.msk [vmem:[%s6458_s15 + $0x80] sm:$0xf] %vm4135_vm8, %v4537_v21 }
 0x241   : > { %v4538_v1 = vpack.c.bf16 %v3988_v5, %v3988_v5  ;;  %4171 = vst.msk [vmem:[%s6458_s15 + $0x8c] sm:$0xf] %vm4135_vm8, %v4540_v12 }
 0x243   : > { %4169 = vst.msk [vmem:[%s6458_s15 + $0x84] sm:$0xf] %vm4135_vm8, %v4538_v1 }
 0x244 PF: > { %s13_s12 = sadd.s32 1, %s5469_s12  }
 0x245   : > { %p10_p4 = scmp.ge.s32.totalorder %s13_s12, 4  }
 0x247   :  { %12 = sbr.rel (!%p10_p4) target bundleno = 1 (0x1), region = 70 }

// kernel: vae_encoder_forward.8
= control target key start
LH: loop header
LB: loop body
LE: loop exit
PB: predicated region body
PF: predicated region fallthrough
CT: control target
= control target key end

     0   :  { %s1177_s12 = smov 0   ;;  %s1369_s0 = inlined_call_operand.vmem [shape: bf16[2,90,32], index: 0, kind: input, shape index: {}]   ;;  %s1370_s1 = inlined_call_operand.vmem [shape: bf16[4,32,16], index: 1, kind: input, shape index: {}]   ;;  %s1371_s2 = inlined_call_operand.vmem [shape: f32[1,16], index: 2, kind: input, shape index: {}]   ;;  %s1372_s3 = inlined_call_operand.vmem [shape: bf16[2,72,16], index: 3, kind: output, shape index: {}]  }
   0x1 LB: > { %s911_s13 = sadd.s32 4294967295, %s1153_s12   ;;  %p915_p0 = scmp.ge.s32.totalorder %s1153_s12, 1  ;;  %s1153_s12 = sphi %s1177_s12, %s13_s12  }
   0x2   : > { %p137_p1 = scmp.lt.s32.totalorder %s1153_s12, 3 }
   0x4   : > { %p138_p2 = pnand %p915_p0, %p137_p1 }
   0x5   : > { %v1127_v0 = vld [vmem:[%s1370_s1 + $0x10] sm:$0xff] (!%p138_p2)   ;;  %v1155_v1 = vmov (!%p138_p2), 0.0   ;;  %v1128_v2 = vld [vmem:[%s1370_s1] sm:$0xff] (!%p138_p2)   ;;  %v1129_v3 = vld [vmem:[%s1370_s1 + $0x18] sm:$0xff] (!%p138_p2)   ;;  %vm1156_vm0 = vmmov (!%p138_p2), 0   ;;  %p161_p3 = scmp.lt.s32.totalorder (!%p138_p2), %s911_s13, 1 }
   0x6   : > { %141 = sbr.rel (%p138_p2) target bundleno = 321 (0x141), region = 32  ;;  %1019 = vmatprep.subr.bf16.mxu0 (!%p138_p2), %v1155_v1  ;;  %1043 = vmatprep.subr.bf16.mxu1 (!%p138_p2), %v1155_v1  ;;  %v1130_v4 = vld [vmem:[%s1370_s1 + $0x8] sm:$0xff] (!%p138_p2)   ;;  %vm268_vm1 = vcmask (!%p138_p2), 261120   ;;  %v1134_v5 = vld [vmem:[%s1370_s1 + $0x30] sm:$0xff] (!%p138_p2)   ;;  %v1138_v12 = vld [vmem:[%s1370_s1 + $0x38] sm:$0xff] (!%p138_p2)   ;;  %vm648_vm3 = vcmask (!%p138_p2), 1046528  }
   0x7   : > { %1020 = vmatpush3.bf16.msra.mxu0 (!%p138_p2), %v1127_v0  ;;  %1047 = vmatprep.mubr.msk.bf16.mxu1 (!%p138_p2), %vm1156_vm0, %v1155_v1  ;;  %vm216_vm2 = vsmask.f32 (!%p138_p2), 7424  ;;  %v1133_v16 = vld [vmem:[%s1370_s1 + $0x20] sm:$0xff] (!%p138_p2)   ;;  %v1137_v23 = vld [vmem:[%s1370_s1 + $0x28] sm:$0xff] (!%p138_p2)   ;;  %vm846_vm5 = vcmask (!%p138_p2), 125952  }
   0x8   : > { %1044 = vmatpush3.bf16.msra.mxu1 (!%p138_p2), %v1128_v2  ;;  %1021 = vmatprep.subr.bf16.mxu0 (!%p138_p2), %v1155_v1 }
   0x9   : > { %1045 = vmatprep.subr.bf16.mxu1 (!%p138_p2), %v1155_v1  ;;  %1023 = vmatprep.mubr.msk.bf16.mxu0 (!%p138_p2), %vm1156_vm0, %v1155_v1 }
   0xb   : > { %1022 = vmatpush3.bf16.msra.mxu0 (!%p138_p2), %v1129_v3 }
   0xc   : > { %1046 = vmatpush3.bf16.msra.mxu1 (!%p138_p2), %v1130_v4  ;;  %1067 = vmatprep.subr.bf16.mxu0 (!%p138_p2), %v1155_v1 }
   0xd   : > { %s1374_s13 = smov (!%p161_p3, %s911_s13), 1  ;;  %1091 = vmatprep.subr.bf16.mxu1 %v1155_v1 }
   0xe   : > { %s1115_s22 = smul.u32 48, %s1374_s13 }
   0xf   : > { %s1116_s9 = smul.u32 36, %s1374_s13 }
  0x10   : > { %s1212_s25 = scalar_lea.vmem %s1369_s0, %s1115_s22 }
  0x11   : > { %v1131_v6 = vld [vmem:[%s1212_s25] sm:$0xff]   ;;  %v1132_v7 = vld [vmem:[%s1212_s25 + $0x8] sm:$0xff]   ;;  %v1135_v11 = vld [vmem:[%s1212_s25 + $0x10] sm:$0xff]   ;;  %s1333_s14 = scalar_lea.vmem %s1372_s3, %s1116_s9 }
  0x12   : > { %1048 = vmatmul.mubr.msk.bf16.vlgmr.msra.gmra.mrb[0].mxu1 %vm268_vm1, %v1131_v6  ;;  %v218_v8 = vshrl.u32 %v1131_v6, 16  ;;  %v220_v9 = vshll.u32 %v1131_v6, 16  ;;  %v225_v10 = vshll.u32 %v1132_v7, 16  ;;  %v229_v17 = vshrl.u32 %v1132_v7, 16  ;;  %v1136_v22 = vld [vmem:[%s1212_s25 + $0x18] sm:$0xff]   ;;  %v1142_v43 = vld [vmem:[%s1212_s25 + $0xc] sm:$0xff]  }
  0x13   : > { %1092 = vmatpush3.bf16.msra.mxu1 %v1134_v5  ;;  %1051 = vmatprep.mubr.msk.bf16.mxu1 %vm1156_vm0, %v1155_v1  ;;  %v233_v18 = vshll.u32 %v1135_v11, 16  ;;  %v237_v25 = vshrl.u32 %v1135_v11, 16  ;;  %v241_v26 = vshll.u32 %v1136_v22, 16  ;;  %v180_v27 = vld [vmem:[%s1212_s25 + $0x20] sm:$0xf]  ;;  %v245_v33 = vshrl.u32 %v1136_v22, 16 }
  0x14   : > { %v222_v13 = vrot.slane %v220_v9, 1  ;;  %1093 = vmatprep.subr.bf16.mxu1 %v1155_v1  ;;  %v227_v14 = vrot.slane %v225_v10, 1  ;;  %v185_v28 = vld [vmem:[%s1212_s25 + $0x24] sm:$0x1]  ;;  %v453_v38 = vld [vmem:[%s1212_s25 + $0x8] sm:$0xf]  ;;  %v934_v42 = vcombine.low %v180_v27, %v180_v27 }
  0x15   : > { %v235_v21 = vrot.slane %v233_v18, 1  ;;  %v243_v30 = vrot.slane %v241_v26, 1  ;;  %v926_v31 = vcombine.low %v180_v27, %v185_v28  ;;  %v452_v37 = vld [vmem:[%s1212_s25 + $0x4] sm:$0xf]  ;;  %v650_v48 = vrot.slane %v1142_v43, 1  ;;  %v1144_v54 = vld [vmem:[%s1212_s25 + $0x14] sm:$0xff]  }
  0x16   : > { %v223_v15 = vor.u32 %v222_v13, %v218_v8  ;;  %v231_v20 = vor.u32 %v229_v17, %v227_v14  ;;  %v639_v39 = vld [vmem:[%s1212_s25 + $0x4] sm:$0xe]  ;;  %v946_v41 = vcombine.low %v452_v37, %v453_v38  ;;  %v500_v52 = vshll.u32 %v1142_v43, 16  ;;  %v1145_v62 = vld [vmem:[%s1212_s25 + $0x1c] sm:$0xff]  }
  0x17   : > { %1094 = vmatpush3.bf16.msra.mxu1 %v1138_v12  ;;  %v239_v29 = vor.u32 %v237_v25, %v235_v21  ;;  %v249_v34 = vshll.u32 %v926_v31, 16  ;;  %v247_v35 = vor.u32 %v245_v33, %v243_v30  ;;  %v962_v44 = vcombine.low %v639_v39, %v453_v38 }
  0x18   : > { %v228_v19 = vsel %vm216_vm2, %v223_v15, %v227_v14  ;;  %v236_v24 = vsel %vm216_vm2, %v231_v20, %v235_v21  ;;  %v253_v45 = vshrl.u32 %v926_v31, 16  ;;  %v495_v46 = vshll.u32 %v946_v41, 16 }
  0x19   : > { %1024 = vmatmul.mubr.msk.bf16.vlgmr.msra.gmra.mrb[0].mxu0 %vm268_vm1, %v228_v19  ;;  %v244_v32 = vsel %vm216_vm2, %v239_v29, %v243_v30  ;;  %v251_v36 = vrot.slane %v249_v34, 1  ;;  %v649_v47 = vrot.slane %v962_v44, 1  ;;  %v493_v50 = vshrl.u32 %v946_v41, 16 }
  0x1a   : > { %1068 = vmatpush3.bf16.msra.mxu0 %v1133_v16  ;;  %1027 = vmatprep.mubr.msk.bf16.mxu0 %vm1156_vm0, %v1155_v1  ;;  %v497_v51 = vrot.slane %v495_v46, 1  ;;  %v502_v56 = vrot.slane %v500_v52, 1  ;;  %v652_v57 = vrot.slane %v1144_v54, 1  ;;  %v504_v59 = vshrl.u32 %v1142_v43, 16 }
  0x1b   : > { %1052 = vmatmul.mubr.msk.bf16.gmra.mrb[4].mxu1 %vm268_vm1, %v1132_v7  ;;  %1069 = vmatprep.subr.bf16.mxu0 %v1155_v1  ;;  %v252_v40 = vsel %vm216_vm2, %v247_v35, %v251_v36  ;;  %v255_v49 = vor.u32 %v253_v45, %v251_v36  ;;  %v651_v53 = vsel %vm648_vm3, %v649_v47, %v650_v48  ;;  %v508_v60 = vshll.u32 %v1144_v54, 16  ;;  %v1146_v7 = vld [vmem:[%s1212_s25 + $0x24] sm:$0x1f]  }
  0x1c   : > { %1055 = vmatprep.mubr.msk.bf16.mxu1 %vm1156_vm0, %v1155_v1  ;;  %v498_v55 = vor.u32 %v497_v51, %v493_v50  ;;  %v653_v61 = vsel %vm648_vm3, %v650_v48, %v652_v57  ;;  %v506_v63 = vor.u32 %v504_v59, %v502_v56  ;;  %v654_v2 = vrot.slane %v1145_v62, 1 }
  0x1d   : > { %v510_v0 = vrot.slane %v508_v60, 1  ;;  %v512_v4 = vshrl.u32 %v1144_v54, 16  ;;  %v516_v5 = vshll.u32 %v1145_v62, 16  ;;  %v656_v10 = vrot.slane %v1146_v7, 1 }
  0x1e   : > { %1070 = vmatpush3.bf16.msra.mxu0 %v1137_v23  ;;  %v503_v58 = vsel %vm216_vm2, %v498_v55, %v502_v56  ;;  %v655_v6 = vsel %vm648_vm3, %v652_v57, %v654_v2  ;;  %v520_v12 = vshrl.u32 %v1145_v62, 16  ;;  %v524_v13 = vshll.u32 %v1146_v7, 16 }
  0x1f   : > { %v511_v3 = vsel %vm216_vm2, %v506_v63, %v510_v0  ;;  %v514_v8 = vor.u32 %v512_v4, %v510_v0  ;;  %v518_v9 = vrot.slane %v516_v5, 1  ;;  %v657_v14 = vsel %vm648_vm3, %v654_v2, %v656_v10 }
  0x20   : > { %v526_v16 = vrot.slane %v524_v13, 1  ;;  %v528_v18 = vshrl.u32 %v1146_v7, 16 }
  0x21   : > { %1028 = vmatmul.mubr.msk.bf16.gmra.mrb[4].mxu0 %vm268_vm1, %v236_v24  ;;  %v522_v15 = vor.u32 %v520_v12, %v518_v9  ;;  %v1325_v12 = vld [vmem:[%s1371_s2] ss:$0 sm:$0xff] }
  0x22   : > { %1031 = vmatprep.mubr.msk.bf16.mxu0 %vm1156_vm0, %v1155_v1  ;;  %v530_v19 = vor.u32 %v528_v18, %v526_v16 }
  0x23   : > { %1056 = vmatmul.mubr.msk.bf16.gmra.mrb[8].mxu1 %vm268_vm1, %v1135_v11  ;;  %v519_v11 = vsel %vm216_vm2, %v514_v8, %v518_v9  ;;  %v527_v17 = vsel %vm216_vm2, %v522_v15, %v526_v16 }
  0x24   : > { %1059 = vmatprep.mubr.msk.bf16.mxu1 %vm1156_vm0, %v1155_v1 }
  0x29   : > { %1032 = vmatmul.mubr.msk.bf16.gmra.mrb[8].mxu0 %vm268_vm1, %v244_v32 }
  0x2a   : > { %1035 = vmatprep.mubr.msk.bf16.mxu0 %vm1156_vm0, %v1155_v1 }
  0x2b   : > { %1060 = vmatmul.mubr.msk.bf16.gmra.mrb[12].mxu1 %vm268_vm1, %v1136_v22 }
  0x2c   : > { %1063 = vmatprep.mubr.msk.bf16.mxu1 %vm1156_vm0, %v1155_v1 }
  0x31   : > { %1036 = vmatmul.mubr.msk.bf16.gmra.mrb[12].mxu0 %vm268_vm1, %v252_v40 }
  0x32   : > { %1039 = vmatprep.mubr.msk.bf16.mxu0 %vm1156_vm0, %v1155_v1 }
  0x33   : > { %1064 = vmatmul.mubr.msk.bf16.gmra.mrb[16].mxu1 %vm268_vm1, %v934_v42 }
  0x34   : > { %1095 = vmatprep.mubr.msk.bf16.mxu1 %vm1156_vm0, %v1155_v1 }
  0x39   : > { %1040 = vmatmul.mubr.msk.bf16.gmra.mrb[16].mxu0 %vm268_vm1, %v255_v49 }
  0x3a   : > { %1071 = vmatprep.mubr.msk.bf16.mxu0 %vm1156_vm0, %v1155_v1 }
  0x3b   : > { %1096 = vmatmul.mubr.msk.bf16.vlgmr.msra.gmra.mrb[20].mxu1 %vm268_vm1, %v651_v53 }
  0x3c   : > { %1099 = vmatprep.mubr.msk.bf16.mxu1 %vm1156_vm0, %v1155_v1 }
  0x41   : > { %1072 = vmatmul.mubr.msk.bf16.vlgmr.msra.gmra.mrb[20].mxu0 %vm268_vm1, %v503_v58 }
  0x42   : > { %1075 = vmatprep.mubr.msk.bf16.mxu0 %vm1156_vm0, %v1155_v1 }
  0x43   : > { %1100 = vmatmul.mubr.msk.bf16.gmra.mrb[24].mxu1 %vm268_vm1, %v653_v61 }
  0x44   : > { %1103 = vmatprep.mubr.msk.bf16.mxu1 %vm1156_vm0, %v1155_v1 }
  0x49   : > { %1076 = vmatmul.mubr.msk.bf16.gmra.mrb[24].mxu0 %vm268_vm1, %v511_v3 }
  0x4a   : > { %1079 = vmatprep.mubr.msk.bf16.mxu0 %vm1156_vm0, %v1155_v1 }
  0x4b   : > { %1104 = vmatmul.mubr.msk.bf16.gmra.mrb[28].mxu1 %vm268_vm1, %v655_v6 }
  0x4c   : > { %1107 = vmatprep.mubr.msk.bf16.mxu1 %vm1156_vm0, %v1155_v1 }
  0x51   : > { %1080 = vmatmul.mubr.msk.bf16.gmra.mrb[28].mxu0 %vm268_vm1, %v519_v11 }
  0x52   : > { %1083 = vmatprep.mubr.msk.bf16.mxu0 %vm1156_vm0, %v1155_v1 }
  0x53   : > { %1108 = vmatmul.mubr.msk.bf16.gmra.mrb[32].mxu1 %vm268_vm1, %v657_v14 }
  0x54   : > { %1111 = vmatprep.mubr.msk.bf16.mxu1 %vm1156_vm0, %v1155_v1 }
  0x59   : > { %1084 = vmatmul.mubr.msk.bf16.gmra.mrb[32].mxu0 %vm268_vm1, %v527_v17 }
  0x5a   : > { %1087 = vmatprep.mubr.msk.bf16.mxu0 %vm1156_vm0, %v1155_v1 }
  0x5b   : > { %1112 = vmatmul.mubr.msk.bf16.gmra.mrb[36].mxu1 %vm268_vm1, %v656_v10 }
  0x61   : > { %1088 = vmatmul.mubr.msk.bf16.gmra.mrb[36].mxu0 %vm268_vm1, %v530_v19 }
  0xe5   : > { %v414_v20 = vpop.f32.mrb[0].mxu1 }
  0xe6   : > { %v1049_v21 = vpop.f32.mrb[1].mxu1 }
  0xe7   : > { %v417_v22 = vpop.f32.mrb[2].mxu1 }
  0xe8   : > { %v1050_v23 = vpop.f32.mrb[3].mxu1 }
  0xec   : > { %v318_v24 = vpop.f32.mrb[0].mxu0 }
  0xed   : > { %v415_v25 = vadd.f32 %v414_v20, %v318_v24  ;;  %v1025_v26 = vpop.f32.mrb[1].mxu0 }
  0xee   : > { %v321_v27 = vpop.f32.mrb[2].mxu0  ;;  %v422_v28 = vpop.f32.mrb[4].mxu1 }
  0xef   : > { %v418_v29 = vadd.f32 %v417_v22, %v321_v27  ;;  %v1026_v30 = vpop.f32.mrb[3].mxu0  ;;  %v1053_v31 = vpop.f32.mrb[5].mxu1 }
  0xf0   : > { %v425_v32 = vpop.f32.mrb[6].mxu1 }
  0xf1   : > { %v1054_v33 = vpop.f32.mrb[7].mxu1 }
  0xf4   : > { %v326_v1 = vpop.f32.mrb[4].mxu0 }
  0xf5   : > { %v423_v34 = vadd.f32 %v422_v28, %v326_v1  ;;  %v1029_v35 = vpop.f32.mrb[5].mxu0 }
  0xf6   : > { %v329_v36 = vpop.f32.mrb[6].mxu0  ;;  %v430_v37 = vpop.f32.mrb[8].mxu1 }
  0xf7   : > { %v1310_v38 = vadd.f32 %v425_v32, %v329_v36  ;;  %v1030_v39 = vpop.f32.mrb[7].mxu0  ;;  %v1057_v40 = vpop.f32.mrb[9].mxu1 }
  0xf8   : > { %v433_v41 = vpop.f32.mrb[10].mxu1 }
  0xf9   : > { %v1058_v42 = vpop.f32.mrb[11].mxu1 }
  0xfc   : > { %v334_v43 = vpop.f32.mrb[8].mxu0 }
  0xfd   : > { %v1312_v44 = vadd.f32 %v430_v37, %v334_v43  ;;  %v1033_v45 = vpop.f32.mrb[9].mxu0 }
  0xfe   : > { %v337_v46 = vpop.f32.mrb[10].mxu0  ;;  %v438_v47 = vpop.f32.mrb[12].mxu1 }
  0xff   : > { %v1314_v48 = vadd.f32 %v433_v41, %v337_v46  ;;  %v1034_v49 = vpop.f32.mrb[11].mxu0  ;;  %v1061_v50 = vpop.f32.mrb[13].mxu1 }
 0x100   : > { %v441_v51 = vpop.f32.mrb[14].mxu1 }
 0x101   : > { %v1062_v52 = vpop.f32.mrb[15].mxu1 }
 0x104   : > { %v342_v53 = vpop.f32.mrb[12].mxu0 }
 0x105   : > { %v1316_v54 = vadd.f32 %v438_v47, %v342_v53  ;;  %v1037_v55 = vpop.f32.mrb[13].mxu0 }
 0x106   : > { %v345_v56 = vpop.f32.mrb[14].mxu0  ;;  %v446_v57 = vpop.f32.mrb[16].mxu1 }
 0x107   : > { %v1318_v58 = vadd.f32 %v441_v51, %v345_v56  ;;  %v1038_v59 = vpop.f32.mrb[15].mxu0  ;;  %v1065_v60 = vpop.f32.mrb[17].mxu1 }
 0x108   : > { %v449_v61 = vpop.f32.mrb[18].mxu1 }
 0x109   : > { %v1066_v62 = vpop.f32.mrb[19].mxu1 }
 0x10c   : > { %v350_v63 = vpop.f32.mrb[16].mxu0 }
 0x10d   : > { %v1320_v0 = vadd.f32 %v446_v57, %v350_v63  ;;  %v1041_v2 = vpop.f32.mrb[17].mxu0 }
 0x10e   : > { %v353_v3 = vpop.f32.mrb[18].mxu0  ;;  %v719_v4 = vpop.f32.mrb[20].mxu1 }
 0x10f   : > { %v1042_v5 = vpop.f32.mrb[19].mxu0  ;;  %v1097_v6 = vpop.f32.mrb[21].mxu1 }
 0x110   : > { %v722_v7 = vpop.f32.mrb[22].mxu1 }
 0x111   : > { %v1098_v8 = vpop.f32.mrb[23].mxu1 }
 0x114   : > { %v592_v9 = vpop.f32.mrb[20].mxu0 }
 0x115   : > { %v630_v10 = vadd.f32 %v592_v9, %v415_v25  ;;  %v1073_v11 = vpop.f32.mrb[21].mxu0 }
 0x116   : > { %v595_v13 = vpop.f32.mrb[22].mxu0  ;;  %v727_v14 = vpop.f32.mrb[24].mxu1 }
 0x117   : > { %v757_v15 = vadd.f32 %v719_v4, %v630_v10  ;;  %v631_v16 = vadd.f32 %v595_v13, %v418_v29  ;;  %v1074_v17 = vpop.f32.mrb[23].mxu0  ;;  %v1101_v18 = vpop.f32.mrb[25].mxu1 }
 0x118   : > { %v730_v19 = vpop.f32.mrb[26].mxu1 }
 0x119   : > { %v773_v20 = vadd.f32 %v1325_v12, %v757_v15  ;;  %v758_v21 = vadd.f32 %v722_v7, %v631_v16  ;;  %v1102_v22 = vpop.f32.mrb[27].mxu1 }
 0x11b   : > { %vm782_vm4 = vcmp.ge.f32.partialorder %v773_v20, 0.0  ;;  %v791_v23 = vmul.f32 0.01, %v773_v20  ;;  %v774_v24 = vadd.f32 %v1325_v12, %v758_v21 }
 0x11c   : > { %v600_v25 = vpop.f32.mrb[24].mxu0 }
 0x11d   : > { %v800_v26 = vsel %vm782_vm4, %v773_v20, %v791_v23  ;;  %vm783_vm6 = vcmp.ge.f32.partialorder %v774_v24, 0.0  ;;  %v792_v27 = vmul.f32 0.01, %v774_v24  ;;  %v632_v28 = vadd.f32 %v600_v25, %v423_v34  ;;  %v1077_v29 = vpop.f32.mrb[25].mxu0 }
 0x11e   : > { %v982_v30 = vpack.c.bf16 %v800_v26, %v800_v26  ;;  %v603_v31 = vpop.f32.mrb[26].mxu0  ;;  %v735_v32 = vpop.f32.mrb[28].mxu1 }
 0x11f   : > { %v801_v33 = vsel %vm783_vm6, %v774_v24, %v792_v27  ;;  %v759_v1 = vadd.f32 %v727_v14, %v632_v28  ;;  %v633_v35 = vadd.f32 %v603_v31, %v1310_v38  ;;  %v1078_v36 = vpop.f32.mrb[27].mxu0  ;;  %v1105_v37 = vpop.f32.mrb[29].mxu1 }
 0x120   : > { %847 = vst.msk [vmem:[%s1333_s14] sm:$0xf] %vm846_vm5, %v982_v30  ;;  %v983_v39 = vpack.c.bf16 %v801_v33, %v801_v33  ;;  %v738_v40 = vpop.f32.mrb[30].mxu1 }
 0x121   : > { %v775_v41 = vadd.f32 %v1325_v12, %v759_v1  ;;  %v760_v42 = vadd.f32 %v730_v19, %v633_v35  ;;  %v1106_v43 = vpop.f32.mrb[31].mxu1 }
 0x122   : > { %848 = vst.msk [vmem:[%s1333_s14 + $0x4] sm:$0xf] %vm846_vm5, %v983_v39 }
 0x123   : > { %vm784_vm7 = vcmp.ge.f32.partialorder %v775_v41, 0.0  ;;  %v793_v34 = vmul.f32 0.01, %v775_v41  ;;  %v776_v45 = vadd.f32 %v1325_v12, %v760_v42 }
 0x124   : > { %v608_v46 = vpop.f32.mrb[28].mxu0 }
 0x125   : > { %v802_v47 = vsel %vm784_vm7, %v775_v41, %v793_v34  ;;  %vm785_vm8 = vcmp.ge.f32.partialorder %v776_v45, 0.0  ;;  %v794_v38 = vmul.f32 0.01, %v776_v45  ;;  %v634_v49 = vadd.f32 %v608_v46, %v1312_v44  ;;  %v1081_v50 = vpop.f32.mrb[29].mxu0 }
 0x126   : > { %v984_v51 = vpack.c.bf16 %v802_v47, %v802_v47  ;;  %v611_v52 = vpop.f32.mrb[30].mxu0  ;;  %v743_v53 = vpop.f32.mrb[32].mxu1 }
 0x127   : > { %v803_v55 = vsel %vm785_vm8, %v776_v45, %v794_v38  ;;  %v761_v56 = vadd.f32 %v735_v32, %v634_v49  ;;  %v635_v57 = vadd.f32 %v611_v52, %v1314_v48  ;;  %v1082_v59 = vpop.f32.mrb[31].mxu0  ;;  %v1109_v60 = vpop.f32.mrb[33].mxu1 }
 0x128   : > { %849 = vst.msk [vmem:[%s1333_s14 + $0x8] sm:$0xf] %vm846_vm5, %v984_v51  ;;  %v985_v61 = vpack.c.bf16 %v803_v55, %v803_v55  ;;  %v746_v62 = vpop.f32.mrb[34].mxu1 }
 0x129   : > { %v777_v63 = vadd.f32 %v1325_v12, %v761_v56  ;;  %v762_v2 = vadd.f32 %v738_v40, %v635_v57  ;;  %v1110_v3 = vpop.f32.mrb[35].mxu1 }
 0x12a   : > { %850 = vst.msk [vmem:[%s1333_s14 + $0xc] sm:$0xf] %vm846_vm5, %v985_v61 }
 0x12b   : > { %vm786_vm9 = vcmp.ge.f32.partialorder %v777_v63, 0.0  ;;  %v795_v44 = vmul.f32 0.01, %v777_v63  ;;  %v778_v4 = vadd.f32 %v1325_v12, %v762_v2 }
 0x12c   : > { %v616_v5 = vpop.f32.mrb[32].mxu0 }
 0x12d   : > { %v804_v6 = vsel %vm786_vm9, %v777_v63, %v795_v44  ;;  %vm787_vm10 = vcmp.ge.f32.partialorder %v778_v4, 0.0  ;;  %v796_v48 = vmul.f32 0.01, %v778_v4  ;;  %v636_v7 = vadd.f32 %v616_v5, %v1316_v54  ;;  %v1085_v8 = vpop.f32.mrb[33].mxu0 }
 0x12e   : > { %v986_v9 = vpack.c.bf16 %v804_v6, %v804_v6  ;;  %v619_v10 = vpop.f32.mrb[34].mxu0  ;;  %v751_v11 = vpop.f32.mrb[36].mxu1 }
 0x12f   : > { %v805_v13 = vsel %vm787_vm10, %v778_v4, %v796_v48  ;;  %v763_v14 = vadd.f32 %v743_v53, %v636_v7  ;;  %v637_v15 = vadd.f32 %v619_v10, %v1318_v58  ;;  %v1086_v16 = vpop.f32.mrb[35].mxu0  ;;  %v1113_v17 = vpop.f32.mrb[37].mxu1 }
 0x130   : > { %851 = vst.msk [vmem:[%s1333_s14 + $0x10] sm:$0xf] %vm846_vm5, %v986_v9  ;;  %v987_v18 = vpack.c.bf16 %v805_v13, %v805_v13  ;;  %v754_v19 = vpop.f32.mrb[38].mxu1 }
 0x131   : > { %v779_v20 = vadd.f32 %v1325_v12, %v763_v14  ;;  %v764_v21 = vadd.f32 %v746_v62, %v637_v15  ;;  %v1114_v22 = vpop.f32.mrb[39].mxu1 }
 0x132   : > { %852 = vst.msk [vmem:[%s1333_s14 + $0x14] sm:$0xf] %vm846_vm5, %v987_v18 }
 0x133   : > { %vm788_vm11 = vcmp.ge.f32.partialorder %v779_v20, 0.0  ;;  %v797_v54 = vmul.f32 0.01, %v779_v20  ;;  %v780_v23 = vadd.f32 %v1325_v12, %v764_v21 }
 0x134   : > { %v624_v24 = vpop.f32.mrb[36].mxu0 }
 0x135   : > { %v806_v58 = vsel %vm788_vm11, %v779_v20, %v797_v54  ;;  %vm789_vm12 = vcmp.ge.f32.partialorder %v780_v23, 0.0  ;;  %v798_v25 = vmul.f32 0.01, %v780_v23  ;;  %v638_v26 = vadd.f32 %v624_v24, %v1320_v0  ;;  %v1089_v27 = vpop.f32.mrb[37].mxu0 }
 0x136   : > { %v988_v28 = vpack.c.bf16 %v806_v58, %v806_v58  ;;  %v627_v29 = vpop.f32.mrb[38].mxu0 }
 0x137   : > { %v807_v30 = vsel %vm789_vm12, %v780_v23, %v798_v25  ;;  %v765_v31 = vadd.f32 %v751_v11, %v638_v26  ;;  %v1090_v32 = vpop.f32.mrb[39].mxu0 }
 0x138   : > { %853 = vst.msk [vmem:[%s1333_s14 + $0x18] sm:$0xf] %vm846_vm5, %v988_v28  ;;  %v989_v33 = vpack.c.bf16 %v807_v30, %v807_v30 }
 0x139   : > { %v781_v1 = vadd.f32 %v1325_v12, %v765_v31 }
 0x13a   : > { %854 = vst.msk [vmem:[%s1333_s14 + $0x1c] sm:$0xf] %vm846_vm5, %v989_v33 }
 0x13b   : > { %vm790_vm13 = vcmp.ge.f32.partialorder %v781_v1, 0.0  ;;  %v799_v35 = vmul.f32 0.01, %v781_v1 }
 0x13d   : > { %v808_v36 = vsel %vm790_vm13, %v781_v1, %v799_v35 }
 0x13e   : > { %v990_v37 = vpack.c.bf16 %v808_v36, %v808_v36 }
 0x140   : > { %855 = vst.msk [vmem:[%s1333_s14 + $0x20] sm:$0xf] %vm846_vm5, %v990_v37 }
 0x141 PF: > { %s13_s12 = sadd.s32 1, %s1153_s12  }
 0x142   : > { %p10_p4 = scmp.ge.s32.totalorder %s13_s12, 4  }
 0x144   :  { %12 = sbr.rel (!%p10_p4) target bundleno = 1 (0x1), region = 65 }

// kernel: vae_encoder_forward.9
= control target key start
LH: loop header
LB: loop body
LE: loop exit
PB: predicated region body
PF: predicated region fallthrough
CT: control target
= control target key end

     0   :  { %s2131_s12 = smov 0   ;;  %s2573_s0 = inlined_call_operand.vmem [shape: bf16[2,110,16], index: 0, kind: input, shape index: {}]   ;;  %s2574_s1 = inlined_call_operand.vmem [shape: bf16[9,16,16], index: 1, kind: input, shape index: {}]   ;;  %s2575_s2 = inlined_call_operand.vmem [shape: f32[1,16], index: 2, kind: input, shape index: {}]   ;;  %s2576_s3 = inlined_call_operand.vmem [shape: bf16[2,80,16], index: 3, kind: output, shape index: {}]  }
   0x1 LB: > { %s1675_s13 = sadd.s32 4294967295, %s2107_s12   ;;  %p1679_p0 = scmp.ge.s32.totalorder %s2107_s12, 1  ;;  %s2107_s12 = sphi %s2131_s12, %s13_s12  }
   0x2   : > { %p137_p1 = scmp.lt.s32.totalorder %s2107_s12, 3 }
   0x4   : > { %p138_p2 = pnand %p1679_p0, %p137_p1 }
   0x5   : > { %v2064_v0 = vld [vmem:[%s2574_s1 + $0x8] sm:$0xff] (!%p138_p2)   ;;  %v2109_v1 = vmov (!%p138_p2), 0.0   ;;  %p161_p3 = scmp.lt.s32.totalorder (!%p138_p2), %s1675_s13, 1  ;;  %vm2110_vm0 = vmmov (!%p138_p2), 0   ;;  %vm216_vm1 = vsmask.f32 (!%p138_p2), 7424 }
   0x6   : > { %141 = sbr.rel (%p138_p2) target bundleno = 429 (0x1ad), region = 32  ;;  %1852 = vmatprep.subr.bf16.mxu0 (!%p138_p2), %v2109_v1  ;;  %2050 = vmatprep.subr.bf16.mxu1 (!%p138_p2), %v2109_v1  ;;  %vm267_vm2 = vcmask (!%p138_p2), 130048   ;;  %v2069_v20 = vld [vmem:[%s2574_s1 + $0x10] sm:$0xff] (!%p138_p2)   ;;  %v2070_v26 = vld [vmem:[%s2574_s1] sm:$0xff] (!%p138_p2)   ;;  %vm452_vm3 = vcmask (!%p138_p2), 1046528   ;;  %v2073_v46 = vld [vmem:[%s2574_s1 + $0x18] sm:$0xff] (!%p138_p2)  }
   0x7   : > { %1853 = vmatpush3.bf16.msra.mxu0 (!%p138_p2), %v2064_v0  ;;  %2051 = vmatpush3.bf16.msra.mxu1 (!%p138_p2), %v2064_v0  ;;  %v2075_v50 = vld [vmem:[%s2574_s1 + $0x20] sm:$0xff] (!%p138_p2)   ;;  %vm732_vm4 = vsmask.f32 (!%p138_p2), 6400  ;;  %vm897_vm5 = vcmask (!%p138_p2), 1045504   ;;  %vm1177_vm6 = vsmask.f32 (!%p138_p2), 5376 }
   0x8   : > { %1854 = vmatprep.mubr.msk.bf16.mxu0 (!%p138_p2), %vm2110_vm0, %v2109_v1  ;;  %1866 = vmatprep.mubr.msk.bf16.mxu1 (!%p138_p2), %vm2110_vm0, %v2109_v1  ;;  %vm1342_vm7 = vcmask (!%p138_p2), 1044480   ;;  %vm1609_vm10 = vcmask (!%p138_p2), 125952  }
   0x9   : > { %1896 = vmatprep.subr.bf16.mxu0 (!%p138_p2), %v2109_v1  ;;  %1874 = vmatprep.subr.bf16.mxu1 (!%p138_p2), %v2109_v1 }
   0xd   : > { %s2578_s13 = smov (!%p161_p3, %s1675_s13), 1 }
   0xe   : > { %s2052_s16 = smul.u32 56, %s2578_s13 }
   0xf   : > { %s2053_s11 = smul.u32 40, %s2578_s13 }
  0x10   : > { %s2156_s19 = scalar_lea.vmem %s2573_s0, %s2052_s16 }
  0x11   : > { %v172_v2 = vld [vmem:[%s2156_s19] sm:$0xf]  ;;  %v173_v3 = vld [vmem:[%s2156_s19 + $0x4] sm:$0xf]  ;;  %v2161_v5 = vld [vmem:[%s2156_s19 + $0x8] sm:$0xff]   ;;  %s2521_s13 = scalar_lea.vmem %s2576_s3, %s2053_s11 }
  0x12   : > { %v1684_v4 = vcombine.low %v172_v2, %v173_v3  ;;  %v225_v8 = vshll.u32 %v2161_v5, 16  ;;  %v2165_v9 = vld [vmem:[%s2156_s19 + $0x18] sm:$0xff]   ;;  %v2168_v10 = vld [vmem:[%s2156_s19 + $0x20] sm:$0xff]   ;;  %v2171_v11 = vld [vmem:[%s2156_s19 + $0x10] sm:$0xff]   ;;  %v229_v21 = vshrl.u32 %v2161_v5, 16  ;;  %v454_v48 = vrot.slane %v2161_v5, 1 }
  0x13   : > { %v241_v14 = vshll.u32 %v2165_v9, 16  ;;  %v245_v15 = vshrl.u32 %v2165_v9, 16  ;;  %v249_v16 = vshll.u32 %v2168_v10, 16  ;;  %v2177_v17 = vld [vmem:[%s2156_s19 + $0x28] ss:$0 sps:$4 sm:$0x11]  }
  0x14   : > { %v218_v6 = vshrl.u32 %v1684_v4, 16  ;;  %v220_v7 = vshll.u32 %v1684_v4, 16  ;;  %v227_v13 = vrot.slane %v225_v8, 1  ;;  %v233_v22 = vshll.u32 %v2171_v11, 16  ;;  %v2199_v34 = vld [vmem:[%s2156_s19 + $0x24] sm:$0xff]   ;;  %v2269_v58 = vld [vmem:[%s2156_s19 + $0xc] sm:$0xff]  }
  0x15   : > { %v243_v19 = vrot.slane %v241_v14, 1  ;;  %v251_v23 = vrot.slane %v249_v16, 1  ;;  %v253_v27 = vshrl.u32 %v2168_v10, 16  ;;  %v257_v28 = vshll.u32 %v2177_v17, 16  ;;  %v445_v40 = vld [vmem:[%s2156_s19] sm:$0xe] }
  0x16   : > { %v222_v12 = vrot.slane %v220_v7, 1  ;;  %v231_v30 = vor.u32 %v229_v21, %v227_v13  ;;  %v235_v31 = vrot.slane %v233_v22, 1  ;;  %v237_v36 = vshrl.u32 %v2171_v11, 16  ;;  %v2083_v37 = vld [vmem:[%s2156_s19 + $0x2c] ss:$0 sps:$4 sm:$0x11]  }
  0x17   : > { %v247_v25 = vor.u32 %v245_v15, %v243_v19  ;;  %v255_v32 = vor.u32 %v253_v27, %v251_v23  ;;  %v259_v33 = vrot.slane %v257_v28, 1  ;;  %v617_v41 = vrot.slane %v2199_v34, 1  ;;  %v2263_v56 = vld [vmem:[%s2156_s19 + $0x4] sm:$0xe]  ;;  %v2266_v57 = vld [vmem:[%s2156_s19 + $0x8] sm:$0xf] }
  0x18   : > { %v223_v18 = vor.u32 %v222_v12, %v218_v6  ;;  %v236_v35 = vsel %vm216_vm1, %v231_v30, %v235_v31  ;;  %v239_v39 = vor.u32 %v237_v36, %v235_v31  ;;  %v619_v42 = vrot.slane %v2083_v37, 1  ;;  %v2287_v6 = vld [vmem:[%s2156_s19 + $0x14] sm:$0xff]   ;;  %v2330_v36 = vld [vmem:[%s2156_s19 + $0x2c] sm:$0x3] }
  0x19   : > { %v252_v29 = vsel %vm216_vm1, %v247_v25, %v251_v23  ;;  %v260_v38 = vsel %vm216_vm1, %v255_v32, %v259_v33  ;;  %v1704_v45 = vcombine.low %v445_v40, %v173_v3  ;;  %v456_v51 = vrot.slane %v2171_v11, 1 }
  0x1a   : > { %v228_v24 = vsel %vm216_vm1, %v223_v18, %v227_v13  ;;  %1867 = vmatmul.mubr.msk.bf16.vlgmr.msra.gmra.mrb[0].mxu1 %vm267_vm2, %v252_v29  ;;  %v2217_v43 = vsel %vm452_vm3, %v617_v41, %v619_v42  ;;  %v244_v44 = vsel %vm216_vm1, %v239_v39, %v243_v19  ;;  %v458_v53 = vrot.slane %v2165_v9, 1  ;;  %v2303_v18 = vld [vmem:[%s2156_s19 + $0x1c] sm:$0xff]  }
  0x1b   : > { %1855 = vmatmul.mubr.msk.bf16.vlgmr.msra.gmra.mrb[0].mxu0 %vm267_vm2, %v228_v24  ;;  %1875 = vmatpush3.bf16.msra.mxu1 %v2070_v26  ;;  %v453_v47 = vrot.slane %v1704_v45, 1  ;;  %v457_v52 = vsel %vm452_vm3, %v454_v48, %v456_v51  ;;  %v460_v55 = vrot.slane %v2168_v10, 1  ;;  %v1713_v60 = vcombine.low %v2263_v56, %v2266_v57 }
  0x1c   : > { %1897 = vmatpush3.bf16.msra.mxu0 %v2069_v20  ;;  %1858 = vmatprep.mubr.msk.bf16.mxu0 %vm2110_vm0, %v2109_v1  ;;  %v459_v54 = vsel %vm452_vm3, %v456_v51, %v458_v53  ;;  %v462_v61 = vrot.slane %v2177_v17, 1  ;;  %v742_v0 = vshrl.u32 %v2269_v58, 16  ;;  %v745_v2 = vshll.u32 %v2269_v58, 16  ;;  %v2080_v20 = vld [vmem:[%s2574_s1 + $0x30] sm:$0xff]  }
  0x1d   : > { %1940 = vmatprep.subr.bf16.mxu0 %v2109_v1  ;;  %1870 = vmatprep.mubr.msk.bf16.mxu1 %vm2110_vm0, %v2109_v1  ;;  %v455_v49 = vsel %vm452_vm3, %v453_v47, %v454_v48  ;;  %v461_v59 = vsel %vm452_vm3, %v458_v53, %v460_v55  ;;  %v734_v62 = vshrl.u32 %v1713_v60, 16  ;;  %v737_v63 = vshll.u32 %v1713_v60, 16  ;;  %v890_v47 = vld [vmem:[%s2156_s19 + $0x4] sm:$0xc]  ;;  %v2360_v53 = vld [vmem:[%s2156_s19 + $0xc] sm:$0xf] }
  0x1e   : > { %1918 = vmatprep.subr.bf16.mxu1 %v2109_v1  ;;  %v610_v3 = vrot.slane %v1713_v60, 1  ;;  %v751_v15 = vshrl.u32 %v2287_v6, 16  ;;  %v754_v16 = vshll.u32 %v2287_v6, 16  ;;  %v613_v17 = vrot.slane %v2287_v6, 1 }
  0x1f   : > { %v736_v7 = vrot.slane %v734_v62, 1  ;;  %v739_v8 = vrot.slane %v737_v63, 2  ;;  %v760_v25 = vshrl.u32 %v2303_v18, 16  ;;  %v763_v26 = vshll.u32 %v2303_v18, 16 }
  0x20   : > { %v753_v21 = vrot.slane %v751_v15, 1  ;;  %v756_v22 = vrot.slane %v754_v16, 2  ;;  %v615_v27 = vrot.slane %v2303_v18, 1  ;;  %v769_v33 = vshrl.u32 %v2199_v34, 16  ;;  %v2413_v16 = vld [vmem:[%s2156_s19 + $0x28] sm:$0xff]  }
  0x21   : > { %v740_v13 = vor.u32 %v739_v8, %v736_v7  ;;  %v762_v29 = vrot.slane %v760_v25, 1  ;;  %v765_v30 = vrot.slane %v763_v26, 2  ;;  %v2337_v40 = vcombine.low %v2330_v36, %v2330_v36  ;;  %v2093_v25 = vld [vmem:[%s2156_s19 + $0x30] ss:$0 sps:$4 sm:$0x33]  }
  0x22   : > { %1871 = vmatmul.mubr.msk.bf16.gmra.mrb[4].mxu1 %vm267_vm2, %v260_v38  ;;  %v757_v24 = vor.u32 %v756_v22, %v753_v21  ;;  %v616_v31 = vsel %vm452_vm3, %v613_v17, %v615_v27  ;;  %v771_v38 = vrot.slane %v769_v33, 1  ;;  %v618_v42 = vsel %vm452_vm3, %v615_v27, %v617_v41 }
  0x23   : > { %1859 = vmatmul.mubr.msk.bf16.gmra.mrb[4].mxu0 %vm267_vm2, %v236_v35  ;;  %1876 = vmatprep.mubr.msk.bf16.mxu1 %vm2110_vm0, %v2109_v1  ;;  %v766_v32 = vor.u32 %v765_v30, %v762_v29  ;;  %v772_v35 = vshll.u32 %v2199_v34, 16  ;;  %v778_v45 = vshrl.u32 %v2337_v40, 16 }
  0x24   : > { %1862 = vmatprep.mubr.msk.bf16.mxu0 %vm2110_vm0, %v2109_v1 }
  0x25   : > { %v767_v37 = vsel %vm732_vm4, %v757_v24, %v766_v32  ;;  %v774_v39 = vrot.slane %v772_v35, 2  ;;  %v780_v48 = vrot.slane %v778_v45, 1 }
  0x2a   : > { %1877 = vmatmul.mubr.msk.bf16.vlgmr.msra.gmra.mrb[8].mxu1 %vm267_vm2, %v1684_v4  ;;  %v611_v4 = vrot.slane %v2269_v58, 1 }
  0x2b   : > { %1863 = vmatmul.mubr.msk.bf16.gmra.mrb[8].mxu0 %vm267_vm2, %v244_v44  ;;  %1919 = vmatpush3.bf16.msra.mxu1 %v2073_v46  ;;  %v775_v44 = vor.u32 %v774_v39, %v771_v38  ;;  %v781_v46 = vshll.u32 %v2337_v40, 16 }
  0x2c   : > { %1898 = vmatprep.mubr.msk.bf16.mxu0 %vm2110_vm0, %v2109_v1  ;;  %1880 = vmatprep.mubr.msk.bf16.mxu1 %vm2110_vm0, %v2109_v1  ;;  %v612_v12 = vsel %vm452_vm3, %v610_v3, %v611_v4  ;;  %v614_v23 = vsel %vm452_vm3, %v611_v4, %v613_v17  ;;  %v2089_v4 = vld [vmem:[%s2574_s1 + $0x40] sm:$0xff]  }
  0x2d   : > { %1962 = vmatprep.subr.bf16.mxu1 %v2109_v1  ;;  %v776_v41 = vsel %vm732_vm4, %v766_v32, %v775_v44  ;;  %v1335_v32 = vld [vmem:[%s2156_s19 + $0x8] sm:$0x8] }
  0x32   : > { %1881 = vmatmul.mubr.msk.bf16.gmra.mrb[12].mxu1 %vm267_vm2, %v2161_v5  ;;  %v463_v5 = vsel %vm452_vm3, %v460_v55, %v462_v61  ;;  %v899_v55 = vrot.slane %v2269_v58, 2  ;;  %v2368_v61 = vld [vmem:[%s2156_s19 + $0x10] sm:$0xff]  }
  0x33   : > { %1899 = vmatmul.mubr.msk.bf16.vlgmr.msra.gmra.mrb[12].mxu0 %vm267_vm2, %v455_v49  ;;  %1884 = vmatprep.mubr.msk.bf16.mxu1 %vm2110_vm0, %v2109_v1  ;;  %v783_v49 = vrot.slane %v781_v46, 2  ;;  %v1187_v22 = vshrl.u32 %v2368_v61, 16 }
  0x34   : > { %1941 = vmatpush3.bf16.msra.mxu0 %v2075_v50  ;;  %1902 = vmatprep.mubr.msk.bf16.mxu0 %vm2110_vm0, %v2109_v1  ;;  %v1736_v50 = vcombine.low %v890_v47, %v2266_v57  ;;  %v1344_v47 = vrot.slane %v2368_v61, 3 }
  0x35   : > { %1984 = vmatprep.subr.bf16.mxu0 %v2109_v1  ;;  %v784_v51 = vor.u32 %v783_v49, %v780_v48  ;;  %v1189_v29 = vrot.slane %v1187_v22, 2 }
  0x3a   : > { %1885 = vmatmul.mubr.msk.bf16.gmra.mrb[16].mxu1 %vm267_vm2, %v2171_v11  ;;  %v747_v11 = vrot.slane %v745_v2, 2  ;;  %v901_v2 = vrot.slane %v2287_v6, 2 }
  0x3b   : > { %1903 = vmatmul.mubr.msk.bf16.gmra.mrb[16].mxu0 %vm267_vm2, %v457_v52  ;;  %1888 = vmatprep.mubr.msk.bf16.mxu1 %vm2110_vm0, %v2109_v1  ;;  %v1013_v52 = vld [vmem:[%s2156_s19 + $0x8] sm:$0xc] }
  0x3c   : > { %1906 = vmatprep.mubr.msk.bf16.mxu0 %vm2110_vm0, %v2109_v1  ;;  %v1745_v60 = vcombine.low %v1013_v52, %v2360_v53  ;;  %v902_v7 = vsel %vm897_vm5, %v899_v55, %v901_v2 }
  0x3e   : > { %v1055_v63 = vrot.slane %v1745_v60, 2  ;;  %v1182_v21 = vshll.u32 %v1745_v60, 16 }
  0x42   : > { %1889 = vmatmul.mubr.msk.bf16.gmra.mrb[20].mxu1 %vm267_vm2, %v2165_v9  ;;  %v744_v9 = vrot.slane %v742_v0, 1  ;;  %v1056_v0 = vrot.slane %v2368_v61, 2 }
  0x43   : > { %1907 = vmatmul.mubr.msk.bf16.gmra.mrb[20].mxu0 %vm267_vm2, %v459_v54  ;;  %1892 = vmatprep.mubr.msk.bf16.mxu1 %vm2110_vm0, %v2109_v1  ;;  %v898_v54 = vrot.slane %v1736_v50, 2 }
  0x44   : > { %1910 = vmatprep.mubr.msk.bf16.mxu0 %vm2110_vm0, %v2109_v1  ;;  %v748_v14 = vor.u32 %v747_v11, %v744_v9  ;;  %v1057_v3 = vsel %vm897_vm5, %v1055_v63, %v1056_v0  ;;  %v903_v9 = vrot.slane %v2303_v18, 2 }
  0x45   : > { %v900_v62 = vsel %vm897_vm5, %v898_v54, %v899_v55 }
  0x46   : > { %v749_v19 = vsel %vm732_vm4, %v740_v13, %v748_v14  ;;  %v758_v28 = vsel %vm732_vm4, %v748_v14, %v757_v24  ;;  %v905_v14 = vrot.slane %v2199_v34, 2  ;;  %v1179_v34 = vshrl.u32 %v1745_v60, 16 }
  0x47   : > { %v1217_v60 = vshll.u32 %v2413_v16, 16 }
  0x48   : > { %v906_v17 = vsel %vm897_vm5, %v903_v9, %v905_v14  ;;  %v1181_v27 = vrot.slane %v1179_v34, 2 }
  0x49   : > { %v1219_v63 = vrot.slane %v1217_v60, 3 }
  0x4a   : > { %1893 = vmatmul.mubr.msk.bf16.gmra.mrb[24].mxu1 %vm267_vm2, %v2168_v10  ;;  %v2078_v10 = vld [vmem:[%s2574_s1 + $0x28] sm:$0xff]  }
  0x4b   : > { %1911 = vmatmul.mubr.msk.bf16.gmra.mrb[24].mxu0 %vm267_vm2, %v461_v59  ;;  %1920 = vmatprep.mubr.msk.bf16.mxu1 %vm2110_vm0, %v2109_v1  ;;  %v785_v59 = vsel %vm732_vm4, %v775_v44, %v784_v51 }
  0x4c   : > { %1914 = vmatprep.mubr.msk.bf16.mxu0 %vm2110_vm0, %v2109_v1 }
  0x52   : > { %1921 = vmatmul.mubr.msk.bf16.vlgmr.msra.gmra.mrb[28].mxu1 %vm267_vm2, %v612_v12  ;;  %v2400_v12 = vld [vmem:[%s2156_s19 + $0x20] sm:$0xff]  }
  0x53   : > { %1915 = vmatmul.mubr.msk.bf16.gmra.mrb[28].mxu0 %vm267_vm2, %v463_v5  ;;  %1963 = vmatpush3.bf16.msra.mxu1 %v2078_v10  ;;  %v2387_v5 = vld [vmem:[%s2156_s19 + $0x18] sm:$0xff]   ;;  %v904_v10 = vsel %vm897_vm5, %v901_v2, %v903_v9  ;;  %v1060_v13 = vrot.slane %v2400_v12, 2  ;;  %v1205_v48 = vshrl.u32 %v2400_v12, 16  ;;  %v1208_v49 = vshll.u32 %v2400_v12, 16 }
  0x54   : > { %1942 = vmatprep.mubr.msk.bf16.mxu0 %vm2110_vm0, %v2109_v1  ;;  %1924 = vmatprep.mubr.msk.bf16.mxu1 %vm2110_vm0, %v2109_v1  ;;  %v1058_v8 = vrot.slane %v2387_v5, 2  ;;  %v1199_v38 = vshll.u32 %v2387_v5, 16  ;;  %v1346_v54 = vrot.slane %v2387_v5, 3  ;;  %v1348_v2 = vrot.slane %v2400_v12, 3 }
  0x55   : > { %2006 = vmatprep.subr.bf16.mxu1 %v2109_v1  ;;  %v1207_v52 = vrot.slane %v1205_v48, 2  ;;  %v1350_v12 = vrot.slane %v2413_v16, 3 }
  0x56   : > { %v1059_v11 = vsel %vm897_vm5, %v1056_v0, %v1058_v8  ;;  %v1061_v15 = vsel %vm897_vm5, %v1058_v8, %v1060_v13  ;;  %v1201_v45 = vrot.slane %v1199_v38, 3  ;;  %v2095_v0 = vld [vmem:[%s2156_s19 + $0x30] ss:$0 sps:$4 sm:$0x77]  }
  0x5a   : > { %1925 = vmatmul.mubr.msk.bf16.gmra.mrb[32].mxu1 %vm267_vm2, %v614_v23  ;;  %v1190_v23 = vshll.u32 %v2368_v61, 16  ;;  %v1347_v61 = vsel %vm1342_vm7, %v1344_v47, %v1346_v54 }
  0x5b   : > { %1943 = vmatmul.mubr.msk.bf16.vlgmr.msra.gmra.mrb[32].mxu0 %vm267_vm2, %v749_v19  ;;  %1928 = vmatprep.mubr.msk.bf16.mxu1 %vm2110_vm0, %v2109_v1  ;;  %v1062_v19 = vrot.slane %v2413_v16, 2 }
  0x5c   : > { %1985 = vmatpush3.bf16.msra.mxu0 %v2080_v20  ;;  %1946 = vmatprep.mubr.msk.bf16.mxu0 %vm2110_vm0, %v2109_v1  ;;  %v907_v20 = vrot.slane %v2337_v40, 2  ;;  %v1192_v30 = vrot.slane %v1190_v23, 3  ;;  %v1768_v40 = vcombine.low %v1335_v32, %v2360_v53  ;;  %v1210_v53 = vrot.slane %v1208_v49, 3 }
  0x5d   : > { %2028 = vmatprep.subr.bf16.mxu0 %v2109_v1  ;;  %v1063_v24 = vsel %vm897_vm5, %v1060_v13, %v1062_v19  ;;  %v1351_v13 = vsel %vm1342_vm7, %v1348_v2, %v1350_v12 }
  0x5e   : > { %v908_v26 = vsel %vm897_vm5, %v905_v14, %v907_v20  ;;  %v1193_v35 = vor.u32 %v1192_v30, %v1189_v29  ;;  %v1343_v46 = vrot.slane %v1768_v40, 3  ;;  %v1211_v55 = vor.u32 %v1210_v53, %v1207_v52 }
  0x60   : > { %v1345_v50 = vsel %vm1342_vm7, %v1343_v46, %v1344_v47 }
  0x62   : > { %1929 = vmatmul.mubr.msk.bf16.gmra.mrb[36].mxu1 %vm267_vm2, %v616_v31  ;;  %v1064_v31 = vrot.slane %v2093_v25, 2 }
  0x63   : > { %1947 = vmatmul.mubr.msk.bf16.gmra.mrb[36].mxu0 %vm267_vm2, %v758_v28  ;;  %1932 = vmatprep.mubr.msk.bf16.mxu1 %vm2110_vm0, %v2109_v1  ;;  %v1184_v28 = vrot.slane %v1182_v21, 3 }
  0x64   : > { %1950 = vmatprep.mubr.msk.bf16.mxu0 %vm2110_vm0, %v2109_v1  ;;  %v1065_v39 = vsel %vm897_vm5, %v1062_v19, %v1064_v31 }
  0x65   : > { %v1185_v33 = vor.u32 %v1184_v28, %v1181_v27 }
  0x6a   : > { %1933 = vmatmul.mubr.msk.bf16.gmra.mrb[40].mxu1 %vm267_vm2, %v618_v42  ;;  %v1194_v42 = vsel %vm1177_vm6, %v1185_v33, %v1193_v35 }
  0x6b   : > { %1951 = vmatmul.mubr.msk.bf16.gmra.mrb[40].mxu0 %vm267_vm2, %v767_v37  ;;  %1936 = vmatprep.mubr.msk.bf16.mxu1 %vm2110_vm0, %v2109_v1  ;;  %v1196_v37 = vshrl.u32 %v2387_v5, 16  ;;  %v1226_v5 = vshll.u32 %v2095_v0, 16 }
  0x6c   : > { %1954 = vmatprep.mubr.msk.bf16.mxu0 %vm2110_vm0, %v2109_v1 }
  0x6d   : > { %v1198_v44 = vrot.slane %v1196_v37, 2 }
  0x72   : > { %1937 = vmatmul.mubr.msk.bf16.gmra.mrb[44].mxu1 %vm267_vm2, %v2217_v43  ;;  %v2086_v43 = vld [vmem:[%s2574_s1 + $0x38] sm:$0xff]  }
  0x73   : > { %1955 = vmatmul.mubr.msk.bf16.gmra.mrb[44].mxu0 %vm267_vm2, %v776_v41  ;;  %1964 = vmatprep.mubr.msk.bf16.mxu1 %vm2110_vm0, %v2109_v1  ;;  %v1202_v41 = vor.u32 %v1201_v45, %v1198_v44 }
  0x74   : > { %1958 = vmatprep.mubr.msk.bf16.mxu0 %vm2110_vm0, %v2109_v1 }
  0x75   : > { %v1203_v51 = vsel %vm1177_vm6, %v1193_v35, %v1202_v41 }
  0x7a   : > { %1965 = vmatmul.mubr.msk.bf16.vlgmr.msra.gmra.mrb[48].mxu1 %vm267_vm2, %v900_v62  ;;  %v1212_v62 = vsel %vm1177_vm6, %v1202_v41, %v1211_v55 }
  0x7b   : > { %1959 = vmatmul.mubr.msk.bf16.gmra.mrb[48].mxu0 %vm267_vm2, %v785_v59  ;;  %2007 = vmatpush3.bf16.msra.mxu1 %v2086_v43  ;;  %v1214_v59 = vshrl.u32 %v2413_v16, 16 }
  0x7c   : > { %1986 = vmatprep.mubr.msk.bf16.mxu0 %vm2110_vm0, %v2109_v1  ;;  %1968 = vmatprep.mubr.msk.bf16.mxu1 %vm2110_vm0, %v2109_v1 }
  0x7d   : > { %v1216_v43 = vrot.slane %v1214_v59, 2 }
  0x82   : > { %1969 = vmatmul.mubr.msk.bf16.gmra.mrb[52].mxu1 %vm267_vm2, %v902_v7  ;;  %v1349_v7 = vsel %vm1342_vm7, %v1346_v54, %v1348_v2 }
  0x83   : > { %1987 = vmatmul.mubr.msk.bf16.vlgmr.msra.gmra.mrb[52].mxu0 %vm267_vm2, %v1057_v3  ;;  %1972 = vmatprep.mubr.msk.bf16.mxu1 %vm2110_vm0, %v2109_v1  ;;  %v1220_v3 = vor.u32 %v1219_v63, %v1216_v43 }
  0x84   : > { %2029 = vmatpush3.bf16.msra.mxu0 %v2089_v4  ;;  %1990 = vmatprep.mubr.msk.bf16.mxu0 %vm2110_vm0, %v2109_v1  ;;  %v1223_v4 = vshrl.u32 %v2095_v0, 16 }
  0x85   : > { %v1221_v8 = vsel %vm1177_vm6, %v1211_v55, %v1220_v3 }
  0x86   : > { %v1225_v9 = vrot.slane %v1223_v4, 2 }
  0x8a   : > { %1973 = vmatmul.mubr.msk.bf16.gmra.mrb[56].mxu1 %vm267_vm2, %v904_v10 }
  0x8b   : > { %1991 = vmatmul.mubr.msk.bf16.gmra.mrb[56].mxu0 %vm267_vm2, %v1059_v11  ;;  %1976 = vmatprep.mubr.msk.bf16.mxu1 %vm2110_vm0, %v2109_v1  ;;  %v1228_v11 = vrot.slane %v1226_v5, 3 }
  0x8c   : > { %1994 = vmatprep.mubr.msk.bf16.mxu0 %vm2110_vm0, %v2109_v1 }
  0x8d   : > { %v1229_v10 = vor.u32 %v1228_v11, %v1225_v9 }
  0x8f   : > { %v1230_v14 = vsel %vm1177_vm6, %v1220_v3, %v1229_v10 }
  0x92   : > { %1977 = vmatmul.mubr.msk.bf16.gmra.mrb[60].mxu1 %vm267_vm2, %v906_v17 }
  0x93   : > { %1995 = vmatmul.mubr.msk.bf16.gmra.mrb[60].mxu0 %vm267_vm2, %v1061_v15  ;;  %1980 = vmatprep.mubr.msk.bf16.mxu1 %vm2110_vm0, %v2109_v1  ;;  %v1352_v15 = vrot.slane %v2095_v0, 3 }
  0x94   : > { %1998 = vmatprep.mubr.msk.bf16.mxu0 %vm2110_vm0, %v2109_v1 }
  0x95   : > { %v1353_v16 = vsel %vm1342_vm7, %v1350_v12, %v1352_v15 }
  0x9a   : > { %1981 = vmatmul.mubr.msk.bf16.gmra.mrb[64].mxu1 %vm267_vm2, %v908_v26 }
  0x9b   : > { %1999 = vmatmul.mubr.msk.bf16.gmra.mrb[64].mxu0 %vm267_vm2, %v1063_v24  ;;  %2008 = vmatprep.mubr.msk.bf16.mxu1 %vm2110_vm0, %v2109_v1 }
  0x9c   : > { %2002 = vmatprep.mubr.msk.bf16.mxu0 %vm2110_vm0, %v2109_v1 }
  0xa2   : > { %2009 = vmatmul.mubr.msk.bf16.vlgmr.msra.gmra.mrb[68].mxu1 %vm267_vm2, %v1194_v42 }
  0xa3   : > { %2003 = vmatmul.mubr.msk.bf16.gmra.mrb[68].mxu0 %vm267_vm2, %v1065_v39  ;;  %2012 = vmatprep.mubr.msk.bf16.mxu1 %vm2110_vm0, %v2109_v1 }
  0xa4   : > { %2030 = vmatprep.mubr.msk.bf16.mxu0 %vm2110_vm0, %v2109_v1 }
  0xaa   : > { %2013 = vmatmul.mubr.msk.bf16.gmra.mrb[72].mxu1 %vm267_vm2, %v1203_v51 }
  0xab   : > { %2031 = vmatmul.mubr.msk.bf16.vlgmr.msra.gmra.mrb[72].mxu0 %vm267_vm2, %v1345_v50  ;;  %2016 = vmatprep.mubr.msk.bf16.mxu1 %vm2110_vm0, %v2109_v1 }
  0xac   : > { %2034 = vmatprep.mubr.msk.bf16.mxu0 %vm2110_vm0, %v2109_v1 }
  0xb2   : > { %2017 = vmatmul.mubr.msk.bf16.gmra.mrb[76].mxu1 %vm267_vm2, %v1212_v62 }
  0xb3   : > { %2035 = vmatmul.mubr.msk.bf16.gmra.mrb[76].mxu0 %vm267_vm2, %v1347_v61  ;;  %2020 = vmatprep.mubr.msk.bf16.mxu1 %vm2110_vm0, %v2109_v1 }
  0xb4   : > { %2038 = vmatprep.mubr.msk.bf16.mxu0 %vm2110_vm0, %v2109_v1 }
  0xba   : > { %2021 = vmatmul.mubr.msk.bf16.gmra.mrb[80].mxu1 %vm267_vm2, %v1221_v8 }
  0xbb   : > { %2039 = vmatmul.mubr.msk.bf16.gmra.mrb[80].mxu0 %vm267_vm2, %v1349_v7  ;;  %2024 = vmatprep.mubr.msk.bf16.mxu1 %vm2110_vm0, %v2109_v1 }
  0xbc   : > { %2042 = vmatprep.mubr.msk.bf16.mxu0 %vm2110_vm0, %v2109_v1 }
  0xc2   : > { %2025 = vmatmul.mubr.msk.bf16.gmra.mrb[84].mxu1 %vm267_vm2, %v1230_v14 }
  0xc3   : > { %2043 = vmatmul.mubr.msk.bf16.gmra.mrb[84].mxu0 %vm267_vm2, %v1351_v13 }
  0xc4   : > { %2046 = vmatprep.mubr.msk.bf16.mxu0 %vm2110_vm0, %v2109_v1 }
  0xcb   : > { %2047 = vmatmul.mubr.msk.bf16.gmra.mrb[88].mxu0 %vm267_vm2, %v1353_v16 }
  0xed   : > { %v341_v34 = vpop.f32.mrb[0].mxu1 }
  0xee   : > { %v317_v17 = vpop.f32.mrb[0].mxu0  ;;  %v1868_v22 = vpop.f32.mrb[1].mxu1 }
  0xef   : > { %v1856_v19 = vpop.f32.mrb[1].mxu0  ;;  %v344_v23 = vpop.f32.mrb[2].mxu1 }
  0xf0   : > { %v320_v20 = vpop.f32.mrb[2].mxu0  ;;  %v1869_v24 = vpop.f32.mrb[3].mxu1 }
  0xf1   : > { %v1857_v21 = vpop.f32.mrb[3].mxu0 }
  0xf5   : > { %v349_v28 = vpop.f32.mrb[4].mxu1 }
  0xf6   : > { %v325_v25 = vpop.f32.mrb[4].mxu0  ;;  %v1872_v29 = vpop.f32.mrb[5].mxu1 }
  0xf7   : > { %v1860_v26 = vpop.f32.mrb[5].mxu0  ;;  %v352_v30 = vpop.f32.mrb[6].mxu1 }
  0xf8   : > { %v328_v27 = vpop.f32.mrb[6].mxu0  ;;  %v1873_v31 = vpop.f32.mrb[7].mxu1 }
  0xf9   : > { %v1861_v1 = vpop.f32.mrb[7].mxu0 }
  0xfd   : > { %v406_v35 = vpop.f32.mrb[8].mxu1 }
  0xfe   : > { %v333_v32 = vpop.f32.mrb[8].mxu0  ;;  %v407_v38 = vadd.f32 %v406_v35, %v317_v17  ;;  %v1878_v39 = vpop.f32.mrb[9].mxu1 }
  0xff   : > { %v1864_v33 = vpop.f32.mrb[9].mxu0  ;;  %v409_v42 = vpop.f32.mrb[10].mxu1 }
 0x100   : > { %v336_v37 = vpop.f32.mrb[10].mxu0  ;;  %v410_v44 = vadd.f32 %v409_v42, %v320_v20  ;;  %v1879_v45 = vpop.f32.mrb[11].mxu1 }
 0x101   : > { %v1865_v40 = vpop.f32.mrb[11].mxu0 }
 0x105   : > { %v414_v48 = vpop.f32.mrb[12].mxu1 }
 0x106   : > { %v519_v46 = vpop.f32.mrb[12].mxu0  ;;  %v415_v50 = vadd.f32 %v414_v48, %v325_v25  ;;  %v1882_v51 = vpop.f32.mrb[13].mxu1 }
 0x107   : > { %v558_v47 = vadd.f32 %v519_v46, %v407_v38  ;;  %v1900_v41 = vpop.f32.mrb[13].mxu0  ;;  %v417_v54 = vpop.f32.mrb[14].mxu1 }
 0x108   : > { %v522_v49 = vpop.f32.mrb[14].mxu0  ;;  %v418_v55 = vadd.f32 %v417_v54, %v328_v27  ;;  %v1883_v59 = vpop.f32.mrb[15].mxu1 }
 0x109   : > { %v559_v52 = vadd.f32 %v522_v49, %v410_v44  ;;  %v1901_v53 = vpop.f32.mrb[15].mxu0 }
 0x10d   : > { %v422_v43 = vpop.f32.mrb[16].mxu1 }
 0x10e   : > { %v527_v60 = vpop.f32.mrb[16].mxu0  ;;  %v423_v0 = vadd.f32 %v422_v43, %v333_v32  ;;  %v1886_v2 = vpop.f32.mrb[17].mxu1 }
 0x10f   : > { %v560_v61 = vadd.f32 %v527_v60, %v415_v50  ;;  %v1904_v62 = vpop.f32.mrb[17].mxu0  ;;  %v425_v5 = vpop.f32.mrb[18].mxu1 }
 0x110   : > { %v530_v63 = vpop.f32.mrb[18].mxu0  ;;  %v426_v7 = vadd.f32 %v425_v5, %v336_v37  ;;  %v1887_v8 = vpop.f32.mrb[19].mxu1 }
 0x111   : > { %v561_v3 = vadd.f32 %v530_v63, %v418_v55  ;;  %v1905_v4 = vpop.f32.mrb[19].mxu0 }
 0x115   : > { %v430_v10 = vpop.f32.mrb[20].mxu1 }
 0x116   : > { %v535_v9 = vpop.f32.mrb[20].mxu0  ;;  %v431_v14 = vadd.f32 %v430_v10, %v341_v34  ;;  %v1890_v15 = vpop.f32.mrb[21].mxu1 }
 0x117   : > { %v562_v11 = vadd.f32 %v535_v9, %v423_v0  ;;  %v1908_v12 = vpop.f32.mrb[21].mxu0  ;;  %v433_v19 = vpop.f32.mrb[22].mxu1 }
 0x118   : > { %v538_v13 = vpop.f32.mrb[22].mxu0  ;;  %v434_v20 = vadd.f32 %v433_v19, %v344_v23  ;;  %v1891_v21 = vpop.f32.mrb[23].mxu1 }
 0x119   : > { %v563_v16 = vadd.f32 %v538_v13, %v426_v7  ;;  %v1909_v17 = vpop.f32.mrb[23].mxu0 }
 0x11d   : > { %v438_v26 = vpop.f32.mrb[24].mxu1 }
 0x11e   : > { %v543_v22 = vpop.f32.mrb[24].mxu0  ;;  %v439_v1 = vadd.f32 %v438_v26, %v349_v28  ;;  %v1894_v29 = vpop.f32.mrb[25].mxu1 }
 0x11f   : > { %v564_v24 = vadd.f32 %v543_v22, %v431_v14  ;;  %v1912_v25 = vpop.f32.mrb[25].mxu0  ;;  %v441_v33 = vpop.f32.mrb[26].mxu1 }
 0x120   : > { %v546_v27 = vpop.f32.mrb[26].mxu0  ;;  %v442_v35 = vadd.f32 %v441_v33, %v352_v30  ;;  %v1895_v37 = vpop.f32.mrb[27].mxu1 }
 0x121   : > { %v565_v31 = vadd.f32 %v546_v27, %v434_v20  ;;  %v1913_v32 = vpop.f32.mrb[27].mxu0 }
 0x125   : > { %v676_v40 = vpop.f32.mrb[28].mxu1 }
 0x126   : > { %v551_v38 = vpop.f32.mrb[28].mxu0  ;;  %v715_v44 = vadd.f32 %v676_v40, %v558_v47  ;;  %v1922_v23 = vpop.f32.mrb[29].mxu1 }
 0x127   : > { %v566_v34 = vadd.f32 %v551_v38, %v439_v1  ;;  %v1916_v39 = vpop.f32.mrb[29].mxu0  ;;  %v679_v41 = vpop.f32.mrb[30].mxu1 }
 0x128   : > { %v554_v42 = vpop.f32.mrb[30].mxu0  ;;  %v716_v48 = vadd.f32 %v679_v41, %v559_v52  ;;  %v1923_v49 = vpop.f32.mrb[31].mxu1 }
 0x129   : > { %v567_v45 = vadd.f32 %v554_v42, %v442_v35  ;;  %v1917_v46 = vpop.f32.mrb[31].mxu0 }
 0x12d   : > { %v684_v53 = vpop.f32.mrb[32].mxu1 }
 0x12e   : > { %v841_v50 = vpop.f32.mrb[32].mxu0  ;;  %v717_v55 = vadd.f32 %v684_v53, %v560_v61  ;;  %v1926_v30 = vpop.f32.mrb[33].mxu1 }
 0x12f   : > { %v880_v28 = vadd.f32 %v841_v50, %v715_v44  ;;  %v1944_v51 = vpop.f32.mrb[33].mxu0  ;;  %v687_v62 = vpop.f32.mrb[34].mxu1 }
 0x130   : > { %v844_v54 = vpop.f32.mrb[34].mxu0  ;;  %v718_v43 = vadd.f32 %v687_v62, %v561_v3  ;;  %v1927_v63 = vpop.f32.mrb[35].mxu1 }
 0x131   : > { %v881_v59 = vadd.f32 %v844_v54, %v716_v48  ;;  %v1945_v60 = vpop.f32.mrb[35].mxu0 }
 0x135   : > { %v692_v4 = vpop.f32.mrb[36].mxu1 }
 0x136   : > { %v849_v0 = vpop.f32.mrb[36].mxu0  ;;  %v719_v7 = vadd.f32 %v692_v4, %v562_v11  ;;  %v1930_v52 = vpop.f32.mrb[37].mxu1 }
 0x137   : > { %v882_v47 = vadd.f32 %v849_v0, %v717_v55  ;;  %v1948_v2 = vpop.f32.mrb[37].mxu0  ;;  %v695_v12 = vpop.f32.mrb[38].mxu1 }
 0x138   : > { %v852_v5 = vpop.f32.mrb[38].mxu0  ;;  %v720_v10 = vadd.f32 %v695_v12, %v563_v16  ;;  %v1931_v13 = vpop.f32.mrb[39].mxu1 }
 0x139   : > { %v883_v8 = vadd.f32 %v852_v5, %v718_v43  ;;  %v1949_v9 = vpop.f32.mrb[39].mxu0 }
 0x13d   : > { %v700_v17 = vpop.f32.mrb[40].mxu1 }
 0x13e   : > { %v857_v14 = vpop.f32.mrb[40].mxu0  ;;  %v721_v20 = vadd.f32 %v700_v17, %v564_v24  ;;  %v1934_v3 = vpop.f32.mrb[41].mxu1 }
 0x13f   : > { %v884_v61 = vadd.f32 %v857_v14, %v719_v7  ;;  %v1952_v15 = vpop.f32.mrb[41].mxu0  ;;  %v703_v25 = vpop.f32.mrb[42].mxu1 }
 0x140   : > { %v860_v19 = vpop.f32.mrb[42].mxu0  ;;  %v722_v26 = vadd.f32 %v703_v25, %v565_v31  ;;  %v1935_v27 = vpop.f32.mrb[43].mxu1 }
 0x141   : > { %v885_v21 = vadd.f32 %v860_v19, %v720_v10  ;;  %v1953_v22 = vpop.f32.mrb[43].mxu0 }
 0x145   : > { %v708_v32 = vpop.f32.mrb[44].mxu1 }
 0x146   : > { %v865_v1 = vpop.f32.mrb[44].mxu0  ;;  %v723_v35 = vadd.f32 %v708_v32, %v566_v34  ;;  %v1938_v16 = vpop.f32.mrb[45].mxu1 }
 0x147   : > { %v886_v11 = vadd.f32 %v865_v1, %v721_v20  ;;  %v1956_v29 = vpop.f32.mrb[45].mxu0  ;;  %v711_v39 = vpop.f32.mrb[46].mxu1 }
 0x148   : > { %v868_v33 = vpop.f32.mrb[46].mxu0  ;;  %v724_v40 = vadd.f32 %v711_v39, %v567_v45  ;;  %v1939_v42 = vpop.f32.mrb[47].mxu1 }
 0x149   : > { %v887_v37 = vadd.f32 %v868_v33, %v722_v26  ;;  %v1957_v38 = vpop.f32.mrb[47].mxu0 }
 0x14d   : > { %v964_v46 = vpop.f32.mrb[48].mxu1 }
 0x14e   : > { %v873_v44 = vpop.f32.mrb[48].mxu0  ;;  %v1003_v48 = vadd.f32 %v964_v46, %v880_v28  ;;  %v1966_v31 = vpop.f32.mrb[49].mxu1 }
 0x14f   : > { %v888_v24 = vadd.f32 %v873_v44, %v723_v35  ;;  %v1960_v23 = vpop.f32.mrb[49].mxu0  ;;  %v967_v51 = vpop.f32.mrb[50].mxu1 }
 0x150   : > { %v876_v41 = vpop.f32.mrb[50].mxu0  ;;  %v1004_v53 = vadd.f32 %v967_v51, %v881_v59  ;;  %v1967_v54 = vpop.f32.mrb[51].mxu1 }
 0x151   : > { %v889_v49 = vadd.f32 %v876_v41, %v724_v40  ;;  %v1961_v50 = vpop.f32.mrb[51].mxu0 }
 0x155   : > { %v972_v60 = vpop.f32.mrb[52].mxu1 }
 0x156   : > { %v1121_v55 = vpop.f32.mrb[52].mxu0  ;;  %v1005_v43 = vadd.f32 %v972_v60, %v882_v47  ;;  %v1970_v45 = vpop.f32.mrb[53].mxu1  ;;  %v1506_v60 = vunpack.c.l.bf16 %v2266_v57 }
 0x157   : > { %v1160_v34 = vadd.f32 %v1121_v55, %v1003_v48  ;;  %v1988_v30 = vpop.f32.mrb[53].mxu0  ;;  %v975_v2 = vpop.f32.mrb[54].mxu1 }
 0x158   : > { %v1124_v62 = vpop.f32.mrb[54].mxu0  ;;  %v1006_v4 = vadd.f32 %v975_v2, %v883_v8  ;;  %v1971_v5 = vpop.f32.mrb[55].mxu1  ;;  %v1529_v2 = vrot.slane %v1506_v60, 3  ;;  %v1511_v60 = vunpack.c.l.bf16 %v2303_v18 }
 0x159   : > { %v1161_v63 = vadd.f32 %v1124_v62, %v1004_v53  ;;  %v1989_v0 = vpop.f32.mrb[55].mxu0 }
 0x15a   : > { %v2508_v0 = vld [vmem:[%s2575_s2] ss:$0 sm:$0xff] }
 0x15d   : > { %v980_v9 = vpop.f32.mrb[56].mxu1 }
 0x15e   : > { %v1129_v7 = vpop.f32.mrb[56].mxu0  ;;  %v1007_v10 = vadd.f32 %v980_v9, %v884_v61  ;;  %v1974_v59 = vpop.f32.mrb[57].mxu1 }
 0x15f   : > { %v1162_v28 = vadd.f32 %v1129_v7, %v1005_v43  ;;  %v1992_v52 = vpop.f32.mrb[57].mxu0  ;;  %v983_v15 = vpop.f32.mrb[58].mxu1 }
 0x160   : > { %v1132_v12 = vpop.f32.mrb[58].mxu0  ;;  %v1008_v17 = vadd.f32 %v983_v15, %v885_v21  ;;  %v1975_v19 = vpop.f32.mrb[59].mxu1  ;;  %v1508_v15 = vunpack.c.h.bf16 %v2269_v58 }
 0x161   : > { %v2488_v13 = vadd.f32 %v1132_v12, %v1006_v4  ;;  %v1993_v14 = vpop.f32.mrb[59].mxu0 }
 0x165   : > { %v988_v22 = vpop.f32.mrb[60].mxu1 }
 0x166   : > { %v1137_v47 = vpop.f32.mrb[60].mxu0  ;;  %v1009_v25 = vadd.f32 %v988_v22, %v886_v11  ;;  %v1978_v26 = vpop.f32.mrb[61].mxu1 }
 0x167   : > { %v2490_v20 = vadd.f32 %v1137_v47, %v1007_v10  ;;  %v1996_v3 = vpop.f32.mrb[61].mxu0  ;;  %v991_v29 = vpop.f32.mrb[62].mxu1 }
 0x168   : > { %v1140_v8 = vpop.f32.mrb[62].mxu0  ;;  %v1010_v61 = vadd.f32 %v991_v29, %v887_v37  ;;  %v1979_v32 = vpop.f32.mrb[63].mxu1  ;;  %v1533_v29 = vrot.slane %v1508_v15, 3 }
 0x169   : > { %v2492_v27 = vadd.f32 %v1140_v8, %v1008_v17  ;;  %v1997_v1 = vpop.f32.mrb[63].mxu0 }
 0x16d   : > { %v996_v21 = vpop.f32.mrb[64].mxu1 }
 0x16e   : > { %v1145_v33 = vpop.f32.mrb[64].mxu0  ;;  %v1011_v39 = vadd.f32 %v996_v21, %v888_v24  ;;  %v1982_v40 = vpop.f32.mrb[65].mxu1  ;;  %v1505_v24 = vunpack.c.l.bf16 %v2263_v56 }
 0x16f   : > { %v2494_v35 = vadd.f32 %v1145_v33, %v1009_v25  ;;  %v2000_v16 = vpop.f32.mrb[65].mxu0  ;;  %v999_v23 = vpop.f32.mrb[66].mxu1 }
 0x170   : > { %v1148_v38 = vpop.f32.mrb[66].mxu0  ;;  %v1012_v11 = vadd.f32 %v999_v23, %v889_v49  ;;  %v1983_v46 = vpop.f32.mrb[67].mxu1  ;;  %v1507_v49 = vunpack.c.l.bf16 %v2269_v58 }
 0x171   : > { %v2496_v42 = vadd.f32 %v1148_v38, %v1010_v61  ;;  %v2001_v44 = vpop.f32.mrb[67].mxu0 }
 0x172   : > { %v1531_v12 = vrot.slane %v1507_v49, 3 }
 0x174   : > { %v1532_v25 = vsel %vm1342_vm7, %v1529_v2, %v1531_v12 }
 0x175   : > { %v1286_v37 = vpop.f32.mrb[68].mxu1 }
 0x176   : > { %v1153_v41 = vpop.f32.mrb[68].mxu0  ;;  %v1325_v51 = vadd.f32 %v1286_v37, %v1160_v34  ;;  %v2010_v53 = vpop.f32.mrb[69].mxu1  ;;  %v1528_v34 = vrot.slane %v1505_v24, 3  ;;  %v1510_v37 = vunpack.c.h.bf16 %v2287_v6 }
 0x177   : > { %v2498_v48 = vadd.f32 %v1153_v41, %v1011_v39  ;;  %v2004_v31 = vpop.f32.mrb[69].mxu0  ;;  %v1289_v30 = vpop.f32.mrb[70].mxu1  ;;  %v1534_v41 = vsel %vm1342_vm7, %v1531_v12, %v1533_v29 }
 0x178   : > { %v1156_v50 = vpop.f32.mrb[70].mxu0  ;;  %v1326_v62 = vadd.f32 %v1289_v30, %v1161_v63  ;;  %v2011_v43 = vpop.f32.mrb[71].mxu1  ;;  %v1530_v59 = vsel %vm1342_vm7, %v1528_v34, %v1529_v2 }
 0x179   : > { %v2500_v54 = vadd.f32 %v1156_v50, %v1012_v11  ;;  %v2005_v55 = vpop.f32.mrb[71].mxu0 }
 0x17d   : > { %v1294_v7 = vpop.f32.mrb[72].mxu1 }
 0x17e   : > { %v1409_v45 = vpop.f32.mrb[72].mxu0  ;;  %v1327_v56 = vadd.f32 %v1294_v7, %v1162_v28  ;;  %v2014_v63 = vpop.f32.mrb[73].mxu1  ;;  %v1509_v28 = vunpack.c.l.bf16 %v2287_v6  ;;  %v1537_v6 = vrot.slane %v1510_v37, 3 }
 0x17f   : > { %v1448_v4 = vadd.f32 %v1409_v45, %v1325_v51  ;;  %v2032_v5 = vpop.f32.mrb[73].mxu0  ;;  %v1297_v14 = vpop.f32.mrb[74].mxu1  ;;  %v1539_v63 = vrot.slane %v1511_v60, 3 }
 0x180   : > { %v1412_v52 = vpop.f32.mrb[74].mxu0  ;;  %v1328_v19 = vadd.f32 %v1297_v14, %v2488_v13  ;;  %v2015_v3 = vpop.f32.mrb[75].mxu1  ;;  %v1535_v38 = vrot.slane %v1509_v28, 3  ;;  %v1512_v14 = vunpack.c.h.bf16 %v2303_v18 }
 0x181   : > { %v1465_v57 = vadd.f32 %v2508_v0, %v1448_v4  ;;  %v1449_v9 = vadd.f32 %v1412_v52, %v1326_v62  ;;  %v2033_v10 = vpop.f32.mrb[75].mxu0 }
 0x182   : > { %v1536_v55 = vsel %vm1342_vm7, %v1533_v29, %v1535_v38  ;;  %v1538_v10 = vsel %vm1342_vm7, %v1535_v38, %v1537_v6  ;;  %v1541_v18 = vrot.slane %v1512_v14, 3 }
 0x183   : > { %vm1475_vm8 = vcmp.ge.f32.partialorder %v1465_v57, 0.0  ;;  %v1485_v17 = vmul.f32 0.01, %v1465_v57  ;;  %v1466_v47 = vadd.f32 %v2508_v0, %v1449_v9 }
 0x185   : > { %v1495_v22 = vsel %vm1475_vm8, %v1465_v57, %v1485_v17  ;;  %vm1476_vm9 = vcmp.ge.f32.partialorder %v1466_v47, 0.0  ;;  %v1486_v8 = vmul.f32 0.01, %v1466_v47  ;;  %v1302_v16 = vpop.f32.mrb[76].mxu1 }
 0x186   : > { %v1559_v26 = vadd.f32 %v1530_v59, %v1495_v22  ;;  %v1417_v1 = vpop.f32.mrb[76].mxu0  ;;  %v1329_v39 = vadd.f32 %v1302_v16, %v2490_v20  ;;  %v2018_v44 = vpop.f32.mrb[77].mxu1 }
 0x187   : > { %v1496_v58 = vsel %vm1476_vm9, %v1466_v47, %v1486_v8  ;;  %v1450_v13 = vadd.f32 %v1417_v1, %v1327_v56  ;;  %v2036_v61 = vpop.f32.mrb[77].mxu0  ;;  %v1305_v31 = vpop.f32.mrb[78].mxu1  ;;  %v2100_v47 = vld [vmem:[%s2156_s19 + $0x24] sm:$0xff]   ;;  %v1540_v8 = vsel %vm1342_vm7, %v1537_v6, %v1539_v63 }
 0x188   : > { %v1788_v32 = vpack.c.bf16 %v1559_v26, %v1559_v26  ;;  %v1560_v33 = vadd.f32 %v1532_v25, %v1496_v58  ;;  %v1420_v21 = vpop.f32.mrb[78].mxu0  ;;  %v1330_v51 = vadd.f32 %v1305_v31, %v2492_v27  ;;  %v2019_v20 = vpop.f32.mrb[79].mxu1  ;;  %v1513_v3 = vunpack.c.l.bf16 %v2100_v47 }
 0x189   : > { %v1467_v40 = vadd.f32 %v2508_v0, %v1450_v13  ;;  %v1451_v23 = vadd.f32 %v1420_v21, %v1328_v19  ;;  %v2037_v11 = vpop.f32.mrb[79].mxu0  ;;  %v1515_v20 = vunpack.c.l.bf16 %v2330_v36 }
 0x18a   : > { %1610 = vst.msk [vmem:[%s2521_s13] sm:$0xf] %vm1609_vm10, %v1788_v32  ;;  %v1789_v46 = vpack.c.bf16 %v1560_v33, %v1560_v33  ;;  %v1543_v33 = vrot.slane %v1513_v3, 3 }
 0x18b   : > { %vm1477_vm11 = vcmp.ge.f32.partialorder %v1467_v40, 0.0  ;;  %v1487_v50 = vmul.f32 0.01, %v1467_v40  ;;  %v1468_v53 = vadd.f32 %v2508_v0, %v1451_v23  ;;  %v1542_v23 = vsel %vm1342_vm7, %v1539_v63, %v1541_v18 }
 0x18c   : > { %1611 = vst.msk [vmem:[%s2521_s13 + $0x4] sm:$0xf] %vm1609_vm10, %v1789_v46  ;;  %v1514_v46 = vunpack.c.h.bf16 %v2100_v47 }
 0x18d   : > { %v1497_v30 = vsel %vm1477_vm11, %v1467_v40, %v1487_v50  ;;  %vm1478_vm12 = vcmp.ge.f32.partialorder %v1468_v53, 0.0  ;;  %v1488_v24 = vmul.f32 0.01, %v1468_v53  ;;  %v1310_v4 = vpop.f32.mrb[80].mxu1 }
 0x18e   : > { %v1561_v62 = vadd.f32 %v1534_v41, %v1497_v30  ;;  %v1425_v43 = vpop.f32.mrb[80].mxu0  ;;  %v1331_v7 = vadd.f32 %v1310_v4, %v2494_v35  ;;  %v2022_v56 = vpop.f32.mrb[81].mxu1 }
 0x18f   : > { %v1498_v49 = vsel %vm1478_vm12, %v1468_v53, %v1488_v24  ;;  %v1452_v45 = vadd.f32 %v1425_v43, %v1329_v39  ;;  %v2040_v34 = vpop.f32.mrb[81].mxu0  ;;  %v1313_v59 = vpop.f32.mrb[82].mxu1 }
 0x190   : > { %v1790_v27 = vpack.c.bf16 %v1561_v62, %v1561_v62  ;;  %v1562_v2 = vadd.f32 %v1536_v55, %v1498_v49  ;;  %v1428_v5 = vpop.f32.mrb[82].mxu0  ;;  %v1332_v35 = vadd.f32 %v1313_v59, %v2496_v42  ;;  %v2023_v19 = vpop.f32.mrb[83].mxu1  ;;  %v1545_v62 = vrot.slane %v1514_v46, 3 }
 0x191   : > { %v1469_v52 = vadd.f32 %v2508_v0, %v1452_v45  ;;  %v1453_v57 = vadd.f32 %v1428_v5, %v1330_v51  ;;  %v2041_v9 = vpop.f32.mrb[83].mxu0 }
 0x192   : > { %1612 = vst.msk [vmem:[%s2521_s13 + $0x8] sm:$0xf] %vm1609_vm10, %v1790_v27  ;;  %v1791_v12 = vpack.c.bf16 %v1562_v2, %v1562_v2  ;;  %v1547_v27 = vrot.slane %v1515_v20, 3  ;;  %v1546_v5 = vsel %vm1342_vm7, %v1543_v33, %v1545_v62 }
 0x193   : > { %vm1479_vm13 = vcmp.ge.f32.partialorder %v1469_v52, 0.0  ;;  %v1489_v15 = vmul.f32 0.01, %v1469_v52  ;;  %v1470_v17 = vadd.f32 %v2508_v0, %v1453_v57 }
 0x194   : > { %1613 = vst.msk [vmem:[%s2521_s13 + $0xc] sm:$0xf] %vm1609_vm10, %v1791_v12  ;;  %v1548_v57 = vsel %vm1342_vm7, %v1545_v62, %v1547_v27 }
 0x195   : > { %v1499_v28 = vsel %vm1479_vm13, %v1469_v52, %v1489_v15  ;;  %vm1480_vm14 = vcmp.ge.f32.partialorder %v1470_v17, 0.0  ;;  %v1490_v22 = vmul.f32 0.01, %v1470_v17  ;;  %v1318_v61 = vpop.f32.mrb[84].mxu1 }
 0x196   : > { %v1563_v25 = vadd.f32 %v1538_v10, %v1499_v28  ;;  %v1433_v26 = vpop.f32.mrb[84].mxu0  ;;  %v1333_v16 = vadd.f32 %v1318_v61, %v2498_v48  ;;  %v2026_v38 = vpop.f32.mrb[85].mxu1  ;;  %v1544_v48 = vsel %vm1342_vm7, %v1541_v18, %v1543_v33 }
 0x197   : > { %v1500_v1 = vsel %vm1480_vm14, %v1470_v17, %v1490_v22  ;;  %v1454_v29 = vadd.f32 %v1433_v26, %v1331_v7  ;;  %v2044_v58 = vpop.f32.mrb[85].mxu0  ;;  %v1321_v11 = vpop.f32.mrb[86].mxu1 }
 0x198   : > { %v1792_v42 = vpack.c.bf16 %v1563_v25, %v1563_v25  ;;  %v1564_v13 = vadd.f32 %v1540_v8, %v1500_v1  ;;  %v1436_v32 = vpop.f32.mrb[86].mxu0  ;;  %v1334_v31 = vadd.f32 %v1321_v11, %v2500_v54  ;;  %v2027_v50 = vpop.f32.mrb[87].mxu1 }
 0x199   : > { %v1471_v21 = vadd.f32 %v2508_v0, %v1454_v29  ;;  %v1455_v39 = vadd.f32 %v1436_v32, %v1332_v35  ;;  %v2045_v40 = vpop.f32.mrb[87].mxu0 }
 0x19a   : > { %1614 = vst.msk [vmem:[%s2521_s13 + $0x10] sm:$0xf] %vm1609_vm10, %v1792_v42  ;;  %v1793_v44 = vpack.c.bf16 %v1564_v13, %v1564_v13 }
 0x19b   : > { %vm1481_vm15 = vcmp.ge.f32.partialorder %v1471_v21, 0.0  ;;  %v1491_v41 = vmul.f32 0.01, %v1471_v21  ;;  %v1472_v37 = vadd.f32 %v2508_v0, %v1455_v39 }
 0x19c   : > { %1615 = vst.msk [vmem:[%s2521_s13 + $0x14] sm:$0xf] %vm1609_vm10, %v1793_v44 }
 0x19d   : > { %v1501_v51 = vsel %vm1481_vm15, %v1471_v21, %v1491_v41  ;;  %vm1482_vm0 = vcmp.ge.f32.partialorder %v1472_v37, 0.0  ;;  %v1492_v53 = vmul.f32 0.01, %v1472_v37 }
 0x19e   : > { %v1565_v55 = vadd.f32 %v1542_v23, %v1501_v51  ;;  %v1441_v30 = vpop.f32.mrb[88].mxu0 }
 0x19f   : > { %v1502_v24 = vsel %vm1482_vm0, %v1472_v37, %v1492_v53  ;;  %v1456_v60 = vadd.f32 %v1441_v30, %v1333_v16  ;;  %v2048_v54 = vpop.f32.mrb[89].mxu0 }
 0x1a0   : > { %v1794_v43 = vpack.c.bf16 %v1565_v55, %v1565_v55  ;;  %v1566_v6 = vadd.f32 %v1544_v48, %v1502_v24  ;;  %v1444_v49 = vpop.f32.mrb[90].mxu0 }
 0x1a1   : > { %v1473_v45 = vadd.f32 %v2508_v0, %v1456_v60  ;;  %v1457_v34 = vadd.f32 %v1444_v49, %v1334_v31  ;;  %v2049_v2 = vpop.f32.mrb[91].mxu0 }
 0x1a2   : > { %1616 = vst.msk [vmem:[%s2521_s13 + $0x18] sm:$0xf] %vm1609_vm10, %v1794_v43  ;;  %v1795_v4 = vpack.c.bf16 %v1566_v6, %v1566_v6 }
 0x1a3   : > { %vm1483_vm1 = vcmp.ge.f32.partialorder %v1473_v45, 0.0  ;;  %v1493_v36 = vmul.f32 0.01, %v1473_v45  ;;  %v1474_v7 = vadd.f32 %v2508_v0, %v1457_v34 }
 0x1a4   : > { %1617 = vst.msk [vmem:[%s2521_s13 + $0x1c] sm:$0xf] %vm1609_vm10, %v1795_v4 }
 0x1a5   : > { %v1503_v52 = vsel %vm1483_vm1, %v1473_v45, %v1493_v36  ;;  %vm1484_vm2 = vcmp.ge.f32.partialorder %v1474_v7, 0.0  ;;  %v1494_v56 = vmul.f32 0.01, %v1474_v7 }
 0x1a6   : > { %v1567_v63 = vadd.f32 %v1546_v5, %v1503_v52 }
 0x1a7   : > { %v1504_v9 = vsel %vm1484_vm2, %v1474_v7, %v1494_v56 }
 0x1a8   : > { %v1796_v12 = vpack.c.bf16 %v1567_v63, %v1567_v63  ;;  %v1568_v10 = vadd.f32 %v1548_v57, %v1504_v9 }
 0x1aa   : > { %1618 = vst.msk [vmem:[%s2521_s13 + $0x20] sm:$0xf] %vm1609_vm10, %v1796_v12  ;;  %v1797_v59 = vpack.c.bf16 %v1568_v10, %v1568_v10 }
 0x1ac   : > { %1619 = vst.msk [vmem:[%s2521_s13 + $0x24] sm:$0xf] %vm1609_vm10, %v1797_v59 }
 0x1ad PF: > { %s13_s12 = sadd.s32 1, %s2107_s12  }
 0x1ae   : > { %p10_p4 = scmp.ge.s32.totalorder %s13_s12, 4  }
 0x1b0   :  { %12 = sbr.rel (!%p10_p4) target bundleno = 1 (0x1), region = 70 }

// kernel: vae_encoder_forward.10
= control target key start
LH: loop header
LB: loop body
LE: loop exit
PB: predicated region body
PF: predicated region fallthrough
CT: control target
= control target key end

     0   :  { %s891_s12 = smov 0   ;;  %s982_s0 = inlined_call_operand.vmem [shape: bf16[2,30,64], index: 0, kind: input, shape index: {}]   ;;  %s983_s1 = inlined_call_operand.vmem [shape: bf16[4,64,32], index: 1, kind: input, shape index: {}]   ;;  %s984_s2 = inlined_call_operand.vmem [shape: f32[1,32], index: 2, kind: input, shape index: {}]   ;;  %s985_s3 = inlined_call_operand.vmem [shape: bf16[2,20,32], index: 3, kind: output, shape index: {}]  }
   0x1 LB: > { %s688_s13 = sadd.s32 4294967295, %s869_s12   ;;  %p692_p0 = scmp.ge.s32.totalorder %s869_s12, 1  ;;  %s869_s12 = sphi %s891_s12, %s13_s12  }
   0x2   : > { %p137_p1 = scmp.lt.s32.totalorder %s869_s12, 3 }
   0x4   : > { %p138_p2 = pnand %p692_p0, %p137_p1 }
   0x5   : > { %v841_v0 = vld [vmem:[%s983_s1 + $0x20] sm:$0xff] (!%p138_p2)   ;;  %p161_p3 = scmp.lt.s32.totalorder (!%p138_p2), %s688_s13, 1  ;;  %v843_v2 = vld [vmem:[%s983_s1 + $0x28] sm:$0xff] (!%p138_p2)   ;;  %v845_v4 = vld [vmem:[%s983_s1 + $0x30] sm:$0xff] (!%p138_p2)   ;;  %vm241_vm0 = vcmask (!%p138_p2), 523264   ;;  %vm511_vm2 = vcmask (!%p138_p2), 1044480  }
   0x6   : > { %141 = sbr.rel (%p138_p2) target bundleno = 268 (0x10c), region = 32  ;;  %v842_v1 = vld [vmem:[%s983_s1] sm:$0xff] (!%p138_p2)   ;;  %784 = vmatprep.subr.bf16.mxu0 (!%p138_p2), %v841_v0  ;;  %v844_v3 = vld [vmem:[%s983_s1 + $0x8] sm:$0xff] (!%p138_p2)   ;;  %v846_v5 = vld [vmem:[%s983_s1 + $0x10] sm:$0xff] (!%p138_p2)   ;;  %vm201_vm1 = vsmask.f32 (!%p138_p2), 7424 }
   0x7   : > { %796 = vmatprep.subr.bf16.mxu1 (!%p138_p2), %v842_v1  ;;  %785 = vmatpush3.bf16.msra.mxu0 (!%p138_p2), %v841_v0  ;;  %v847_v6 = vld [vmem:[%s983_s1 + $0x38] sm:$0xff] (!%p138_p2)   ;;  %v852_v10 = vld [vmem:[%s983_s1 + $0x40] sm:$0xff] (!%p138_p2)   ;;  %v854_v21 = vld [vmem:[%s983_s1 + $0x48] sm:$0xff] (!%p138_p2)   ;;  %vm399_vm3 = vsmask.f32 (!%p138_p2), 5376  ;;  %vm631_vm6 = vcmask (!%p138_p2), 254976  }
   0x8   : > { %797 = vmatpush3.bf16.msra.mxu1 (!%p138_p2), %v842_v1  ;;  %786 = vmatprep.subr.bf16.mxu0 (!%p138_p2), %v843_v2  ;;  %v848_v7 = vld [vmem:[%s983_s1 + $0x18] sm:$0xff] (!%p138_p2)   ;;  %v853_v18 = vld [vmem:[%s983_s1 + $0x60] sm:$0xff] (!%p138_p2)   ;;  %v855_v23 = vld [vmem:[%s983_s1 + $0x68] sm:$0xff] (!%p138_p2)   ;;  %vm628_vm7 = vcmask (!%p138_p2), 257024  }
   0x9   : > { %798 = vmatprep.subr.bf16.mxu1 (!%p138_p2), %v844_v3  ;;  %v856_v28 = vld [vmem:[%s983_s1 + $0x50] sm:$0xff] (!%p138_p2)   ;;  %v858_v41 = vld [vmem:[%s983_s1 + $0x58] sm:$0xff] (!%p138_p2)   ;;  %v750_v0 = vld [vmem:[%s984_s2] ss:$0 sm:$0xff] (!%p138_p2) }
   0xa   : > { %v857_v29 = vld [vmem:[%s983_s1 + $0x70] sm:$0xff] (!%p138_p2)   ;;  %v859_v42 = vld [vmem:[%s983_s1 + $0x78] sm:$0xff] (!%p138_p2)  }
   0xb   : > { %787 = vmatpush3.bf16.msra.mxu0 (!%p138_p2), %v843_v2 }
   0xc   : > { %799 = vmatpush3.bf16.msra.mxu1 (!%p138_p2), %v844_v3  ;;  %788 = vmatprep.subr.bf16.mxu0 (!%p138_p2), %v845_v4 }
   0xd   : > { %s987_s13 = smov (!%p161_p3, %s688_s13), 1  ;;  %800 = vmatprep.subr.bf16.mxu1 %v846_v5 }
   0xe   : > { %s756_s24 = sshll.u32 %s987_s13, 4  ;;  %s832_s27 = smul.u32 12, %s987_s13 }
   0xf   : > { %s923_s29 = scalar_lea.vmem %s982_s0, %s756_s24  ;;  %789 = vmatpush3.bf16.msra.mxu0 %v845_v4 }
  0x10   : > { %v849_v8 = vld [vmem:[%s923_s29] sm:$0xff]   ;;  %v850_v9 = vld [vmem:[%s923_s29 + $0x8] ss:$0 sps:$4 sm:$0x77]   ;;  %801 = vmatpush3.bf16.msra.mxu1 %v846_v5  ;;  %790 = vmatprep.subr.bf16.mxu0 %v847_v6  ;;  %s170_s30 = scalar_lea.vmem %s985_s3, %s832_s27 }
  0x11   : > { %v203_v11 = vshrl.u32 %v849_v8, 16  ;;  %v205_v12 = vshll.u32 %v849_v8, 16  ;;  %v210_v13 = vshll.u32 %v850_v9, 16  ;;  %v214_v14 = vshrl.u32 %v850_v9, 16  ;;  %804 = vmatprep.mubr.msk.bf16.mxu1 %vm241_vm0, %v849_v8  ;;  %802 = vmatprep.subr.bf16.mxu1 %v848_v7  ;;  %v376_v24 = vld [vmem:[%s923_s29] sm:$0xc] }
  0x12   : > { %v851_v17 = vld [vmem:[%s923_s29 + $0x8] ss:$0 sps:$4 sm:$0x33]   ;;  %v377_v25 = vld [vmem:[%s923_s29 + $0x4] sm:$0xf] }
  0x13   : > { %v207_v15 = vrot.slane %v205_v12, 1  ;;  %v212_v16 = vrot.slane %v210_v13, 1  ;;  %791 = vmatpush3.bf16.msra.mxu0 %v847_v6  ;;  %v727_v26 = vcombine.low %v376_v24, %v377_v25  ;;  %v861_v27 = vld [vmem:[%s923_s29 + $0x8] sm:$0x1f]   ;;  %v498_v30 = vld [vmem:[%s923_s29] sm:$0x8] }
  0x14   : > { %803 = vmatpush3.bf16.msra.mxu1 %v848_v7  ;;  %808 = vmatprep.subr.bf16.mxu0 %v852_v10  ;;  %v409_v33 = vshrl.u32 %v861_v27, 16  ;;  %v412_v34 = vshll.u32 %v861_v27, 16  ;;  %v743_v35 = vcombine.low %v498_v30, %v377_v25  ;;  %v513_v36 = vrot.slane %v861_v27, 3 }
  0x15   : > { %v208_v19 = vor.u32 %v207_v15, %v203_v11  ;;  %v216_v20 = vor.u32 %v214_v14, %v212_v16  ;;  %820 = vmatprep.subr.bf16.mxu1 %v853_v18  ;;  %v401_v31 = vshrl.u32 %v727_v26, 16  ;;  %v404_v32 = vshll.u32 %v727_v26, 16 }
  0x16   : > { %v411_v39 = vrot.slane %v409_v33, 2  ;;  %v414_v40 = vrot.slane %v412_v34, 3  ;;  %v512_v43 = vrot.slane %v743_v35, 3 }
  0x17   : > { %v213_v22 = vsel %vm201_vm1, %v208_v19, %v212_v16  ;;  %805 = vmatmul.mubr.msk.bf16.vlgmr.msra.gmra.mrb[0].mxu1 %vm241_vm0, %v851_v17  ;;  %v403_v37 = vrot.slane %v401_v31, 2  ;;  %v406_v38 = vrot.slane %v404_v32, 3 }
  0x18   : > { %792 = vmatprep.mubr.msk.bf16.mxu0 %vm241_vm0, %v213_v22  ;;  %821 = vmatpush3.bf16.msra.mxu1 %v853_v18  ;;  %v415_v45 = vor.u32 %v414_v40, %v411_v39  ;;  %v514_v46 = vsel %vm511_vm2, %v512_v43, %v513_v36 }
  0x19   : > { %793 = vmatmul.mubr.msk.bf16.vlgmr.msra.gmra.mrb[0].mxu0 %vm241_vm0, %v216_v20  ;;  %822 = vmatprep.subr.bf16.mxu1 %v855_v23  ;;  %v407_v44 = vor.u32 %v406_v38, %v403_v37 }
  0x1a   : > { %809 = vmatpush3.bf16.msra.mxu0 %v852_v10  ;;  %828 = vmatprep.mubr.msk.bf16.mxu1 %vm241_vm0, %v514_v46 }
  0x1b   : > { %810 = vmatprep.subr.bf16.mxu0 %v854_v21  ;;  %v416_v47 = vsel %vm399_vm3, %v407_v44, %v415_v45 }
  0x1c   : > { %823 = vmatpush3.bf16.msra.mxu1 %v855_v23  ;;  %816 = vmatprep.mubr.msk.bf16.mxu0 %vm241_vm0, %v416_v47 }
  0x1d   : > { %824 = vmatprep.subr.bf16.mxu1 %v857_v29 }
  0x1e   : > { %811 = vmatpush3.bf16.msra.mxu0 %v854_v21 }
  0x1f   : > { %812 = vmatprep.subr.bf16.mxu0 %v856_v28 }
  0x20   : > { %825 = vmatpush3.bf16.msra.mxu1 %v857_v29 }
  0x21   : > { %826 = vmatprep.subr.bf16.mxu1 %v859_v42 }
  0x22   : > { %813 = vmatpush3.bf16.msra.mxu0 %v856_v28 }
  0x23   : > { %814 = vmatprep.subr.bf16.mxu0 %v858_v41 }
  0x24   : > { %827 = vmatpush3.bf16.msra.mxu1 %v859_v42 }
  0x26   : > { %815 = vmatpush3.bf16.msra.mxu0 %v858_v41 }
  0x27   : > { %829 = vmatmul.mubr.msk.bf16.vlgmr.msra.gmra.mrb[4].mxu1 %vm241_vm0, %v513_v36 }
  0x29   : > { %817 = vmatmul.mubr.msk.bf16.vlgmr.msra.gmra.mrb[4].mxu0 %vm241_vm0, %v415_v45 }
  0xea   : > { %v806_v49 = vpop.f32.mrb[0].mxu1 }
  0xeb   : > { %v362_v52 = vpop.f32.mrb[1].mxu1 }
  0xec   : > { %v794_v48 = vpop.f32.mrb[0].mxu0  ;;  %v807_v55 = vpop.f32.mrb[2].mxu1 }
  0xed   : > { %v371_v50 = vadd.f32 %v806_v49, %v794_v48  ;;  %v282_v51 = vpop.f32.mrb[1].mxu0  ;;  %v365_v57 = vpop.f32.mrb[3].mxu1 }
  0xee   : > { %v363_v53 = vadd.f32 %v362_v52, %v282_v51  ;;  %v795_v54 = vpop.f32.mrb[2].mxu0 }
  0xef   : > { %v285_v56 = vpop.f32.mrb[3].mxu0 }
  0xf0   : > { %v366_v58 = vadd.f32 %v365_v57, %v285_v56 }
  0xfa   : > { %v830_v60 = vpop.f32.mrb[4].mxu1 }
  0xfb   : > { %v579_v63 = vpop.f32.mrb[5].mxu1 }
  0xfc   : > { %v818_v59 = vpop.f32.mrb[4].mxu0  ;;  %v831_v3 = vpop.f32.mrb[6].mxu1 }
  0xfd   : > { %v497_v61 = vadd.f32 %v818_v59, %v371_v50  ;;  %v481_v62 = vpop.f32.mrb[5].mxu0  ;;  %v582_v6 = vpop.f32.mrb[7].mxu1 }
  0xfe   : > { %v495_v1 = vadd.f32 %v481_v62, %v363_v53  ;;  %v819_v2 = vpop.f32.mrb[6].mxu0 }
  0xff   : > { %v595_v4 = vadd.f32 %v830_v60, %v497_v61  ;;  %v484_v5 = vpop.f32.mrb[7].mxu0 }
 0x100   : > { %v593_v7 = vadd.f32 %v579_v63, %v495_v1  ;;  %v496_v8 = vadd.f32 %v484_v5, %v366_v58 }
 0x101   : > { %v605_v9 = vadd.f32 %v750_v0, %v595_v4 }
 0x102   : > { %v603_v10 = vadd.f32 %v750_v0, %v593_v7  ;;  %v594_v11 = vadd.f32 %v582_v6, %v496_v8 }
 0x103   : > { %vm608_vm4 = vcmp.ge.f32.partialorder %v605_v9, 0.0  ;;  %v611_v12 = vmul.f32 0.01, %v605_v9 }
 0x104   : > { %vm606_vm5 = vcmp.ge.f32.partialorder %v603_v10, 0.0  ;;  %v609_v13 = vmul.f32 0.01, %v603_v10  ;;  %v604_v14 = vadd.f32 %v750_v0, %v594_v11 }
 0x105   : > { %v614_v15 = vsel %vm608_vm4, %v605_v9, %v611_v12 }
 0x106   : > { %v759_v16 = vpack.c.bf16 %v614_v15, %v614_v15  ;;  %v612_v17 = vsel %vm606_vm5, %v603_v10, %v609_v13  ;;  %vm607_vm8 = vcmp.ge.f32.partialorder %v604_v14, 0.0  ;;  %v610_v18 = vmul.f32 0.01, %v604_v14 }
 0x107   : > { %v757_v19 = vpack.c.bf16 %v612_v17, %v612_v17 }
 0x108   : > { %632 = vst.msk [vmem:[%s170_s30 + $0x8] sm:$0x3] %vm631_vm6, %v759_v16  ;;  %v613_v20 = vsel %vm607_vm8, %v604_v14, %v610_v18 }
 0x109   : > { %629 = vst.msk [vmem:[%s170_s30] sm:$0xf] %vm628_vm7, %v757_v19  ;;  %v758_v21 = vpack.c.bf16 %v613_v20, %v613_v20 }
 0x10b   : > { %630 = vst.msk [vmem:[%s170_s30 + $0x4] sm:$0xf] %vm628_vm7, %v758_v21 }
 0x10c PF: > { %s13_s12 = sadd.s32 1, %s869_s12  }
 0x10d   : > { %p10_p4 = scmp.ge.s32.totalorder %s13_s12, 4  }
 0x10f   :  { %12 = sbr.rel (!%p10_p4) target bundleno = 1 (0x1), region = 65 }

// kernel: vae_encoder_forward.11
= control target key start
LH: loop header
LB: loop body
LE: loop exit
PB: predicated region body
PF: predicated region fallthrough
CT: control target
= control target key end

     0   :  { %s1289_s12 = smov 0   ;;  %s1432_s0 = inlined_call_operand.vmem [shape: bf16[2,42,32], index: 0, kind: input, shape index: {}]   ;;  %s1433_s1 = inlined_call_operand.vmem [shape: bf16[9,32,8], index: 1, kind: input, shape index: {}]   ;;  %s1434_s2 = inlined_call_operand.vmem [shape: f32[1,8], index: 2, kind: input, shape index: {}]   ;;  %s1435_s3 = inlined_call_operand.vmem [shape: f32[2,24,8], index: 3, kind: output, shape index: {}]  }
   0x1 LB: > { %s1022_s13 = sadd.s32 4294967295, %s1267_s12   ;;  %p1026_p0 = scmp.ge.s32.totalorder %s1267_s12, 1  ;;  %s1267_s12 = sphi %s1289_s12, %s13_s12  }
   0x2   : > { %p137_p1 = scmp.lt.s32.totalorder %s1267_s12, 3 }
   0x4   : > { %p138_p2 = pnand %p1026_p0, %p137_p1 }
   0x5   : > { %v1230_v0 = vld [vmem:[%s1433_s1 + $0x10] sm:$0xff] (!%p138_p2)   ;;  %p161_p3 = scmp.lt.s32.totalorder (!%p138_p2), %s1022_s13, 1  ;;  %v1231_v1 = vld [vmem:[%s1433_s1] sm:$0xff] (!%p138_p2)   ;;  %v1232_v2 = vld [vmem:[%s1433_s1 + $0x18] sm:$0xff] (!%p138_p2)   ;;  %vm223_vm0 = vcmask (!%p138_p2), 261120   ;;  %vm353_vm2 = vcmask (!%p138_p2), 1046528  }
   0x6   : > { %141 = sbr.rel (%p138_p2) target bundleno = 280 (0x118), region = 32  ;;  %1149 = vmatprep.subr.bf16.mxu0 (!%p138_p2), %v1230_v0  ;;  %1157 = vmatprep.subr.bf16.mxu1 (!%p138_p2), %v1231_v1  ;;  %v1233_v3 = vld [vmem:[%s1433_s1 + $0x8] sm:$0xff] (!%p138_p2)   ;;  %v1236_v4 = vld [vmem:[%s1433_s1 + $0x20] sm:$0xff] (!%p138_p2)   ;;  %v1238_v5 = vld [vmem:[%s1433_s1 + $0x30] sm:$0xff] (!%p138_p2)   ;;  %vm195_vm1 = vsmask.f32 (!%p138_p2), 7424 }
   0x7   : > { %1150 = vmatpush3.bf16.msra.mxu0 (!%p138_p2), %v1230_v0  ;;  %1158 = vmatpush3.bf16.msra.mxu1 (!%p138_p2), %v1231_v1  ;;  %v1240_v13 = vld [vmem:[%s1433_s1 + $0x38] sm:$0xff] (!%p138_p2)   ;;  %v1245_v28 = vld [vmem:[%s1433_s1 + $0x50] sm:$0xff] (!%p138_p2)   ;;  %vm439_vm3 = vcmask (!%p138_p2), 1044480   ;;  %v1239_v36 = vld [vmem:[%s1433_s1 + $0x28] sm:$0xff] (!%p138_p2)   ;;  %vm521_vm4 = vsmask.f32 (!%p138_p2), 4352 }
   0x8   : > { %1151 = vmatprep.subr.bf16.mxu0 (!%p138_p2), %v1232_v2  ;;  %1159 = vmatprep.subr.bf16.mxu1 (!%p138_p2), %v1233_v3  ;;  %v1247_v42 = vld [vmem:[%s1433_s1 + $0x58] sm:$0xff] (!%p138_p2)   ;;  %v1242_v46 = vld [vmem:[%s1433_s1 + $0x40] sm:$0xff] (!%p138_p2)   ;;  %v1252_v50 = vld [vmem:[%s1433_s1 + $0x70] sm:$0xff] (!%p138_p2)   ;;  %vm785_vm5 = vsmask.f32 (!%p138_p2), 5376  ;;  %vm703_vm6 = vcmask (!%p138_p2), 1045504  }
   0x9   : > { %v1246_v61 = vld [vmem:[%s1433_s1 + $0x48] sm:$0xff] (!%p138_p2)   ;;  %vm963_vm7 = vcmask (!%p138_p2), 64512  }
   0xb   : > { %1152 = vmatpush3.bf16.msra.mxu0 (!%p138_p2), %v1232_v2  ;;  %1160 = vmatpush3.bf16.msra.mxu1 (!%p138_p2), %v1233_v3 }
   0xc   : > { %1165 = vmatprep.subr.bf16.mxu0 (!%p138_p2), %v1236_v4  ;;  %1173 = vmatprep.subr.bf16.mxu1 (!%p138_p2), %v1238_v5 }
   0xd   : > { %s1437_s13 = smov (!%p161_p3, %s1022_s13), 1 }
   0xe   : > { %s1221_s22 = smul.u32 24, %s1437_s13 }
  0x10   : > { %s1320_s27 = scalar_lea.vmem %s1432_s0, %s1221_s22  ;;  %s170_s7 = scalar_lea.vmem %s1435_s3, %s1221_s22 }
  0x11   : > { %v172_v6 = vld [vmem:[%s1320_s27] sm:$0xf]  ;;  %v1327_v7 = vld [vmem:[%s1320_s27 + $0x4] sm:$0xf]  ;;  %v1330_v8 = vld [vmem:[%s1320_s27 + $0x8] sm:$0xf] }
  0x12   : > { %v179_v9 = vld [vmem:[%s1320_s27 + $0xc] sm:$0x1]  ;;  %v1033_v10 = vcombine.low %v172_v6, %v1327_v7  ;;  %v1039_v11 = vcombine.low %v1330_v8, %v1330_v8  ;;  %v344_v14 = vld [vmem:[%s1320_s27] sm:$0xe]  ;;  %v1076_v41 = vcombine.low %v1327_v7, %v1330_v8  ;;  %v684_v52 = vld [vmem:[%s1320_s27 + $0x4] sm:$0xc] }
  0x13   : > { %v1337_v12 = vcombine.low %v1330_v8, %v179_v9  ;;  %v1048_v17 = vcombine.low %v344_v14, %v1327_v7  ;;  %v426_v21 = vld [vmem:[%s1320_s27] sm:$0x8]  ;;  %v427_v24 = vld [vmem:[%s1320_s27 + $0xc] sm:$0x7]  ;;  %v685_v53 = vld [vmem:[%s1320_s27 + $0x8] sm:$0xf] }
  0x14   : > { %v197_v15 = vshrl.u32 %v1033_v10, 16  ;;  %v199_v16 = vshll.u32 %v1033_v10, 16  ;;  %1161 = vmatprep.mubr.msk.bf16.mxu1 %vm223_vm0, %v1033_v10  ;;  %v1057_v25 = vcombine.low %v426_v21, %v1327_v7  ;;  %v1058_v27 = vcombine.low %v1330_v8, %v427_v24  ;;  %v512_v34 = vld [vmem:[%s1320_s27 + $0xc] sm:$0xf]  ;;  %v687_v56 = vld [vmem:[%s1320_s27 + $0x10] sm:$0x3] }
  0x15   : > { %v204_v18 = vshll.u32 %v1337_v12, 16  ;;  %v208_v19 = vshrl.u32 %v1337_v12, 16  ;;  %1162 = vmatmul.mubr.msk.bf16.vlgmr.msra.gmra.mrb[0].mxu1 %vm223_vm0, %v1039_v11  ;;  %v355_v20 = vrot.slane %v1337_v12, 1  ;;  %v354_v23 = vrot.slane %v1048_v17, 1  ;;  %v686_v54 = vld [vmem:[%s1320_s27 + $0xc] sm:$0xf] }
  0x16   : > { %v201_v22 = vrot.slane %v199_v16, 1  ;;  %1174 = vmatpush3.bf16.msra.mxu1 %v1238_v5  ;;  %v440_v30 = vrot.slane %v1057_v25, 3  ;;  %v441_v33 = vrot.slane %v1058_v27, 3  ;;  %v1067_v37 = vcombine.low %v1330_v8, %v512_v34  ;;  %v776_v58 = vld [vmem:[%s1320_s27 + $0x10] sm:$0x7]  ;;  %v1249_v9 = vld [vmem:[%s1433_s1 + $0x60] sm:$0xff]  }
  0x17   : > { %v206_v26 = vrot.slane %v204_v18, 1  ;;  %1175 = vmatprep.subr.bf16.mxu1 %v1240_v13  ;;  %v356_v32 = vsel %vm353_vm2, %v354_v23, %v355_v20  ;;  %v523_v38 = vshrl.u32 %v1057_v25, 16  ;;  %v526_v40 = vshll.u32 %v1057_v25, 16  ;;  %v872_v14 = vld [vmem:[%s1320_s27 + $0x4] sm:$0x8]  ;;  %v1253_v16 = vld [vmem:[%s1433_s1 + $0x68] sm:$0xff]  }
  0x18   : > { %v202_v29 = vor.u32 %v201_v22, %v197_v15  ;;  %v442_v39 = vsel %vm439_vm3, %v440_v30, %v441_v33  ;;  %v531_v44 = vshrl.u32 %v1067_v37, 16  ;;  %v534_v45 = vshll.u32 %v1067_v37, 16  ;;  %v1259_v22 = vld [vmem:[%s1433_s1 + $0x88] sm:$0xff]  }
  0x19   : > { %v210_v31 = vor.u32 %v208_v19, %v206_v26  ;;  %1177 = vmatprep.mubr.msk.bf16.mxu1 %vm223_vm0, %v442_v39  ;;  %v525_v43 = vrot.slane %v523_v38, 3  ;;  %v528_v47 = vrot.slane %v526_v40, 4  ;;  %v1086_v57 = vcombine.low %v684_v52, %v685_v53  ;;  %v1258_v19 = vld [vmem:[%s1433_s1 + $0x80] sm:$0xff]  }
  0x1a   : > { %v207_v35 = vsel %vm195_vm1, %v202_v29, %v206_v26  ;;  %1176 = vmatpush3.bf16.msra.mxu1 %v1240_v13  ;;  %v533_v48 = vrot.slane %v531_v44, 3  ;;  %v536_v49 = vrot.slane %v534_v45, 4  ;;  %v1077_v59 = vcombine.low %v512_v34, %v512_v34 }
  0x1b   : > { %1153 = vmatprep.mubr.msk.bf16.mxu0 %vm223_vm0, %v207_v35  ;;  %1189 = vmatprep.subr.bf16.mxu1 %v1245_v28  ;;  %v529_v51 = vor.u32 %v528_v47, %v525_v43  ;;  %v1096_v60 = vcombine.low %v686_v54, %v776_v58  ;;  %v1087_v63 = vcombine.low %v686_v54, %v687_v56  ;;  %v787_v0 = vshrl.u32 %v1086_v57, 16 }
  0x1c   : > { %1154 = vmatmul.mubr.msk.bf16.vlgmr.msra.gmra.mrb[0].mxu0 %vm223_vm0, %v210_v31  ;;  %v537_v55 = vor.u32 %v536_v49, %v533_v48  ;;  %v790_v1 = vshll.u32 %v1086_v57, 16  ;;  %v704_v10 = vrot.slane %v1086_v57, 2  ;;  %v1105_v18 = vcombine.low %v872_v14, %v685_v53  ;;  %v1110_v14 = vld [vmem:[%s1434_s2] ss:$0 sm:$0xff] }
  0x1d   : > { %1166 = vmatpush3.bf16.msra.mxu0 %v1236_v4  ;;  %1169 = vmatprep.mubr.msk.bf16.mxu0 %vm223_vm0, %v356_v32  ;;  %v795_v2 = vshrl.u32 %v1096_v60, 16  ;;  %v798_v3 = vshll.u32 %v1096_v60, 16  ;;  %v1254_v4 = vld [vmem:[%s1433_s1 + $0x78] sm:$0xff]   ;;  %v789_v5 = vrot.slane %v787_v0, 2  ;;  %v705_v11 = vrot.slane %v1087_v63, 2 }
  0x1e   : > { %1167 = vmatprep.subr.bf16.mxu0 %v1239_v36  ;;  %1178 = vmatmul.mubr.msk.bf16.vlgmr.msra.gmra.mrb[4].mxu1 %vm223_vm0, %v441_v33  ;;  %v538_v62 = vsel %vm521_vm4, %v529_v51, %v537_v55  ;;  %v792_v6 = vrot.slane %v790_v1, 3  ;;  %v882_v21 = vrot.slane %v1096_v60, 3 }
  0x1f   : > { %1190 = vmatpush3.bf16.msra.mxu1 %v1245_v28  ;;  %1193 = vmatprep.mubr.msk.bf16.mxu1 %vm223_vm0, %v1076_v41  ;;  %v797_v7 = vrot.slane %v795_v2, 2  ;;  %v800_v8 = vrot.slane %v798_v3, 3  ;;  %v706_v17 = vsel %vm703_vm6, %v704_v10, %v705_v11 }
  0x20   : > { %1191 = vmatprep.subr.bf16.mxu1 %v1247_v42  ;;  %v793_v12 = vor.u32 %v792_v6, %v789_v5 }
  0x21   : > { %1168 = vmatpush3.bf16.msra.mxu0 %v1239_v36  ;;  %v801_v13 = vor.u32 %v800_v8, %v797_v7 }
  0x22   : > { %1181 = vmatprep.subr.bf16.mxu0 %v1242_v46 }
  0x23   : > { %1192 = vmatpush3.bf16.msra.mxu1 %v1247_v42  ;;  %v802_v15 = vsel %vm785_vm5, %v793_v12, %v801_v13 }
  0x24   : > { %1170 = vmatmul.mubr.msk.bf16.vlgmr.msra.gmra.mrb[4].mxu0 %vm223_vm0, %v355_v20  ;;  %1205 = vmatprep.subr.bf16.mxu1 %v1252_v50  ;;  %v881_v20 = vrot.slane %v1105_v18, 3 }
  0x25   : > { %1182 = vmatpush3.bf16.msra.mxu0 %v1242_v46  ;;  %1185 = vmatprep.mubr.msk.bf16.mxu0 %vm223_vm0, %v538_v62 }
  0x26   : > { %1183 = vmatprep.subr.bf16.mxu0 %v1246_v61  ;;  %1194 = vmatmul.mubr.msk.bf16.vlgmr.msra.gmra.mrb[8].mxu1 %vm223_vm0, %v1077_v59  ;;  %v883_v23 = vsel %vm439_vm3, %v881_v20, %v882_v21 }
  0x27   : > { %1206 = vmatpush3.bf16.msra.mxu1 %v1252_v50  ;;  %1209 = vmatprep.mubr.msk.bf16.mxu1 %vm223_vm0, %v802_v15 }
  0x28   : > { %1207 = vmatprep.subr.bf16.mxu1 %v1254_v4 }
  0x29   : > { %1184 = vmatpush3.bf16.msra.mxu0 %v1246_v61 }
  0x2a   : > { %1197 = vmatprep.subr.bf16.mxu0 %v1249_v9 }
  0x2b   : > { %1208 = vmatpush3.bf16.msra.mxu1 %v1254_v4 }
  0x2c   : > { %1186 = vmatmul.mubr.msk.bf16.vlgmr.msra.gmra.mrb[8].mxu0 %vm223_vm0, %v537_v55 }
  0x2d   : > { %1198 = vmatpush3.bf16.msra.mxu0 %v1249_v9  ;;  %1201 = vmatprep.mubr.msk.bf16.mxu0 %vm223_vm0, %v706_v17 }
  0x2e   : > { %1199 = vmatprep.subr.bf16.mxu0 %v1253_v16  ;;  %1210 = vmatmul.mubr.msk.bf16.vlgmr.msra.gmra.mrb[12].mxu1 %vm223_vm0, %v801_v13 }
  0x31   : > { %1200 = vmatpush3.bf16.msra.mxu0 %v1253_v16 }
  0x32   : > { %1213 = vmatprep.subr.bf16.mxu0 %v1258_v19 }
  0x34   : > { %1202 = vmatmul.mubr.msk.bf16.vlgmr.msra.gmra.mrb[12].mxu0 %vm223_vm0, %v705_v11 }
  0x35   : > { %1214 = vmatpush3.bf16.msra.mxu0 %v1258_v19  ;;  %1217 = vmatprep.mubr.msk.bf16.mxu0 %vm223_vm0, %v883_v23 }
  0x36   : > { %1215 = vmatprep.subr.bf16.mxu0 %v1259_v22 }
  0x39   : > { %1216 = vmatpush3.bf16.msra.mxu0 %v1259_v22 }
  0x3c   : > { %1218 = vmatmul.mubr.msk.bf16.vlgmr.msra.gmra.mrb[16].mxu0 %vm223_vm0, %v882_v21 }
  0xe8   : > { %v1163_v24 = vpop.f32.mrb[0].mxu1 }
  0xe9   : > { %v330_v25 = vpop.f32.mrb[1].mxu1 }
  0xea   : > { %v1164_v26 = vpop.f32.mrb[2].mxu1 }
  0xeb   : > { %v333_v27 = vpop.f32.mrb[3].mxu1 }
  0xef   : > { %v1155_v28 = vpop.f32.mrb[0].mxu0 }
  0xf0   : > { %v339_v29 = vadd.f32 %v1163_v24, %v1155_v28  ;;  %v264_v30 = vpop.f32.mrb[1].mxu0 }
  0xf1   : > { %v331_v31 = vadd.f32 %v330_v25, %v264_v30  ;;  %v1156_v32 = vpop.f32.mrb[2].mxu0  ;;  %v1179_v33 = vpop.f32.mrb[4].mxu1 }
  0xf2   : > { %v267_v34 = vpop.f32.mrb[3].mxu0  ;;  %v495_v35 = vpop.f32.mrb[5].mxu1 }
  0xf3   : > { %v334_v36 = vadd.f32 %v333_v27, %v267_v34  ;;  %v1180_v37 = vpop.f32.mrb[6].mxu1 }
  0xf4   : > { %v498_v38 = vpop.f32.mrb[7].mxu1 }
  0xf7   : > { %v1171_v39 = vpop.f32.mrb[4].mxu0 }
  0xf8   : > { %v425_v40 = vadd.f32 %v1171_v39, %v339_v29  ;;  %v409_v41 = vpop.f32.mrb[5].mxu0 }
  0xf9   : > { %v423_v42 = vadd.f32 %v409_v41, %v331_v31  ;;  %v1172_v43 = vpop.f32.mrb[6].mxu0  ;;  %v1195_v44 = vpop.f32.mrb[8].mxu1 }
  0xfa   : > { %v511_v45 = vadd.f32 %v1179_v33, %v425_v40  ;;  %v412_v46 = vpop.f32.mrb[7].mxu0  ;;  %v667_v47 = vpop.f32.mrb[9].mxu1 }
  0xfb   : > { %v424_v48 = vadd.f32 %v412_v46, %v334_v36  ;;  %v509_v49 = vadd.f32 %v495_v35, %v423_v42  ;;  %v1196_v50 = vpop.f32.mrb[10].mxu1 }
  0xfc   : > { %v670_v51 = vpop.f32.mrb[11].mxu1 }
  0xfd   : > { %v510_v52 = vadd.f32 %v498_v38, %v424_v48 }
  0xff   : > { %v1187_v53 = vpop.f32.mrb[8].mxu0 }
 0x100   : > { %v607_v54 = vadd.f32 %v1187_v53, %v511_v45  ;;  %v591_v55 = vpop.f32.mrb[9].mxu0 }
 0x101   : > { %v605_v56 = vadd.f32 %v591_v55, %v509_v49  ;;  %v1188_v57 = vpop.f32.mrb[10].mxu0  ;;  %v1211_v58 = vpop.f32.mrb[12].mxu1 }
 0x102   : > { %v683_v59 = vadd.f32 %v1195_v44, %v607_v54  ;;  %v594_v60 = vpop.f32.mrb[11].mxu0  ;;  %v855_v61 = vpop.f32.mrb[13].mxu1 }
 0x103   : > { %v606_v62 = vadd.f32 %v594_v60, %v510_v52  ;;  %v681_v63 = vadd.f32 %v667_v47, %v605_v56  ;;  %v1212_v0 = vpop.f32.mrb[14].mxu1 }
 0x104   : > { %v858_v1 = vpop.f32.mrb[15].mxu1 }
 0x105   : > { %v682_v2 = vadd.f32 %v670_v51, %v606_v62 }
 0x107   : > { %v1203_v3 = vpop.f32.mrb[12].mxu0 }
 0x108   : > { %v775_v4 = vadd.f32 %v1203_v3, %v683_v59  ;;  %v759_v5 = vpop.f32.mrb[13].mxu0 }
 0x109   : > { %v773_v6 = vadd.f32 %v759_v5, %v681_v63  ;;  %v1204_v7 = vpop.f32.mrb[14].mxu0 }
 0x10a   : > { %v871_v8 = vadd.f32 %v1211_v58, %v775_v4  ;;  %v762_v9 = vpop.f32.mrb[15].mxu0 }
 0x10b   : > { %v774_v10 = vadd.f32 %v762_v9, %v682_v2  ;;  %v869_v11 = vadd.f32 %v855_v61, %v773_v6 }
 0x10d   : > { %v870_v12 = vadd.f32 %v858_v1, %v774_v10 }
 0x10f   : > { %v1219_v13 = vpop.f32.mrb[16].mxu0 }
 0x110   : > { %v952_v15 = vadd.f32 %v1219_v13, %v871_v8  ;;  %v936_v16 = vpop.f32.mrb[17].mxu0 }
 0x111   : > { %v950_v17 = vadd.f32 %v936_v16, %v869_v11  ;;  %v1220_v18 = vpop.f32.mrb[18].mxu0 }
 0x112   : > { %v962_v19 = vadd.f32 %v1110_v14, %v952_v15  ;;  %v939_v20 = vpop.f32.mrb[19].mxu0 }
 0x113   : > { %v960_v21 = vadd.f32 %v1110_v14, %v950_v17  ;;  %v951_v22 = vadd.f32 %v939_v20, %v870_v12 }
 0x114   : > { %966 = vst.msk [vmem:[%s170_s7 + $0x10] sm:$0xff] %vm963_vm7, %v962_v19 }
 0x115   : > { %964 = vst.msk [vmem:[%s170_s7] sm:$0xff] %vm963_vm7, %v960_v21  ;;  %v961_v23 = vadd.f32 %v1110_v14, %v951_v22 }
 0x117   : > { %965 = vst.msk [vmem:[%s170_s7 + $0x8] sm:$0xff] %vm963_vm7, %v961_v23 }
 0x118 PF: > { %s13_s12 = sadd.s32 1, %s1267_s12  }
 0x119   : > { %p10_p4 = scmp.ge.s32.totalorder %s13_s12, 4  }
 0x11b   :  { %12 = sbr.rel (!%p10_p4) target bundleno = 1 (0x1), region = 70 }

</bundles_post_ra>
